<compile_context>
chip_gen: v6e
topology: v6e:2x2x1
jax: 0.10.0
libtpu: 0.0.40
codegen_flags: <defaults>
</compile_context>

<pallas_src>
import jax
import jax.numpy as jnp
from jax.experimental import pallas as pl
from jax.experimental.pallas import tpu as pltpu

F1, F2, F3, BOTTLENECK = 64, 32, 16, 16


def gcn_cn_v3_kernel(adj_ref, x_ref,
                     w1_ref, b1_ref, w2_ref, b2_ref, w3_ref, b3_ref,
                     watt_ref, wfc_ref, bfc_ref, wsc_ref, bsc_ref,
                     out_ref):
    adj = adj_ref[...]                                   # (GB, N, N)
    x = x_ref[...]                                       # (GB, N, Fin)
    gb, n, _ = adj.shape

    # --- symmetric GCN normalization, never materializing A+I or A_hat ---
    #   A_hat @ H = d * (A @ (d * H)) + d^2 * H,  d = (deg + 1)^(-1/2)
    deg = jnp.sum(adj, axis=2, keepdims=True) + 1.0      # (GB, N, 1)
    d = jax.lax.rsqrt(deg)
    d2 = d * d

    def propagate(h):
        ah = jnp.einsum('gij,gjf->gif', adj, d * h,
                        preferred_element_type=jnp.float32)
        return d * ah + d2 * h

    def project(h, w_ref):
        # Pack (graph, node) into the M axis -> one dense MXU matmul.
        w = w_ref[...]
        f_in, f_out = w.shape
        y = jnp.dot(h.reshape(gb * n, f_in), w,
                    preferred_element_type=jnp.float32)
        return y.reshape(gb, n, f_out)

    # TODO(synk): dropout is identity here (inference path, training=False).
    # layer 1: propagate on the narrower F_in=32 first, then project to 64
    h = jnp.maximum(project(propagate(x), w1_ref) + b1_ref[...], 0.0)
    # layers 2/3: project to the narrower output first, then propagate
    h = jnp.maximum(propagate(project(h, w2_ref)) + b2_ref[...], 0.0)
    h = jnp.maximum(propagate(project(h, w3_ref)) + b3_ref[...], 0.0)

    # --- AttentionModule pooling (per graph) ---
    # TODO(synk): if graphs were padded to a common node count, the node-axis
    # reductions below would need masking to the real per-graph node count.
    ew = project(h, watt_ref)                             # (GB, N, F3)
    global_ctx = jnp.mean(ew, axis=1, keepdims=True)      # (GB, 1, F3)
    transformed = jnp.tanh(global_ctx)                    # (GB, 1, F3)
    sig = jax.nn.sigmoid(
        jnp.sum(h * transformed, axis=2, keepdims=True))  # (GB, N, 1)
    pooled = jnp.sum(h * sig, axis=1)                     # (GB, F3)

    # --- MLP head ---
    hid = jnp.maximum(
        jnp.dot(pooled, wfc_ref[...], preferred_element_type=jnp.float32)
        + bfc_ref[...], 0.0)                              # (GB, 16)
    scores = (jnp.dot(hid, wsc_ref[...], preferred_element_type=jnp.float32)
              + bsc_ref[...])                             # (GB, C)

    # --- log_softmax along dim=1 ---
    m = jnp.max(scores, axis=1, keepdims=True)
    z = scores - m
    lse = jnp.log(jnp.sum(jnp.exp(z), axis=1, keepdims=True))
    out_ref[...] = z - lse


def gcn_cn_v3_forward(adj, features, params, num_classes, graphs_per_block=8):
    g_total, n, f_in = features.shape
    gb = min(graphs_per_block, g_total)
    assert g_total % gb == 0, "batch must be divisible by graphs_per_block"

    weight_args = (params["w1"], params["b1"],
                   params["w2"], params["b2"],
                   params["w3"], params["b3"],
                   params["watt"],
                   params["wfc"], params["bfc"],
                   params["wsc"], params["bsc"])

    graph_map = lambda g: (g, 0, 0)
    resident_map = lambda g: (0, 0)   # same block every step -> stays in VMEM

    in_specs = [pl.BlockSpec((gb, n, n), graph_map),
                pl.BlockSpec((gb, n, f_in), graph_map)]
    in_specs += [pl.BlockSpec(w.shape, resident_map) for w in weight_args]
    out_specs = pl.BlockSpec((gb, num_classes), lambda g: (g, 0))

    flops_per_graph = (
        2 * n * n * f_in + 2 * n * f_in * F1 +     # layer 1
        2 * n * F1 * F2 + 2 * n * n * F2 +         # layer 2
        2 * n * F2 * F3 + 2 * n * n * F3 +         # layer 3
        2 * n * F3 * F3 + 6 * n * F3 +             # attention pooling
        2 * F3 * BOTTLENECK + 2 * BOTTLENECK * num_classes)
    bytes_accessed = 4 * (adj.size + features.size + g_total * num_classes
                          + sum(int(w.size) for w in weight_args))
    cost = pl.CostEstimate(
        flops=int(g_total * flops_per_graph),
        transcendentals=int(g_total * (2 * n + F3 + num_classes)),
        bytes_accessed=int(bytes_accessed))

    return pl.pallas_call(
        gcn_cn_v3_kernel,
        out_shape=jax.ShapeDtypeStruct((g_total, num_classes), jnp.float32),
        grid=(g_total // gb,),
        in_specs=in_specs,
        out_specs=out_specs,
        compiler_params=pltpu.CompilerParams(
            dimension_semantics=("parallel",)),
        cost_estimate=cost,
    )(adj, features, *weight_args)


def _reference_single(adj, x, p):
    """Pure-JAX reference of the original PyTorch math (single graph)."""
    n = adj.shape[0]
    a_tilde = adj + jnp.eye(n, dtype=adj.dtype)
    d = jax.lax.rsqrt(jnp.sum(a_tilde, axis=1, keepdims=True))
    a_hat = d * a_tilde * d.reshape(1, n)

    def layer(h, w, b):
        return jax.nn.relu(a_hat @ (h @ w) + b)

    h = layer(x, p["w1"], p["b1"])
    h = layer(h, p["w2"], p["b2"])
    h = layer(h, p["w3"], p["b3"])
    gc = jnp.mean(h @ p["watt"], axis=0)
    tg = jnp.tanh(gc)
    sig = jax.nn.sigmoid(h @ tg.reshape(-1, 1))
    pooled = (h.T @ sig).T                                 # (1, 16)
    hid = jax.nn.relu(pooled @ p["wfc"] + p["bfc"])
    scores = hid @ p["wsc"] + p["bsc"]
    return jax.nn.log_softmax(scores, axis=1)[0]           # (C,)


if __name__ == "__main__":
    G = 16                 # graphs in the batch (2 grid steps of 8)
    N = 64                 # nodes per graph
    FEATURE_DIM = 32       # feature_dim_size
    NUM_CLASSES = 4

    key = jax.random.PRNGKey(0)
    keys = jax.random.split(key, 12)

    # Dense symmetric adjacency per graph (no self loops; kernel adds them).
    a = (jax.random.uniform(keys[0], (G, N, N)) < 0.15).astype(jnp.float32)
    adj = jnp.maximum(a, jnp.swapaxes(a, 1, 2)) * (1.0 - jnp.eye(N, dtype=jnp.float32))
    features = jax.random.normal(keys[1], (G, N, FEATURE_DIM), dtype=jnp.float32)

    def glorot(k, shape):
        fan_in, fan_out = shape
        lim = jnp.sqrt(6.0 / (fan_in + fan_out))
        return jax.random.uniform(k, shape, jnp.float32, -lim, lim)

    params = {
        "w1": glorot(keys[2], (FEATURE_DIM, F1)), "b1": jnp.zeros((1, F1), jnp.float32),
        "w2": glorot(keys[3], (F1, F2)),          "b2": jnp.zeros((1, F2), jnp.float32),
        "w3": glorot(keys[4], (F2, F3)),          "b3": jnp.zeros((1, F3), jnp.float32),
        "watt": glorot(keys[5], (F3, F3)),
        "wfc": glorot(keys[6], (F3, BOTTLENECK)),
        "bfc": 0.01 * jax.random.normal(keys[7], (1, BOTTLENECK), jnp.float32),
        "wsc": glorot(keys[8], (BOTTLENECK, NUM_CLASSES)),
        "bsc": 0.01 * jax.random.normal(keys[9], (1, NUM_CLASSES), jnp.float32),
    }

    out = gcn_cn_v3_forward(adj, features, params, NUM_CLASSES, graphs_per_block=8)
    out = jax.block_until_ready(out)

    ref = jax.vmap(lambda a_i, x_i: _reference_single(a_i, x_i, params))(adj, features)
    assert out.shape == (G, NUM_CLASSES)
    assert jnp.allclose(out, ref, atol=1e-3, rtol=1e-3), (out, ref)
    print("KERNEL_OK")
</pallas_src>

<mosaic_0001>
module attributes {stable_mosaic.version = 11 : i64} {
  func.func @gcn_cn_v3_kernel(%arg0: i32, %arg1: memref<8x64x64xf32, #tpu.memory_space<vmem>>, %arg2: memref<8x64x32xf32, #tpu.memory_space<vmem>>, %arg3: memref<32x64xf32, #tpu.memory_space<vmem>>, %arg4: memref<1x64xf32, #tpu.memory_space<vmem>>, %arg5: memref<64x32xf32, #tpu.memory_space<vmem>>, %arg6: memref<1x32xf32, #tpu.memory_space<vmem>>, %arg7: memref<32x16xf32, #tpu.memory_space<vmem>>, %arg8: memref<1x16xf32, #tpu.memory_space<vmem>>, %arg9: memref<16x16xf32, #tpu.memory_space<vmem>>, %arg10: memref<16x16xf32, #tpu.memory_space<vmem>>, %arg11: memref<1x16xf32, #tpu.memory_space<vmem>>, %arg12: memref<16x4xf32, #tpu.memory_space<vmem>>, %arg13: memref<1x4xf32, #tpu.memory_space<vmem>>, %arg14: memref<8x4xf32, #tpu.memory_space<vmem>>) attributes {dimension_semantics = [#tpu.dimension_semantics<parallel>], iteration_bounds = array<i64: 2>, scalar_prefetch = 0 : i64, scratch_operands = 0 : i64, tpu.core_type = #tpu.core_type<tc>, window_params = [{transform_indices = @transform_0, window_bounds = array<i64: 8, 64, 64>}, {transform_indices = @transform_1, window_bounds = array<i64: 8, 64, 32>}, {pipeline_mode = #tpu.pipeline_mode<synchronous>, transform_indices = @transform_2, window_bounds = array<i64: 32, 64>}, {pipeline_mode = #tpu.pipeline_mode<synchronous>, transform_indices = @transform_3, window_bounds = array<i64: 1, 64>}, {pipeline_mode = #tpu.pipeline_mode<synchronous>, transform_indices = @transform_4, window_bounds = array<i64: 64, 32>}, {pipeline_mode = #tpu.pipeline_mode<synchronous>, transform_indices = @transform_5, window_bounds = array<i64: 1, 32>}, {pipeline_mode = #tpu.pipeline_mode<synchronous>, transform_indices = @transform_6, window_bounds = array<i64: 32, 16>}, {pipeline_mode = #tpu.pipeline_mode<synchronous>, transform_indices = @transform_7, window_bounds = array<i64: 1, 16>}, {pipeline_mode = #tpu.pipeline_mode<synchronous>, transform_indices = @transform_8, window_bounds = array<i64: 16, 16>}, {pipeline_mode = #tpu.pipeline_mode<synchronous>, transform_indices = @transform_9, window_bounds = array<i64: 16, 16>}, {pipeline_mode = #tpu.pipeline_mode<synchronous>, transform_indices = @transform_10, window_bounds = array<i64: 1, 16>}, {pipeline_mode = #tpu.pipeline_mode<synchronous>, transform_indices = @transform_11, window_bounds = array<i64: 16, 4>}, {pipeline_mode = #tpu.pipeline_mode<synchronous>, transform_indices = @transform_12, window_bounds = array<i64: 1, 4>}, {transform_indices = @transform_13, window_bounds = array<i64: 8, 4>}]} {
    %c0 = arith.constant 0 : index
    %c0_0 = arith.constant 0 : index
    %c0_1 = arith.constant 0 : index
    %0 = vector.load %arg1[%c0, %c0_0, %c0_1] : memref<8x64x64xf32, #tpu.memory_space<vmem>>, vector<8x64x64xf32>
    %c0_2 = arith.constant 0 : index
    %c0_3 = arith.constant 0 : index
    %c0_4 = arith.constant 0 : index
    %1 = vector.load %arg2[%c0_2, %c0_3, %c0_4] : memref<8x64x32xf32, #tpu.memory_space<vmem>>, vector<8x64x32xf32>
    %cst = arith.constant dense<0.000000e+00> : vector<8x64xf32>
    %2 = vector.multi_reduction <add>, %0, %cst [2] : vector<8x64x64xf32> to vector<8x64xf32>
    %3 = vector.shape_cast %2 : vector<8x64xf32> to vector<8x64x1xf32>
    %cst_5 = arith.constant 1.000000e+00 : f32
    %4 = vector.broadcast %cst_5 : f32 to vector<8x64x1xf32>
    %5 = arith.addf %3, %4 : vector<8x64x1xf32>
    %6 = math.rsqrt %5 : vector<8x64x1xf32>
    %7 = arith.mulf %6, %6 : vector<8x64x1xf32>
    %8 = vector.broadcast %6 : vector<8x64x1xf32> to vector<8x64x32xf32>
    %9 = arith.mulf %8, %1 : vector<8x64x32xf32>
    "tpu.trace_start"() <{level = 10 : i32, message = "gij,gjf->gif"}> : () -> ()
    %cst_6 = arith.constant dense<0.000000e+00> : vector<8x64x32xf32>
    %10 = tpu.matmul %0, %9, %cst_6 {dimension_numbers = #tpu.dot_dimension_numbers<[2], [1], [1], [2], [0, 0, 0, 1, 1, 2], [0], [0]>} : vector<8x64x64xf32>, vector<8x64x32xf32>, vector<8x64x32xf32> -> vector<8x64x32xf32>
    "tpu.trace_stop"() : () -> ()
    %11 = vector.broadcast %6 : vector<8x64x1xf32> to vector<8x64x32xf32>
    %12 = arith.mulf %11, %10 : vector<8x64x32xf32>
    %13 = vector.broadcast %7 : vector<8x64x1xf32> to vector<8x64x32xf32>
    %14 = arith.mulf %13, %1 : vector<8x64x32xf32>
    %15 = arith.addf %12, %14 : vector<8x64x32xf32>
    %c0_7 = arith.constant 0 : index
    %c0_8 = arith.constant 0 : index
    %16 = vector.load %arg3[%c0_7, %c0_8] : memref<32x64xf32, #tpu.memory_space<vmem>>, vector<32x64xf32>
    %17 = vector.shape_cast %15 : vector<8x64x32xf32> to vector<512x32xf32>
    %cst_9 = arith.constant dense<0.000000e+00> : vector<512x64xf32>
    %18 = tpu.matmul %17, %16, %cst_9 {dimension_numbers = #tpu.dot_dimension_numbers<[1], [0], [0], [1], [0, 0, 1, 1], [], []>} : vector<512x32xf32>, vector<32x64xf32>, vector<512x64xf32> -> vector<512x64xf32>
    %19 = vector.shape_cast %18 : vector<512x64xf32> to vector<8x64x64xf32>
    %c0_10 = arith.constant 0 : index
    %c0_11 = arith.constant 0 : index
    %20 = vector.load %arg4[%c0_10, %c0_11] : memref<1x64xf32, #tpu.memory_space<vmem>>, vector<1x64xf32>
    %21 = vector.shape_cast %20 : vector<1x64xf32> to vector<1x1x64xf32>
    %22 = vector.broadcast %21 : vector<1x1x64xf32> to vector<8x64x64xf32>
    %23 = arith.addf %19, %22 : vector<8x64x64xf32>
    %cst_12 = arith.constant 0.000000e+00 : f32
    %24 = vector.broadcast %cst_12 : f32 to vector<8x64x64xf32>
    %25 = arith.maximumf %23, %24 : vector<8x64x64xf32>
    %c0_13 = arith.constant 0 : index
    %c0_14 = arith.constant 0 : index
    %26 = vector.load %arg5[%c0_13, %c0_14] : memref<64x32xf32, #tpu.memory_space<vmem>>, vector<64x32xf32>
    %27 = vector.shape_cast %25 : vector<8x64x64xf32> to vector<512x64xf32>
    %cst_15 = arith.constant dense<0.000000e+00> : vector<512x32xf32>
    %28 = tpu.matmul %27, %26, %cst_15 {dimension_numbers = #tpu.dot_dimension_numbers<[1], [0], [0], [1], [0, 0, 1, 1], [], []>} : vector<512x64xf32>, vector<64x32xf32>, vector<512x32xf32> -> vector<512x32xf32>
    %29 = vector.shape_cast %28 : vector<512x32xf32> to vector<8x64x32xf32>
    %30 = vector.broadcast %6 : vector<8x64x1xf32> to vector<8x64x32xf32>
    %31 = arith.mulf %30, %29 : vector<8x64x32xf32>
    "tpu.trace_start"() <{level = 10 : i32, message = "gij,gjf->gif"}> : () -> ()
    %cst_16 = arith.constant dense<0.000000e+00> : vector<8x64x32xf32>
    %32 = tpu.matmul %0, %31, %cst_16 {dimension_numbers = #tpu.dot_dimension_numbers<[2], [1], [1], [2], [0, 0, 0, 1, 1, 2], [0], [0]>} : vector<8x64x64xf32>, vector<8x64x32xf32>, vector<8x64x32xf32> -> vector<8x64x32xf32>
    "tpu.trace_stop"() : () -> ()
    %33 = vector.broadcast %6 : vector<8x64x1xf32> to vector<8x64x32xf32>
    %34 = arith.mulf %33, %32 : vector<8x64x32xf32>
    %35 = vector.broadcast %7 : vector<8x64x1xf32> to vector<8x64x32xf32>
    %36 = arith.mulf %35, %29 : vector<8x64x32xf32>
    %37 = arith.addf %34, %36 : vector<8x64x32xf32>
    %c0_17 = arith.constant 0 : index
    %c0_18 = arith.constant 0 : index
    %38 = vector.load %arg6[%c0_17, %c0_18] : memref<1x32xf32, #tpu.memory_space<vmem>>, vector<1x32xf32>
    %39 = vector.shape_cast %38 : vector<1x32xf32> to vector<1x1x32xf32>
    %40 = vector.broadcast %39 : vector<1x1x32xf32> to vector<8x64x32xf32>
    %41 = arith.addf %37, %40 : vector<8x64x32xf32>
    %cst_19 = arith.constant 0.000000e+00 : f32
    %42 = vector.broadcast %cst_19 : f32 to vector<8x64x32xf32>
    %43 = arith.maximumf %41, %42 : vector<8x64x32xf32>
    %c0_20 = arith.constant 0 : index
    %c0_21 = arith.constant 0 : index
    %44 = vector.load %arg7[%c0_20, %c0_21] : memref<32x16xf32, #tpu.memory_space<vmem>>, vector<32x16xf32>
    %45 = vector.shape_cast %43 : vector<8x64x32xf32> to vector<512x32xf32>
    %cst_22 = arith.constant dense<0.000000e+00> : vector<512x16xf32>
    %46 = tpu.matmul %45, %44, %cst_22 {dimension_numbers = #tpu.dot_dimension_numbers<[1], [0], [0], [1], [0, 0, 1, 1], [], []>} : vector<512x32xf32>, vector<32x16xf32>, vector<512x16xf32> -> vector<512x16xf32>
    %47 = vector.shape_cast %46 : vector<512x16xf32> to vector<8x64x16xf32>
    %48 = vector.broadcast %6 : vector<8x64x1xf32> to vector<8x64x16xf32>
    %49 = arith.mulf %48, %47 : vector<8x64x16xf32>
    "tpu.trace_start"() <{level = 10 : i32, message = "gij,gjf->gif"}> : () -> ()
    %cst_23 = arith.constant dense<0.000000e+00> : vector<8x64x16xf32>
    %50 = tpu.matmul %0, %49, %cst_23 {dimension_numbers = #tpu.dot_dimension_numbers<[2], [1], [1], [2], [0, 0, 0, 1, 1, 2], [0], [0]>} : vector<8x64x64xf32>, vector<8x64x16xf32>, vector<8x64x16xf32> -> vector<8x64x16xf32>
    "tpu.trace_stop"() : () -> ()
    %51 = vector.broadcast %6 : vector<8x64x1xf32> to vector<8x64x16xf32>
    %52 = arith.mulf %51, %50 : vector<8x64x16xf32>
    %53 = vector.broadcast %7 : vector<8x64x1xf32> to vector<8x64x16xf32>
    %54 = arith.mulf %53, %47 : vector<8x64x16xf32>
    %55 = arith.addf %52, %54 : vector<8x64x16xf32>
    %c0_24 = arith.constant 0 : index
    %c0_25 = arith.constant 0 : index
    %56 = vector.load %arg8[%c0_24, %c0_25] : memref<1x16xf32, #tpu.memory_space<vmem>>, vector<1x16xf32>
    %57 = vector.shape_cast %56 : vector<1x16xf32> to vector<1x1x16xf32>
    %58 = vector.broadcast %57 : vector<1x1x16xf32> to vector<8x64x16xf32>
    %59 = arith.addf %55, %58 : vector<8x64x16xf32>
    %cst_26 = arith.constant 0.000000e+00 : f32
    %60 = vector.broadcast %cst_26 : f32 to vector<8x64x16xf32>
    %61 = arith.maximumf %59, %60 : vector<8x64x16xf32>
    %c0_27 = arith.constant 0 : index
    %c0_28 = arith.constant 0 : index
    %62 = vector.load %arg9[%c0_27, %c0_28] : memref<16x16xf32, #tpu.memory_space<vmem>>, vector<16x16xf32>
    %63 = vector.shape_cast %61 : vector<8x64x16xf32> to vector<512x16xf32>
    %cst_29 = arith.constant dense<0.000000e+00> : vector<512x16xf32>
    %64 = tpu.matmul %63, %62, %cst_29 {dimension_numbers = #tpu.dot_dimension_numbers<[1], [0], [0], [1], [0, 0, 1, 1], [], []>} : vector<512x16xf32>, vector<16x16xf32>, vector<512x16xf32> -> vector<512x16xf32>
    %65 = vector.shape_cast %64 : vector<512x16xf32> to vector<8x64x16xf32>
    %cst_30 = arith.constant dense<0.000000e+00> : vector<8x16xf32>
    %66 = vector.multi_reduction <add>, %65, %cst_30 [1] : vector<8x64x16xf32> to vector<8x16xf32>
    %67 = vector.shape_cast %66 : vector<8x16xf32> to vector<8x1x16xf32>
    %cst_31 = arith.constant 6.400000e+01 : f32
    %68 = vector.broadcast %cst_31 : f32 to vector<8x1x16xf32>
    %69 = arith.divf %67, %68 : vector<8x1x16xf32>
    %70 = math.tanh %69 : vector<8x1x16xf32>
    %71 = vector.broadcast %70 : vector<8x1x16xf32> to vector<8x64x16xf32>
    %72 = arith.mulf %61, %71 : vector<8x64x16xf32>
    %cst_32 = arith.constant dense<0.000000e+00> : vector<8x64xf32>
    %73 = vector.multi_reduction <add>, %72, %cst_32 [2] : vector<8x64x16xf32> to vector<8x64xf32>
    %74 = vector.shape_cast %73 : vector<8x64xf32> to vector<8x64x1xf32>
    %75 = arith.negf %74 : vector<8x64x1xf32>
    %76 = math.exp %75 : vector<8x64x1xf32>
    %cst_33 = arith.constant 1.000000e+00 : f32
    %77 = vector.broadcast %cst_33 : f32 to vector<8x64x1xf32>
    %78 = arith.addf %77, %76 : vector<8x64x1xf32>
    %79 = arith.divf %77, %78 : vector<8x64x1xf32>
    %80 = vector.broadcast %79 : vector<8x64x1xf32> to vector<8x64x16xf32>
    %81 = arith.mulf %61, %80 : vector<8x64x16xf32>
    %cst_34 = arith.constant dense<0.000000e+00> : vector<8x16xf32>
    %82 = vector.multi_reduction <add>, %81, %cst_34 [1] : vector<8x64x16xf32> to vector<8x16xf32>
    %c0_35 = arith.constant 0 : index
    %c0_36 = arith.constant 0 : index
    %83 = vector.load %arg10[%c0_35, %c0_36] : memref<16x16xf32, #tpu.memory_space<vmem>>, vector<16x16xf32>
    %cst_37 = arith.constant dense<0.000000e+00> : vector<8x16xf32>
    %84 = tpu.matmul %82, %83, %cst_37 {dimension_numbers = #tpu.dot_dimension_numbers<[1], [0], [0], [1], [0, 0, 1, 1], [], []>} : vector<8x16xf32>, vector<16x16xf32>, vector<8x16xf32> -> vector<8x16xf32>
    %c0_38 = arith.constant 0 : index
    %c0_39 = arith.constant 0 : index
    %85 = vector.load %arg11[%c0_38, %c0_39] : memref<1x16xf32, #tpu.memory_space<vmem>>, vector<1x16xf32>
    %86 = vector.broadcast %85 : vector<1x16xf32> to vector<8x16xf32>
    %87 = arith.addf %84, %86 : vector<8x16xf32>
    %cst_40 = arith.constant 0.000000e+00 : f32
    %88 = vector.broadcast %cst_40 : f32 to vector<8x16xf32>
    %89 = arith.maximumf %87, %88 : vector<8x16xf32>
    %c0_41 = arith.constant 0 : index
    %c0_42 = arith.constant 0 : index
    %90 = vector.load %arg12[%c0_41, %c0_42] : memref<16x4xf32, #tpu.memory_space<vmem>>, vector<16x4xf32>
    %cst_43 = arith.constant dense<0.000000e+00> : vector<8x4xf32>
    %91 = tpu.matmul %89, %90, %cst_43 {dimension_numbers = #tpu.dot_dimension_numbers<[1], [0], [0], [1], [0, 0, 1, 1], [], []>} : vector<8x16xf32>, vector<16x4xf32>, vector<8x4xf32> -> vector<8x4xf32>
    %c0_44 = arith.constant 0 : index
    %c0_45 = arith.constant 0 : index
    %92 = vector.load %arg13[%c0_44, %c0_45] : memref<1x4xf32, #tpu.memory_space<vmem>>, vector<1x4xf32>
    %93 = vector.broadcast %92 : vector<1x4xf32> to vector<8x4xf32>
    %94 = arith.addf %91, %93 : vector<8x4xf32>
    %cst_46 = arith.constant dense<0xFF800000> : vector<8xf32>
    %95 = vector.multi_reduction <maximumf>, %94, %cst_46 [1] : vector<8x4xf32> to vector<8xf32>
    %96 = vector.shape_cast %95 : vector<8xf32> to vector<8x1xf32>
    %97 = vector.broadcast %96 : vector<8x1xf32> to vector<8x4xf32>
    %98 = arith.subf %94, %97 : vector<8x4xf32>
    %99 = math.exp %98 : vector<8x4xf32>
    %cst_47 = arith.constant dense<0.000000e+00> : vector<8xf32>
    %100 = vector.multi_reduction <add>, %99, %cst_47 [1] : vector<8x4xf32> to vector<8xf32>
    %101 = vector.shape_cast %100 : vector<8xf32> to vector<8x1xf32>
    %102 = math.log %101 : vector<8x1xf32>
    %103 = vector.broadcast %102 : vector<8x1xf32> to vector<8x4xf32>
    %104 = arith.subf %98, %103 : vector<8x4xf32>
    %c0_48 = arith.constant 0 : index
    %c0_49 = arith.constant 0 : index
    %105 = vector.load %arg14[%c0_48, %c0_49] : memref<8x4xf32, #tpu.memory_space<vmem>>, vector<8x4xf32>
    tpu.vector_store %arg14[%c0_48, %c0_49], %104 {strides = array<i32>} : memref<8x4xf32, #tpu.memory_space<vmem>>, vector<8x4xf32>,
    return
  }
  func.func @transform_0(%arg0: i32) -> (i32, i32, i32) {
    %c0_i32 = arith.constant 0 : i32
    %c0_i32_0 = arith.constant 0 : i32
    %c0_i32_1 = arith.constant 0 : i32
    return %arg0, %c0_i32, %c0_i32_0 : i32, i32, i32
  }
  func.func @transform_1(%arg0: i32) -> (i32, i32, i32) {
    %c0_i32 = arith.constant 0 : i32
    %c0_i32_0 = arith.constant 0 : i32
    %c0_i32_1 = arith.constant 0 : i32
    return %arg0, %c0_i32, %c0_i32_0 : i32, i32, i32
  }
  func.func @transform_2(%arg0: i32) -> (i32, i32) {
    %c0_i32 = arith.constant 0 : i32
    %c0_i32_0 = arith.constant 0 : i32
    %c0_i32_1 = arith.constant 0 : i32
    return %c0_i32, %c0_i32_0 : i32, i32
  }
  func.func @transform_3(%arg0: i32) -> (i32, i32) {
    %c0_i32 = arith.constant 0 : i32
    %c0_i32_0 = arith.constant 0 : i32
    %c0_i32_1 = arith.constant 0 : i32
    return %c0_i32, %c0_i32_0 : i32, i32
  }
  func.func @transform_4(%arg0: i32) -> (i32, i32) {
    %c0_i32 = arith.constant 0 : i32
    %c0_i32_0 = arith.constant 0 : i32
    %c0_i32_1 = arith.constant 0 : i32
    return %c0_i32, %c0_i32_0 : i32, i32
  }
  func.func @transform_5(%arg0: i32) -> (i32, i32) {
    %c0_i32 = arith.constant 0 : i32
    %c0_i32_0 = arith.constant 0 : i32
    %c0_i32_1 = arith.constant 0 : i32
    return %c0_i32, %c0_i32_0 : i32, i32
  }
  func.func @transform_6(%arg0: i32) -> (i32, i32) {
    %c0_i32 = arith.constant 0 : i32
    %c0_i32_0 = arith.constant 0 : i32
    %c0_i32_1 = arith.constant 0 : i32
    return %c0_i32, %c0_i32_0 : i32, i32
  }
  func.func @transform_7(%arg0: i32) -> (i32, i32) {
    %c0_i32 = arith.constant 0 : i32
    %c0_i32_0 = arith.constant 0 : i32
    %c0_i32_1 = arith.constant 0 : i32
    return %c0_i32, %c0_i32_0 : i32, i32
  }
  func.func @transform_8(%arg0: i32) -> (i32, i32) {
    %c0_i32 = arith.constant 0 : i32
    %c0_i32_0 = arith.constant 0 : i32
    %c0_i32_1 = arith.constant 0 : i32
    return %c0_i32, %c0_i32_0 : i32, i32
  }
  func.func @transform_9(%arg0: i32) -> (i32, i32) {
    %c0_i32 = arith.constant 0 : i32
    %c0_i32_0 = arith.constant 0 : i32
    %c0_i32_1 = arith.constant 0 : i32
    return %c0_i32, %c0_i32_0 : i32, i32
  }
  func.func @transform_10(%arg0: i32) -> (i32, i32) {
    %c0_i32 = arith.constant 0 : i32
    %c0_i32_0 = arith.constant 0 : i32
    %c0_i32_1 = arith.constant 0 : i32
    return %c0_i32, %c0_i32_0 : i32, i32
  }
  func.func @transform_11(%arg0: i32) -> (i32, i32) {
    %c0_i32 = arith.constant 0 : i32
    %c0_i32_0 = arith.constant 0 : i32
    %c0_i32_1 = arith.constant 0 : i32
    return %c0_i32, %c0_i32_0 : i32, i32
  }
  func.func @transform_12(%arg0: i32) -> (i32, i32) {
    %c0_i32 = arith.constant 0 : i32
    %c0_i32_0 = arith.constant 0 : i32
    %c0_i32_1 = arith.constant 0 : i32
    return %c0_i32, %c0_i32_0 : i32, i32
  }
  func.func @transform_13(%arg0: i32) -> (i32, i32) {
    %c0_i32 = arith.constant 0 : i32
    %c0_i32_0 = arith.constant 0 : i32
    return %arg0, %c0_i32 : i32, i32
  }
}

</mosaic_0001>

<bundles_post_ra>
// kernel: tpu_custom_call.1
= control target key start
LH: loop header
LB: loop body
LE: loop exit
PB: predicated region body
PF: predicated region fallthrough
CT: control target
= control target key end

     0   :  { %s11506_s25 = smov 0   ;;  %s15030_s0 = inlined_call_operand.vmem [shape: f32[16,64,64], index: 0, kind: input, shape index: {}]   ;;  %s15031_s1 = inlined_call_operand.vmem [shape: f32[16,64,32], index: 1, kind: input, shape index: {}]   ;;  %s15032_s2 = inlined_call_operand.vmem [shape: f32[32,64], index: 2, kind: input, shape index: {}]   ;;  %s15033_s3 = inlined_call_operand.vmem [shape: f32[1,64], index: 3, kind: input, shape index: {}]   ;;  %s15034_s4 = inlined_call_operand.vmem [shape: f32[64,32], index: 4, kind: input, shape index: {}]   ;;  %s15035_s5 = inlined_call_operand.vmem [shape: f32[1,32], index: 5, kind: input, shape index: {}]   ;;  %s15036_s6 = inlined_call_operand.vmem [shape: f32[32,16], index: 6, kind: input, shape index: {}]   ;;  %s15037_s7 = inlined_call_operand.vmem [shape: f32[1,16], index: 7, kind: input, shape index: {}]   ;;  %s15038_s8 = inlined_call_operand.vmem [shape: f32[16,16], index: 8, kind: input, shape index: {}]   ;;  %s15039_s9 = inlined_call_operand.vmem [shape: f32[16,16], index: 9, kind: input, shape index: {}]   ;;  %s15040_s10 = inlined_call_operand.vmem [shape: f32[1,16], index: 10, kind: input, shape index: {}]   ;;  %s15041_s11 = inlined_call_operand.vmem [shape: f32[16,4], index: 11, kind: input, shape index: {}]   ;;  %s15042_s12 = inlined_call_operand.vmem [shape: f32[1,4], index: 12, kind: input, shape index: {}]   ;;  %s15043_s13 = inlined_call_operand.vmem [shape: f32[16,4], index: 13, kind: output, shape index: {}]  }
   0x1 LB: > { %s11512_s26 = sadd.s32 4294967295, %s11432_s25   ;;  %p8521_p0 = scmp.ge.s32.totalorder %s11432_s25, 1  ;;  %s11432_s25 = sphi %s11506_s25, %s23_s25  }
   0x2   : > { %p401_p1 = scmp.lt.s32.totalorder %s11432_s25, 3 }
   0x4   : > { %p402_p2 = pnand %p8521_p0, %p401_p1 }
   0x6   : > { %405 = sbr.rel (%p402_p2) target bundleno = 2728 (0xaa8), region = 72 }
   0xb   : > { %s8522_s27 = sshll.u32 %s11512_s26, 3  ;;  %vm597_vm0 = vcmask 523264   ;;  %vm2274_vm1 = vcmask 261120   ;;  %vm6617_vm2 = vcmask 130048   ;;  %vm11435_vm3 = vmmov 0   ;;  %p465_p4 = scmp.lt.s32.totalorder %s11512_s26, 1 }
   0xc   : > { %p452_p3 = scmp.lt.s32.totalorder %s8522_s27, 15  ;;  %vm8269_vm4 = vcmask 1041409   ;;  %vm8271_vm5 = vcmask 1042434   ;;  %vm8273_vm6 = vcmask 1043459   ;;  %vm8275_vm7 = vcmask 1044484  }
   0xd   : > { %vm8277_vm8 = vcmask 1045509   ;;  %vm8279_vm9 = vcmask 1046534   ;;  %vm8281_vm10 = vcmask 1047559   ;;  %vm8438_vm11 = vcmask 31744   ;;  %s16136_s26 = smov (!%p465_p4, %s11512_s26), 1 }
   0xe   : > { %s16134_s27 = smov (!%p452_p3, %s8522_s27), 15  ;;  %s8528_s15 = sshll.u32 %s16136_s26, 3 }
   0xf   : > { %s9050_s28 = sshll.u32 %s16134_s27, 6 }
  0x10   : > { %s11525_s14 = scalar_lea.vmem %s15030_s0, %s9050_s28  ;;  %s11773_s17 = scalar_lea.vmem %s15031_s1, %s9050_s28 }
  0x11   : > { %v11528_v0 = vld [vmem:[%s11525_s14 + $0x38] sm:$0xff]  ;;  %v11531_v1 = vld [vmem:[%s11525_s14 + $0x28] sm:$0xff]  ;;  %v11534_v2 = vld [vmem:[%s11525_s14 + $0x30] sm:$0xff] }
  0x12   : > { %v619_v3 = vsel %vm597_vm0, %v11528_v0, 0.0  ;;  %v613_v4 = vsel %vm597_vm0, %v11531_v1, 0.0  ;;  %v11541_v5 = vld [vmem:[%s11525_s14 + $0x20] sm:$0xff]  ;;  %v616_v7 = vsel %vm597_vm0, %v11534_v2, 0.0  ;;  %v11550_v9 = vld [vmem:[%s11525_s14 + $0x18] sm:$0xff]  ;;  %v11553_v10 = vld [vmem:[%s11525_s14 + $0x10] sm:$0xff] }
  0x13   : > { %620 = vadd.xlane.f32.xlu0 %v619_v3  ;;  %614 = vadd.xlane.f32.xlu1 %v613_v4  ;;  %v469_v6 = vld [vmem:[%s11525_s14] sm:$0xff]  ;;  %v610_v8 = vsel %vm597_vm0, %v11541_v5, 0.0  ;;  %v607_v12 = vsel %vm597_vm0, %v11550_v9, 0.0  ;;  %v604_v13 = vsel %vm597_vm0, %v11553_v10, 0.0  ;;  %v11562_v14 = vld [vmem:[%s11525_s14 + $0x8] sm:$0xff]  ;;  %v11568_v17 = vld [vmem:[%s11525_s14 + $0x78] sm:$0xff] }
  0x14   : > { %9732 = vmatprep.mubr.msk.f32.mxu0 %vm597_vm0, %v469_v6  ;;  %v477_v11 = vld [vmem:[%s11525_s14 + $0x40] sm:$0xff]  ;;  %v601_v15 = vsel %vm597_vm0, %v11562_v14, 0.0  ;;  %v598_v16 = vsel %vm597_vm0, %v469_v6, 0.0  ;;  %v11571_v18 = vld [vmem:[%s11525_s14 + $0x70] sm:$0xff]  ;;  %v643_v19 = vsel %vm597_vm0, %v11568_v17, 0.0  ;;  %v11578_v21 = vld [vmem:[%s11525_s14 + $0x68] sm:$0xff] }
  0x15   : > { %9760 = vmatprep.mubr.msk.f32.mxu1 %vm597_vm0, %v477_v11  ;;  %v640_v20 = vsel %vm597_vm0, %v11571_v18, 0.0  ;;  %v11581_v22 = vld [vmem:[%s11525_s14 + $0x60] sm:$0xff]  ;;  %v637_v23 = vsel %vm597_vm0, %v11578_v21, 0.0  ;;  %v11588_v25 = vld [vmem:[%s11525_s14 + $0x58] sm:$0xff]  ;;  %v11591_v26 = vld [vmem:[%s11525_s14 + $0x50] sm:$0xff]  ;;  %v622_v31 = vsel %vm597_vm0, %v477_v11, 0.0 }
  0x16   : > { %v634_v24 = vsel %vm597_vm0, %v11581_v22, 0.0  ;;  %v631_v27 = vsel %vm597_vm0, %v11588_v25, 0.0  ;;  %v628_v28 = vsel %vm597_vm0, %v11591_v26, 0.0  ;;  %v11598_v29 = vld [vmem:[%s11525_s14 + $0x48] sm:$0xff]  ;;  %v11604_v32 = vld [vmem:[%s11525_s14 + $0xb8] sm:$0xff]  ;;  %v11607_v33 = vld [vmem:[%s11525_s14 + $0xb0] sm:$0xff] }
  0x17   : > { %617 = vadd.xlane.f32.xlu0 %v616_v7  ;;  %611 = vadd.xlane.f32.xlu1 %v610_v8  ;;  %v625_v30 = vsel %vm597_vm0, %v11598_v29, 0.0  ;;  %v667_v34 = vsel %vm597_vm0, %v11604_v32, 0.0  ;;  %v664_v35 = vsel %vm597_vm0, %v11607_v33, 0.0  ;;  %v11614_v36 = vld [vmem:[%s11525_s14 + $0xa8] sm:$0xff]  ;;  %v11617_v37 = vld [vmem:[%s11525_s14 + $0xa0] sm:$0xff]  ;;  %v11624_v40 = vld [vmem:[%s11525_s14 + $0x98] sm:$0xff] }
  0x18   : > { %v661_v38 = vsel %vm597_vm0, %v11614_v36, 0.0  ;;  %v658_v39 = vsel %vm597_vm0, %v11617_v37, 0.0  ;;  %v11627_v41 = vld [vmem:[%s11525_s14 + $0x90] sm:$0xff]  ;;  %v655_v42 = vsel %vm597_vm0, %v11624_v40, 0.0  ;;  %v11634_v44 = vld [vmem:[%s11525_s14 + $0x88] sm:$0xff]  ;;  %v11637_v45 = vld [vmem:[%s11525_s14 + $0x80] sm:$0xff] }
  0x19   : > { %v652_v43 = vsel %vm597_vm0, %v11627_v41, 0.0  ;;  %v649_v46 = vsel %vm597_vm0, %v11634_v44, 0.0  ;;  %v646_v47 = vsel %vm597_vm0, %v11637_v45, 0.0  ;;  %v11644_v48 = vld [vmem:[%s11525_s14 + $0xf8] sm:$0xff]  ;;  %v11647_v49 = vld [vmem:[%s11525_s14 + $0xf0] sm:$0xff]  ;;  %v11654_v52 = vld [vmem:[%s11525_s14 + $0xe8] sm:$0xff] }
  0x1a   : > { %v691_v50 = vsel %vm597_vm0, %v11644_v48, 0.0  ;;  %v688_v51 = vsel %vm597_vm0, %v11647_v49, 0.0  ;;  %v11657_v53 = vld [vmem:[%s11525_s14 + $0xe0] sm:$0xff]  ;;  %v685_v54 = vsel %vm597_vm0, %v11654_v52, 0.0  ;;  %v11664_v56 = vld [vmem:[%s11525_s14 + $0xd8] sm:$0xff]  ;;  %v11667_v57 = vld [vmem:[%s11525_s14 + $0xd0] sm:$0xff] }
  0x1b   : > { %608 = vadd.xlane.f32.xlu0 %v607_v12  ;;  %605 = vadd.xlane.f32.xlu1 %v604_v13  ;;  %v682_v55 = vsel %vm597_vm0, %v11657_v53, 0.0  ;;  %v679_v58 = vsel %vm597_vm0, %v11664_v56, 0.0  ;;  %v676_v59 = vsel %vm597_vm0, %v11667_v57, 0.0  ;;  %v11674_v60 = vld [vmem:[%s11525_s14 + $0xc8] sm:$0xff]  ;;  %v11677_v61 = vld [vmem:[%s11525_s14 + $0xc0] sm:$0xff]  ;;  %v508_v3 = vld [vmem:[%s11525_s14 + $0x138] sm:$0xff] }
  0x1c   : > { %v673_v62 = vsel %vm597_vm0, %v11674_v60, 0.0  ;;  %v670_v63 = vsel %vm597_vm0, %v11677_v61, 0.0  ;;  %v507_v4 = vld [vmem:[%s11525_s14 + $0x130] sm:$0xff]  ;;  %v715_v6 = vsel %vm597_vm0, %v508_v3, 0.0  ;;  %v506_v8 = vld [vmem:[%s11525_s14 + $0x128] sm:$0xff]  ;;  %v11689_v11 = vld [vmem:[%s11525_s14 + $0x120] sm:$0xff] }
  0x1d   : > { %v712_v7 = vsel %vm597_vm0, %v507_v4, 0.0  ;;  %v709_v12 = vsel %vm597_vm0, %v506_v8, 0.0  ;;  %v706_v13 = vsel %vm597_vm0, %v11689_v11, 0.0 }
  0x1f   : > { %602 = vadd.xlane.f32.xlu0 %v601_v15  ;;  %599 = vadd.xlane.f32.xlu1 %v598_v16  ;;  %v11695_v15 = vld [vmem:[%s11525_s14 + $0x118] sm:$0xff]  ;;  %v11698_v16 = vld [vmem:[%s11525_s14 + $0x110] sm:$0xff] }
  0x23   : > { %644 = vadd.xlane.f32.xlu0 %v643_v19  ;;  %641 = vadd.xlane.f32.xlu1 %v640_v20  ;;  %v703_v19 = vsel %vm597_vm0, %v11695_v15, 0.0  ;;  %v700_v20 = vsel %vm597_vm0, %v11698_v16, 0.0 }
  0x27   : > { %638 = vadd.xlane.f32.xlu0 %v637_v23  ;;  %635 = vadd.xlane.f32.xlu1 %v634_v24  ;;  %v11705_v23 = vld [vmem:[%s11525_s14 + $0x108] sm:$0xff]  ;;  %v11708_v24 = vld [vmem:[%s11525_s14 + $0x100] sm:$0xff] }
  0x2b   : > { %632 = vadd.xlane.f32.xlu0 %v631_v27  ;;  %629 = vadd.xlane.f32.xlu1 %v628_v28  ;;  %v697_v27 = vsel %vm597_vm0, %v11705_v23, 0.0  ;;  %v694_v28 = vsel %vm597_vm0, %v11708_v24, 0.0 }
  0x2f   : > { %626 = vadd.xlane.f32.xlu0 %v625_v30  ;;  %623 = vadd.xlane.f32.xlu1 %v622_v31  ;;  %v516_v30 = vld [vmem:[%s11525_s14 + $0x178] sm:$0xff]  ;;  %v515_v31 = vld [vmem:[%s11525_s14 + $0x170] sm:$0xff] }
  0x33   : > { %668 = vadd.xlane.f32.xlu0 %v667_v34  ;;  %665 = vadd.xlane.f32.xlu1 %v664_v35  ;;  %v739_v34 = vsel %vm597_vm0, %v516_v30, 0.0  ;;  %v736_v35 = vsel %vm597_vm0, %v515_v31, 0.0  ;;  %v11747_v30 = vld [vmem:[%s11525_s14 + $0x180] sm:$0xff] }
  0x37   : > { %662 = vadd.xlane.f32.xlu0 %v661_v38  ;;  %659 = vadd.xlane.f32.xlu1 %v658_v39  ;;  %v514_v38 = vld [vmem:[%s11525_s14 + $0x168] sm:$0xff]  ;;  %v513_v39 = vld [vmem:[%s11525_s14 + $0x160] sm:$0xff] }
  0x3b   : > { %656 = vadd.xlane.f32.xlu0 %v655_v42  ;;  %653 = vadd.xlane.f32.xlu1 %v652_v43  ;;  %v733_v42 = vsel %vm597_vm0, %v514_v38, 0.0  ;;  %v730_v43 = vsel %vm597_vm0, %v513_v39, 0.0  ;;  %v531_v38 = vld [vmem:[%s11525_s14 + $0x1f0] sm:$0xff] }
  0x3f   : > { %650 = vadd.xlane.f32.xlu0 %v649_v46  ;;  %647 = vadd.xlane.f32.xlu1 %v646_v47  ;;  %v512_v46 = vld [vmem:[%s11525_s14 + $0x158] sm:$0xff]  ;;  %v511_v47 = vld [vmem:[%s11525_s14 + $0x150] sm:$0xff] }
  0x43   : > { %692 = vadd.xlane.f32.xlu0 %v691_v50  ;;  %689 = vadd.xlane.f32.xlu1 %v688_v51  ;;  %v727_v50 = vsel %vm597_vm0, %v512_v46, 0.0  ;;  %v724_v51 = vsel %vm597_vm0, %v511_v47, 0.0  ;;  %v529_v46 = vld [vmem:[%s11525_s14 + $0x1e0] sm:$0xff] }
  0x47   : > { %686 = vadd.xlane.f32.xlu0 %v685_v54  ;;  %683 = vadd.xlane.f32.xlu1 %v682_v55  ;;  %v510_v54 = vld [vmem:[%s11525_s14 + $0x148] sm:$0xff]  ;;  %v11728_v55 = vld [vmem:[%s11525_s14 + $0x140] sm:$0xff] }
  0x4b   : > { %680 = vadd.xlane.f32.xlu0 %v679_v58  ;;  %677 = vadd.xlane.f32.xlu1 %v676_v59  ;;  %v721_v58 = vsel %vm597_vm0, %v510_v54, 0.0  ;;  %v718_v59 = vsel %vm597_vm0, %v11728_v55, 0.0  ;;  %v527_v54 = vld [vmem:[%s11525_s14 + $0x1d0] sm:$0xff] }
  0x4f   : > { %674 = vadd.xlane.f32.xlu0 %v673_v62  ;;  %671 = vadd.xlane.f32.xlu1 %v670_v63  ;;  %v524_v62 = vld [vmem:[%s11525_s14 + $0x1b8] sm:$0xff]  ;;  %v523_v63 = vld [vmem:[%s11525_s14 + $0x1b0] sm:$0xff] }
  0x50   : > { %v763_v3 = vsel %vm597_vm0, %v524_v62, 0.0  ;;  %v760_v4 = vsel %vm597_vm0, %v523_v63, 0.0  ;;  %v526_v62 = vld [vmem:[%s11525_s14 + $0x1c8] sm:$0xff]  ;;  %v525_v63 = vld [vmem:[%s11525_s14 + $0x1c0] sm:$0xff] }
  0x53   : > { %716 = vadd.xlane.f32.xlu0 %v715_v6  ;;  %713 = vadd.xlane.f32.xlu1 %v712_v7  ;;  %v522_v6 = vld [vmem:[%s11525_s14 + $0x1a8] sm:$0xff]  ;;  %v521_v7 = vld [vmem:[%s11525_s14 + $0x1a0] sm:$0xff] }
  0x54   : > { %v757_v8 = vsel %vm597_vm0, %v522_v6, 0.0 }
  0x57   : > { %710 = vadd.xlane.f32.xlu0 %v709_v12  ;;  %707 = vadd.xlane.f32.xlu1 %v706_v13  ;;  %v754_v12 = vsel %vm597_vm0, %v521_v7, 0.0  ;;  %v520_v13 = vld [vmem:[%s11525_s14 + $0x198] sm:$0xff] }
  0x5b   : > { %704 = vadd.xlane.f32.xlu0 %v703_v19  ;;  %701 = vadd.xlane.f32.xlu1 %v700_v20  ;;  %v519_v19 = vld [vmem:[%s11525_s14 + $0x190] sm:$0xff]  ;;  %v751_v20 = vsel %vm597_vm0, %v520_v13, 0.0 }
  0x5f   : > { %698 = vadd.xlane.f32.xlu0 %v697_v27  ;;  %695 = vadd.xlane.f32.xlu1 %v694_v28  ;;  %v748_v27 = vsel %vm597_vm0, %v519_v19, 0.0  ;;  %v518_v28 = vld [vmem:[%s11525_s14 + $0x188] sm:$0xff] }
  0x60   : > { %v745_v31 = vsel %vm597_vm0, %v518_v28, 0.0 }
  0x63   : > { %740 = vadd.xlane.f32.xlu0 %v739_v34  ;;  %737 = vadd.xlane.f32.xlu1 %v736_v35  ;;  %v742_v34 = vsel %vm597_vm0, %v11747_v30, 0.0  ;;  %v532_v35 = vld [vmem:[%s11525_s14 + $0x1f8] sm:$0xff] }
  0x64   : > { %v787_v39 = vsel %vm597_vm0, %v532_v35, 0.0 }
  0x67   : > { %734 = vadd.xlane.f32.xlu0 %v733_v42  ;;  %731 = vadd.xlane.f32.xlu1 %v730_v43  ;;  %v784_v42 = vsel %vm597_vm0, %v531_v38, 0.0  ;;  %v530_v43 = vld [vmem:[%s11525_s14 + $0x1e8] sm:$0xff] }
  0x68   : > { %v781_v47 = vsel %vm597_vm0, %v530_v43, 0.0 }
  0x6b   : > { %728 = vadd.xlane.f32.xlu0 %v727_v50  ;;  %725 = vadd.xlane.f32.xlu1 %v724_v51  ;;  %v778_v50 = vsel %vm597_vm0, %v529_v46, 0.0  ;;  %v528_v51 = vld [vmem:[%s11525_s14 + $0x1d8] sm:$0xff] }
  0x6c   : > { %v540_v46 = vld [vmem:[%s11773_s17 + $0x38] sm:$0xff] }
  0x6f   : > { %722 = vadd.xlane.f32.xlu0 %v721_v58  ;;  %719 = vadd.xlane.f32.xlu1 %v718_v59  ;;  %v775_v58 = vsel %vm597_vm0, %v528_v51, 0.0  ;;  %v772_v59 = vsel %vm597_vm0, %v527_v54, 0.0 }
  0x73   : > { %764 = vadd.xlane.f32.xlu0 %v763_v3  ;;  %761 = vadd.xlane.f32.xlu1 %v760_v4  ;;  %v769_v3 = vsel %vm597_vm0, %v526_v62, 0.0  ;;  %v766_v4 = vsel %vm597_vm0, %v525_v63, 0.0  ;;  %v539_v62 = vld [vmem:[%s11773_s17 + $0x30] sm:$0xff] }
  0x77   : > { %758 = vadd.xlane.f32.xlu0 %v757_v8  ;;  %755 = vadd.xlane.f32.xlu1 %v754_v12 }
  0x7b   : > { %752 = vadd.xlane.f32.xlu0 %v751_v20  ;;  %749 = vadd.xlane.f32.xlu1 %v748_v27 }
  0x7f   : > { %746 = vadd.xlane.f32.xlu0 %v745_v31  ;;  %743 = vadd.xlane.f32.xlu1 %v742_v34 }
  0x83   : > { %788 = vadd.xlane.f32.xlu0 %v787_v39  ;;  %785 = vadd.xlane.f32.xlu1 %v784_v42 }
  0x87   : > { %782 = vadd.xlane.f32.xlu0 %v781_v47  ;;  %779 = vadd.xlane.f32.xlu1 %v778_v50 }
  0x8b   : > { %776 = vadd.xlane.f32.xlu0 %v775_v58  ;;  %773 = vadd.xlane.f32.xlu1 %v772_v59 }
  0x8f   : > { %770 = vadd.xlane.f32.xlu0 %v769_v3  ;;  %767 = vadd.xlane.f32.xlu1 %v766_v4 }
  0x9c   : > { %v621_v6 = vpop.xlane.xlu0 %620  ;;  %v615_v7 = vpop.xlane.xlu1 %614 }
  0x9d   : > { %v797_v8 = vadd.f32 1.0, %v621_v6  ;;  %v795_v12 = vadd.f32 1.0, %v615_v7  ;;  %v538_v7 = vld [vmem:[%s11773_s17 + $0x28] sm:$0xff] }
  0x9f   : > { %10840 = vrsqrt.f32 %v797_v8  ;;  %v537_v8 = vld [vmem:[%s11773_s17 + $0x20] sm:$0xff] }
  0xa0   : > { %v618_v13 = vpop.xlane.xlu0 %617  ;;  %v612_v19 = vpop.xlane.xlu1 %611  ;;  %10842 = vrsqrt.f32 %v795_v12 }
  0xa1   : > { %v796_v20 = vadd.f32 1.0, %v618_v13  ;;  %v794_v27 = vadd.f32 1.0, %v612_v19 }
  0xa3   : > { %10844 = vrsqrt.f32 %v796_v20 }
  0xa4   : > { %10846 = vrsqrt.f32 %v794_v27  ;;  %v609_v28 = vpop.xlane.xlu0 %608  ;;  %v606_v31 = vpop.xlane.xlu1 %605  ;;  %v536_v27 = vld [vmem:[%s11773_s17 + $0x18] sm:$0xff] }
  0xa5   : > { %v793_v34 = vadd.f32 1.0, %v609_v28  ;;  %v792_v35 = vadd.f32 1.0, %v606_v31 }
  0xa7   : > { %10848 = vrsqrt.f32 %v793_v34 }
  0xa8   : > { %10850 = vrsqrt.f32 %v792_v35  ;;  %v603_v38 = vpop.xlane.xlu0 %602  ;;  %v600_v39 = vpop.xlane.xlu1 %599 }
  0xa9   : > { %v791_v42 = vadd.f32 1.0, %v603_v38  ;;  %v790_v43 = vadd.f32 1.0, %v600_v39  ;;  %v535_v39 = vld [vmem:[%s11773_s17 + $0x10] sm:$0xff] }
  0xab   : > { %10852 = vrsqrt.f32 %v791_v42 }
  0xac   : > { %v11776_v47 = vpop.eup %10840  ;;  %10854 = vrsqrt.f32 %v790_v43  ;;  %v645_v50 = vpop.xlane.xlu0 %644 }
  0xad   : > { %15472 = vst [vmem:[#allocation2_spill] sm:$0xff] %v11776_v47  ;;  %v642_v51 = vpop.xlane.xlu1 %641  ;;  %v805_v54 = vadd.f32 1.0, %v645_v50  ;;  %v989_v59 = vmul.f32 %v11776_v47, %v540_v46  ;;  %v11780_v63 = vpop.eup %10842 }
  0xae   : > { %v804_v58 = vadd.f32 1.0, %v642_v51  ;;  %15473 = vst [vmem:[#allocation3_spill] sm:$0xff] %v11780_v63  ;;  %v987_v28 = vmul.f32 %v11780_v63, %v538_v7  ;;  %v534_v51 = vld [vmem:[%s11773_s17 + $0x8] sm:$0xff] }
  0xaf   : > { %10856 = vrsqrt.f32 %v805_v54  ;;  %9716 = vmatprep.subr.mxu0 %v989_v59 }
  0xb0   : > { %v11782_v3 = vpop.eup %10844  ;;  %10858 = vrsqrt.f32 %v804_v58  ;;  %9717 = vmatpush3.msra.mxu0 %v989_v59  ;;  %v639_v4 = vpop.xlane.xlu0 %638 }
  0xb1   : > { %15474 = vst [vmem:[#allocation4_spill] sm:$0xff] %v11782_v3  ;;  %v636_v6 = vpop.xlane.xlu1 %635  ;;  %v11786_v12 = vpop.eup %10846  ;;  %v803_v13 = vadd.f32 1.0, %v639_v4  ;;  %v988_v20 = vmul.f32 %v11782_v3, %v539_v62  ;;  %v533_v4 = vld [vmem:[%s11773_s17] sm:$0xff] }
  0xb2   : > { %15475 = vst [vmem:[#allocation5_spill] sm:$0xff] %v11786_v12  ;;  %v802_v19 = vadd.f32 1.0, %v636_v6  ;;  %v986_v31 = vmul.f32 %v11786_v12, %v537_v8 }
  0xb3   : > { %10860 = vrsqrt.f32 %v803_v13  ;;  %9718 = vmatprep.subr.mxu0 %v988_v20 }
  0xb4   : > { %v11792_v34 = vpop.eup %10848  ;;  %10862 = vrsqrt.f32 %v802_v19  ;;  %9719 = vmatpush3.msra.mxu0 %v988_v20  ;;  %v633_v35 = vpop.xlane.xlu0 %632  ;;  %v548_v19 = vld [vmem:[%s11773_s17 + $0x78] sm:$0xff] }
  0xb5   : > { %15476 = vst [vmem:[#allocation6_spill] sm:$0xff] %v11792_v34  ;;  %v630_v38 = vpop.xlane.xlu1 %629  ;;  %v11795_v42 = vpop.eup %10850  ;;  %v801_v43 = vadd.f32 1.0, %v633_v35  ;;  %9720 = vmatprep.subr.mxu0 %v987_v28  ;;  %v985_v50 = vmul.f32 %v11792_v34, %v536_v27  ;;  %v547_v27 = vld [vmem:[%s11773_s17 + $0x70] sm:$0xff] }
  0xb6   : > { %15477 = vst [vmem:[#allocation7_spill] sm:$0xff] %v11795_v42  ;;  %v800_v46 = vadd.f32 1.0, %v630_v38  ;;  %9721 = vmatpush3.msra.mxu0 %v987_v28  ;;  %v984_v54 = vmul.f32 %v11795_v42, %v535_v39 }
  0xb7   : > { %10864 = vrsqrt.f32 %v801_v43  ;;  %9722 = vmatprep.subr.mxu0 %v986_v31 }
  0xb8   : > { %v11800_v58 = vpop.eup %10852  ;;  %10866 = vrsqrt.f32 %v800_v46  ;;  %9723 = vmatpush3.msra.mxu0 %v986_v31  ;;  %v627_v59 = vpop.xlane.xlu0 %626 }
  0xb9   : > { %15478 = vst [vmem:[#allocation8_spill] sm:$0xff] %v11800_v58  ;;  %v624_v62 = vpop.xlane.xlu1 %623  ;;  %v11803_v6 = vpop.eup %10854  ;;  %v799_v7 = vadd.f32 1.0, %v627_v59  ;;  %9724 = vmatprep.subr.mxu0 %v985_v50  ;;  %v983_v13 = vmul.f32 %v11800_v58, %v534_v51  ;;  %v546_v51 = vld [vmem:[%s11773_s17 + $0x68] sm:$0xff]  ;;  %v545_v59 = vld [vmem:[%s11773_s17 + $0x60] sm:$0xff] }
  0xba   : > { %15479 = vst [vmem:[#allocation9_spill] sm:$0xff] %v11803_v6  ;;  %v798_v8 = vadd.f32 1.0, %v624_v62  ;;  %9725 = vmatpush3.msra.mxu0 %v985_v50  ;;  %v982_v20 = vmul.f32 %v11803_v6, %v533_v4 }
  0xbb   : > { %10868 = vrsqrt.f32 %v799_v7  ;;  %9726 = vmatprep.subr.mxu0 %v984_v54 }
  0xbc   : > { %v11809_v28 = vpop.eup %10856  ;;  %10870 = vrsqrt.f32 %v798_v8  ;;  %9727 = vmatpush3.msra.mxu0 %v984_v54  ;;  %v669_v31 = vpop.xlane.xlu0 %668 }
  0xbd   : > { %15480 = vst [vmem:[#allocation10_spill] sm:$0xff] %v11809_v28  ;;  %v666_v35 = vpop.xlane.xlu1 %665  ;;  %v11811_v38 = vpop.eup %10858  ;;  %v813_v39 = vadd.f32 1.0, %v669_v31  ;;  %9728 = vmatprep.subr.mxu0 %v983_v13  ;;  %v997_v46 = vmul.f32 %v11809_v28, %v548_v19  ;;  %v544_v31 = vld [vmem:[%s11773_s17 + $0x58] sm:$0xff] }
  0xbe   : > { %15481 = vst [vmem:[#allocation11_spill] sm:$0xff] %v11811_v38  ;;  %v812_v43 = vadd.f32 1.0, %v666_v35  ;;  %9729 = vmatpush3.msra.mxu0 %v983_v13  ;;  %v996_v50 = vmul.f32 %v11811_v38, %v547_v27 }
  0xbf   : > { %10872 = vrsqrt.f32 %v813_v39  ;;  %9730 = vmatprep.subr.mxu0 %v982_v20  ;;  %9744 = vmatprep.subr.mxu1 %v997_v46 }
  0xc0   : > { %v11817_v62 = vpop.eup %10860  ;;  %10874 = vrsqrt.f32 %v812_v43  ;;  %9745 = vmatpush3.msra.mxu1 %v997_v46  ;;  %v663_v54 = vpop.xlane.xlu0 %662  ;;  %9731 = vmatpush3.msra.mxu0 %v982_v20  ;;  %v543_v20 = vld [vmem:[%s11773_s17 + $0x50] sm:$0xff] }
  0xc1   : > { %15482 = vst [vmem:[#allocation12_spill] sm:$0xff] %v11817_v62  ;;  %v660_v4 = vpop.xlane.xlu1 %659  ;;  %v11819_v7 = vpop.eup %10862  ;;  %v811_v8 = vadd.f32 1.0, %v663_v54  ;;  %9733 = vmatmul.mubr.msk.f32.vlgmr.msra.gmra.mxu0 %vm597_vm0, %v11562_v14  ;;  %9746 = vmatprep.subr.mxu1 %v996_v50  ;;  %v995_v19 = vmul.f32 %v11817_v62, %v546_v51  ;;  %v11841_v54 = vld [vmem:[%s11773_s17 + $0x40] sm:$0xff] }
  0xc2   : > { %15483 = vst [vmem:[#allocation13_spill] sm:$0xff] %v11819_v7  ;;  %v810_v13 = vadd.f32 1.0, %v660_v4  ;;  %9747 = vmatpush3.msra.mxu1 %v996_v50  ;;  %9735 = vmatprep.mubr.msk.f32.mxu0 %vm597_vm0, %v11553_v10  ;;  %v994_v27 = vmul.f32 %v11819_v7, %v545_v59  ;;  %v542_v59 = vld [vmem:[%s11773_s17 + $0x48] sm:$0xff] }
  0xc3   : > { %10876 = vrsqrt.f32 %v811_v8  ;;  %9748 = vmatprep.subr.mxu1 %v995_v19 }
  0xc4   : > { %v11829_v35 = vpop.eup %10864  ;;  %10878 = vrsqrt.f32 %v810_v13  ;;  %v657_v14 = vpop.xlane.xlu0 %656  ;;  %9749 = vmatpush3.msra.mxu1 %v995_v19 }
  0xc5   : > { %v654_v39 = vpop.xlane.xlu1 %653  ;;  %v11831_v43 = vpop.eup %10866  ;;  %v809_v46 = vadd.f32 1.0, %v657_v14  ;;  %9736 = vmatmul.mubr.msk.f32.gmra.mxu0 %vm597_vm0, %v11550_v9  ;;  %9750 = vmatprep.subr.mxu1 %v994_v27  ;;  %v993_v50 = vmul.f32 %v11829_v35, %v544_v31  ;;  %v555_v14 = vld [vmem:[%s11773_s17 + $0xb0] sm:$0xff] }
  0xc6   : > { %v808_v10 = vadd.f32 1.0, %v654_v39  ;;  %9751 = vmatpush3.msra.mxu1 %v994_v27  ;;  %9738 = vmatprep.mubr.msk.f32.mxu0 %vm597_vm0, %v11541_v5  ;;  %v992_v51 = vmul.f32 %v11831_v43, %v543_v20  ;;  %v556_v20 = vld [vmem:[%s11773_s17 + $0xb8] sm:$0xff] }
  0xc7   : > { %10880 = vrsqrt.f32 %v809_v46  ;;  %9752 = vmatprep.subr.mxu1 %v993_v50 }
  0xc8   : > { %v11843_v4 = vpop.eup %10868  ;;  %10882 = vrsqrt.f32 %v808_v10  ;;  %v651_v9 = vpop.xlane.xlu0 %650  ;;  %9753 = vmatpush3.msra.mxu1 %v993_v50 }
  0xc9   : > { %v648_v8 = vpop.xlane.xlu1 %647  ;;  %v11845_v13 = vpop.eup %10870  ;;  %v807_v19 = vadd.f32 1.0, %v651_v9  ;;  %9739 = vmatmul.mubr.msk.f32.gmra.mxu0 %vm597_vm0, %v11531_v1  ;;  %9754 = vmatprep.subr.mxu1 %v992_v51  ;;  %v991_v27 = vmul.f32 %v11843_v4, %v542_v59  ;;  %v554_v9 = vld [vmem:[%s11773_s17 + $0xa8] sm:$0xff] }
  0xca   : > { %v806_v5 = vadd.f32 1.0, %v648_v8  ;;  %9755 = vmatpush3.msra.mxu1 %v992_v51  ;;  %9741 = vmatprep.mubr.msk.f32.mxu0 %vm597_vm0, %v11534_v2  ;;  %v990_v31 = vmul.f32 %v11845_v13, %v11841_v54  ;;  %v553_v8 = vld [vmem:[%s11773_s17 + $0xa0] sm:$0xff] }
  0xcb   : > { %10884 = vrsqrt.f32 %v807_v19  ;;  %9756 = vmatprep.subr.mxu1 %v991_v27 }
  0xcc   : > { %v11856_v39 = vpop.eup %10872  ;;  %10886 = vrsqrt.f32 %v806_v5  ;;  %v693_v1 = vpop.xlane.xlu0 %692  ;;  %9757 = vmatpush3.msra.mxu1 %v991_v27 }
  0xcd   : > { %15484 = vst [vmem:[#allocation14_spill] sm:$0xff] %v11856_v39  ;;  %v690_v46 = vpop.xlane.xlu1 %689  ;;  %v11858_v10 = vpop.eup %10874  ;;  %v821_v50 = vadd.f32 1.0, %v693_v1  ;;  %9742 = vmatmul.mubr.msk.f32.gmra.mxu0 %vm597_vm0, %v11528_v0  ;;  %9758 = vmatprep.subr.mxu1 %v990_v31  ;;  %v1005_v51 = vmul.f32 %v11856_v39, %v556_v20  ;;  %v551_v1 = vld [vmem:[%s11773_s17 + $0x90] sm:$0xff] }
  0xce   : > { %15485 = vst [vmem:[#allocation15_spill] sm:$0xff] %v11858_v10  ;;  %v820_v2 = vadd.f32 1.0, %v690_v46  ;;  %9759 = vmatpush3.msra.mxu1 %v990_v31  ;;  %v1004_v59 = vmul.f32 %v11858_v10, %v555_v14  ;;  %9788 = vmatprep.mubr.msk.f32.mxu0 %vm597_vm0, %v11637_v45  ;;  %v552_v14 = vld [vmem:[%s11773_s17 + $0x98] sm:$0xff] }
  0xcf   : > { %10888 = vrsqrt.f32 %v821_v50  ;;  %9761 = vmatmul.mubr.msk.f32.vlgmr.msra.gmra.mxu1 %vm597_vm0, %v11598_v29  ;;  %9772 = vmatprep.subr.mxu0 %v1005_v51 }
  0xd0   : > { %v11870_v19 = vpop.eup %10876  ;;  %10890 = vrsqrt.f32 %v820_v2  ;;  %v687_v0 = vpop.xlane.xlu0 %686  ;;  %9773 = vmatpush3.msra.mxu0 %v1005_v51  ;;  %9763 = vmatprep.mubr.msk.f32.mxu1 %vm597_vm0, %v11591_v26 }
  0xd1   : > { %15486 = vst [vmem:[#allocation16_spill] sm:$0xff] %v11870_v19  ;;  %v684_v5 = vpop.xlane.xlu1 %683  ;;  %v11874_v27 = vpop.eup %10878  ;;  %v819_v45 = vadd.f32 1.0, %v687_v0  ;;  %9774 = vmatprep.subr.mxu0 %v1004_v59  ;;  %v1003_v29 = vmul.f32 %v11870_v19, %v554_v9 }
  0xd2   : > { %15487 = vst [vmem:[#allocation17_spill] sm:$0xff] %v11874_v27  ;;  %v818_v31 = vadd.f32 1.0, %v684_v5  ;;  %9775 = vmatpush3.msra.mxu0 %v1004_v59  ;;  %v1002_v20 = vmul.f32 %v11874_v27, %v553_v8  ;;  %v11891_v8 = vld [vmem:[%s11773_s17 + $0x88] sm:$0xff] }
  0xd3   : > { %10892 = vrsqrt.f32 %v819_v45  ;;  %9764 = vmatmul.mubr.msk.f32.gmra.mxu1 %vm597_vm0, %v11588_v25  ;;  %9776 = vmatprep.subr.mxu0 %v1003_v29 }
  0xd4   : > { %v11882_v26 = vpop.eup %10880  ;;  %10894 = vrsqrt.f32 %v818_v31  ;;  %v681_v46 = vpop.xlane.xlu0 %680  ;;  %9777 = vmatpush3.msra.mxu0 %v1003_v29  ;;  %9766 = vmatprep.mubr.msk.f32.mxu1 %vm597_vm0, %v11581_v22  ;;  %v11896_v22 = vld [vmem:[%s11773_s17 + $0x80] sm:$0xff] }
  0xd5   : > { %v678_v50 = vpop.xlane.xlu1 %677  ;;  %v11886_v2 = vpop.eup %10882  ;;  %v817_v51 = vadd.f32 1.0, %v681_v46  ;;  %9778 = vmatprep.subr.mxu0 %v1002_v20  ;;  %v1001_v25 = vmul.f32 %v11882_v26, %v552_v14 }
  0xd6   : > { %v816_v59 = vadd.f32 1.0, %v678_v50  ;;  %9779 = vmatpush3.msra.mxu0 %v1002_v20  ;;  %v1000_v9 = vmul.f32 %v11886_v2, %v551_v1  ;;  %v564_v1 = vld [vmem:[%s11773_s17 + $0xf8] sm:$0xff] }
  0xd7   : > { %10896 = vrsqrt.f32 %v817_v51  ;;  %9767 = vmatmul.mubr.msk.f32.gmra.mxu1 %vm597_vm0, %v11578_v21  ;;  %9780 = vmatprep.subr.mxu0 %v1001_v25 }
  0xd8   : > { %v11898_v0 = vpop.eup %10884  ;;  %10898 = vrsqrt.f32 %v816_v59  ;;  %v675_v5 = vpop.xlane.xlu0 %674  ;;  %9781 = vmatpush3.msra.mxu0 %v1001_v25  ;;  %9769 = vmatprep.mubr.msk.f32.mxu1 %vm597_vm0, %v11571_v18  ;;  %v563_v18 = vld [vmem:[%s11773_s17 + $0xf0] sm:$0xff] }
  0xd9   : > { %v672_v45 = vpop.xlane.xlu1 %671  ;;  %v11902_v31 = vpop.eup %10886  ;;  %v815_v29 = vadd.f32 1.0, %v675_v5  ;;  %9782 = vmatprep.subr.mxu0 %v1000_v9  ;;  %v999_v21 = vmul.f32 %v11898_v0, %v11891_v8 }
  0xda   : > { %v814_v20 = vadd.f32 1.0, %v672_v45  ;;  %9783 = vmatpush3.msra.mxu0 %v1000_v9  ;;  %v998_v14 = vmul.f32 %v11902_v31, %v11896_v22  ;;  %v562_v45 = vld [vmem:[%s11773_s17 + $0xe8] sm:$0xff] }
  0xdb   : > { %10900 = vrsqrt.f32 %v815_v29  ;;  %9770 = vmatmul.mubr.msk.f32.gmra.mxu1 %vm597_vm0, %v11568_v17  ;;  %9784 = vmatprep.subr.mxu0 %v999_v21  ;;  %v561_v29 = vld [vmem:[%s11773_s17 + $0xe0] sm:$0xff] }
  0xdc   : > { %v11912_v46 = vpop.eup %10888  ;;  %10902 = vrsqrt.f32 %v814_v20  ;;  %v717_v50 = vpop.xlane.xlu0 %716  ;;  %9785 = vmatpush3.msra.mxu0 %v999_v21  ;;  %9816 = vmatprep.mubr.msk.f32.mxu1 %vm597_vm0, %v11677_v61 }
  0xdd   : > { %15488 = vst [vmem:[#allocation18_spill] sm:$0xff] %v11912_v46  ;;  %v714_v51 = vpop.xlane.xlu1 %713  ;;  %v11916_v59 = vpop.eup %10890  ;;  %v829_v25 = vadd.f32 1.0, %v717_v50  ;;  %9786 = vmatprep.subr.mxu0 %v998_v14  ;;  %v1013_v17 = vmul.f32 %v11912_v46, %v564_v1 }
  0xde   : > { %15489 = vst [vmem:[#allocation19_spill] sm:$0xff] %v11916_v59  ;;  %v828_v9 = vadd.f32 1.0, %v714_v51  ;;  %9787 = vmatpush3.msra.mxu0 %v998_v14  ;;  %v1012_v5 = vmul.f32 %v11916_v59, %v563_v18  ;;  %v11933_v51 = vld [vmem:[%s11773_s17 + $0xd8] sm:$0xff] }
  0xdf   : > { %10904 = vrsqrt.f32 %v829_v25  ;;  %9789 = vmatmul.mubr.msk.f32.vlgmr.msra.gmra.mxu0 %vm597_vm0, %v11634_v44  ;;  %9800 = vmatprep.subr.mxu1 %v1013_v17 }
  0xe0   : > { %v11924_v20 = vpop.eup %10892  ;;  %10906 = vrsqrt.f32 %v828_v9  ;;  %v711_v61 = vpop.xlane.xlu0 %710  ;;  %9801 = vmatpush3.msra.mxu1 %v1013_v17  ;;  %9791 = vmatprep.mubr.msk.f32.mxu0 %vm597_vm0, %v11627_v41  ;;  %v11938_v41 = vld [vmem:[%s11773_s17 + $0xd0] sm:$0xff] }
  0xe1   : > { %15490 = vst [vmem:[#allocation20_spill] sm:$0xff] %v11924_v20  ;;  %v708_v21 = vpop.xlane.xlu1 %707  ;;  %v11928_v14 = vpop.eup %10894  ;;  %v827_v1 = vadd.f32 1.0, %v711_v61  ;;  %9802 = vmatprep.subr.mxu1 %v1012_v5  ;;  %v1011_v44 = vmul.f32 %v11924_v20, %v562_v45  ;;  %v11981_v20 = vld [vmem:[%s11773_s17 + $0x128] sm:$0xff] }
  0xe2   : > { %15491 = vst [vmem:[#allocation21_spill] sm:$0xff] %v11928_v14  ;;  %v826_v18 = vadd.f32 1.0, %v708_v21  ;;  %9803 = vmatpush3.msra.mxu1 %v1012_v5  ;;  %v1010_v50 = vmul.f32 %v11928_v14, %v561_v29  ;;  %v11951_v21 = vld [vmem:[%s11773_s17 + $0xc8] sm:$0xff]  ;;  %15494 = vst [vmem:[#allocation24_spill] sm:$0xff] %v11981_v20 }
  0xe3   : > { %10908 = vrsqrt.f32 %v827_v1  ;;  %9792 = vmatmul.mubr.msk.f32.gmra.mxu0 %vm597_vm0, %v11624_v40  ;;  %9804 = vmatprep.subr.mxu1 %v1011_v44 }
  0xe4   : > { %v11940_v25 = vpop.eup %10896  ;;  %10910 = vrsqrt.f32 %v826_v18  ;;  %v705_v9 = vpop.xlane.xlu0 %704  ;;  %9805 = vmatpush3.msra.mxu1 %v1011_v44  ;;  %9794 = vmatprep.mubr.msk.f32.mxu0 %vm597_vm0, %v11617_v37  ;;  %v11956_v37 = vld [vmem:[%s11773_s17 + $0xc0] sm:$0xff] }
  0xe5   : > { %v702_v17 = vpop.xlane.xlu1 %701  ;;  %v11944_v5 = vpop.eup %10898  ;;  %v825_v45 = vadd.f32 1.0, %v705_v9  ;;  %9806 = vmatprep.subr.mxu1 %v1010_v50  ;;  %v1009_v40 = vmul.f32 %v11940_v25, %v11933_v51 }
  0xe6   : > { %v824_v29 = vadd.f32 1.0, %v702_v17  ;;  %9807 = vmatpush3.msra.mxu1 %v1010_v50  ;;  %v1008_v61 = vmul.f32 %v11944_v5, %v11938_v41 }
  0xe7   : > { %10912 = vrsqrt.f32 %v825_v45  ;;  %9795 = vmatmul.mubr.msk.f32.gmra.mxu0 %vm597_vm0, %v11614_v36  ;;  %9808 = vmatprep.subr.mxu1 %v1009_v40 }
  0xe8   : > { %v11958_v1 = vpop.eup %10900  ;;  %10914 = vrsqrt.f32 %v824_v29  ;;  %v699_v18 = vpop.xlane.xlu0 %698  ;;  %9809 = vmatpush3.msra.mxu1 %v1009_v40  ;;  %9797 = vmatprep.mubr.msk.f32.mxu0 %vm597_vm0, %v11607_v33  ;;  %v572_v29 = vld [vmem:[%s11773_s17 + $0x138] sm:$0xff]  ;;  %v571_v33 = vld [vmem:[%s11773_s17 + $0x130] sm:$0xff] }
  0xe9   : > { %v696_v44 = vpop.xlane.xlu1 %695  ;;  %v11962_v50 = vpop.eup %10902  ;;  %v823_v9 = vadd.f32 1.0, %v699_v18  ;;  %9810 = vmatprep.subr.mxu1 %v1008_v61  ;;  %v1007_v36 = vmul.f32 %v11958_v1, %v11951_v21 }
  0xea   : > { %v822_v17 = vadd.f32 1.0, %v696_v44  ;;  %9811 = vmatpush3.msra.mxu1 %v1008_v61  ;;  %v1006_v45 = vmul.f32 %v11962_v50, %v11956_v37 }
  0xeb   : > { %10916 = vrsqrt.f32 %v823_v9  ;;  %9798 = vmatmul.mubr.msk.f32.gmra.mxu0 %vm597_vm0, %v11604_v32  ;;  %9812 = vmatprep.subr.mxu1 %v1007_v36 }
  0xec   : > { %v11972_v40 = vpop.eup %10904  ;;  %10918 = vrsqrt.f32 %v822_v17  ;;  %v741_v18 = vpop.xlane.xlu0 %740  ;;  %9813 = vmatpush3.msra.mxu1 %v1007_v36  ;;  %9844 = vmatprep.mubr.msk.f32.mxu0 %vm597_vm0, %v11708_v24  ;;  %v11986_v17 = vld [vmem:[%s11773_s17 + $0x120] sm:$0xff] }
  0xed   : > { %15492 = vst [vmem:[#allocation22_spill] sm:$0xff] %v11972_v40  ;;  %v738_v44 = vpop.xlane.xlu1 %737  ;;  %v11976_v61 = vpop.eup %10906  ;;  %v837_v46 = vadd.f32 1.0, %v741_v18  ;;  %9814 = vmatprep.subr.mxu1 %v1006_v45  ;;  %v1021_v32 = vmul.f32 %v11972_v40, %v572_v29  ;;  %15495 = vst [vmem:[#allocation25_spill] sm:$0xff] %v11986_v17 }
  0xee   : > { %15493 = vst [vmem:[#allocation23_spill] sm:$0xff] %v11976_v61  ;;  %v836_v9 = vadd.f32 1.0, %v738_v44  ;;  %9815 = vmatpush3.msra.mxu1 %v1006_v45  ;;  %v1020_v59 = vmul.f32 %v11976_v61, %v571_v33  ;;  %v11999_v44 = vld [vmem:[%s11773_s17 + $0x118] sm:$0xff] }
  0xef   : > { %10920 = vrsqrt.f32 %v837_v46  ;;  %9817 = vmatmul.mubr.msk.f32.vlgmr.msra.gmra.mxu1 %vm597_vm0, %v11674_v60  ;;  %9828 = vmatprep.subr.mxu0 %v1021_v32  ;;  %15498 = vst [vmem:[#allocation28_spill] sm:$0xff] %v11999_v44 }
  0xf0   : > { %v11988_v24 = vpop.eup %10908  ;;  %10922 = vrsqrt.f32 %v836_v9  ;;  %v735_v36 = vpop.xlane.xlu0 %734  ;;  %9829 = vmatpush3.msra.mxu0 %v1021_v32  ;;  %9819 = vmatprep.mubr.msk.f32.mxu1 %vm597_vm0, %v11667_v57  ;;  %v12004_v57 = vld [vmem:[%s11773_s17 + $0x110] sm:$0xff] }
  0xf1   : > { %15496 = vst [vmem:[#allocation26_spill] sm:$0xff] %v11988_v24  ;;  %v732_v45 = vpop.xlane.xlu1 %731  ;;  %v11992_v29 = vpop.eup %10910  ;;  %v835_v46 = vadd.f32 1.0, %v735_v36  ;;  %9830 = vmatprep.subr.mxu0 %v1020_v59  ;;  %v1019_v60 = vmul.f32 %v11988_v24, %v11981_v20 }
  0xf2   : > { %15497 = vst [vmem:[#allocation27_spill] sm:$0xff] %v11992_v29  ;;  %v834_v33 = vadd.f32 1.0, %v732_v45  ;;  %9831 = vmatpush3.msra.mxu0 %v1020_v59  ;;  %v1018_v18 = vmul.f32 %v11992_v29, %v11986_v17 }
  0xf3   : > { %10924 = vrsqrt.f32 %v835_v46  ;;  %9820 = vmatmul.mubr.msk.f32.gmra.mxu1 %vm597_vm0, %v11664_v56  ;;  %9832 = vmatprep.subr.mxu0 %v1019_v60 }
  0xf4   : > { %v12006_v9 = vpop.eup %10912  ;;  %10926 = vrsqrt.f32 %v834_v33  ;;  %v729_v32 = vpop.xlane.xlu0 %728  ;;  %9833 = vmatpush3.msra.mxu0 %v1019_v60  ;;  %9822 = vmatprep.mubr.msk.f32.mxu1 %vm597_vm0, %v11657_v53  ;;  %v12017_v33 = vld [vmem:[%s11773_s17 + $0x108] sm:$0xff]  ;;  %v12022_v53 = vld [vmem:[%s11773_s17 + $0x100] sm:$0xff] }
  0xf5   : > { %v726_v59 = vpop.xlane.xlu1 %725  ;;  %v12010_v36 = vpop.eup %10914  ;;  %v833_v45 = vadd.f32 1.0, %v729_v32  ;;  %9834 = vmatprep.subr.mxu0 %v1018_v18  ;;  %v1017_v56 = vmul.f32 %v12006_v9, %v11999_v44  ;;  %v12047_v44 = vld [vmem:[%s11773_s17 + $0x168] sm:$0xff] }
  0xf6   : > { %v832_v46 = vadd.f32 1.0, %v726_v59  ;;  %9835 = vmatpush3.msra.mxu0 %v1018_v18  ;;  %v1016_v40 = vmul.f32 %v12010_v36, %v12004_v57  ;;  %15501 = vst [vmem:[#allocation31_spill] sm:$0xff] %v12047_v44 }
  0xf7   : > { %10928 = vrsqrt.f32 %v833_v45  ;;  %9823 = vmatmul.mubr.msk.f32.gmra.mxu1 %vm597_vm0, %v11654_v52  ;;  %9836 = vmatprep.subr.mxu0 %v1017_v56 }
  0xf8   : > { %v12024_v60 = vpop.eup %10916  ;;  %10930 = vrsqrt.f32 %v832_v46  ;;  %v723_v32 = vpop.xlane.xlu0 %722  ;;  %9837 = vmatpush3.msra.mxu0 %v1017_v56  ;;  %9825 = vmatprep.mubr.msk.f32.mxu1 %vm597_vm0, %v11647_v49  ;;  %v580_v46 = vld [vmem:[%s11773_s17 + $0x178] sm:$0xff]  ;;  %v579_v49 = vld [vmem:[%s11773_s17 + $0x170] sm:$0xff] }
  0xf9   : > { %v720_v18 = vpop.xlane.xlu1 %719  ;;  %v12028_v59 = vpop.eup %10918  ;;  %v831_v45 = vadd.f32 1.0, %v723_v32  ;;  %9838 = vmatprep.subr.mxu0 %v1016_v40  ;;  %v1015_v52 = vmul.f32 %v12024_v60, %v12017_v33 }
  0xfa   : > { %v830_v20 = vadd.f32 1.0, %v720_v18  ;;  %9839 = vmatpush3.msra.mxu0 %v1016_v40  ;;  %v1014_v61 = vmul.f32 %v12028_v59, %v12022_v53 }
  0xfb   : > { %10932 = vrsqrt.f32 %v831_v45  ;;  %9826 = vmatmul.mubr.msk.f32.gmra.mxu1 %vm597_vm0, %v11644_v48  ;;  %9840 = vmatprep.subr.mxu0 %v1015_v52 }
  0xfc   : > { %v12038_v56 = vpop.eup %10920  ;;  %10934 = vrsqrt.f32 %v830_v20  ;;  %v765_v32 = vpop.xlane.xlu0 %764  ;;  %9841 = vmatpush3.msra.mxu0 %v1015_v52  ;;  %9872 = vmatprep.mubr.msk.f32.mxu1 %vm597_vm0, %v11728_v55  ;;  %v12052_v20 = vld [vmem:[%s11773_s17 + $0x160] sm:$0xff] }
  0xfd   : > { %15499 = vst [vmem:[#allocation29_spill] sm:$0xff] %v12038_v56  ;;  %v762_v18 = vpop.xlane.xlu1 %761  ;;  %v12042_v40 = vpop.eup %10922  ;;  %v845_v17 = vadd.f32 1.0, %v765_v32  ;;  %9842 = vmatprep.subr.mxu0 %v1014_v61  ;;  %v1029_v48 = vmul.f32 %v12038_v56, %v580_v46  ;;  %15502 = vst [vmem:[#allocation32_spill] sm:$0xff] %v12052_v20  ;;  %v12083_v56 = vld [vmem:[%s11773_s17 + $0x148] sm:$0xff] }
  0xfe   : > { %15500 = vst [vmem:[#allocation30_spill] sm:$0xff] %v12042_v40  ;;  %v844_v45 = vadd.f32 1.0, %v762_v18  ;;  %9843 = vmatpush3.msra.mxu0 %v1014_v61  ;;  %v1028_v24 = vmul.f32 %v12042_v40, %v579_v49  ;;  %v12065_v18 = vld [vmem:[%s11773_s17 + $0x158] sm:$0xff] }
  0xff   : > { %10936 = vrsqrt.f32 %v845_v17  ;;  %9845 = vmatmul.mubr.msk.f32.vlgmr.msra.gmra.mxu0 %vm597_vm0, %v11705_v23  ;;  %9856 = vmatprep.subr.mxu1 %v1029_v48  ;;  %15505 = vst [vmem:[#allocation35_spill] sm:$0xff] %v12065_v18 }
 0x100   : > { %v12054_v55 = vpop.eup %10924  ;;  %10938 = vrsqrt.f32 %v844_v45  ;;  %v759_v52 = vpop.xlane.xlu0 %758  ;;  %9857 = vmatpush3.msra.mxu1 %v1029_v48  ;;  %9847 = vmatprep.mubr.msk.f32.mxu0 %vm597_vm0, %v11698_v16  ;;  %v12070_v16 = vld [vmem:[%s11773_s17 + $0x150] sm:$0xff] }
 0x101   : > { %15503 = vst [vmem:[#allocation33_spill] sm:$0xff] %v12054_v55  ;;  %v756_v61 = vpop.xlane.xlu1 %755  ;;  %v12058_v46 = vpop.eup %10926  ;;  %v843_v17 = vadd.f32 1.0, %v759_v52  ;;  %9858 = vmatprep.subr.mxu1 %v1028_v24  ;;  %v1027_v23 = vmul.f32 %v12054_v55, %v12047_v44  ;;  %15506 = vst [vmem:[#allocation36_spill] sm:$0xff] %v12070_v16 }
 0x102   : > { %15504 = vst [vmem:[#allocation34_spill] sm:$0xff] %v12058_v46  ;;  %v842_v49 = vadd.f32 1.0, %v756_v61  ;;  %9859 = vmatpush3.msra.mxu1 %v1028_v24  ;;  %v1026_v32 = vmul.f32 %v12058_v46, %v12052_v20 }
 0x103   : > { %10940 = vrsqrt.f32 %v843_v17  ;;  %9848 = vmatmul.mubr.msk.f32.gmra.mxu0 %vm597_vm0, %v11695_v15  ;;  %9860 = vmatprep.subr.mxu1 %v1027_v23 }
 0x104   : > { %v12072_v45 = vpop.eup %10928  ;;  %10942 = vrsqrt.f32 %v842_v49  ;;  %v753_v48 = vpop.xlane.xlu0 %752  ;;  %9861 = vmatpush3.msra.mxu1 %v1027_v23  ;;  %9850 = vmatprep.mubr.msk.f32.mxu0 %vm597_vm0, %v11689_v11  ;;  %v11244_v23 = vld [vmem:[%s11525_s14 + $0x128] sm:$0xff]  ;;  %v12088_v11 = vld [vmem:[%s11773_s17 + $0x140] sm:$0xff] }
 0x105   : > { %15507 = vst [vmem:[#allocation37_spill] sm:$0xff] %v12072_v45  ;;  %v750_v24 = vpop.xlane.xlu1 %749  ;;  %v12076_v52 = vpop.eup %10930  ;;  %v841_v61 = vadd.f32 1.0, %v753_v48  ;;  %9862 = vmatprep.subr.mxu1 %v1026_v32  ;;  %v1025_v17 = vmul.f32 %v12072_v45, %v12065_v18 }
 0x106   : > { %15508 = vst [vmem:[#allocation38_spill] sm:$0xff] %v12076_v52  ;;  %v840_v15 = vadd.f32 1.0, %v750_v24  ;;  %9863 = vmatpush3.msra.mxu1 %v1026_v32  ;;  %v1024_v49 = vmul.f32 %v12076_v52, %v12070_v16  ;;  %v11245_v32 = vld [vmem:[%s11525_s14 + $0x130] sm:$0xff]  ;;  %v12119_v16 = vld [vmem:[%s11773_s17 + $0x1a8] sm:$0xff] }
 0x107   : > { %10944 = vrsqrt.f32 %v841_v61  ;;  %9851 = vmatmul.mubr.msk.f32.gmra.mxu0 %vm597_vm0, %v11244_v23  ;;  %9864 = vmatprep.subr.mxu1 %v1025_v17  ;;  %15515 = vst [vmem:[#allocation45_spill] sm:$0xff] %v12119_v16 }
 0x108   : > { %v12090_v48 = vpop.eup %10932  ;;  %10946 = vrsqrt.f32 %v840_v15  ;;  %v747_v24 = vpop.xlane.xlu0 %746  ;;  %9865 = vmatpush3.msra.mxu1 %v1025_v17  ;;  %9853 = vmatprep.mubr.msk.f32.mxu0 %vm597_vm0, %v11245_v32  ;;  %v12101_v15 = vld [vmem:[%s11773_s17 + $0x1b8] sm:$0xff]  ;;  %v12106_v32 = vld [vmem:[%s11773_s17 + $0x1b0] sm:$0xff] }
 0x109   : > { %15509 = vst [vmem:[#allocation39_spill] sm:$0xff] %v12090_v48  ;;  %v744_v44 = vpop.xlane.xlu1 %743  ;;  %v12094_v40 = vpop.eup %10934  ;;  %v839_v61 = vadd.f32 1.0, %v747_v24  ;;  %9866 = vmatprep.subr.mxu1 %v1024_v49  ;;  %v1023_v20 = vmul.f32 %v12090_v48, %v12083_v56  ;;  %15511 = vst [vmem:[#allocation41_spill] sm:$0xff] %v12101_v15  ;;  %v11246_v17 = vld [vmem:[%s11525_s14 + $0x138] sm:$0xff] }
 0x10a   : > { %15510 = vst [vmem:[#allocation40_spill] sm:$0xff] %v12094_v40  ;;  %v838_v23 = vadd.f32 1.0, %v744_v44  ;;  %9867 = vmatpush3.msra.mxu1 %v1024_v49  ;;  %v1022_v55 = vmul.f32 %v12094_v40, %v12088_v11  ;;  %15512 = vst [vmem:[#allocation42_spill] sm:$0xff] %v12106_v32 }
 0x10b   : > { %10948 = vrsqrt.f32 %v839_v61  ;;  %9854 = vmatmul.mubr.msk.f32.gmra.mxu0 %vm597_vm0, %v11246_v17  ;;  %9868 = vmatprep.subr.mxu1 %v1023_v20 }
 0x10c   : > { %v12108_v24 = vpop.eup %10936  ;;  %10950 = vrsqrt.f32 %v838_v23  ;;  %v789_v44 = vpop.xlane.xlu0 %788  ;;  %9869 = vmatpush3.msra.mxu1 %v1023_v20  ;;  %9900 = vmatprep.mubr.msk.f32.mxu0 %vm597_vm0, %v11747_v30  ;;  %v11247_v20 = vld [vmem:[%s11525_s14 + $0x148] sm:$0xff]  ;;  %v12124_v30 = vld [vmem:[%s11773_s17 + $0x1a0] sm:$0xff] }
 0x10d   : > { %15513 = vst [vmem:[#allocation43_spill] sm:$0xff] %v12108_v24  ;;  %v786_v49 = vpop.xlane.xlu1 %785  ;;  %v12112_v18 = vpop.eup %10938  ;;  %v853_v61 = vadd.f32 1.0, %v789_v44  ;;  %9870 = vmatprep.subr.mxu1 %v1022_v55  ;;  %v1037_v46 = vmul.f32 %v12108_v24, %v12101_v15  ;;  %15516 = vst [vmem:[#allocation46_spill] sm:$0xff] %v12124_v30 }
 0x10e   : > { %15514 = vst [vmem:[#allocation44_spill] sm:$0xff] %v12112_v18  ;;  %v852_v17 = vadd.f32 1.0, %v786_v49  ;;  %9871 = vmatpush3.msra.mxu1 %v1022_v55  ;;  %v1036_v23 = vmul.f32 %v12112_v18, %v12106_v32  ;;  %v11248_v55 = vld [vmem:[%s11525_s14 + $0x150] sm:$0xff]  ;;  %v12137_v18 = vld [vmem:[%s11773_s17 + $0x198] sm:$0xff] }
 0x10f   : > { %10952 = vrsqrt.f32 %v853_v61  ;;  %9873 = vmatmul.mubr.msk.f32.vlgmr.msra.gmra.mxu1 %vm597_vm0, %v11247_v20  ;;  %9884 = vmatprep.subr.mxu0 %v1037_v46  ;;  %15519 = vst [vmem:[#allocation49_spill] sm:$0xff] %v12137_v18 }
 0x110   : > { %v12126_v44 = vpop.eup %10940  ;;  %10954 = vrsqrt.f32 %v852_v17  ;;  %v783_v49 = vpop.xlane.xlu0 %782  ;;  %9885 = vmatpush3.msra.mxu0 %v1037_v46  ;;  %9875 = vmatprep.mubr.msk.f32.mxu1 %vm597_vm0, %v11248_v55  ;;  %v11249_v46 = vld [vmem:[%s11525_s14 + $0x158] sm:$0xff]  ;;  %v12142_v55 = vld [vmem:[%s11773_s17 + $0x190] sm:$0xff] }
 0x111   : > { %15517 = vst [vmem:[#allocation47_spill] sm:$0xff] %v12126_v44  ;;  %v780_v15 = vpop.xlane.xlu1 %779  ;;  %v12130_v32 = vpop.eup %10942  ;;  %v851_v61 = vadd.f32 1.0, %v783_v49  ;;  %9886 = vmatprep.subr.mxu0 %v1036_v23  ;;  %v1035_v24 = vmul.f32 %v12126_v44, %v12119_v16  ;;  %15520 = vst [vmem:[#allocation50_spill] sm:$0xff] %v12142_v55 }
 0x112   : > { %15518 = vst [vmem:[#allocation48_spill] sm:$0xff] %v12130_v32  ;;  %v850_v20 = vadd.f32 1.0, %v780_v15  ;;  %9887 = vmatpush3.msra.mxu0 %v1036_v23  ;;  %v1034_v17 = vmul.f32 %v12130_v32, %v12124_v30  ;;  %v11250_v23 = vld [vmem:[%s11525_s14 + $0x160] sm:$0xff]  ;;  %v12155_v32 = vld [vmem:[%s11773_s17 + $0x188] sm:$0xff] }
 0x113   : > { %10956 = vrsqrt.f32 %v851_v61  ;;  %9876 = vmatmul.mubr.msk.f32.gmra.mxu1 %vm597_vm0, %v11249_v46  ;;  %9888 = vmatprep.subr.mxu0 %v1035_v24  ;;  %15523 = vst [vmem:[#allocation53_spill] sm:$0xff] %v12155_v32 }
 0x114   : > { %v12144_v49 = vpop.eup %10944  ;;  %10958 = vrsqrt.f32 %v850_v20  ;;  %v777_v15 = vpop.xlane.xlu0 %776  ;;  %9889 = vmatpush3.msra.mxu0 %v1035_v24  ;;  %9878 = vmatprep.mubr.msk.f32.mxu1 %vm597_vm0, %v11250_v23  ;;  %v11251_v24 = vld [vmem:[%s11525_s14 + $0x168] sm:$0xff]  ;;  %v12160_v23 = vld [vmem:[%s11773_s17 + $0x180] sm:$0xff] }
 0x115   : > { %15521 = vst [vmem:[#allocation51_spill] sm:$0xff] %v12144_v49  ;;  %v774_v16 = vpop.xlane.xlu1 %773  ;;  %v12148_v30 = vpop.eup %10946  ;;  %v849_v61 = vadd.f32 1.0, %v777_v15  ;;  %9890 = vmatprep.subr.mxu0 %v1034_v17  ;;  %v1033_v44 = vmul.f32 %v12144_v49, %v12137_v18  ;;  %15524 = vst [vmem:[#allocation54_spill] sm:$0xff] %v12160_v23 }
 0x116   : > { %15522 = vst [vmem:[#allocation52_spill] sm:$0xff] %v12148_v30  ;;  %v848_v46 = vadd.f32 1.0, %v774_v16  ;;  %9891 = vmatpush3.msra.mxu0 %v1034_v17  ;;  %v1032_v20 = vmul.f32 %v12148_v30, %v12142_v55  ;;  %v11252_v17 = vld [vmem:[%s11525_s14 + $0x170] sm:$0xff]  ;;  %v12173_v30 = vld [vmem:[%s11773_s17 + $0x1f8] sm:$0xff] }
 0x117   : > { %10960 = vrsqrt.f32 %v849_v61  ;;  %9879 = vmatmul.mubr.msk.f32.gmra.mxu1 %vm597_vm0, %v11251_v24  ;;  %9892 = vmatprep.subr.mxu0 %v1033_v44  ;;  %15527 = vst [vmem:[#allocation57_spill] sm:$0xff] %v12173_v30 }
 0x118   : > { %v12162_v15 = vpop.eup %10948  ;;  %10962 = vrsqrt.f32 %v848_v46  ;;  %v771_v16 = vpop.xlane.xlu0 %770  ;;  %9893 = vmatpush3.msra.mxu0 %v1033_v44  ;;  %9881 = vmatprep.mubr.msk.f32.mxu1 %vm597_vm0, %v11252_v17  ;;  %v11253_v44 = vld [vmem:[%s11525_s14 + $0x178] sm:$0xff]  ;;  %v12178_v17 = vld [vmem:[%s11773_s17 + $0x1f0] sm:$0xff] }
 0x119   : > { %15525 = vst [vmem:[#allocation55_spill] sm:$0xff] %v12162_v15  ;;  %v768_v18 = vpop.xlane.xlu1 %767  ;;  %v12166_v55 = vpop.eup %10950  ;;  %v847_v61 = vadd.f32 1.0, %v771_v16  ;;  %9894 = vmatprep.subr.mxu0 %v1032_v20  ;;  %v1031_v49 = vmul.f32 %v12162_v15, %v12155_v32  ;;  %15528 = vst [vmem:[#allocation58_spill] sm:$0xff] %v12178_v17  ;;  %v12191_v32 = vld [vmem:[%s11773_s17 + $0x1e8] sm:$0xff]  ;;  %v12245_v15 = vld [vmem:[%s11773_s17 + $0x1c0] sm:$0xff] }
 0x11a   : > { %15526 = vst [vmem:[#allocation56_spill] sm:$0xff] %v12166_v55  ;;  %v846_v24 = vadd.f32 1.0, %v768_v18  ;;  %9895 = vmatpush3.msra.mxu0 %v1032_v20  ;;  %v1030_v46 = vmul.f32 %v12166_v55, %v12160_v23  ;;  %v11254_v20 = vld [vmem:[%s11525_s14 + $0x1c0] sm:$0xff]  ;;  %15531 = vst [vmem:[#allocation61_spill] sm:$0xff] %v12191_v32  ;;  %v12237_v23 = vld [vmem:[%s11773_s17 + $0x1c8] sm:$0xff] }
 0x11b   : > { %10964 = vrsqrt.f32 %v847_v61  ;;  %9882 = vmatmul.mubr.msk.f32.gmra.mxu1 %vm597_vm0, %v11253_v44  ;;  %9896 = vmatprep.subr.mxu0 %v1031_v49  ;;  %15539 = vst [vmem:[#allocation69_spill] sm:$0xff] %v12237_v23  ;;  %15540 = vst [vmem:[#allocation70_spill] sm:$0xff] %v12245_v15  ;;  %v11271_v55 = vld [vmem:[%s11773_s17 + $0x10] sm:$0xff] }
 0x11c   : > { %v12180_v18 = vpop.eup %10952  ;;  %10966 = vrsqrt.f32 %v846_v24  ;;  %9897 = vmatpush3.msra.mxu0 %v1031_v49  ;;  %9928 = vmatprep.mubr.msk.f32.mxu1 %vm597_vm0, %v11254_v20  ;;  %v12196_v49 = vld [vmem:[%s15032_s2 + $0x18] sm:$0xff]  ;;  %v11255_v24 = vld [vmem:[%s11525_s14 + $0x188] sm:$0xff]  ;;  %v12201_v20 = vld [vmem:[%s11773_s17 + $0x1e0] sm:$0xff] }
 0x11d   : > { %15529 = vst [vmem:[#allocation59_spill] sm:$0xff] %v12180_v18  ;;  %v12184_v16 = vpop.eup %10954  ;;  %9898 = vmatprep.subr.mxu0 %v1030_v46  ;;  %v1045_v61 = vmul.f32 %v12180_v18, %v12173_v30  ;;  %15532 = vst [vmem:[#allocation62_spill] sm:$0xff] %v12201_v20 }
 0x11e   : > { %15530 = vst [vmem:[#allocation60_spill] sm:$0xff] %v12184_v16  ;;  %9899 = vmatpush3.msra.mxu0 %v1030_v46  ;;  %v1044_v44 = vmul.f32 %v12184_v16, %v12178_v17  ;;  %v11256_v46 = vld [vmem:[%s11525_s14 + $0x190] sm:$0xff]  ;;  %v12215_v16 = vld [vmem:[%s11773_s17 + $0x1d8] sm:$0xff] }
 0x11f   : > { %9901 = vmatmul.mubr.msk.f32.vlgmr.msra.gmra.mxu0 %vm597_vm0, %v11255_v24  ;;  %9912 = vmatprep.subr.mxu1 %v1045_v61  ;;  %15535 = vst [vmem:[#allocation65_spill] sm:$0xff] %v12215_v16 }
 0x120   : > { %v12203_v30 = vpop.eup %10956  ;;  %9913 = vmatpush3.msra.mxu1 %v1045_v61  ;;  %9903 = vmatprep.mubr.msk.f32.mxu0 %vm597_vm0, %v11256_v46  ;;  %v2272_v61 = vld [vmem:[%s15032_s2 + $0x10] sm:$0xff]  ;;  %v11257_v46 = vld [vmem:[%s11525_s14 + $0x198] sm:$0xff] }
 0x121   : > { %15533 = vst [vmem:[#allocation63_spill] sm:$0xff] %v12203_v30  ;;  %v12207_v17 = vpop.eup %10958  ;;  %9914 = vmatprep.subr.mxu1 %v1044_v44  ;;  %v1043_v18 = vmul.f32 %v12203_v30, %v12191_v32  ;;  %9940 = vmatprep.subr.mxu0 %v12196_v49  ;;  %v12224_v32 = vld [vmem:[%s11773_s17 + $0x1d0] sm:$0xff] }
 0x122   : > { %15534 = vst [vmem:[#allocation64_spill] sm:$0xff] %v12207_v17  ;;  %9915 = vmatpush3.msra.mxu1 %v1044_v44  ;;  %v1042_v24 = vmul.f32 %v12207_v17, %v12201_v20  ;;  %9941 = vmatpush3.msra.mxu0 %v12196_v49  ;;  %15536 = vst [vmem:[#allocation66_spill] sm:$0xff] %v12224_v32  ;;  %v11258_v20 = vld [vmem:[%s11525_s14 + $0x1a0] sm:$0xff] }
 0x123   : > { %9904 = vmatmul.mubr.msk.f32.gmra.mxu0 %vm597_vm0, %v11257_v46  ;;  %9916 = vmatprep.subr.mxu1 %v1043_v18 }
 0x124   : > { %v12226_v44 = vpop.eup %10960  ;;  %9917 = vmatpush3.msra.mxu1 %v1043_v18  ;;  %9906 = vmatprep.mubr.msk.f32.mxu0 %vm597_vm0, %v11258_v20  ;;  %v2271_v18 = vld [vmem:[%s15032_s2 + $0x8] sm:$0xff] }
 0x125   : > { %15537 = vst [vmem:[#allocation67_spill] sm:$0xff] %v12226_v44  ;;  %v12230_v30 = vpop.eup %10962  ;;  %9918 = vmatprep.subr.mxu1 %v1042_v24  ;;  %v1041_v17 = vmul.f32 %v12226_v44, %v12215_v16  ;;  %9942 = vmatprep.subr.mxu0 %v2272_v61  ;;  %v11259_v20 = vld [vmem:[%s11525_s14 + $0x1a8] sm:$0xff] }
 0x126   : > { %15538 = vst [vmem:[#allocation68_spill] sm:$0xff] %v12230_v30  ;;  %9919 = vmatpush3.msra.mxu1 %v1042_v24  ;;  %v1040_v46 = vmul.f32 %v12230_v30, %v12224_v32  ;;  %9943 = vmatpush3.msra.mxu0 %v2272_v61  ;;  %v11260_v24 = vld [vmem:[%s11525_s14 + $0x1b0] sm:$0xff]  ;;  %v11261_v30 = vld [vmem:[%s11525_s14 + $0x1b8] sm:$0xff] }
 0x127   : > { %9907 = vmatmul.mubr.msk.f32.gmra.mxu0 %vm597_vm0, %v11259_v20  ;;  %9920 = vmatprep.subr.mxu1 %v1041_v17  ;;  %v2270_v20 = vld [vmem:[%s15032_s2] sm:$0xff] }
 0x128   : > { %v12247_v16 = vpop.eup %10964  ;;  %9921 = vmatpush3.msra.mxu1 %v1041_v17  ;;  %9909 = vmatprep.mubr.msk.f32.mxu0 %vm597_vm0, %v11260_v24  ;;  %v11262_v24 = vld [vmem:[%s11525_s14 + $0x1c8] sm:$0xff] }
 0x129   : > { %15541 = vst [vmem:[#allocation71_spill] sm:$0xff] %v12247_v16  ;;  %v12251_v32 = vpop.eup %10966  ;;  %9922 = vmatprep.subr.mxu1 %v1040_v46  ;;  %v1039_v44 = vmul.f32 %v12247_v16, %v12237_v23  ;;  %9944 = vmatprep.subr.mxu0 %v2271_v18  ;;  %v12297_v23 = vmul.f32 %v11795_v42, %v11795_v42 }
 0x12a   : > { %15542 = vst [vmem:[#allocation72_spill] sm:$0xff] %v12251_v32  ;;  %9923 = vmatpush3.msra.mxu1 %v1040_v46  ;;  %v1038_v17 = vmul.f32 %v12251_v32, %v12245_v15  ;;  %9945 = vmatpush3.msra.mxu0 %v2271_v18  ;;  %v11263_v46 = vld [vmem:[%s11525_s14 + $0x1d0] sm:$0xff]  ;;  %v12304_v15 = vmul.f32 %v11792_v34, %v11792_v34 }
 0x12b   : > { %9910 = vmatmul.mubr.msk.f32.gmra.mxu0 %vm597_vm0, %v11261_v30  ;;  %9924 = vmatprep.subr.mxu1 %v1039_v44  ;;  %v11264_v30 = vld [vmem:[%s11525_s14 + $0x1d8] sm:$0xff]  ;;  %15545 = vst [vmem:[#allocation75_spill] sm:$0xff] %v12297_v23  ;;  %v2144_v45 = vmul.f32 %v11271_v55, %v12297_v23  ;;  %v11273_v23 = vld [vmem:[%s11773_s17 + $0x20] sm:$0xff] }
 0x12c   : > { %9925 = vmatpush3.msra.mxu1 %v1039_v44  ;;  %9946 = vmatprep.subr.mxu0 %v2270_v20  ;;  %v11265_v44 = vld [vmem:[%s11525_s14 + $0x1e0] sm:$0xff]  ;;  %15546 = vst [vmem:[#allocation76_spill] sm:$0xff] %v12304_v15 }
 0x12d   : > { %9926 = vmatprep.subr.mxu1 %v1038_v17  ;;  %9947 = vmatpush3.msra.mxu0 %v2270_v20 }
 0x12e   : > { %9927 = vmatpush3.msra.mxu1 %v1038_v17  ;;  %v11266_v17 = vld [vmem:[%s11525_s14 + $0x1e8] sm:$0xff] }
 0x12f   : > { %9929 = vmatmul.mubr.msk.f32.vlgmr.msra.gmra.mxu1 %vm597_vm0, %v11262_v24  ;;  %10822 = vmatprep.subr.mxu1 %v12196_v49  ;;  %v11267_v24 = vld [vmem:[%s11525_s14 + $0x1f0] sm:$0xff] }
 0x130   : > { %9931 = vmatprep.mubr.msk.f32.mxu1 %vm597_vm0, %v11263_v46  ;;  %10826 = vmatpush3.msra.mxu1 %v12196_v49  ;;  %v11268_v49 = vld [vmem:[%s11525_s14 + $0x1f8] sm:$0xff] }
 0x131   : > { %10823 = vmatprep.subr.mxu1 %v2272_v61 }
 0x132   : > { %10827 = vmatpush3.msra.mxu1 %v2272_v61  ;;  %v12280_v61 = vmul.f32 %v11803_v6, %v11803_v6 }
 0x133   : > { %9932 = vmatmul.mubr.msk.f32.gmra.mxu1 %vm597_vm0, %v11264_v30  ;;  %10824 = vmatprep.subr.mxu1 %v2271_v18 }
 0x134   : > { %9934 = vmatprep.mubr.msk.f32.mxu1 %vm597_vm0, %v11265_v44  ;;  %10828 = vmatpush3.msra.mxu1 %v2271_v18  ;;  %15543 = vst [vmem:[#allocation73_spill] sm:$0xff] %v12280_v61  ;;  %v12284_v18 = vmul.f32 %v11800_v58, %v11800_v58  ;;  %v12290_v44 = vld [vmem:[%s15034_s4 + $0x38] sm:$0xff] }
 0x135   : > { %10825 = vmatprep.subr.mxu1 %v2270_v20 }
 0x136   : > { %10829 = vmatpush3.msra.mxu1 %v2270_v20  ;;  %15544 = vst [vmem:[#allocation74_spill] sm:$0xff] %v12284_v18 }
 0x137   : > { %9935 = vmatmul.mubr.msk.f32.gmra.mxu1 %vm597_vm0, %v11266_v17  ;;  %10044 = vmatprep.subr.mxu1 %v12290_v44 }
 0x138   : > { %9937 = vmatprep.mubr.msk.f32.mxu1 %vm597_vm0, %v11267_v24  ;;  %v11269_v24 = vld [vmem:[%s11773_s17] sm:$0xff] }
 0x13b   : > { %9938 = vmatmul.mubr.msk.f32.gmra.mxu1 %vm597_vm0, %v11268_v49  ;;  %v2142_v49 = vmul.f32 %v11269_v24, %v12280_v61 }
 0x181   : > { %v9734_v46 = vpop.f32.mrf.mxu0 }
 0x182   : > { %v2079_v20 = vmul.f32 %v11800_v58, %v9734_v46  ;;  %v11270_v46 = vld [vmem:[%s11773_s17 + $0x8] sm:$0xff] }
 0x183   : > { %v1136_v30 = vpop.f32.mrf.mxu0  ;;  %v2143_v58 = vmul.f32 %v11270_v46, %v12284_v18  ;;  %v12313_v46 = vmul.f32 %v11786_v12, %v11786_v12  ;;  %v11272_v18 = vld [vmem:[%s11773_s17 + $0x18] sm:$0xff] }
 0x184   : > { %v2078_v17 = vmul.f32 %v11803_v6, %v1136_v30 }
 0x185   : > { %v9737_v16 = vpop.f32.mrf.mxu0  ;;  %v2207_v6 = vadd.f32 %v2143_v58, %v2079_v20  ;;  %15547 = vst [vmem:[#allocation77_spill] sm:$0xff] %v12313_v46  ;;  %v12319_v58 = vmul.f32 %v11780_v63, %v11780_v63 }
 0x186   : > { %v2206_v30 = vadd.f32 %v2142_v49, %v2078_v17  ;;  %v2081_v24 = vmul.f32 %v11792_v34, %v9737_v16  ;;  %v2145_v17 = vmul.f32 %v11272_v18, %v12304_v15  ;;  %v12329_v18 = vmul.f32 %v11782_v3, %v11782_v3  ;;  %v11275_v34 = vld [vmem:[%s11773_s17 + $0x30] sm:$0xff] }
 0x187   : > { %v1146_v61 = vpop.f32.mrf.mxu0  ;;  %15548 = vst [vmem:[#allocation78_spill] sm:$0xff] %v12319_v58 }
 0x188   : > { %v2080_v32 = vmul.f32 %v11795_v42, %v1146_v61  ;;  %9948 = vmatprep.mubr.msk.f32.mxu0 %vm2274_vm1, %v2206_v30  ;;  %v2209_v20 = vadd.f32 %v2145_v17, %v2081_v24  ;;  %v2146_v42 = vmul.f32 %v11273_v23, %v12313_v46  ;;  %15549 = vst [vmem:[#allocation79_spill] sm:$0xff] %v12329_v18 }
 0x189   : > { %v9740_v16 = vpop.f32.mrf.mxu0  ;;  %9949 = vmatmul.mubr.msk.f32.vlgmr.msra.gmra.mxu0 %vm2274_vm1, %v2207_v6  ;;  %v12333_v6 = vmul.f32 %v11776_v47, %v11776_v47  ;;  %v12340_v23 = vmul.f32 %v11845_v13, %v11845_v13 }
 0x18a   : > { %v2208_v61 = vadd.f32 %v2144_v45, %v2080_v32  ;;  %v2083_v55 = vmul.f32 %v11780_v63, %v9740_v16  ;;  %v11274_v45 = vld [vmem:[%s11773_s17 + $0x28] sm:$0xff] }
 0x18b   : > { %v1156_v49 = vpop.f32.mrf.mxu0  ;;  %15550 = vst [vmem:[#allocation80_spill] sm:$0xff] %v12333_v6  ;;  %v2147_v32 = vmul.f32 %v11274_v45, %v12319_v58  ;;  %15551 = vst [vmem:[#allocation81_spill] sm:$0xff] %v12340_v23  ;;  %v11276_v45 = vld [vmem:[%s11773_s17 + $0x38] sm:$0xff] }
 0x18c   : > { %v2082_v30 = vmul.f32 %v11786_v12, %v1156_v49  ;;  %9951 = vmatprep.mubr.msk.f32.mxu0 %vm2274_vm1, %v2208_v61  ;;  %v2148_v12 = vmul.f32 %v11275_v34, %v12329_v18  ;;  %v2150_v34 = vmul.f32 %v12340_v23, %v11841_v54  ;;  %v11279_v23 = vld [vmem:[%s11773_s17 + $0x58] sm:$0xff] }
 0x18d   : > { %v9743_v24 = vpop.f32.mrf.mxu0  ;;  %9952 = vmatmul.mubr.msk.f32.gmra.mxu0 %vm2274_vm1, %v2209_v20  ;;  %v2211_v16 = vadd.f32 %v2147_v32, %v2083_v55  ;;  %v12351_v20 = vmul.f32 %v11843_v4, %v11843_v4 }
 0x18e   : > { %v2210_v17 = vadd.f32 %v2146_v42, %v2082_v30  ;;  %v2085_v61 = vmul.f32 %v11776_v47, %v9743_v24  ;;  %v2149_v42 = vmul.f32 %v11276_v45, %v12333_v6  ;;  %v12359_v24 = vmul.f32 %v11831_v43, %v11831_v43  ;;  %v15616_v6 = vld [vmem:[#allocation53_spill] sm:$0xff] }
 0x18f   : > { %v1166_v49 = vpop.f32.mrf.mxu0  ;;  %v9762_v46 = vpop.f32.mrf.mxu1  ;;  %15552 = vst [vmem:[#allocation82_spill] sm:$0xff] %v12351_v20 }
 0x190   : > { %v2084_v15 = vmul.f32 %v11782_v3, %v1166_v49  ;;  %9954 = vmatprep.mubr.msk.f32.mxu0 %vm2274_vm1, %v2210_v17  ;;  %15553 = vst [vmem:[#allocation83_spill] sm:$0xff] %v12359_v24  ;;  %v2213_v17 = vadd.f32 %v2149_v42, %v2085_v61  ;;  %v2087_v49 = vmul.f32 %v11843_v4, %v9762_v46  ;;  %v11278_v42 = vld [vmem:[%s11773_s17 + $0x50] sm:$0xff] }
 0x191   : > { %v1265_v55 = vpop.f32.mrf.mxu1  ;;  %9955 = vmatmul.mubr.msk.f32.gmra.mxu0 %vm2274_vm1, %v2211_v16  ;;  %v11277_v16 = vld [vmem:[%s11773_s17 + $0x48] sm:$0xff]  ;;  %v2152_v46 = vmul.f32 %v11278_v42, %v12359_v24  ;;  %v11280_v24 = vld [vmem:[%s11773_s17 + $0x60] sm:$0xff] }
 0x192   : > { %v2212_v30 = vadd.f32 %v2148_v12, %v2084_v15  ;;  %v2086_v32 = vmul.f32 %v11845_v13, %v1265_v55  ;;  %v2151_v12 = vmul.f32 %v11277_v16, %v12351_v20  ;;  %v12367_v15 = vmul.f32 %v11829_v35, %v11829_v35 }
 0x193   : > { %v9765_v45 = vpop.f32.mrf.mxu1  ;;  %v12376_v55 = vmul.f32 %v11819_v7, %v11819_v7 }
 0x194   : > { %v2214_v18 = vadd.f32 %v2150_v34, %v2086_v32  ;;  %9957 = vmatprep.mubr.msk.f32.mxu0 %vm2274_vm1, %v2212_v30  ;;  %15554 = vst [vmem:[#allocation84_spill] sm:$0xff] %v12367_v15  ;;  %v2215_v30 = vadd.f32 %v2151_v12, %v2087_v49  ;;  %v2089_v32 = vmul.f32 %v11829_v35, %v9765_v45 }
 0x195   : > { %v1275_v54 = vpop.f32.mrf.mxu1  ;;  %9958 = vmatmul.mubr.msk.f32.gmra.mxu0 %vm2274_vm1, %v2213_v17  ;;  %15555 = vst [vmem:[#allocation85_spill] sm:$0xff] %v12376_v55  ;;  %v2153_v17 = vmul.f32 %v11279_v23, %v12367_v15  ;;  %v2154_v49 = vmul.f32 %v11280_v24, %v12376_v55  ;;  %v12392_v45 = vmul.f32 %v11811_v38, %v11811_v38  ;;  %v11282_v55 = vld [vmem:[%s11773_s17 + $0x70] sm:$0xff] }
 0x196   : > { %v2088_v61 = vmul.f32 %v11831_v43, %v1275_v54  ;;  %9960 = vmatprep.mubr.msk.f32.mxu0 %vm2274_vm1, %v2214_v18  ;;  %v12383_v54 = vmul.f32 %v11817_v62, %v11817_v62 }
 0x197   : > { %v9768_v34 = vpop.f32.mrf.mxu1  ;;  %15557 = vst [vmem:[#allocation87_spill] sm:$0xff] %v12392_v45  ;;  %v2217_v23 = vadd.f32 %v2153_v17, %v2089_v32  ;;  %v2156_v32 = vmul.f32 %v11282_v55, %v12392_v45  ;;  %v11298_v45 = vld [vmem:[%s11773_s17 + $0x178] sm:$0xff] }
 0x198   : > { %v2216_v16 = vadd.f32 %v2152_v46, %v2088_v61  ;;  %15556 = vst [vmem:[#allocation86_spill] sm:$0xff] %v12383_v54  ;;  %v2091_v12 = vmul.f32 %v11817_v62, %v9768_v34  ;;  %v12408_v34 = vmul.f32 %v11902_v31, %v11902_v31 }
 0x199   : > { %v1285_v42 = vpop.f32.mrf.mxu1  ;;  %9961 = vmatmul.mubr.msk.f32.gmra.mxu0 %vm2274_vm1, %v2215_v30  ;;  %v12397_v30 = vmul.f32 %v11809_v28, %v11809_v28 }
 0x19a   : > { %v2090_v18 = vmul.f32 %v11819_v7, %v1285_v42  ;;  %9963 = vmatprep.mubr.msk.f32.mxu0 %vm2274_vm1, %v2216_v16  ;;  %v11281_v42 = vld [vmem:[%s11773_s17 + $0x68] sm:$0xff]  ;;  %15559 = vst [vmem:[#allocation89_spill] sm:$0xff] %v12408_v34 }
 0x19b   : > { %v9771_v61 = vpop.f32.mrf.mxu1  ;;  %15558 = vst [vmem:[#allocation88_spill] sm:$0xff] %v12397_v30  ;;  %v2155_v15 = vmul.f32 %v11281_v42, %v12383_v54  ;;  %v11283_v42 = vld [vmem:[%s11773_s17 + $0x78] sm:$0xff] }
 0x19c   : > { %v2218_v46 = vadd.f32 %v2154_v49, %v2090_v18  ;;  %v2093_v18 = vmul.f32 %v11809_v28, %v9771_v61  ;;  %v2157_v54 = vmul.f32 %v11283_v42, %v12397_v30  ;;  %v12431_v42 = vmul.f32 %v11882_v26, %v11882_v26 }
 0x19d   : > { %v1295_v24 = vpop.f32.mrf.mxu1  ;;  %9964 = vmatmul.mubr.msk.f32.gmra.mxu0 %vm2274_vm1, %v2217_v23  ;;  %v2219_v17 = vadd.f32 %v2155_v15, %v2091_v12  ;;  %v12415_v23 = vmul.f32 %v11898_v0, %v11898_v0  ;;  %v2158_v15 = vmul.f32 %v12408_v34, %v11896_v22  ;;  %v12424_v12 = vmul.f32 %v11886_v2, %v11886_v2  ;;  %v11285_v34 = vld [vmem:[%s11773_s17 + $0x98] sm:$0xff] }
 0x19e   : > { %v2092_v16 = vmul.f32 %v11811_v38, %v1295_v24  ;;  %9966 = vmatprep.mubr.msk.f32.mxu0 %vm2274_vm1, %v2218_v46  ;;  %v2221_v61 = vadd.f32 %v2157_v54, %v2093_v18  ;;  %15562 = vst [vmem:[#allocation92_spill] sm:$0xff] %v12431_v42  ;;  %v12440_v18 = vmul.f32 %v11874_v27, %v11874_v27 }
 0x19f   : > { %v9790_v49 = vpop.f32.mrf.mxu0  ;;  %15560 = vst [vmem:[#allocation90_spill] sm:$0xff] %v12415_v23  ;;  %15561 = vst [vmem:[#allocation91_spill] sm:$0xff] %v12424_v12 }
 0x1a0   : > { %v2220_v20 = vadd.f32 %v2156_v32, %v2092_v16  ;;  %v2095_v24 = vmul.f32 %v11898_v0, %v9790_v49  ;;  %15563 = vst [vmem:[#allocation93_spill] sm:$0xff] %v12440_v18 }
 0x1a1   : > { %v1394_v55 = vpop.f32.mrf.mxu0  ;;  %9967 = vmatmul.mubr.msk.f32.gmra.mxu0 %vm2274_vm1, %v2219_v17  ;;  %v2159_v17 = vmul.f32 %v12415_v23, %v11891_v8 }
 0x1a2   : > { %v2094_v46 = vmul.f32 %v11902_v31, %v1394_v55  ;;  %9969 = vmatprep.mubr.msk.f32.mxu0 %vm2274_vm1, %v2220_v20  ;;  %v11284_v55 = vld [vmem:[%s11773_s17 + $0x90] sm:$0xff] }
 0x1a3   : > { %v9793_v16 = vpop.f32.mrf.mxu0  ;;  %v2160_v54 = vmul.f32 %v11284_v55, %v12424_v12  ;;  %v2223_v8 = vadd.f32 %v2159_v17, %v2095_v24  ;;  %v11286_v12 = vld [vmem:[%s11773_s17 + $0xa0] sm:$0xff] }
 0x1a4   : > { %v2222_v32 = vadd.f32 %v2158_v15, %v2094_v46  ;;  %v2097_v49 = vmul.f32 %v11882_v26, %v9793_v16  ;;  %v2162_v24 = vmul.f32 %v11286_v12, %v12440_v18  ;;  %v12456_v16 = vmul.f32 %v11858_v10, %v11858_v10  ;;  %v11288_v18 = vld [vmem:[%s11773_s17 + $0xb0] sm:$0xff] }
 0x1a5   : > { %v1404_v22 = vpop.f32.mrf.mxu0  ;;  %9970 = vmatmul.mubr.msk.f32.gmra.mxu0 %vm2274_vm1, %v2221_v61  ;;  %v2161_v61 = vmul.f32 %v11285_v34, %v12431_v42  ;;  %v11287_v42 = vld [vmem:[%s11773_s17 + $0xa8] sm:$0xff] }
 0x1a6   : > { %v2096_v20 = vmul.f32 %v11886_v2, %v1404_v22  ;;  %9972 = vmatprep.mubr.msk.f32.mxu0 %vm2274_vm1, %v2222_v32  ;;  %v12447_v22 = vmul.f32 %v11870_v19, %v11870_v19  ;;  %15565 = vst [vmem:[#allocation95_spill] sm:$0xff] %v12456_v16 }
 0x1a7   : > { %v9796_v46 = vpop.f32.mrf.mxu0  ;;  %v2225_v34 = vadd.f32 %v2161_v61, %v2097_v49  ;;  %v2164_v49 = vmul.f32 %v11288_v18, %v12456_v16 }
 0x1a8   : > { %v2224_v15 = vadd.f32 %v2160_v54, %v2096_v20  ;;  %15564 = vst [vmem:[#allocation94_spill] sm:$0xff] %v12447_v22  ;;  %v2099_v17 = vmul.f32 %v11870_v19, %v9796_v46  ;;  %v12472_v46 = vmul.f32 %v11962_v50, %v11962_v50 }
 0x1a9   : > { %v1414_v55 = vpop.f32.mrf.mxu0  ;;  %9973 = vmatmul.mubr.msk.f32.gmra.mxu0 %vm2274_vm1, %v2223_v8  ;;  %v2163_v8 = vmul.f32 %v11287_v42, %v12447_v22  ;;  %v11289_v22 = vld [vmem:[%s11773_s17 + $0xb8] sm:$0xff] }
 0x1aa   : > { %v2098_v32 = vmul.f32 %v11874_v27, %v1414_v55  ;;  %9975 = vmatprep.mubr.msk.f32.mxu0 %vm2274_vm1, %v2224_v15  ;;  %v12463_v55 = vmul.f32 %v11856_v39, %v11856_v39  ;;  %15567 = vst [vmem:[#allocation97_spill] sm:$0xff] %v12472_v46 }
 0x1ab   : > { %v9799_v20 = vpop.f32.mrf.mxu0  ;;  %v2227_v61 = vadd.f32 %v2163_v8, %v2099_v17  ;;  %v12488_v17 = vmul.f32 %v11944_v5, %v11944_v5 }
 0x1ac   : > { %v2226_v54 = vadd.f32 %v2162_v24, %v2098_v32  ;;  %15566 = vst [vmem:[#allocation96_spill] sm:$0xff] %v12463_v55  ;;  %v2101_v42 = vmul.f32 %v11856_v39, %v9799_v20  ;;  %v2165_v23 = vmul.f32 %v11289_v22, %v12463_v55  ;;  %v11297_v55 = vld [vmem:[%s11773_s17 + $0x170] sm:$0xff] }
 0x1ad   : > { %v1424_v12 = vpop.f32.mrf.mxu0  ;;  %9976 = vmatmul.mubr.msk.f32.gmra.mxu0 %vm2274_vm1, %v2225_v34  ;;  %v12479_v34 = vmul.f32 %v11958_v1, %v11958_v1  ;;  %15569 = vst [vmem:[#allocation99_spill] sm:$0xff] %v12488_v17 }
 0x1ae   : > { %v2100_v15 = vmul.f32 %v11858_v10, %v1424_v12  ;;  %9978 = vmatprep.mubr.msk.f32.mxu0 %vm2274_vm1, %v2226_v54  ;;  %v2166_v54 = vmul.f32 %v12472_v46, %v11956_v37  ;;  %v2229_v20 = vadd.f32 %v2165_v23, %v2101_v42  ;;  %v2168_v23 = vmul.f32 %v12488_v17, %v11938_v41  ;;  %v11290_v17 = vld [vmem:[%s11773_s17 + $0xe0] sm:$0xff]  ;;  %v11291_v46 = vld [vmem:[%s11773_s17 + $0xe8] sm:$0xff] }
 0x1af   : > { %v9818_v32 = vpop.f32.mrf.mxu1  ;;  %15568 = vst [vmem:[#allocation98_spill] sm:$0xff] %v12479_v34  ;;  %v12504_v42 = vmul.f32 %v11928_v14, %v11928_v14 }
 0x1b0   : > { %v2228_v24 = vadd.f32 %v2164_v49, %v2100_v15  ;;  %v2103_v22 = vmul.f32 %v11958_v1, %v9818_v32  ;;  %v2167_v49 = vmul.f32 %v12479_v34, %v11951_v21  ;;  %v15576_v34 = vld [vmem:[#allocation18_spill] sm:$0xff] }
 0x1b1   : > { %v1523_v12 = vpop.f32.mrf.mxu1  ;;  %9979 = vmatmul.mubr.msk.f32.gmra.mxu0 %vm2274_vm1, %v2227_v61  ;;  %v12495_v61 = vmul.f32 %v11940_v25, %v11940_v25  ;;  %15571 = vst [vmem:[#allocation101_spill] sm:$0xff] %v12504_v42 }
 0x1b2   : > { %v2102_v18 = vmul.f32 %v11962_v50, %v1523_v12  ;;  %9981 = vmatprep.mubr.msk.f32.mxu0 %vm2274_vm1, %v2228_v24  ;;  %v2231_v21 = vadd.f32 %v2167_v49, %v2103_v22  ;;  %v2170_v22 = vmul.f32 %v11290_v17, %v12504_v42  ;;  %v11292_v42 = vld [vmem:[%s11773_s17 + $0xf0] sm:$0xff] }
 0x1b3   : > { %v9821_v8 = vpop.f32.mrf.mxu1  ;;  %15570 = vst [vmem:[#allocation100_spill] sm:$0xff] %v12495_v61 }
 0x1b4   : > { %v2230_v15 = vadd.f32 %v2166_v54, %v2102_v18  ;;  %v2105_v32 = vmul.f32 %v11940_v25, %v9821_v8  ;;  %v2169_v54 = vmul.f32 %v12495_v61, %v11933_v51  ;;  %v15574_v8 = vld [vmem:[#allocation19_spill] sm:$0xff] }
 0x1b5   : > { %v1533_v37 = vpop.f32.mrf.mxu1  ;;  %9982 = vmatmul.mubr.msk.f32.gmra.mxu0 %vm2274_vm1, %v2229_v20  ;;  %v15572_v20 = vld [vmem:[#allocation20_spill] sm:$0xff]  ;;  %v12520_v49 = vmul.f32 %v15574_v8, %v15574_v8 }
 0x1b6   : > { %v2104_v24 = vmul.f32 %v11944_v5, %v1533_v37  ;;  %9984 = vmatprep.mubr.msk.f32.mxu0 %vm2274_vm1, %v2230_v15  ;;  %v12511_v37 = vmul.f32 %v15572_v20, %v15572_v20  ;;  %v2233_v51 = vadd.f32 %v2169_v54, %v2105_v32 }
 0x1b7   : > { %v9824_v12 = vpop.f32.mrf.mxu1  ;;  %15575 = vst [vmem:[#allocation103_spill] sm:$0xff] %v12520_v49  ;;  %v2172_v32 = vmul.f32 %v11292_v42, %v12520_v49 }
 0x1b8   : > { %v2232_v18 = vadd.f32 %v2168_v23, %v2104_v24  ;;  %15573 = vst [vmem:[#allocation102_spill] sm:$0xff] %v12511_v37  ;;  %v2107_v24 = vmul.f32 %v15572_v20, %v9824_v12  ;;  %v12536_v12 = vmul.f32 %v12028_v59, %v12028_v59 }
 0x1b9   : > { %v1543_v41 = vpop.f32.mrf.mxu1  ;;  %9985 = vmatmul.mubr.msk.f32.gmra.mxu0 %vm2274_vm1, %v2231_v21  ;;  %v2171_v21 = vmul.f32 %v11291_v46, %v12511_v37  ;;  %v11293_v37 = vld [vmem:[%s11773_s17 + $0xf8] sm:$0xff] }
 0x1ba   : > { %v2106_v15 = vmul.f32 %v11928_v14, %v1543_v41  ;;  %9987 = vmatprep.mubr.msk.f32.mxu0 %vm2274_vm1, %v2232_v18  ;;  %v12527_v41 = vmul.f32 %v15576_v34, %v15576_v34  ;;  %15578 = vst [vmem:[#allocation105_spill] sm:$0xff] %v12536_v12  ;;  %v2174_v42 = vmul.f32 %v12536_v12, %v12022_v53 }
 0x1bb   : > { %v9827_v23 = vpop.f32.mrf.mxu1  ;;  %v2235_v54 = vadd.f32 %v2171_v21, %v2107_v24  ;;  %v12552_v24 = vmul.f32 %v12010_v36, %v12010_v36  ;;  %v12557_v21 = vmul.f32 %v12006_v9, %v12006_v9 }
 0x1bc   : > { %v2234_v61 = vadd.f32 %v2170_v22, %v2106_v15  ;;  %15577 = vst [vmem:[#allocation104_spill] sm:$0xff] %v12527_v41  ;;  %v2109_v46 = vmul.f32 %v15576_v34, %v9827_v23  ;;  %v2173_v16 = vmul.f32 %v11293_v37, %v12527_v41  ;;  %v15603_v41 = vld [vmem:[#allocation32_spill] sm:$0xff] }
 0x1bd   : > { %v1553_v17 = vpop.f32.mrf.mxu1  ;;  %9988 = vmatmul.mubr.msk.f32.gmra.mxu0 %vm2274_vm1, %v2233_v51  ;;  %v12543_v51 = vmul.f32 %v12024_v60, %v12024_v60  ;;  %15580 = vst [vmem:[#allocation107_spill] sm:$0xff] %v12552_v24  ;;  %15581 = vst [vmem:[#allocation108_spill] sm:$0xff] %v12557_v21 }
 0x1be   : > { %v2108_v18 = vmul.f32 %v15574_v8, %v1553_v17  ;;  %9990 = vmatprep.mubr.msk.f32.mxu0 %vm2274_vm1, %v2234_v61  ;;  %v2237_v23 = vadd.f32 %v2173_v16, %v2109_v46  ;;  %v2176_v16 = vmul.f32 %v12552_v24, %v12004_v57  ;;  %v12569_v46 = vmul.f32 %v11992_v29, %v11992_v29 }
 0x1bf   : > { %v9846_v15 = vpop.f32.mrf.mxu0  ;;  %15579 = vst [vmem:[#allocation106_spill] sm:$0xff] %v12543_v51 }
 0x1c0   : > { %v2236_v22 = vadd.f32 %v2172_v32, %v2108_v18  ;;  %v2111_v37 = vmul.f32 %v12024_v60, %v9846_v15  ;;  %15582 = vst [vmem:[#allocation109_spill] sm:$0xff] %v12569_v46 }
 0x1c1   : > { %v1652_v17 = vpop.f32.mrf.mxu0  ;;  %9991 = vmatmul.mubr.msk.f32.gmra.mxu0 %vm2274_vm1, %v2235_v54  ;;  %v2175_v54 = vmul.f32 %v12543_v51, %v12017_v33  ;;  %v15586_v51 = vld [vmem:[#allocation25_spill] sm:$0xff] }
 0x1c2   : > { %v2110_v61 = vmul.f32 %v12028_v59, %v1652_v17  ;;  %9993 = vmatprep.mubr.msk.f32.mxu0 %vm2274_vm1, %v2236_v22 }
 0x1c3   : > { %v9849_v18 = vpop.f32.mrf.mxu0  ;;  %v2239_v15 = vadd.f32 %v2175_v54, %v2111_v37  ;;  %v2178_v37 = vmul.f32 %v12569_v46, %v15586_v51  ;;  %v15587_v54 = vld [vmem:[#allocation23_spill] sm:$0xff] }
 0x1c4   : > { %v2238_v32 = vadd.f32 %v2174_v42, %v2110_v61  ;;  %v2113_v53 = vmul.f32 %v12006_v9, %v9849_v18  ;;  %v15583_v61 = vld [vmem:[#allocation28_spill] sm:$0xff]  ;;  %v15584_v42 = vld [vmem:[#allocation26_spill] sm:$0xff] }
 0x1c5   : > { %v1662_v17 = vpop.f32.mrf.mxu0  ;;  %9994 = vmatmul.mubr.msk.f32.gmra.mxu0 %vm2274_vm1, %v2237_v23  ;;  %v2177_v33 = vmul.f32 %v12557_v21, %v15583_v61  ;;  %v12575_v18 = vmul.f32 %v15584_v42, %v15584_v42  ;;  %v12585_v61 = vmul.f32 %v15587_v54, %v15587_v54 }
 0x1c6   : > { %v2112_v22 = vmul.f32 %v12010_v36, %v1662_v17  ;;  %9996 = vmatprep.mubr.msk.f32.mxu0 %vm2274_vm1, %v2238_v32 }
 0x1c7   : > { %15585 = vst [vmem:[#allocation28_spill] sm:$0xff] %v12575_v18  ;;  %v9852_v23 = vpop.f32.mrf.mxu0  ;;  %v2241_v12 = vadd.f32 %v2177_v33, %v2113_v53  ;;  %15588 = vst [vmem:[#allocation25_spill] sm:$0xff] %v12585_v61  ;;  %v2993_v53 = vld [vmem:[%s15034_s4 + $0x30] sm:$0xff] }
 0x1c8   : > { %v2240_v17 = vadd.f32 %v2176_v16, %v2112_v22  ;;  %v2115_v57 = vmul.f32 %v15584_v42, %v9852_v23  ;;  %v11294_v22 = vld [vmem:[%s11525_s14] sm:$0xff]  ;;  %v15589_v16 = vld [vmem:[#allocation24_spill] sm:$0xff] }
 0x1c9   : > { %v1672_v24 = vpop.f32.mrf.mxu0  ;;  %9997 = vmatmul.mubr.msk.f32.gmra.mxu0 %vm2274_vm1, %v2239_v15  ;;  %v15590_v15 = vld [vmem:[#allocation22_spill] sm:$0xff] }
 0x1ca   : > { %v2114_v32 = vmul.f32 %v11992_v29, %v1672_v24  ;;  %9999 = vmatprep.mubr.msk.f32.mxu1 %vm2274_vm1, %v2240_v17  ;;  %10172 = vmatprep.mubr.msk.f32.mxu0 %vm597_vm0, %v11294_v22  ;;  %v2179_v24 = vmul.f32 %v12575_v18, %v15589_v16  ;;  %v12596_v51 = vmul.f32 %v15590_v15, %v15590_v15  ;;  %v2992_v17 = vld [vmem:[%s15034_s4 + $0x28] sm:$0xff]  ;;  %v11295_v18 = vld [vmem:[%s11773_s17 + $0x130] sm:$0xff] }
 0x1cb   : > { %v9855_v33 = vpop.f32.mrf.mxu0  ;;  %10000 = vmatmul.mubr.msk.f32.vlgmr.msra.gmra.mxu1 %vm2274_vm1, %v2241_v12  ;;  %v2180_v49 = vmul.f32 %v11295_v18, %v12585_v61  ;;  %v12610_v12 = vmul.f32 %v12094_v40, %v12094_v40 }
 0x1cc   : > { %15591 = vst [vmem:[#allocation24_spill] sm:$0xff] %v12596_v51  ;;  %v2242_v23 = vadd.f32 %v2178_v37, %v2114_v32  ;;  %10045 = vmatpush3.msra.mxu1 %v12290_v44  ;;  %v2243_v46 = vadd.f32 %v2179_v24, %v2115_v57  ;;  %v2117_v22 = vmul.f32 %v15590_v15, %v9855_v33  ;;  %v2991_v44 = vld [vmem:[%s15034_s4 + $0x20] sm:$0xff]  ;;  %v11296_v57 = vld [vmem:[%s11773_s17 + $0x138] sm:$0xff] }
 0x1cd   : > { %v1682_v21 = vpop.f32.mrf.mxu0  ;;  %10046 = vmatprep.subr.mxu1 %v2993_v53  ;;  %15592 = vst [vmem:[#allocation110_spill] sm:$0xff] %v12610_v12  ;;  %v2181_v32 = vmul.f32 %v11296_v57, %v12596_v51  ;;  %v2182_v61 = vmul.f32 %v12610_v12, %v12088_v11  ;;  %v15597_v12 = vld [vmem:[#allocation36_spill] sm:$0xff] }
 0x1ce   : > { %v2116_v16 = vmul.f32 %v15587_v54, %v1682_v21  ;;  %10002 = vmatprep.mubr.msk.f32.mxu1 %vm2274_vm1, %v2242_v23  ;;  %10047 = vmatpush3.msra.mxu1 %v2993_v53  ;;  %v12619_v21 = vmul.f32 %v12090_v48, %v12090_v48  ;;  %v2990_v53 = vld [vmem:[%s15034_s4 + $0x18] sm:$0xff] }
 0x1cf   : > { %v9874_v37 = vpop.f32.mrf.mxu1  ;;  %10003 = vmatmul.mubr.msk.f32.gmra.mxu1 %vm2274_vm1, %v2243_v46  ;;  %10048 = vmatprep.subr.mxu1 %v2992_v17  ;;  %v2245_v24 = vadd.f32 %v2181_v32, %v2117_v22  ;;  %v2989_v46 = vld [vmem:[%s15034_s4 + $0x10] sm:$0xff]  ;;  %v15595_v22 = vld [vmem:[#allocation37_spill] sm:$0xff] }
 0x1d0   : > { %15593 = vst [vmem:[#allocation111_spill] sm:$0xff] %v12619_v21  ;;  %v2244_v18 = vadd.f32 %v2180_v49, %v2116_v16  ;;  %10049 = vmatpush3.msra.mxu1 %v2992_v17  ;;  %v2119_v33 = vmul.f32 %v12090_v48, %v9874_v37  ;;  %v12632_v49 = vmul.f32 %v12076_v52, %v12076_v52 }
 0x1d1   : > { %v1781_v23 = vpop.f32.mrf.mxu1  ;;  %10050 = vmatprep.subr.mxu1 %v2991_v44  ;;  %v2183_v17 = vmul.f32 %v12619_v21, %v12083_v56  ;;  %v12641_v16 = vmul.f32 %v15595_v22, %v15595_v22 }
 0x1d2   : > { %v2118_v57 = vmul.f32 %v12094_v40, %v1781_v23  ;;  %10005 = vmatprep.mubr.msk.f32.mxu1 %vm2274_vm1, %v2244_v18  ;;  %15594 = vst [vmem:[#allocation112_spill] sm:$0xff] %v12632_v49  ;;  %10051 = vmatpush3.msra.mxu1 %v2991_v44  ;;  %v2988_v44 = vld [vmem:[%s15034_s4 + $0x8] sm:$0xff]  ;;  %v2184_v21 = vmul.f32 %v12632_v49, %v15597_v12 }
 0x1d3   : > { %15596 = vst [vmem:[#allocation113_spill] sm:$0xff] %v12641_v16  ;;  %v9877_v32 = vpop.f32.mrf.mxu1  ;;  %10006 = vmatmul.mubr.msk.f32.gmra.mxu1 %vm2274_vm1, %v2245_v24  ;;  %10052 = vmatprep.subr.mxu1 %v2990_v53  ;;  %v2247_v37 = vadd.f32 %v2183_v17, %v2119_v33  ;;  %v15598_v24 = vld [vmem:[#allocation34_spill] sm:$0xff]  ;;  %v15600_v33 = vld [vmem:[#allocation35_spill] sm:$0xff]  ;;  %v15601_v17 = vld [vmem:[#allocation33_spill] sm:$0xff] }
 0x1d4   : > { %v2246_v11 = vadd.f32 %v2182_v61, %v2118_v57  ;;  %10053 = vmatpush3.msra.mxu1 %v2990_v53  ;;  %v2121_v18 = vmul.f32 %v15595_v22, %v9877_v32  ;;  %v12654_v61 = vmul.f32 %v15598_v24, %v15598_v24  ;;  %v2987_v53 = vld [vmem:[%s15034_s4] sm:$0xff]  ;;  %v2185_v57 = vmul.f32 %v12641_v16, %v15600_v33 }
 0x1d5   : > { %v1791_v23 = vpop.f32.mrf.mxu1  ;;  %10054 = vmatprep.subr.mxu1 %v2989_v46  ;;  %v12663_v32 = vmul.f32 %v15601_v17, %v15601_v17  ;;  %v15604_v16 = vld [vmem:[#allocation30_spill] sm:$0xff] }
 0x1d6   : > { %v2120_v56 = vmul.f32 %v12076_v52, %v1791_v23  ;;  %10008 = vmatprep.mubr.msk.f32.mxu1 %vm2274_vm1, %v2246_v11  ;;  %15599 = vst [vmem:[#allocation36_spill] sm:$0xff] %v12654_v61  ;;  %10055 = vmatpush3.msra.mxu1 %v2989_v46  ;;  %v2249_v11 = vadd.f32 %v2185_v57, %v2121_v18  ;;  %v15607_v18 = vld [vmem:[#allocation29_spill] sm:$0xff] }
 0x1d7   : > { %15602 = vst [vmem:[#allocation35_spill] sm:$0xff] %v12663_v32  ;;  %v9880_v23 = vpop.f32.mrf.mxu1  ;;  %10009 = vmatmul.mubr.msk.f32.gmra.mxu1 %vm2274_vm1, %v2247_v37  ;;  %10056 = vmatprep.subr.mxu1 %v2988_v44  ;;  %v2186_v33 = vmul.f32 %v12654_v61, %v15603_v41  ;;  %v12673_v37 = vmul.f32 %v15604_v16, %v15604_v16 }
 0x1d8   : > { %v2248_v12 = vadd.f32 %v2184_v21, %v2120_v56  ;;  %10057 = vmatpush3.msra.mxu1 %v2988_v44  ;;  %v2123_v46 = vmul.f32 %v15601_v17, %v9880_v23  ;;  %v15606_v21 = vld [vmem:[#allocation31_spill] sm:$0xff]  ;;  %v12679_v56 = vmul.f32 %v15607_v18, %v15607_v18 }
 0x1d9   : > { %v1801_v49 = vpop.f32.mrf.mxu1  ;;  %10058 = vmatprep.subr.mxu1 %v2987_v53  ;;  %15605 = vst [vmem:[#allocation32_spill] sm:$0xff] %v12673_v37  ;;  %v2187_v44 = vmul.f32 %v12663_v32, %v15606_v21  ;;  %v15609_v21 = vld [vmem:[#allocation56_spill] sm:$0xff] }
 0x1da   : > { %v2122_v51 = vmul.f32 %v15598_v24, %v1801_v49  ;;  %10011 = vmatprep.mubr.msk.f32.mxu1 %vm2274_vm1, %v2248_v12  ;;  %10059 = vmatpush3.msra.mxu1 %v2987_v53  ;;  %15608 = vst [vmem:[#allocation31_spill] sm:$0xff] %v12679_v56  ;;  %v2188_v53 = vmul.f32 %v11297_v55, %v12673_v37 }
 0x1db   : > { %v9883_v57 = vpop.f32.mrf.mxu1  ;;  %10012 = vmatmul.mubr.msk.f32.gmra.mxu1 %vm2274_vm1, %v2249_v11  ;;  %v2251_v41 = vadd.f32 %v2187_v44, %v2123_v46  ;;  %v12689_v32 = vmul.f32 %v15609_v21, %v15609_v21  ;;  %v2189_v30 = vmul.f32 %v11298_v45, %v12679_v56  ;;  %v15611_v11 = vld [vmem:[#allocation55_spill] sm:$0xff]  ;;  %v15614_v45 = vld [vmem:[#allocation52_spill] sm:$0xff] }
 0x1dc   : > { %v2250_v49 = vadd.f32 %v2186_v33, %v2122_v51  ;;  %v2125_v23 = vmul.f32 %v15607_v18, %v9883_v57  ;;  %v12695_v51 = vmul.f32 %v15611_v11, %v15611_v11  ;;  %v12705_v56 = vmul.f32 %v15614_v45, %v15614_v45 }
 0x1dd   : > { %v1811_v12 = vpop.f32.mrf.mxu1  ;;  %15610 = vst [vmem:[#allocation114_spill] sm:$0xff] %v12689_v32 }
 0x1de   : > { %v2124_v61 = vmul.f32 %v15604_v16, %v1811_v12  ;;  %10014 = vmatprep.mubr.msk.f32.mxu1 %vm2274_vm1, %v2250_v49  ;;  %15612 = vst [vmem:[#allocation115_spill] sm:$0xff] %v12695_v51  ;;  %v2253_v44 = vadd.f32 %v2189_v30, %v2125_v23  ;;  %v15613_v12 = vld [vmem:[#allocation54_spill] sm:$0xff]  ;;  %v2191_v58 = vmul.f32 %v12695_v51, %v15616_v6  ;;  %v15620_v6 = vld [vmem:[#allocation48_spill] sm:$0xff] }
 0x1df   : > { %v9902_v46 = vpop.f32.mrf.mxu0  ;;  %10015 = vmatmul.mubr.msk.f32.gmra.mxu1 %vm2274_vm1, %v2251_v41  ;;  %v2190_v37 = vmul.f32 %v12689_v32, %v15613_v12  ;;  %15615 = vst [vmem:[#allocation54_spill] sm:$0xff] %v12705_v56  ;;  %v15617_v41 = vld [vmem:[#allocation51_spill] sm:$0xff]  ;;  %v15619_v12 = vld [vmem:[#allocation50_spill] sm:$0xff]  ;;  %v12721_v51 = vmul.f32 %v15620_v6, %v15620_v6 }
 0x1e0   : > { %v2252_v33 = vadd.f32 %v2188_v53, %v2124_v61  ;;  %v2127_v55 = vmul.f32 %v15611_v11, %v9902_v46  ;;  %v12711_v30 = vmul.f32 %v15617_v41, %v15617_v41  ;;  %v2192_v32 = vmul.f32 %v12705_v56, %v15619_v12  ;;  %v15625_v12 = vld [vmem:[#allocation46_spill] sm:$0xff] }
 0x1e1   : > { %v1910_v57 = vpop.f32.mrf.mxu0  ;;  %15621 = vst [vmem:[#allocation50_spill] sm:$0xff] %v12721_v51  ;;  %v2194_v56 = vmul.f32 %v12721_v51, %v15625_v12  ;;  %v15631_v12 = vld [vmem:[#allocation42_spill] sm:$0xff] }
 0x1e2   : > { %v2126_v49 = vmul.f32 %v15609_v21, %v1910_v57  ;;  %10017 = vmatprep.mubr.msk.f32.mxu1 %vm2274_vm1, %v2252_v33  ;;  %15618 = vst [vmem:[#allocation53_spill] sm:$0xff] %v12711_v30  ;;  %v2255_v53 = vadd.f32 %v2191_v58, %v2127_v55  ;;  %v15622_v21 = vld [vmem:[#allocation49_spill] sm:$0xff] }
 0x1e3   : > { %v9905_v61 = vpop.f32.mrf.mxu0  ;;  %10018 = vmatmul.mubr.msk.f32.gmra.mxu1 %vm2274_vm1, %v2253_v44  ;;  %v2193_v11 = vmul.f32 %v12711_v30, %v15622_v21  ;;  %v15623_v44 = vld [vmem:[#allocation47_spill] sm:$0xff]  ;;  %v15626_v21 = vld [vmem:[#allocation44_spill] sm:$0xff] }
 0x1e4   : > { %v2254_v23 = vadd.f32 %v2190_v37, %v2126_v49  ;;  %v2129_v46 = vmul.f32 %v15617_v41, %v9905_v61  ;;  %v12727_v58 = vmul.f32 %v15623_v44, %v15623_v44  ;;  %v12737_v30 = vmul.f32 %v15626_v21, %v15626_v21 }
 0x1e5   : > { %v1920_v57 = vpop.f32.mrf.mxu0 }
 0x1e6   : > { %v2128_v33 = vmul.f32 %v15614_v45, %v1920_v57  ;;  %10020 = vmatprep.mubr.msk.f32.mxu1 %vm2274_vm1, %v2254_v23  ;;  %15624 = vst [vmem:[#allocation49_spill] sm:$0xff] %v12727_v58  ;;  %v2257_v49 = vadd.f32 %v2193_v11, %v2129_v46  ;;  %15627 = vst [vmem:[#allocation46_spill] sm:$0xff] %v12737_v30  ;;  %v15628_v45 = vld [vmem:[#allocation45_spill] sm:$0xff]  ;;  %v2196_v51 = vmul.f32 %v12737_v30, %v15631_v12  ;;  %v15637_v12 = vld [vmem:[#allocation70_spill] sm:$0xff] }
 0x1e7   : > { %v9908_v37 = vpop.f32.mrf.mxu0  ;;  %10021 = vmatmul.mubr.msk.f32.gmra.mxu1 %vm2274_vm1, %v2255_v53  ;;  %v2195_v41 = vmul.f32 %v12727_v58, %v15628_v45  ;;  %v15629_v53 = vld [vmem:[#allocation43_spill] sm:$0xff]  ;;  %v15632_v45 = vld [vmem:[#allocation72_spill] sm:$0xff] }
 0x1e8   : > { %v2256_v55 = vadd.f32 %v2192_v32, %v2128_v33  ;;  %v2131_v61 = vmul.f32 %v15623_v44, %v9908_v37  ;;  %v12743_v32 = vmul.f32 %v15629_v53, %v15629_v53  ;;  %v12753_v58 = vmul.f32 %v15632_v45, %v15632_v45 }
 0x1e9   : > { %v1930_v57 = vpop.f32.mrf.mxu0 }
 0x1ea   : > { %v2130_v23 = vmul.f32 %v15620_v6, %v1930_v57  ;;  %10023 = vmatprep.mubr.msk.f32.mxu1 %vm2274_vm1, %v2256_v55  ;;  %15630 = vst [vmem:[#allocation45_spill] sm:$0xff] %v12743_v32  ;;  %v2259_v33 = vadd.f32 %v2195_v41, %v2131_v61  ;;  %15633 = vst [vmem:[#allocation42_spill] sm:$0xff] %v12753_v58  ;;  %v15634_v6 = vld [vmem:[#allocation41_spill] sm:$0xff]  ;;  %v2198_v30 = vmul.f32 %v12753_v58, %v15637_v12  ;;  %v15643_v12 = vld [vmem:[#allocation66_spill] sm:$0xff] }
 0x1eb   : > { %v9911_v11 = vpop.f32.mrf.mxu0  ;;  %10024 = vmatmul.mubr.msk.f32.gmra.mxu1 %vm2274_vm1, %v2257_v49  ;;  %v2197_v44 = vmul.f32 %v12743_v32, %v15634_v6  ;;  %v15635_v49 = vld [vmem:[#allocation71_spill] sm:$0xff]  ;;  %v15638_v6 = vld [vmem:[#allocation68_spill] sm:$0xff] }
 0x1ec   : > { %v2258_v46 = vadd.f32 %v2194_v56, %v2130_v23  ;;  %v2133_v37 = vmul.f32 %v15629_v53, %v9911_v11  ;;  %v12759_v56 = vmul.f32 %v15635_v49, %v15635_v49  ;;  %v12769_v32 = vmul.f32 %v15638_v6, %v15638_v6 }
 0x1ed   : > { %v1940_v57 = vpop.f32.mrf.mxu0 }
 0x1ee   : > { %v2132_v55 = vmul.f32 %v15626_v21, %v1940_v57  ;;  %10026 = vmatprep.mubr.msk.f32.mxu1 %vm2274_vm1, %v2258_v46  ;;  %15636 = vst [vmem:[#allocation41_spill] sm:$0xff] %v12759_v56  ;;  %v2261_v23 = vadd.f32 %v2197_v44, %v2133_v37  ;;  %15639 = vst [vmem:[#allocation70_spill] sm:$0xff] %v12769_v32  ;;  %v15640_v21 = vld [vmem:[#allocation69_spill] sm:$0xff]  ;;  %v2200_v58 = vmul.f32 %v12769_v32, %v15643_v12  ;;  %v15649_v12 = vld [vmem:[#allocation62_spill] sm:$0xff] }
 0x1ef   : > { %v9930_v41 = vpop.f32.mrf.mxu1  ;;  %10027 = vmatmul.mubr.msk.f32.gmra.mxu1 %vm2274_vm1, %v2259_v33  ;;  %v2199_v53 = vmul.f32 %v12759_v56, %v15640_v21  ;;  %v15641_v33 = vld [vmem:[#allocation67_spill] sm:$0xff]  ;;  %v15644_v21 = vld [vmem:[#allocation64_spill] sm:$0xff] }
 0x1f0   : > { %v2260_v61 = vadd.f32 %v2196_v51, %v2132_v55  ;;  %v2135_v11 = vmul.f32 %v15635_v49, %v9930_v41  ;;  %v12775_v51 = vmul.f32 %v15641_v33, %v15641_v33  ;;  %v12785_v56 = vmul.f32 %v15644_v21, %v15644_v21 }
 0x1f1   : > { %v2039_v57 = vpop.f32.mrf.mxu1 }
 0x1f2   : > { %v2134_v46 = vmul.f32 %v15632_v45, %v2039_v57  ;;  %10029 = vmatprep.mubr.msk.f32.mxu1 %vm2274_vm1, %v2260_v61  ;;  %15642 = vst [vmem:[#allocation69_spill] sm:$0xff] %v12775_v51  ;;  %v2263_v55 = vadd.f32 %v2199_v53, %v2135_v11  ;;  %15645 = vst [vmem:[#allocation66_spill] sm:$0xff] %v12785_v56  ;;  %v15646_v45 = vld [vmem:[#allocation65_spill] sm:$0xff]  ;;  %v2202_v32 = vmul.f32 %v12785_v56, %v15649_v12  ;;  %v15655_v12 = vld [vmem:[#allocation58_spill] sm:$0xff] }
 0x1f3   : > { %v9933_v44 = vpop.f32.mrf.mxu1  ;;  %10030 = vmatmul.mubr.msk.f32.gmra.mxu1 %vm2274_vm1, %v2261_v23  ;;  %v2201_v49 = vmul.f32 %v12775_v51, %v15646_v45  ;;  %v15647_v23 = vld [vmem:[#allocation63_spill] sm:$0xff]  ;;  %v15650_v45 = vld [vmem:[#allocation60_spill] sm:$0xff] }
 0x1f4   : > { %v2262_v37 = vadd.f32 %v2198_v30, %v2134_v46  ;;  %v2137_v41 = vmul.f32 %v15641_v33, %v9933_v44  ;;  %v12791_v30 = vmul.f32 %v15647_v23, %v15647_v23  ;;  %v12801_v51 = vmul.f32 %v15650_v45, %v15650_v45 }
 0x1f5   : > { %v2049_v57 = vpop.f32.mrf.mxu1 }
 0x1f6   : > { %v2136_v61 = vmul.f32 %v15638_v6, %v2049_v57  ;;  %10032 = vmatprep.mubr.msk.f32.mxu1 %vm2274_vm1, %v2262_v37  ;;  %15648 = vst [vmem:[#allocation65_spill] sm:$0xff] %v12791_v30  ;;  %v2265_v46 = vadd.f32 %v2201_v49, %v2137_v41  ;;  %15651 = vst [vmem:[#allocation62_spill] sm:$0xff] %v12801_v51  ;;  %v15652_v6 = vld [vmem:[#allocation61_spill] sm:$0xff]  ;;  %v2204_v56 = vmul.f32 %v12801_v51, %v15655_v12 }
 0x1f7   : > { %v9936_v53 = vpop.f32.mrf.mxu1  ;;  %10033 = vmatmul.mubr.msk.f32.gmra.mxu1 %vm2274_vm1, %v2263_v55  ;;  %v2203_v33 = vmul.f32 %v12791_v30, %v15652_v6  ;;  %v15653_v55 = vld [vmem:[#allocation59_spill] sm:$0xff]  ;;  %v15656_v6 = vld [vmem:[#allocation57_spill] sm:$0xff] }
 0x1f8   : > { %v2264_v11 = vadd.f32 %v2200_v58, %v2136_v61  ;;  %v2139_v44 = vmul.f32 %v15647_v23, %v9936_v53  ;;  %v12807_v58 = vmul.f32 %v15653_v55, %v15653_v55 }
 0x1f9   : > { %v2059_v57 = vpop.f32.mrf.mxu1 }
 0x1fa   : > { %v2138_v37 = vmul.f32 %v15644_v21, %v2059_v57  ;;  %10035 = vmatprep.mubr.msk.f32.mxu1 %vm2274_vm1, %v2264_v11  ;;  %15654 = vst [vmem:[#allocation61_spill] sm:$0xff] %v12807_v58  ;;  %v2267_v61 = vadd.f32 %v2203_v33, %v2139_v44  ;;  %v2205_v30 = vmul.f32 %v12807_v58, %v15656_v6 }
 0x1fb   : > { %v9939_v49 = vpop.f32.mrf.mxu1  ;;  %10036 = vmatmul.mubr.msk.f32.gmra.mxu1 %vm2274_vm1, %v2265_v46 }
 0x1fc   : > { %v2266_v41 = vadd.f32 %v2202_v32, %v2138_v37  ;;  %v2141_v53 = vmul.f32 %v15653_v55, %v9939_v49  ;;  %v12823_v32 = vld [vmem:[%s15033_s3] ss:$0 sm:$0xff] }
 0x1fd   : > { %v2069_v57 = vpop.f32.mrf.mxu1 }
 0x1fe   : > { %v2140_v11 = vmul.f32 %v15650_v45, %v2069_v57  ;;  %10038 = vmatprep.mubr.msk.f32.mxu1 %vm2274_vm1, %v2266_v41  ;;  %v2269_v23 = vadd.f32 %v2205_v30, %v2141_v53 }
 0x1ff   : > { %10039 = vmatmul.mubr.msk.f32.gmra.mxu1 %vm2274_vm1, %v2267_v61 }
 0x200   : > { %v2268_v21 = vadd.f32 %v2204_v56, %v2140_v11 }
 0x202   : > { %10041 = vmatprep.mubr.msk.f32.mxu1 %vm2274_vm1, %v2268_v21 }
 0x203   : > { %10042 = vmatmul.mubr.msk.f32.gmra.mxu1 %vm2274_vm1, %v2269_v23 }
 0x249   : > { %v9950_v33 = vpop.f32.mrf.mxu0 }
 0x24a   : > { %v2860_v46 = vadd.f32 %v9950_v33, %v12823_v32 }
 0x24b   : > { %v2533_v44 = vpop.f32.mrf.mxu0 }
 0x24c   : > { %v2859_v37 = vadd.f32 %v12823_v32, %v2533_v44  ;;  %v2924_v61 = vmax.f32 %v2860_v46, 0.0 }
 0x24d   : > { %v9953_v49 = vpop.f32.mrf.mxu0 }
 0x24e   : > { %v2923_v41 = vmax.f32 %v2859_v37, 0.0  ;;  %v2862_v56 = vadd.f32 %v9953_v49, %v12823_v32 }
 0x24f   : > { %v2543_v30 = vpop.f32.mrf.mxu0 }
 0x250   : > { %v2861_v21 = vadd.f32 %v12823_v32, %v2543_v30  ;;  %10060 = vmatprep.mubr.msk.f32.mxu1 %vm597_vm0, %v2923_v41  ;;  %v2926_v57 = vmax.f32 %v2862_v56, 0.0 }
 0x251   : > { %v9956_v23 = vpop.f32.mrf.mxu0  ;;  %10061 = vmatmul.mubr.msk.f32.vlgmr.msra.gmra.mxu1 %vm597_vm0, %v2924_v61 }
 0x252   : > { %v2925_v53 = vmax.f32 %v2861_v21, 0.0  ;;  %v2864_v11 = vadd.f32 %v9956_v23, %v12823_v32 }
 0x253   : > { %v2553_v12 = vpop.f32.mrf.mxu0 }
 0x254   : > { %v2863_v6 = vadd.f32 %v12823_v32, %v2553_v12  ;;  %10063 = vmatprep.mubr.msk.f32.mxu1 %vm597_vm0, %v2925_v53  ;;  %v2928_v44 = vmax.f32 %v2864_v11, 0.0 }
 0x255   : > { %v9959_v33 = vpop.f32.mrf.mxu0  ;;  %10064 = vmatmul.mubr.msk.f32.gmra.mxu1 %vm597_vm0, %v2926_v57 }
 0x256   : > { %v2927_v46 = vmax.f32 %v2863_v6, 0.0  ;;  %v2866_v37 = vadd.f32 %v9959_v33, %v12823_v32 }
 0x257   : > { %v2563_v49 = vpop.f32.mrf.mxu0 }
 0x258   : > { %v2865_v41 = vadd.f32 %v12823_v32, %v2563_v49  ;;  %10066 = vmatprep.mubr.msk.f32.mxu1 %vm597_vm0, %v2927_v46  ;;  %v2930_v30 = vmax.f32 %v2866_v37, 0.0 }
 0x259   : > { %v9962_v61 = vpop.f32.mrf.mxu0  ;;  %10067 = vmatmul.mubr.msk.f32.gmra.mxu1 %vm597_vm0, %v2928_v44 }
 0x25a   : > { %v2929_v56 = vmax.f32 %v2865_v41, 0.0  ;;  %v2868_v21 = vadd.f32 %v9962_v61, %v12823_v32 }
 0x25b   : > { %v2573_v23 = vpop.f32.mrf.mxu0 }
 0x25c   : > { %v2867_v53 = vadd.f32 %v12823_v32, %v2573_v23  ;;  %10069 = vmatprep.mubr.msk.f32.mxu1 %vm597_vm0, %v2929_v56  ;;  %v2932_v12 = vmax.f32 %v2868_v21, 0.0 }
 0x25d   : > { %v9965_v57 = vpop.f32.mrf.mxu0  ;;  %10070 = vmatmul.mubr.msk.f32.gmra.mxu1 %vm597_vm0, %v2930_v30 }
 0x25e   : > { %v2931_v11 = vmax.f32 %v2867_v53, 0.0  ;;  %v2870_v6 = vadd.f32 %v9965_v57, %v12823_v32 }
 0x25f   : > { %v2583_v33 = vpop.f32.mrf.mxu0 }
 0x260   : > { %v2869_v46 = vadd.f32 %v12823_v32, %v2583_v33  ;;  %10072 = vmatprep.mubr.msk.f32.mxu1 %vm597_vm0, %v2931_v11  ;;  %v2934_v49 = vmax.f32 %v2870_v6, 0.0 }
 0x261   : > { %v9968_v44 = vpop.f32.mrf.mxu0  ;;  %10073 = vmatmul.mubr.msk.f32.gmra.mxu1 %vm597_vm0, %v2932_v12 }
 0x262   : > { %v2933_v37 = vmax.f32 %v2869_v46, 0.0  ;;  %v2872_v41 = vadd.f32 %v9968_v44, %v12823_v32 }
 0x263   : > { %v2593_v61 = vpop.f32.mrf.mxu0 }
 0x264   : > { %v2871_v56 = vadd.f32 %v12823_v32, %v2593_v61  ;;  %10075 = vmatprep.mubr.msk.f32.mxu1 %vm597_vm0, %v2933_v37  ;;  %v2936_v23 = vmax.f32 %v2872_v41, 0.0 }
 0x265   : > { %v9971_v30 = vpop.f32.mrf.mxu0  ;;  %10076 = vmatmul.mubr.msk.f32.gmra.mxu1 %vm597_vm0, %v2934_v49 }
 0x266   : > { %v2935_v21 = vmax.f32 %v2871_v56, 0.0  ;;  %v2874_v53 = vadd.f32 %v9971_v30, %v12823_v32 }
 0x267   : > { %v2603_v57 = vpop.f32.mrf.mxu0 }
 0x268   : > { %v2873_v11 = vadd.f32 %v12823_v32, %v2603_v57  ;;  %10078 = vmatprep.mubr.msk.f32.mxu1 %vm597_vm0, %v2935_v21  ;;  %v2938_v33 = vmax.f32 %v2874_v53, 0.0 }
 0x269   : > { %v9974_v12 = vpop.f32.mrf.mxu0  ;;  %10079 = vmatmul.mubr.msk.f32.gmra.mxu1 %vm597_vm0, %v2936_v23 }
 0x26a   : > { %v2937_v6 = vmax.f32 %v2873_v11, 0.0  ;;  %v2876_v46 = vadd.f32 %v9974_v12, %v12823_v32 }
 0x26b   : > { %v2613_v44 = vpop.f32.mrf.mxu0 }
 0x26c   : > { %v2875_v37 = vadd.f32 %v12823_v32, %v2613_v44  ;;  %10081 = vmatprep.mubr.msk.f32.mxu1 %vm597_vm0, %v2937_v6  ;;  %v2940_v61 = vmax.f32 %v2876_v46, 0.0 }
 0x26d   : > { %v9977_v49 = vpop.f32.mrf.mxu0  ;;  %10082 = vmatmul.mubr.msk.f32.gmra.mxu1 %vm597_vm0, %v2938_v33 }
 0x26e   : > { %v2939_v41 = vmax.f32 %v2875_v37, 0.0  ;;  %v2878_v56 = vadd.f32 %v9977_v49, %v12823_v32 }
 0x26f   : > { %v2623_v30 = vpop.f32.mrf.mxu0 }
 0x270   : > { %v2877_v21 = vadd.f32 %v12823_v32, %v2623_v30  ;;  %10084 = vmatprep.mubr.msk.f32.mxu1 %vm597_vm0, %v2939_v41  ;;  %v2942_v57 = vmax.f32 %v2878_v56, 0.0 }
 0x271   : > { %v9980_v23 = vpop.f32.mrf.mxu0  ;;  %10085 = vmatmul.mubr.msk.f32.gmra.mxu1 %vm597_vm0, %v2940_v61 }
 0x272   : > { %v2941_v53 = vmax.f32 %v2877_v21, 0.0  ;;  %v2880_v11 = vadd.f32 %v9980_v23, %v12823_v32 }
 0x273   : > { %v2633_v12 = vpop.f32.mrf.mxu0 }
 0x274   : > { %v2879_v6 = vadd.f32 %v12823_v32, %v2633_v12  ;;  %10087 = vmatprep.mubr.msk.f32.mxu1 %vm597_vm0, %v2941_v53  ;;  %v2944_v44 = vmax.f32 %v2880_v11, 0.0 }
 0x275   : > { %v9983_v33 = vpop.f32.mrf.mxu0  ;;  %10088 = vmatmul.mubr.msk.f32.gmra.mxu1 %vm597_vm0, %v2942_v57 }
 0x276   : > { %v2943_v46 = vmax.f32 %v2879_v6, 0.0  ;;  %v2882_v37 = vadd.f32 %v9983_v33, %v12823_v32 }
 0x277   : > { %v2643_v49 = vpop.f32.mrf.mxu0 }
 0x278   : > { %v2881_v41 = vadd.f32 %v12823_v32, %v2643_v49  ;;  %10090 = vmatprep.mubr.msk.f32.mxu1 %vm597_vm0, %v2943_v46  ;;  %v2946_v30 = vmax.f32 %v2882_v37, 0.0 }
 0x279   : > { %v9986_v61 = vpop.f32.mrf.mxu0  ;;  %10091 = vmatmul.mubr.msk.f32.gmra.mxu1 %vm597_vm0, %v2944_v44 }
 0x27a   : > { %v2945_v56 = vmax.f32 %v2881_v41, 0.0  ;;  %v2884_v21 = vadd.f32 %v9986_v61, %v12823_v32 }
 0x27b   : > { %v2653_v23 = vpop.f32.mrf.mxu0 }
 0x27c   : > { %v2883_v53 = vadd.f32 %v12823_v32, %v2653_v23  ;;  %10093 = vmatprep.mubr.msk.f32.mxu1 %vm597_vm0, %v2945_v56  ;;  %v2948_v12 = vmax.f32 %v2884_v21, 0.0 }
 0x27d   : > { %v9989_v57 = vpop.f32.mrf.mxu0  ;;  %10094 = vmatmul.mubr.msk.f32.gmra.mxu1 %vm597_vm0, %v2946_v30 }
 0x27e   : > { %v2947_v11 = vmax.f32 %v2883_v53, 0.0  ;;  %v2886_v6 = vadd.f32 %v9989_v57, %v12823_v32 }
 0x27f   : > { %v2663_v33 = vpop.f32.mrf.mxu0 }
 0x280   : > { %v2885_v46 = vadd.f32 %v12823_v32, %v2663_v33  ;;  %10096 = vmatprep.mubr.msk.f32.mxu1 %vm597_vm0, %v2947_v11  ;;  %v2950_v49 = vmax.f32 %v2886_v6, 0.0 }
 0x281   : > { %v9992_v44 = vpop.f32.mrf.mxu0  ;;  %10097 = vmatmul.mubr.msk.f32.gmra.mxu1 %vm597_vm0, %v2948_v12 }
 0x282   : > { %v2949_v37 = vmax.f32 %v2885_v46, 0.0  ;;  %v2888_v41 = vadd.f32 %v9992_v44, %v12823_v32 }
 0x283   : > { %v2673_v61 = vpop.f32.mrf.mxu0 }
 0x284   : > { %v2887_v56 = vadd.f32 %v12823_v32, %v2673_v61  ;;  %10099 = vmatprep.mubr.msk.f32.mxu1 %vm597_vm0, %v2949_v37  ;;  %v2952_v23 = vmax.f32 %v2888_v41, 0.0 }
 0x285   : > { %v9995_v30 = vpop.f32.mrf.mxu0  ;;  %10100 = vmatmul.mubr.msk.f32.gmra.mxu1 %vm597_vm0, %v2950_v49 }
 0x286   : > { %v2951_v21 = vmax.f32 %v2887_v56, 0.0  ;;  %v2890_v53 = vadd.f32 %v9995_v30, %v12823_v32 }
 0x287   : > { %v2683_v57 = vpop.f32.mrf.mxu0 }
 0x288   : > { %v2889_v11 = vadd.f32 %v12823_v32, %v2683_v57  ;;  %10102 = vmatprep.mubr.msk.f32.mxu1 %vm597_vm0, %v2951_v21  ;;  %v2954_v33 = vmax.f32 %v2890_v53, 0.0 }
 0x289   : > { %v9998_v12 = vpop.f32.mrf.mxu0  ;;  %10103 = vmatmul.mubr.msk.f32.gmra.mxu1 %vm597_vm0, %v2952_v23 }
 0x28a   : > { %v2953_v6 = vmax.f32 %v2889_v11, 0.0  ;;  %v2892_v46 = vadd.f32 %v9998_v12, %v12823_v32 }
 0x28b   : > { %v2693_v44 = vpop.f32.mrf.mxu0  ;;  %v10001_v37 = vpop.f32.mrf.mxu1 }
 0x28c   : > { %v2891_v49 = vadd.f32 %v12823_v32, %v2693_v44  ;;  %10105 = vmatprep.mubr.msk.f32.mxu1 %vm597_vm0, %v2953_v6  ;;  %v2956_v30 = vmax.f32 %v2892_v46, 0.0  ;;  %v2894_v21 = vadd.f32 %v10001_v37, %v12823_v32 }
 0x28d   : > { %v2703_v41 = vpop.f32.mrf.mxu1  ;;  %10106 = vmatmul.mubr.msk.f32.gmra.mxu1 %vm597_vm0, %v2954_v33 }
 0x28e   : > { %v2955_v61 = vmax.f32 %v2891_v49, 0.0  ;;  %v2893_v56 = vadd.f32 %v12823_v32, %v2703_v41  ;;  %v2958_v12 = vmax.f32 %v2894_v21, 0.0 }
 0x28f   : > { %v10004_v23 = vpop.f32.mrf.mxu1 }
 0x290   : > { %v2957_v57 = vmax.f32 %v2893_v56, 0.0  ;;  %10108 = vmatprep.mubr.msk.f32.mxu1 %vm597_vm0, %v2955_v61  ;;  %v2896_v6 = vadd.f32 %v10004_v23, %v12823_v32 }
 0x291   : > { %v2713_v53 = vpop.f32.mrf.mxu1  ;;  %10109 = vmatmul.mubr.msk.f32.gmra.mxu1 %vm597_vm0, %v2956_v30 }
 0x292   : > { %v2895_v11 = vadd.f32 %v12823_v32, %v2713_v53  ;;  %10111 = vmatprep.mubr.msk.f32.mxu1 %vm597_vm0, %v2957_v57  ;;  %v2960_v37 = vmax.f32 %v2896_v6, 0.0 }
 0x293   : > { %v10007_v33 = vpop.f32.mrf.mxu1 }
 0x294   : > { %v2959_v44 = vmax.f32 %v2895_v11, 0.0  ;;  %v2898_v41 = vadd.f32 %v10007_v33, %v12823_v32 }
 0x295   : > { %v2723_v49 = vpop.f32.mrf.mxu1  ;;  %10112 = vmatmul.mubr.msk.f32.gmra.mxu1 %vm597_vm0, %v2958_v12 }
 0x296   : > { %v2897_v46 = vadd.f32 %v12823_v32, %v2723_v49  ;;  %10114 = vmatprep.mubr.msk.f32.mxu1 %vm597_vm0, %v2959_v44  ;;  %v2962_v23 = vmax.f32 %v2898_v41, 0.0 }
 0x297   : > { %v10010_v61 = vpop.f32.mrf.mxu1 }
 0x298   : > { %v2961_v56 = vmax.f32 %v2897_v46, 0.0  ;;  %v2900_v57 = vadd.f32 %v10010_v61, %v12823_v32 }
 0x299   : > { %v2733_v30 = vpop.f32.mrf.mxu1  ;;  %10115 = vmatmul.mubr.msk.f32.gmra.mxu1 %vm597_vm0, %v2960_v37 }
 0x29a   : > { %v2899_v21 = vadd.f32 %v12823_v32, %v2733_v30  ;;  %10117 = vmatprep.mubr.msk.f32.mxu1 %vm597_vm0, %v2961_v56  ;;  %v2964_v33 = vmax.f32 %v2900_v57, 0.0 }
 0x29b   : > { %v10013_v53 = vpop.f32.mrf.mxu1 }
 0x29c   : > { %v2963_v11 = vmax.f32 %v2899_v21, 0.0  ;;  %v2902_v44 = vadd.f32 %v10013_v53, %v12823_v32 }
 0x29d   : > { %v2743_v12 = vpop.f32.mrf.mxu1  ;;  %10118 = vmatmul.mubr.msk.f32.gmra.mxu1 %vm597_vm0, %v2962_v23 }
 0x29e   : > { %v2901_v6 = vadd.f32 %v12823_v32, %v2743_v12  ;;  %10120 = vmatprep.mubr.msk.f32.mxu1 %vm597_vm0, %v2963_v11  ;;  %v2966_v61 = vmax.f32 %v2902_v44, 0.0 }
 0x29f   : > { %v10016_v49 = vpop.f32.mrf.mxu1 }
 0x2a0   : > { %v2965_v46 = vmax.f32 %v2901_v6, 0.0  ;;  %v2904_v56 = vadd.f32 %v10016_v49, %v12823_v32 }
 0x2a1   : > { %v2753_v37 = vpop.f32.mrf.mxu1  ;;  %10121 = vmatmul.mubr.msk.f32.gmra.mxu1 %vm597_vm0, %v2964_v33 }
 0x2a2   : > { %v2903_v41 = vadd.f32 %v12823_v32, %v2753_v37  ;;  %10123 = vmatprep.mubr.msk.f32.mxu1 %vm597_vm0, %v2965_v46  ;;  %v2968_v53 = vmax.f32 %v2904_v56, 0.0 }
 0x2a3   : > { %v10019_v30 = vpop.f32.mrf.mxu1 }
 0x2a4   : > { %v2967_v21 = vmax.f32 %v2903_v41, 0.0  ;;  %v2906_v11 = vadd.f32 %v10019_v30, %v12823_v32 }
 0x2a5   : > { %v2763_v23 = vpop.f32.mrf.mxu1  ;;  %10124 = vmatmul.mubr.msk.f32.gmra.mxu1 %vm597_vm0, %v2966_v61 }
 0x2a6   : > { %v2905_v57 = vadd.f32 %v12823_v32, %v2763_v23  ;;  %10126 = vmatprep.mubr.msk.f32.mxu1 %vm597_vm0, %v2967_v21  ;;  %v2970_v49 = vmax.f32 %v2906_v11, 0.0 }
 0x2a7   : > { %v10022_v12 = vpop.f32.mrf.mxu1 }
 0x2a8   : > { %v2969_v6 = vmax.f32 %v2905_v57, 0.0  ;;  %v2908_v46 = vadd.f32 %v10022_v12, %v12823_v32 }
 0x2a9   : > { %v2773_v33 = vpop.f32.mrf.mxu1  ;;  %10127 = vmatmul.mubr.msk.f32.gmra.mxu1 %vm597_vm0, %v2968_v53 }
 0x2aa   : > { %v2907_v44 = vadd.f32 %v12823_v32, %v2773_v33  ;;  %10129 = vmatprep.mubr.msk.f32.mxu1 %vm597_vm0, %v2969_v6  ;;  %v2972_v30 = vmax.f32 %v2908_v46, 0.0 }
 0x2ab   : > { %v10025_v37 = vpop.f32.mrf.mxu1 }
 0x2ac   : > { %v2971_v41 = vmax.f32 %v2907_v44, 0.0  ;;  %v2910_v21 = vadd.f32 %v10025_v37, %v12823_v32 }
 0x2ad   : > { %v2783_v61 = vpop.f32.mrf.mxu1  ;;  %10130 = vmatmul.mubr.msk.f32.gmra.mxu1 %vm597_vm0, %v2970_v49 }
 0x2ae   : > { %v2909_v56 = vadd.f32 %v12823_v32, %v2783_v61  ;;  %10132 = vmatprep.mubr.msk.f32.mxu1 %vm597_vm0, %v2971_v41  ;;  %v2974_v12 = vmax.f32 %v2910_v21, 0.0 }
 0x2af   : > { %v10028_v23 = vpop.f32.mrf.mxu1 }
 0x2b0   : > { %v2973_v57 = vmax.f32 %v2909_v56, 0.0  ;;  %v2912_v6 = vadd.f32 %v10028_v23, %v12823_v32 }
 0x2b1   : > { %v2793_v53 = vpop.f32.mrf.mxu1  ;;  %10133 = vmatmul.mubr.msk.f32.gmra.mxu1 %vm597_vm0, %v2972_v30 }
 0x2b2   : > { %v2911_v11 = vadd.f32 %v12823_v32, %v2793_v53  ;;  %10135 = vmatprep.mubr.msk.f32.mxu1 %vm597_vm0, %v2973_v57  ;;  %v2976_v37 = vmax.f32 %v2912_v6, 0.0 }
 0x2b3   : > { %v10031_v33 = vpop.f32.mrf.mxu1 }
 0x2b4   : > { %v2975_v44 = vmax.f32 %v2911_v11, 0.0  ;;  %v2914_v41 = vadd.f32 %v10031_v33, %v12823_v32 }
 0x2b5   : > { %v2803_v49 = vpop.f32.mrf.mxu1  ;;  %10136 = vmatmul.mubr.msk.f32.gmra.mxu1 %vm597_vm0, %v2974_v12 }
 0x2b6   : > { %v2913_v46 = vadd.f32 %v12823_v32, %v2803_v49  ;;  %10138 = vmatprep.mubr.msk.f32.mxu1 %vm597_vm0, %v2975_v44  ;;  %v2978_v23 = vmax.f32 %v2914_v41, 0.0 }
 0x2b7   : > { %v10034_v61 = vpop.f32.mrf.mxu1 }
 0x2b8   : > { %v2977_v56 = vmax.f32 %v2913_v46, 0.0  ;;  %v2916_v57 = vadd.f32 %v10034_v61, %v12823_v32 }
 0x2b9   : > { %v2813_v30 = vpop.f32.mrf.mxu1  ;;  %10139 = vmatmul.mubr.msk.f32.gmra.mxu1 %vm597_vm0, %v2976_v37 }
 0x2ba   : > { %v2915_v21 = vadd.f32 %v12823_v32, %v2813_v30  ;;  %10141 = vmatprep.mubr.msk.f32.mxu1 %vm597_vm0, %v2977_v56  ;;  %v2980_v33 = vmax.f32 %v2916_v57, 0.0 }
 0x2bb   : > { %v10037_v53 = vpop.f32.mrf.mxu1 }
 0x2bc   : > { %v2979_v11 = vmax.f32 %v2915_v21, 0.0  ;;  %v2918_v44 = vadd.f32 %v10037_v53, %v12823_v32 }
 0x2bd   : > { %v2823_v12 = vpop.f32.mrf.mxu1  ;;  %10142 = vmatmul.mubr.msk.f32.gmra.mxu1 %vm597_vm0, %v2978_v23 }
 0x2be   : > { %v2917_v6 = vadd.f32 %v12823_v32, %v2823_v12  ;;  %10144 = vmatprep.mubr.msk.f32.mxu1 %vm597_vm0, %v2979_v11  ;;  %v2982_v61 = vmax.f32 %v2918_v44, 0.0 }
 0x2bf   : > { %v10040_v49 = vpop.f32.mrf.mxu1 }
 0x2c0   : > { %v2981_v46 = vmax.f32 %v2917_v6, 0.0  ;;  %v2920_v56 = vadd.f32 %v10040_v49, %v12823_v32 }
 0x2c1   : > { %v2833_v37 = vpop.f32.mrf.mxu1  ;;  %10145 = vmatmul.mubr.msk.f32.gmra.mxu1 %vm597_vm0, %v2980_v33  ;;  %v11299_v33 = vld [vmem:[%s11525_s14 + $0x40] sm:$0xff] }
 0x2c2   : > { %v2919_v41 = vadd.f32 %v12823_v32, %v2833_v37  ;;  %10147 = vmatprep.mubr.msk.f32.mxu1 %vm597_vm0, %v2981_v46  ;;  %v2984_v53 = vmax.f32 %v2920_v56, 0.0 }
 0x2c3   : > { %v10043_v30 = vpop.f32.mrf.mxu1 }
 0x2c4   : > { %v2983_v21 = vmax.f32 %v2919_v41, 0.0  ;;  %v2922_v11 = vadd.f32 %v10043_v30, %v12823_v32 }
 0x2c5   : > { %v2843_v23 = vpop.f32.mrf.mxu1  ;;  %10148 = vmatmul.mubr.msk.f32.gmra.mxu1 %vm597_vm0, %v2982_v61 }
 0x2c6   : > { %v2921_v57 = vadd.f32 %v12823_v32, %v2843_v23  ;;  %10150 = vmatprep.mubr.msk.f32.mxu1 %vm597_vm0, %v2983_v21  ;;  %v2986_v6 = vmax.f32 %v2922_v11, 0.0  ;;  %v15661_v11 = vld [vmem:[#allocation5_spill] sm:$0xff] }
 0x2c8   : > { %v2985_v12 = vmax.f32 %v2921_v57, 0.0 }
 0x2c9   : > { %10151 = vmatmul.mubr.msk.f32.gmra.mxu1 %vm597_vm0, %v2984_v53 }
 0x2ca   : > { %10153 = vmatprep.mubr.msk.f32.mxu1 %vm597_vm0, %v2985_v12 }
 0x2cd   : > { %10154 = vmatmul.mubr.msk.f32.gmra.mxu1 %vm597_vm0, %v2986_v6 }
 0x2ce   : > { %10200 = vmatprep.mubr.msk.f32.mxu1 %vm597_vm0, %v11299_v33  ;;  %v15662_v33 = vld [vmem:[#allocation6_spill] sm:$0xff] }
 0x311   : > { %v12955_v44 = vpop.f32.mrf.mxu1 }
 0x313   : > { %v12957_v49 = vpop.f32.mrf.mxu1 }
 0x315   : > { %v12959_v46 = vpop.f32.mrf.mxu1 }
 0x316   : > { %v3575_v51 = vmul.f32 %v15662_v33, %v12959_v46 }
 0x317   : > { %v12961_v37 = vpop.f32.mrf.mxu1 }
 0x319   : > { %v12963_v32 = vpop.f32.mrf.mxu1 }
 0x31a   : > { %15657 = vst [vmem:[#allocation58_spill] sm:$0xff] %v12963_v32  ;;  %v3577_v57 = vmul.f32 %v11780_v63, %v12963_v32  ;;  %v11300_v32 = vld [vmem:[%s11525_s14 + $0x8] sm:$0xff] }
 0x31b   : > { %v12965_v41 = vpop.f32.mrf.mxu1 }
 0x31c   : > { %15658 = vst [vmem:[#allocation57_spill] sm:$0xff] %v12965_v41  ;;  %v3576_v12 = vmul.f32 %v15661_v11, %v12965_v41 }
 0x31d   : > { %v12967_v61 = vpop.f32.mrf.mxu1 }
 0x31e   : > { %15659 = vst [vmem:[#allocation116_spill] sm:$0xff] %v12967_v61  ;;  %v3579_v56 = vmul.f32 %v11776_v47, %v12967_v61  ;;  %v15667_v61 = vld [vmem:[#allocation9_spill] sm:$0xff] }
 0x31f   : > { %v12971_v30 = vpop.f32.mrf.mxu1  ;;  %v3572_v11 = vmul.f32 %v15667_v61, %v12957_v49 }
 0x320   : > { %15660 = vst [vmem:[#allocation117_spill] sm:$0xff] %v12971_v30  ;;  %v3578_v21 = vmul.f32 %v11782_v3, %v12971_v30  ;;  %10156 = vmatprep.subr.mxu0 %v3579_v56  ;;  %v15665_v30 = vld [vmem:[#allocation8_spill] sm:$0xff] }
 0x321   : > { %v12975_v23 = vpop.f32.mrf.mxu1  ;;  %10157 = vmatpush3.msra.mxu0 %v3579_v56  ;;  %v15663_v56 = vld [vmem:[#allocation7_spill] sm:$0xff]  ;;  %v3573_v47 = vmul.f32 %v15665_v30, %v12955_v44 }
 0x322   : > { %10158 = vmatprep.subr.mxu0 %v3578_v21  ;;  %v3574_v3 = vmul.f32 %v15663_v56, %v12961_v37 }
 0x323   : > { %v12979_v53 = vpop.f32.mrf.mxu1  ;;  %10159 = vmatpush3.msra.mxu0 %v3578_v21 }
 0x324   : > { %10160 = vmatprep.subr.mxu0 %v3577_v57 }
 0x325   : > { %v12983_v6 = vpop.f32.mrf.mxu1  ;;  %10161 = vmatpush3.msra.mxu0 %v3577_v57 }
 0x326   : > { %10162 = vmatprep.subr.mxu0 %v3576_v12 }
 0x327   : > { %v12987_v58 = vpop.f32.mrf.mxu1  ;;  %10163 = vmatpush3.msra.mxu0 %v3576_v12 }
 0x328   : > { %10164 = vmatprep.subr.mxu0 %v3575_v51 }
 0x329   : > { %v12991_v21 = vpop.f32.mrf.mxu1  ;;  %10165 = vmatpush3.msra.mxu0 %v3575_v51 }
 0x32a   : > { %15664 = vst [vmem:[#allocation118_spill] sm:$0xff] %v12991_v21  ;;  %10166 = vmatprep.subr.mxu0 %v3574_v3 }
 0x32b   : > { %v12995_v57 = vpop.f32.mrf.mxu1  ;;  %10167 = vmatpush3.msra.mxu0 %v3574_v3 }
 0x32c   : > { %15666 = vst [vmem:[#allocation119_spill] sm:$0xff] %v12995_v57  ;;  %10168 = vmatprep.subr.mxu0 %v3573_v47 }
 0x32d   : > { %v12999_v12 = vpop.f32.mrf.mxu1  ;;  %10169 = vmatpush3.msra.mxu0 %v3573_v47  ;;  %v11301_v47 = vld [vmem:[%s11525_s14 + $0x10] sm:$0xff] }
 0x32e   : > { %15668 = vst [vmem:[#allocation120_spill] sm:$0xff] %v12999_v12  ;;  %v3587_v41 = vmul.f32 %v11809_v28, %v12999_v12  ;;  %10170 = vmatprep.subr.mxu0 %v3572_v11  ;;  %v3585_v28 = vmul.f32 %v11817_v62, %v12991_v21  ;;  %v3582_v12 = vmul.f32 %v11831_v43, %v12987_v58 }
 0x32f   : > { %v13003_v51 = vpop.f32.mrf.mxu1  ;;  %10171 = vmatpush3.msra.mxu0 %v3572_v11 }
 0x330   : > { %15669 = vst [vmem:[#allocation121_spill] sm:$0xff] %v13003_v51  ;;  %v3586_v63 = vmul.f32 %v11811_v38, %v13003_v51  ;;  %10173 = vmatmul.mubr.msk.f32.vlgmr.msra.gmra.mxu0 %vm597_vm0, %v11300_v32  ;;  %10184 = vmatprep.subr.mxu1 %v3587_v41  ;;  %v3584_v38 = vmul.f32 %v11819_v7, %v12995_v57  ;;  %v11302_v32 = vld [vmem:[%s11525_s14 + $0x18] sm:$0xff] }
 0x331   : > { %v13009_v3 = vpop.f32.mrf.mxu1  ;;  %10185 = vmatpush3.msra.mxu1 %v3587_v41  ;;  %10175 = vmatprep.mubr.msk.f32.mxu0 %vm597_vm0, %v11301_v47  ;;  %v11303_v47 = vld [vmem:[%s11525_s14 + $0x20] sm:$0xff]  ;;  %v3583_v51 = vmul.f32 %v11829_v35, %v12983_v6  ;;  %v3581_v7 = vmul.f32 %v11843_v4, %v12975_v23  ;;  %v3580_v57 = vmul.f32 %v11845_v13, %v12979_v53 }
 0x332   : > { %10186 = vmatprep.subr.mxu1 %v3586_v63 }
 0x333   : > { %v13015_v11 = vpop.f32.mrf.mxu1  ;;  %10187 = vmatpush3.msra.mxu1 %v3586_v63 }
 0x334   : > { %10176 = vmatmul.mubr.msk.f32.gmra.mxu0 %vm597_vm0, %v11302_v32  ;;  %10188 = vmatprep.subr.mxu1 %v3585_v28  ;;  %v11304_v32 = vld [vmem:[%s11525_s14 + $0x28] sm:$0xff] }
 0x335   : > { %v13021_v41 = vpop.f32.mrf.mxu1  ;;  %10189 = vmatpush3.msra.mxu1 %v3585_v28  ;;  %10178 = vmatprep.mubr.msk.f32.mxu0 %vm597_vm0, %v11303_v47  ;;  %v11305_v47 = vld [vmem:[%s11525_s14 + $0x30] sm:$0xff] }
 0x336   : > { %10190 = vmatprep.subr.mxu1 %v3584_v38 }
 0x337   : > { %v13027_v63 = vpop.f32.mrf.mxu1  ;;  %10191 = vmatpush3.msra.mxu1 %v3584_v38 }
 0x338   : > { %10179 = vmatmul.mubr.msk.f32.gmra.mxu0 %vm597_vm0, %v11304_v32  ;;  %10192 = vmatprep.subr.mxu1 %v3583_v51  ;;  %v11306_v32 = vld [vmem:[%s11525_s14 + $0x38] sm:$0xff] }
 0x339   : > { %v13033_v28 = vpop.f32.mrf.mxu1  ;;  %10193 = vmatpush3.msra.mxu1 %v3583_v51  ;;  %10181 = vmatprep.mubr.msk.f32.mxu0 %vm597_vm0, %v11305_v47  ;;  %v11307_v47 = vld [vmem:[%s11525_s14 + $0x80] sm:$0xff] }
 0x33a   : > { %15670 = vst [vmem:[#allocation122_spill] sm:$0xff] %v13033_v28  ;;  %10194 = vmatprep.subr.mxu1 %v3582_v12 }
 0x33b   : > { %v13039_v38 = vpop.f32.mrf.mxu1  ;;  %10195 = vmatpush3.msra.mxu1 %v3582_v12 }
 0x33c   : > { %15671 = vst [vmem:[#allocation123_spill] sm:$0xff] %v13039_v38  ;;  %10182 = vmatmul.mubr.msk.f32.gmra.mxu0 %vm597_vm0, %v11306_v32  ;;  %10196 = vmatprep.subr.mxu1 %v3581_v7  ;;  %v11308_v32 = vld [vmem:[%s11525_s14 + $0x48] sm:$0xff] }
 0x33d   : > { %v13045_v51 = vpop.f32.mrf.mxu1  ;;  %10197 = vmatpush3.msra.mxu1 %v3581_v7  ;;  %10228 = vmatprep.mubr.msk.f32.mxu0 %vm597_vm0, %v11307_v47  ;;  %v11309_v47 = vld [vmem:[%s11525_s14 + $0x50] sm:$0xff] }
 0x33e   : > { %15672 = vst [vmem:[#allocation124_spill] sm:$0xff] %v13045_v51  ;;  %v3595_v62 = vmul.f32 %v11856_v39, %v13045_v51  ;;  %10198 = vmatprep.subr.mxu1 %v3580_v57  ;;  %v3593_v39 = vmul.f32 %v11870_v19, %v13033_v28  ;;  %v3590_v51 = vmul.f32 %v11886_v2, %v13027_v63 }
 0x33f   : > { %v13051_v12 = vpop.f32.mrf.mxu1  ;;  %10199 = vmatpush3.msra.mxu1 %v3580_v57 }
 0x340   : > { %15673 = vst [vmem:[#allocation125_spill] sm:$0xff] %v13051_v12  ;;  %v3594_v21 = vmul.f32 %v11858_v10, %v13051_v12  ;;  %10201 = vmatmul.mubr.msk.f32.vlgmr.msra.gmra.mxu1 %vm597_vm0, %v11308_v32  ;;  %10212 = vmatprep.subr.mxu0 %v3595_v62  ;;  %v3592_v10 = vmul.f32 %v11874_v27, %v13039_v38  ;;  %v11310_v32 = vld [vmem:[%s11525_s14 + $0x58] sm:$0xff] }
 0x341   : > { %v13057_v7 = vpop.f32.mrf.mxu1  ;;  %10213 = vmatpush3.msra.mxu0 %v3595_v62  ;;  %10203 = vmatprep.mubr.msk.f32.mxu1 %vm597_vm0, %v11309_v47  ;;  %v11311_v47 = vld [vmem:[%s11525_s14 + $0x60] sm:$0xff]  ;;  %v3591_v12 = vmul.f32 %v11882_v26, %v13021_v41  ;;  %v3589_v27 = vmul.f32 %v11898_v0, %v13009_v3  ;;  %v3588_v38 = vmul.f32 %v11902_v31, %v13015_v11 }
 0x342   : > { %10214 = vmatprep.subr.mxu0 %v3594_v21 }
 0x343   : > { %v13063_v57 = vpop.f32.mrf.mxu1  ;;  %10215 = vmatpush3.msra.mxu0 %v3594_v21 }
 0x344   : > { %10204 = vmatmul.mubr.msk.f32.gmra.mxu1 %vm597_vm0, %v11310_v32  ;;  %10216 = vmatprep.subr.mxu0 %v3593_v39  ;;  %v11312_v32 = vld [vmem:[%s11525_s14 + $0x68] sm:$0xff] }
 0x345   : > { %v13069_v62 = vpop.f32.mrf.mxu1  ;;  %10217 = vmatpush3.msra.mxu0 %v3593_v39  ;;  %10206 = vmatprep.mubr.msk.f32.mxu1 %vm597_vm0, %v11311_v47  ;;  %v11313_v47 = vld [vmem:[%s11525_s14 + $0x70] sm:$0xff] }
 0x346   : > { %10218 = vmatprep.subr.mxu0 %v3592_v10 }
 0x347   : > { %v13075_v21 = vpop.f32.mrf.mxu1  ;;  %10219 = vmatpush3.msra.mxu0 %v3592_v10 }
 0x348   : > { %10207 = vmatmul.mubr.msk.f32.gmra.mxu1 %vm597_vm0, %v11312_v32  ;;  %10220 = vmatprep.subr.mxu0 %v3591_v12  ;;  %v11314_v32 = vld [vmem:[%s11525_s14 + $0x78] sm:$0xff] }
 0x349   : > { %v13081_v39 = vpop.f32.mrf.mxu1  ;;  %10221 = vmatpush3.msra.mxu0 %v3591_v12  ;;  %10209 = vmatprep.mubr.msk.f32.mxu1 %vm597_vm0, %v11313_v47  ;;  %v11315_v47 = vld [vmem:[%s11525_s14 + $0xc0] sm:$0xff] }
 0x34a   : > { %15674 = vst [vmem:[#allocation126_spill] sm:$0xff] %v13081_v39  ;;  %10222 = vmatprep.subr.mxu0 %v3590_v51 }
 0x34b   : > { %v13087_v10 = vpop.f32.mrf.mxu1  ;;  %10223 = vmatpush3.msra.mxu0 %v3590_v51 }
 0x34c   : > { %15675 = vst [vmem:[#allocation127_spill] sm:$0xff] %v13087_v10  ;;  %10210 = vmatmul.mubr.msk.f32.gmra.mxu1 %vm597_vm0, %v11314_v32  ;;  %10224 = vmatprep.subr.mxu0 %v3589_v27  ;;  %v11316_v32 = vld [vmem:[%s11525_s14 + $0x88] sm:$0xff] }
 0x34d   : > { %v13093_v12 = vpop.f32.mrf.mxu1  ;;  %10225 = vmatpush3.msra.mxu0 %v3589_v27  ;;  %10256 = vmatprep.mubr.msk.f32.mxu1 %vm597_vm0, %v11315_v47  ;;  %v11317_v47 = vld [vmem:[%s11525_s14 + $0x90] sm:$0xff] }
 0x34e   : > { %15676 = vst [vmem:[#allocation128_spill] sm:$0xff] %v13093_v12  ;;  %v3603_v19 = vmul.f32 %v15576_v34, %v13093_v12  ;;  %10226 = vmatprep.subr.mxu0 %v3588_v38  ;;  %v3601_v34 = vmul.f32 %v15572_v20, %v13081_v39  ;;  %v3598_v12 = vmul.f32 %v11944_v5, %v13075_v21 }
 0x34f   : > { %v13099_v51 = vpop.f32.mrf.mxu1  ;;  %10227 = vmatpush3.msra.mxu0 %v3588_v38 }
 0x350   : > { %15677 = vst [vmem:[#allocation129_spill] sm:$0xff] %v13099_v51  ;;  %v3602_v28 = vmul.f32 %v15574_v8, %v13099_v51  ;;  %10229 = vmatmul.mubr.msk.f32.vlgmr.msra.gmra.mxu0 %vm597_vm0, %v11316_v32  ;;  %10240 = vmatprep.subr.mxu1 %v3603_v19  ;;  %v3600_v8 = vmul.f32 %v11928_v14, %v13087_v10  ;;  %v11318_v32 = vld [vmem:[%s11525_s14 + $0x98] sm:$0xff] }
 0x351   : > { %v13105_v27 = vpop.f32.mrf.mxu1  ;;  %10241 = vmatpush3.msra.mxu1 %v3603_v19  ;;  %10231 = vmatprep.mubr.msk.f32.mxu0 %vm597_vm0, %v11317_v47  ;;  %v11319_v47 = vld [vmem:[%s11525_s14 + $0xa0] sm:$0xff]  ;;  %v3599_v51 = vmul.f32 %v11940_v25, %v13069_v62  ;;  %v3597_v14 = vmul.f32 %v11958_v1, %v13057_v7  ;;  %v3596_v10 = vmul.f32 %v11962_v50, %v13063_v57 }
 0x352   : > { %10242 = vmatprep.subr.mxu1 %v3602_v28 }
 0x353   : > { %v13111_v38 = vpop.f32.mrf.mxu1  ;;  %10243 = vmatpush3.msra.mxu1 %v3602_v28 }
 0x354   : > { %10232 = vmatmul.mubr.msk.f32.gmra.mxu0 %vm597_vm0, %v11318_v32  ;;  %10244 = vmatprep.subr.mxu1 %v3601_v34  ;;  %v11320_v32 = vld [vmem:[%s11525_s14 + $0xa8] sm:$0xff] }
 0x355   : > { %v13117_v19 = vpop.f32.mrf.mxu1  ;;  %10245 = vmatpush3.msra.mxu1 %v3601_v34  ;;  %10234 = vmatprep.mubr.msk.f32.mxu0 %vm597_vm0, %v11319_v47  ;;  %v11321_v47 = vld [vmem:[%s11525_s14 + $0xb0] sm:$0xff] }
 0x356   : > { %10246 = vmatprep.subr.mxu1 %v3600_v8 }
 0x357   : > { %v13123_v28 = vpop.f32.mrf.mxu1  ;;  %10247 = vmatpush3.msra.mxu1 %v3600_v8 }
 0x358   : > { %10235 = vmatmul.mubr.msk.f32.gmra.mxu0 %vm597_vm0, %v11320_v32  ;;  %10248 = vmatprep.subr.mxu1 %v3599_v51  ;;  %v11322_v32 = vld [vmem:[%s11525_s14 + $0xb8] sm:$0xff] }
 0x359   : > { %v13129_v34 = vpop.f32.mrf.mxu1  ;;  %10249 = vmatpush3.msra.mxu1 %v3599_v51  ;;  %10237 = vmatprep.mubr.msk.f32.mxu0 %vm597_vm0, %v11321_v47  ;;  %v11323_v47 = vld [vmem:[%s11525_s14 + $0x100] sm:$0xff] }
 0x35a   : > { %15678 = vst [vmem:[#allocation130_spill] sm:$0xff] %v13129_v34  ;;  %10250 = vmatprep.subr.mxu1 %v3598_v12 }
 0x35b   : > { %v13135_v8 = vpop.f32.mrf.mxu1  ;;  %10251 = vmatpush3.msra.mxu1 %v3598_v12 }
 0x35c   : > { %15679 = vst [vmem:[#allocation131_spill] sm:$0xff] %v13135_v8  ;;  %10238 = vmatmul.mubr.msk.f32.gmra.mxu0 %vm597_vm0, %v11322_v32  ;;  %10252 = vmatprep.subr.mxu1 %v3597_v14  ;;  %v11324_v32 = vld [vmem:[%s11525_s14 + $0xc8] sm:$0xff] }
 0x35d   : > { %v13141_v51 = vpop.f32.mrf.mxu1  ;;  %10253 = vmatpush3.msra.mxu1 %v3597_v14  ;;  %10284 = vmatprep.mubr.msk.f32.mxu0 %vm597_vm0, %v11323_v47  ;;  %v11325_v47 = vld [vmem:[%s11525_s14 + $0xd0] sm:$0xff] }
 0x35e   : > { %15680 = vst [vmem:[#allocation132_spill] sm:$0xff] %v13141_v51  ;;  %v3611_v20 = vmul.f32 %v15590_v15, %v13141_v51  ;;  %10254 = vmatprep.subr.mxu1 %v3596_v10  ;;  %v3609_v15 = vmul.f32 %v15584_v42, %v13129_v34  ;;  %v3606_v51 = vmul.f32 %v12010_v36, %v13123_v28 }
 0x35f   : > { %v13147_v12 = vpop.f32.mrf.mxu1  ;;  %10255 = vmatpush3.msra.mxu1 %v3596_v10 }
 0x360   : > { %15681 = vst [vmem:[#allocation133_spill] sm:$0xff] %v13147_v12  ;;  %v3610_v39 = vmul.f32 %v15587_v54, %v13147_v12  ;;  %10257 = vmatmul.mubr.msk.f32.vlgmr.msra.gmra.mxu1 %vm597_vm0, %v11324_v32  ;;  %10268 = vmatprep.subr.mxu0 %v3611_v20  ;;  %v3608_v54 = vmul.f32 %v11992_v29, %v13135_v8  ;;  %v11326_v32 = vld [vmem:[%s11525_s14 + $0xd8] sm:$0xff] }
 0x361   : > { %v13153_v14 = vpop.f32.mrf.mxu1  ;;  %10269 = vmatpush3.msra.mxu0 %v3611_v20  ;;  %10259 = vmatprep.mubr.msk.f32.mxu1 %vm597_vm0, %v11325_v47  ;;  %v11327_v47 = vld [vmem:[%s11525_s14 + $0xe0] sm:$0xff]  ;;  %v3607_v12 = vmul.f32 %v12006_v9, %v13117_v19  ;;  %v3605_v29 = vmul.f32 %v12024_v60, %v13105_v27  ;;  %v3604_v8 = vmul.f32 %v12028_v59, %v13111_v38 }
 0x362   : > { %10270 = vmatprep.subr.mxu0 %v3610_v39 }
 0x363   : > { %v13159_v10 = vpop.f32.mrf.mxu1  ;;  %10271 = vmatpush3.msra.mxu0 %v3610_v39 }
 0x364   : > { %10260 = vmatmul.mubr.msk.f32.gmra.mxu1 %vm597_vm0, %v11326_v32  ;;  %10272 = vmatprep.subr.mxu0 %v3609_v15  ;;  %v11328_v32 = vld [vmem:[%s11525_s14 + $0xe8] sm:$0xff] }
 0x365   : > { %v13165_v20 = vpop.f32.mrf.mxu1  ;;  %10273 = vmatpush3.msra.mxu0 %v3609_v15  ;;  %10262 = vmatprep.mubr.msk.f32.mxu1 %vm597_vm0, %v11327_v47  ;;  %v11329_v47 = vld [vmem:[%s11525_s14 + $0xf0] sm:$0xff] }
 0x366   : > { %10274 = vmatprep.subr.mxu0 %v3608_v54 }
 0x367   : > { %v13171_v39 = vpop.f32.mrf.mxu1  ;;  %10275 = vmatpush3.msra.mxu0 %v3608_v54 }
 0x368   : > { %15682 = vst [vmem:[#allocation134_spill] sm:$0xff] %v13171_v39  ;;  %10263 = vmatmul.mubr.msk.f32.gmra.mxu1 %vm597_vm0, %v11328_v32  ;;  %10276 = vmatprep.subr.mxu0 %v3607_v12  ;;  %v11330_v32 = vld [vmem:[%s11525_s14 + $0xf8] sm:$0xff] }
 0x369   : > { %v13177_v15 = vpop.f32.mrf.mxu1  ;;  %10277 = vmatpush3.msra.mxu0 %v3607_v12  ;;  %10265 = vmatprep.mubr.msk.f32.mxu1 %vm597_vm0, %v11329_v47  ;;  %v11331_v47 = vld [vmem:[%s11525_s14 + $0x140] sm:$0xff] }
 0x36a   : > { %15683 = vst [vmem:[#allocation135_spill] sm:$0xff] %v13177_v15  ;;  %10278 = vmatprep.subr.mxu0 %v3606_v51 }
 0x36b   : > { %v13183_v54 = vpop.f32.mrf.mxu1  ;;  %10279 = vmatpush3.msra.mxu0 %v3606_v51 }
 0x36c   : > { %15684 = vst [vmem:[#allocation136_spill] sm:$0xff] %v13183_v54  ;;  %10266 = vmatmul.mubr.msk.f32.gmra.mxu1 %vm597_vm0, %v11330_v32  ;;  %10280 = vmatprep.subr.mxu0 %v3605_v29  ;;  %v11332_v32 = vld [vmem:[%s11525_s14 + $0x108] sm:$0xff] }
 0x36d   : > { %v13189_v12 = vpop.f32.mrf.mxu1  ;;  %10281 = vmatpush3.msra.mxu0 %v3605_v29  ;;  %10312 = vmatprep.mubr.msk.f32.mxu1 %vm597_vm0, %v11331_v47  ;;  %v11333_v47 = vld [vmem:[%s11525_s14 + $0x110] sm:$0xff] }
 0x36e   : > { %15685 = vst [vmem:[#allocation137_spill] sm:$0xff] %v13189_v12  ;;  %v3619_v42 = vmul.f32 %v15607_v18, %v13189_v12  ;;  %10282 = vmatprep.subr.mxu0 %v3604_v8  ;;  %v3617_v18 = vmul.f32 %v15601_v17, %v13177_v15  ;;  %v3614_v12 = vmul.f32 %v12076_v52, %v13171_v39  ;;  %v15693_v17 = vld [vmem:[#allocation43_spill] sm:$0xff]  ;;  %v15695_v52 = vld [vmem:[#allocation44_spill] sm:$0xff] }
 0x36f   : > { %v13195_v51 = vpop.f32.mrf.mxu1  ;;  %10283 = vmatpush3.msra.mxu0 %v3604_v8 }
 0x370   : > { %15686 = vst [vmem:[#allocation138_spill] sm:$0xff] %v13195_v51  ;;  %v3618_v34 = vmul.f32 %v15604_v16, %v13195_v51  ;;  %10285 = vmatmul.mubr.msk.f32.vlgmr.msra.gmra.mxu0 %vm597_vm0, %v11332_v32  ;;  %10296 = vmatprep.subr.mxu1 %v3619_v42  ;;  %v3616_v16 = vmul.f32 %v15598_v24, %v13183_v54  ;;  %v11334_v32 = vld [vmem:[%s11525_s14 + $0x118] sm:$0xff] }
 0x371   : > { %v13201_v29 = vpop.f32.mrf.mxu1  ;;  %10297 = vmatpush3.msra.mxu1 %v3619_v42  ;;  %10287 = vmatprep.mubr.msk.f32.mxu0 %vm597_vm0, %v11333_v47  ;;  %v11335_v47 = vld [vmem:[%s11525_s14 + $0x120] sm:$0xff]  ;;  %v3615_v51 = vmul.f32 %v15595_v22, %v13165_v20  ;;  %v3613_v24 = vmul.f32 %v12090_v48, %v13153_v14  ;;  %v3612_v54 = vmul.f32 %v12094_v40, %v13159_v10 }
 0x372   : > { %10298 = vmatprep.subr.mxu1 %v3618_v34 }
 0x373   : > { %v13207_v8 = vpop.f32.mrf.mxu1  ;;  %10299 = vmatpush3.msra.mxu1 %v3618_v34 }
 0x374   : > { %15687 = vst [vmem:[#allocation139_spill] sm:$0xff] %v13207_v8  ;;  %10288 = vmatmul.mubr.msk.f32.gmra.mxu0 %vm597_vm0, %v11334_v32  ;;  %10300 = vmatprep.subr.mxu1 %v3617_v18  ;;  %v11336_v32 = vld [vmem:[%s11525_s14 + $0x128] sm:$0xff] }
 0x375   : > { %v13213_v42 = vpop.f32.mrf.mxu1  ;;  %10301 = vmatpush3.msra.mxu1 %v3617_v18  ;;  %10290 = vmatprep.mubr.msk.f32.mxu0 %vm597_vm0, %v11335_v47  ;;  %v11337_v47 = vld [vmem:[%s11525_s14 + $0x130] sm:$0xff] }
 0x376   : > { %15688 = vst [vmem:[#allocation140_spill] sm:$0xff] %v13213_v42  ;;  %10302 = vmatprep.subr.mxu1 %v3616_v16 }
 0x377   : > { %v13219_v34 = vpop.f32.mrf.mxu1  ;;  %10303 = vmatpush3.msra.mxu1 %v3616_v16 }
 0x378   : > { %15689 = vst [vmem:[#allocation141_spill] sm:$0xff] %v13219_v34  ;;  %10291 = vmatmul.mubr.msk.f32.gmra.mxu0 %vm597_vm0, %v11336_v32  ;;  %10304 = vmatprep.subr.mxu1 %v3615_v51  ;;  %v11338_v32 = vld [vmem:[%s11525_s14 + $0x138] sm:$0xff] }
 0x379   : > { %v13225_v18 = vpop.f32.mrf.mxu1  ;;  %10305 = vmatpush3.msra.mxu1 %v3615_v51  ;;  %10293 = vmatprep.mubr.msk.f32.mxu0 %vm597_vm0, %v11337_v47  ;;  %v11339_v47 = vld [vmem:[%s11525_s14 + $0x180] sm:$0xff] }
 0x37a   : > { %15690 = vst [vmem:[#allocation142_spill] sm:$0xff] %v13225_v18  ;;  %10306 = vmatprep.subr.mxu1 %v3614_v12 }
 0x37b   : > { %v13231_v16 = vpop.f32.mrf.mxu1  ;;  %10307 = vmatpush3.msra.mxu1 %v3614_v12 }
 0x37c   : > { %15691 = vst [vmem:[#allocation143_spill] sm:$0xff] %v13231_v16  ;;  %10294 = vmatmul.mubr.msk.f32.gmra.mxu0 %vm597_vm0, %v11338_v32  ;;  %10308 = vmatprep.subr.mxu1 %v3613_v24  ;;  %v11340_v32 = vld [vmem:[%s11525_s14 + $0x148] sm:$0xff] }
 0x37d   : > { %v13237_v51 = vpop.f32.mrf.mxu1  ;;  %10309 = vmatpush3.msra.mxu1 %v3613_v24  ;;  %10340 = vmatprep.mubr.msk.f32.mxu0 %vm597_vm0, %v11339_v47  ;;  %v11341_v47 = vld [vmem:[%s11525_s14 + $0x150] sm:$0xff] }
 0x37e   : > { %15692 = vst [vmem:[#allocation144_spill] sm:$0xff] %v13237_v51  ;;  %v3627_v15 = vmul.f32 %v15693_v17, %v13237_v51  ;;  %10310 = vmatprep.subr.mxu1 %v3612_v54  ;;  %v15697_v17 = vld [vmem:[#allocation47_spill] sm:$0xff] }
 0x37f   : > { %v13243_v12 = vpop.f32.mrf.mxu1  ;;  %10311 = vmatpush3.msra.mxu1 %v3612_v54  ;;  %v3625_v51 = vmul.f32 %v15697_v17, %v13225_v18  ;;  %v15701_v17 = vld [vmem:[#allocation51_spill] sm:$0xff] }
 0x380   : > { %15694 = vst [vmem:[#allocation145_spill] sm:$0xff] %v13243_v12  ;;  %v3626_v39 = vmul.f32 %v15695_v52, %v13243_v12  ;;  %10313 = vmatmul.mubr.msk.f32.vlgmr.msra.gmra.mxu1 %vm597_vm0, %v11340_v32  ;;  %10324 = vmatprep.subr.mxu0 %v3627_v15  ;;  %v15699_v52 = vld [vmem:[#allocation48_spill] sm:$0xff]  ;;  %v11342_v32 = vld [vmem:[%s11525_s14 + $0x158] sm:$0xff]  ;;  %v3623_v18 = vmul.f32 %v15701_v17, %v13213_v42  ;;  %v15705_v17 = vld [vmem:[#allocation55_spill] sm:$0xff] }
 0x381   : > { %v13249_v24 = vpop.f32.mrf.mxu1  ;;  %10325 = vmatpush3.msra.mxu0 %v3627_v15  ;;  %10315 = vmatprep.mubr.msk.f32.mxu1 %vm597_vm0, %v11341_v47  ;;  %v3624_v12 = vmul.f32 %v15699_v52, %v13231_v16  ;;  %v11343_v47 = vld [vmem:[%s11525_s14 + $0x160] sm:$0xff]  ;;  %v15703_v52 = vld [vmem:[#allocation52_spill] sm:$0xff]  ;;  %v3621_v42 = vmul.f32 %v15705_v17, %v13201_v29 }
 0x382   : > { %15696 = vst [vmem:[#allocation146_spill] sm:$0xff] %v13249_v24  ;;  %10326 = vmatprep.subr.mxu0 %v3626_v39  ;;  %v3622_v16 = vmul.f32 %v15703_v52, %v13219_v34 }
 0x383   : > { %v13255_v54 = vpop.f32.mrf.mxu1  ;;  %10327 = vmatpush3.msra.mxu0 %v3626_v39 }
 0x384   : > { %15698 = vst [vmem:[#allocation147_spill] sm:$0xff] %v13255_v54  ;;  %10316 = vmatmul.mubr.msk.f32.gmra.mxu1 %vm597_vm0, %v11342_v32  ;;  %10328 = vmatprep.subr.mxu0 %v3625_v51  ;;  %v11344_v32 = vld [vmem:[%s11525_s14 + $0x168] sm:$0xff] }
 0x385   : > { %v13261_v15 = vpop.f32.mrf.mxu1  ;;  %10329 = vmatpush3.msra.mxu0 %v3625_v51  ;;  %10318 = vmatprep.mubr.msk.f32.mxu1 %vm597_vm0, %v11343_v47  ;;  %v11345_v47 = vld [vmem:[%s11525_s14 + $0x170] sm:$0xff] }
 0x386   : > { %15700 = vst [vmem:[#allocation148_spill] sm:$0xff] %v13261_v15  ;;  %10330 = vmatprep.subr.mxu0 %v3624_v12 }
 0x387   : > { %v13267_v39 = vpop.f32.mrf.mxu1  ;;  %10331 = vmatpush3.msra.mxu0 %v3624_v12  ;;  %v15707_v12 = vld [vmem:[#allocation56_spill] sm:$0xff] }
 0x388   : > { %15702 = vst [vmem:[#allocation149_spill] sm:$0xff] %v13267_v39  ;;  %10319 = vmatmul.mubr.msk.f32.gmra.mxu1 %vm597_vm0, %v11344_v32  ;;  %10332 = vmatprep.subr.mxu0 %v3623_v18  ;;  %v3620_v52 = vmul.f32 %v15707_v12, %v13207_v8  ;;  %v11346_v32 = vld [vmem:[%s11525_s14 + $0x178] sm:$0xff]  ;;  %v11348_v12 = vld [vmem:[%s11525_s14 + $0x188] sm:$0xff] }
 0x389   : > { %v13273_v51 = vpop.f32.mrf.mxu1  ;;  %10333 = vmatpush3.msra.mxu0 %v3623_v18  ;;  %10321 = vmatprep.mubr.msk.f32.mxu1 %vm597_vm0, %v11345_v47  ;;  %v11347_v47 = vld [vmem:[%s11525_s14 + $0x1c0] sm:$0xff]  ;;  %v15724_v8 = vld [vmem:[#allocation57_spill] sm:$0xff] }
 0x38a   : > { %15704 = vst [vmem:[#allocation150_spill] sm:$0xff] %v13273_v51  ;;  %10334 = vmatprep.subr.mxu0 %v3622_v16 }
 0x38b   : > { %v13279_v22 = vpop.f32.mrf.mxu1  ;;  %10335 = vmatpush3.msra.mxu0 %v3622_v16  ;;  %v4806_v16 = vld [vmem:[%s15036_s6 + $0x18] sm:$0xff] }
 0x38c   : > { %15706 = vst [vmem:[#allocation151_spill] sm:$0xff] %v13279_v22  ;;  %10322 = vmatmul.mubr.msk.f32.gmra.mxu1 %vm597_vm0, %v11346_v32  ;;  %10336 = vmatprep.subr.mxu0 %v3621_v42 }
 0x38d   : > { %v13285_v18 = vpop.f32.mrf.mxu1  ;;  %10337 = vmatpush3.msra.mxu0 %v3621_v42  ;;  %10368 = vmatprep.mubr.msk.f32.mxu1 %vm597_vm0, %v11347_v47  ;;  %v11349_v42 = vld [vmem:[%s11525_s14 + $0x190] sm:$0xff]  ;;  %v15710_v47 = vld [vmem:[#allocation63_spill] sm:$0xff] }
 0x38e   : > { %15708 = vst [vmem:[#allocation152_spill] sm:$0xff] %v13285_v18  ;;  %v3635_v34 = vmul.f32 %v15653_v55, %v13285_v18  ;;  %10338 = vmatprep.subr.mxu0 %v3620_v52  ;;  %v11350_v55 = vld [vmem:[%s11525_s14 + $0x198] sm:$0xff] }
 0x38f   : > { %v13291_v17 = vpop.f32.mrf.mxu1  ;;  %10339 = vmatpush3.msra.mxu0 %v3620_v52  ;;  %v3633_v52 = vmul.f32 %v15710_v47, %v13273_v51  ;;  %v11358_v47 = vld [vmem:[%s11525_s14 + $0x1e0] sm:$0xff] }
 0x390   : > { %15709 = vst [vmem:[#allocation153_spill] sm:$0xff] %v13291_v17  ;;  %v3634_v32 = vmul.f32 %v15650_v45, %v13291_v17  ;;  %10341 = vmatmul.mubr.msk.f32.vlgmr.msra.gmra.mxu0 %vm597_vm0, %v11348_v12  ;;  %10352 = vmatprep.subr.mxu1 %v3635_v34  ;;  %v4805_v45 = vld [vmem:[%s15036_s6 + $0x10] sm:$0xff] }
 0x391   : > { %10353 = vmatpush3.msra.mxu1 %v3635_v34  ;;  %10343 = vmatprep.mubr.msk.f32.mxu0 %vm597_vm0, %v11349_v42  ;;  %v15711_v12 = vld [vmem:[#allocation64_spill] sm:$0xff]  ;;  %v11351_v34 = vld [vmem:[%s11525_s14 + $0x1a0] sm:$0xff]  ;;  %v4804_v42 = vld [vmem:[%s15036_s6 + $0x8] sm:$0xff] }
 0x392   : > { %10354 = vmatprep.subr.mxu1 %v3634_v32  ;;  %10380 = vmatprep.subr.mxu0 %v4806_v16  ;;  %v3632_v17 = vmul.f32 %v15711_v12, %v13279_v22  ;;  %v11352_v12 = vld [vmem:[%s11525_s14 + $0x1a8] sm:$0xff]  ;;  %v11354_v22 = vld [vmem:[%s11525_s14 + $0x1b8] sm:$0xff] }
 0x393   : > { %10355 = vmatpush3.msra.mxu1 %v3634_v32  ;;  %10381 = vmatpush3.msra.mxu0 %v4806_v16  ;;  %v15712_v32 = vld [vmem:[#allocation67_spill] sm:$0xff] }
 0x394   : > { %10344 = vmatmul.mubr.msk.f32.gmra.mxu0 %vm597_vm0, %v11350_v55  ;;  %10356 = vmatprep.subr.mxu1 %v3633_v52  ;;  %v3631_v16 = vmul.f32 %v15712_v32, %v13261_v15  ;;  %v15713_v55 = vld [vmem:[#allocation68_spill] sm:$0xff] }
 0x395   : > { %10357 = vmatpush3.msra.mxu1 %v3633_v52  ;;  %10346 = vmatprep.mubr.msk.f32.mxu0 %vm597_vm0, %v11351_v34  ;;  %v3630_v18 = vmul.f32 %v15713_v55, %v13267_v39  ;;  %v11353_v52 = vld [vmem:[%s11525_s14 + $0x1b0] sm:$0xff]  ;;  %v15714_v34 = vld [vmem:[#allocation71_spill] sm:$0xff] }
 0x396   : > { %10358 = vmatprep.subr.mxu1 %v3632_v17  ;;  %10382 = vmatprep.subr.mxu0 %v4805_v45 }
 0x397   : > { %10359 = vmatpush3.msra.mxu1 %v3632_v17  ;;  %10383 = vmatpush3.msra.mxu0 %v4805_v45  ;;  %v3629_v17 = vmul.f32 %v15714_v34, %v13249_v24  ;;  %v4803_v45 = vld [vmem:[%s15036_s6] sm:$0xff] }
 0x398   : > { %10347 = vmatmul.mubr.msk.f32.gmra.mxu0 %vm597_vm0, %v11352_v12  ;;  %10360 = vmatprep.subr.mxu1 %v3631_v16  ;;  %v15715_v12 = vld [vmem:[#allocation72_spill] sm:$0xff] }
 0x399   : > { %10361 = vmatpush3.msra.mxu1 %v3631_v16  ;;  %10349 = vmatprep.mubr.msk.f32.mxu0 %vm597_vm0, %v11353_v52  ;;  %v3628_v16 = vmul.f32 %v15715_v12, %v13255_v54  ;;  %v11355_v52 = vld [vmem:[%s11525_s14 + $0x1c8] sm:$0xff] }
 0x39a   : > { %10362 = vmatprep.subr.mxu1 %v3630_v18  ;;  %10384 = vmatprep.subr.mxu0 %v4804_v42 }
 0x39b   : > { %10363 = vmatpush3.msra.mxu1 %v3630_v18  ;;  %10385 = vmatpush3.msra.mxu0 %v4804_v42  ;;  %v11356_v18 = vld [vmem:[%s11525_s14 + $0x1d0] sm:$0xff]  ;;  %v11357_v42 = vld [vmem:[%s11525_s14 + $0x1d8] sm:$0xff] }
 0x39c   : > { %10350 = vmatmul.mubr.msk.f32.gmra.mxu0 %vm597_vm0, %v11354_v22  ;;  %10364 = vmatprep.subr.mxu1 %v3629_v17  ;;  %v11359_v22 = vld [vmem:[%s11525_s14 + $0x1e8] sm:$0xff] }
 0x39d   : > { %10365 = vmatpush3.msra.mxu1 %v3629_v17  ;;  %10386 = vmatprep.subr.mxu0 %v4803_v45  ;;  %v11360_v17 = vld [vmem:[%s11525_s14 + $0x1f0] sm:$0xff] }
 0x39e   : > { %10366 = vmatprep.subr.mxu1 %v3628_v16  ;;  %10387 = vmatpush3.msra.mxu0 %v4803_v45  ;;  %v11361_v45 = vld [vmem:[%s11525_s14 + $0x1f8] sm:$0xff] }
 0x39f   : > { %10367 = vmatpush3.msra.mxu1 %v3628_v16  ;;  %v11362_v16 = vld [vmem:[%s11525_s14] sm:$0xff] }
 0x3a0   : > { %10369 = vmatmul.mubr.msk.f32.vlgmr.msra.gmra.mxu1 %vm597_vm0, %v11355_v52 }
 0x3a1   : > { %10371 = vmatprep.mubr.msk.f32.mxu1 %vm597_vm0, %v11356_v18  ;;  %v15716_v18 = vld [vmem:[#allocation74_spill] sm:$0xff] }
 0x3a2   : > { %v4541_v51 = vmul.f32 %v12955_v44, %v15716_v18 }
 0x3a4   : > { %10372 = vmatmul.mubr.msk.f32.gmra.mxu1 %vm597_vm0, %v11357_v42 }
 0x3a5   : > { %10374 = vmatprep.mubr.msk.f32.mxu1 %vm597_vm0, %v11358_v47  ;;  %v15717_v47 = vld [vmem:[#allocation73_spill] sm:$0xff] }
 0x3a6   : > { %v4540_v39 = vmul.f32 %v12957_v49, %v15717_v47 }
 0x3a8   : > { %10375 = vmatmul.mubr.msk.f32.gmra.mxu1 %vm597_vm0, %v11359_v22 }
 0x3a9   : > { %10377 = vmatprep.mubr.msk.f32.mxu1 %vm597_vm0, %v11360_v17  ;;  %v13357_v17 = vld [vmem:[%s15035_s5] ss:$0 sm:$0xff] }
 0x3ac   : > { %10378 = vmatmul.mubr.msk.f32.gmra.mxu1 %vm597_vm0, %v11361_v45 }
 0x3ad   : > { %10500 = vmatprep.mubr.msk.f32.mxu1 %vm597_vm0, %v11362_v16  ;;  %v15718_v16 = vld [vmem:[#allocation76_spill] sm:$0xff] }
 0x3ae   : > { %v4543_v15 = vmul.f32 %v12959_v46, %v15718_v16 }
 0x3f0   : > { %v10174_v52 = vpop.f32.mrf.mxu0 }
 0x3f1   : > { %v4477_v42 = vmul.f32 %v15665_v30, %v10174_v52  ;;  %v15719_v30 = vld [vmem:[#allocation75_spill] sm:$0xff] }
 0x3f2   : > { %v3702_v55 = vpop.f32.mrf.mxu0  ;;  %v4542_v49 = vmul.f32 %v12961_v37, %v15719_v30 }
 0x3f3   : > { %v4605_v22 = vadd.f32 %v4541_v51, %v4477_v42  ;;  %v4476_v45 = vmul.f32 %v15667_v61, %v3702_v55  ;;  %v15720_v55 = vld [vmem:[#allocation78_spill] sm:$0xff] }
 0x3f4   : > { %v10177_v32 = vpop.f32.mrf.mxu0  ;;  %v15721_v61 = vld [vmem:[#allocation58_spill] sm:$0xff] }
 0x3f5   : > { %v4604_v12 = vadd.f32 %v4540_v39, %v4476_v45  ;;  %v4479_v44 = vmul.f32 %v15662_v33, %v10177_v32  ;;  %v4676_v52 = vadd.f32 %v13357_v17, %v4605_v22  ;;  %v4545_v34 = vmul.f32 %v15721_v61, %v15720_v55  ;;  %v15722_v39 = vld [vmem:[#allocation3_spill] sm:$0xff]  ;;  %v15723_v33 = vld [vmem:[#allocation77_spill] sm:$0xff]  ;;  %v15726_v61 = vld [vmem:[#allocation80_spill] sm:$0xff] }
 0x3f6   : > { %v3712_v18 = vpop.f32.mrf.mxu0  ;;  %v4544_v37 = vmul.f32 %v15724_v8, %v15723_v33 }
 0x3f7   : > { %v4675_v51 = vadd.f32 %v13357_v17, %v4604_v12  ;;  %v4607_v42 = vadd.f32 %v4543_v15, %v4479_v44  ;;  %v4478_v47 = vmul.f32 %v15663_v56, %v3712_v18  ;;  %v4740_v32 = vmax.f32 %v4676_v52, 0.0  ;;  %v15725_v44 = vld [vmem:[#allocation5_spill] sm:$0xff]  ;;  %v15731_v56 = vld [vmem:[#allocation4_spill] sm:$0xff] }
 0x3f8   : > { %v10180_v54 = vpop.f32.mrf.mxu0 }
 0x3f9   : > { %v4739_v24 = vmax.f32 %v4675_v51, 0.0  ;;  %v4606_v46 = vadd.f32 %v4542_v49, %v4478_v47  ;;  %v4481_v45 = vmul.f32 %v15722_v39, %v10180_v54  ;;  %v4678_v22 = vadd.f32 %v13357_v17, %v4607_v42  ;;  %v15727_v47 = vld [vmem:[#allocation116_spill] sm:$0xff]  ;;  %v15728_v51 = vld [vmem:[#allocation2_spill] sm:$0xff] }
 0x3fa   : > { %v3722_v16 = vpop.f32.mrf.mxu0  ;;  %v4547_v54 = vmul.f32 %v15727_v47, %v15726_v61 }
 0x3fb   : > { %v4677_v12 = vadd.f32 %v13357_v17, %v4606_v46  ;;  %v4609_v15 = vadd.f32 %v4545_v34, %v4481_v45  ;;  %v4480_v18 = vmul.f32 %v15725_v44, %v3722_v16  ;;  %10388 = vmatprep.mubr.msk.f32.mxu0 %vm2274_vm1, %v4739_v24  ;;  %v4742_v55 = vmax.f32 %v4678_v22, 0.0  ;;  %v15729_v46 = vld [vmem:[#allocation79_spill] sm:$0xff]  ;;  %v15730_v34 = vld [vmem:[#allocation117_spill] sm:$0xff] }
 0x3fc   : > { %v10183_v30 = vpop.f32.mrf.mxu0  ;;  %10389 = vmatmul.mubr.msk.f32.vlgmr.msra.gmra.mxu0 %vm2274_vm1, %v4740_v32  ;;  %v4546_v45 = vmul.f32 %v15730_v34, %v15729_v46  ;;  %v15747_v46 = vld [vmem:[#allocation11_spill] sm:$0xff] }
 0x3fd   : > { %v4741_v52 = vmax.f32 %v4677_v12, 0.0  ;;  %v4608_v49 = vadd.f32 %v4544_v37, %v4480_v18  ;;  %v4483_v42 = vmul.f32 %v15728_v51, %v10183_v30  ;;  %v4680_v8 = vadd.f32 %v13357_v17, %v4609_v15  ;;  %v15732_v37 = vld [vmem:[#allocation82_spill] sm:$0xff] }
 0x3fe   : > { %v3732_v33 = vpop.f32.mrf.mxu0  ;;  %v4549_v30 = vmul.f32 %v12975_v23, %v15732_v37  ;;  %v15734_v23 = vld [vmem:[#allocation84_spill] sm:$0xff] }
 0x3ff   : > { %v4679_v16 = vadd.f32 %v13357_v17, %v4608_v49  ;;  %v4611_v24 = vadd.f32 %v4547_v54, %v4483_v42  ;;  %v4482_v44 = vmul.f32 %v15731_v56, %v3732_v33  ;;  %10391 = vmatprep.mubr.msk.f32.mxu0 %vm2274_vm1, %v4741_v52  ;;  %v4744_v18 = vmax.f32 %v4680_v8, 0.0  ;;  %v15733_v49 = vld [vmem:[#allocation81_spill] sm:$0xff] }
 0x400   : > { %v10202_v32 = vpop.f32.mrf.mxu1  ;;  %10392 = vmatmul.mubr.msk.f32.gmra.mxu0 %vm2274_vm1, %v4742_v55  ;;  %v4548_v54 = vmul.f32 %v12979_v53, %v15733_v49  ;;  %v15741_v49 = vld [vmem:[#allocation13_spill] sm:$0xff] }
 0x401   : > { %v4743_v22 = vmax.f32 %v4679_v16, 0.0  ;;  %v4610_v12 = vadd.f32 %v4546_v45, %v4482_v44  ;;  %v4485_v15 = vmul.f32 %v11843_v4, %v10202_v32  ;;  %v4682_v47 = vadd.f32 %v13357_v17, %v4611_v24 }
 0x402   : > { %v3807_v34 = vpop.f32.mrf.mxu1  ;;  %v4551_v44 = vmul.f32 %v12983_v6, %v15734_v23  ;;  %v15736_v6 = vld [vmem:[#allocation86_spill] sm:$0xff] }
 0x403   : > { %v4681_v33 = vadd.f32 %v13357_v17, %v4610_v12  ;;  %v4613_v52 = vadd.f32 %v4549_v30, %v4485_v15  ;;  %v4484_v42 = vmul.f32 %v11845_v13, %v3807_v34  ;;  %10394 = vmatprep.mubr.msk.f32.mxu0 %vm2274_vm1, %v4743_v22  ;;  %v4746_v24 = vmax.f32 %v4682_v47, 0.0  ;;  %v15735_v12 = vld [vmem:[#allocation83_spill] sm:$0xff] }
 0x404   : > { %v10205_v55 = vpop.f32.mrf.mxu1  ;;  %10395 = vmatmul.mubr.msk.f32.gmra.mxu0 %vm2274_vm1, %v4744_v18  ;;  %v4550_v30 = vmul.f32 %v12987_v58, %v15735_v12 }
 0x405   : > { %v4745_v8 = vmax.f32 %v4681_v33, 0.0  ;;  %v4612_v45 = vadd.f32 %v4548_v54, %v4484_v42  ;;  %v4487_v16 = vmul.f32 %v11829_v35, %v10205_v55  ;;  %v4684_v53 = vadd.f32 %v13357_v17, %v4613_v52  ;;  %v15737_v54 = vld [vmem:[#allocation118_spill] sm:$0xff]  ;;  %v15738_v52 = vld [vmem:[#allocation12_spill] sm:$0xff] }
 0x406   : > { %v3817_v32 = vpop.f32.mrf.mxu1  ;;  %v4553_v33 = vmul.f32 %v15737_v54, %v15736_v6 }
 0x407   : > { %v4683_v15 = vadd.f32 %v13357_v17, %v4612_v45  ;;  %v4615_v22 = vadd.f32 %v4551_v44, %v4487_v16  ;;  %v4486_v34 = vmul.f32 %v11831_v43, %v3817_v32  ;;  %10397 = vmatprep.mubr.msk.f32.mxu0 %vm2274_vm1, %v4745_v8  ;;  %v4748_v23 = vmax.f32 %v4684_v53, 0.0  ;;  %v15739_v45 = vld [vmem:[#allocation85_spill] sm:$0xff]  ;;  %v15740_v44 = vld [vmem:[#allocation119_spill] sm:$0xff] }
 0x408   : > { %v10208_v18 = vpop.f32.mrf.mxu1  ;;  %10398 = vmatmul.mubr.msk.f32.gmra.mxu0 %vm2274_vm1, %v4746_v24  ;;  %v4552_v16 = vmul.f32 %v15740_v44, %v15739_v45 }
 0x409   : > { %v4747_v47 = vmax.f32 %v4683_v15, 0.0  ;;  %v4614_v42 = vadd.f32 %v4550_v30, %v4486_v34  ;;  %v4489_v55 = vmul.f32 %v15738_v52, %v10208_v18  ;;  %v4686_v58 = vadd.f32 %v13357_v17, %v4615_v22  ;;  %v15742_v30 = vld [vmem:[#allocation88_spill] sm:$0xff]  ;;  %v15744_v22 = vld [vmem:[#allocation10_spill] sm:$0xff] }
 0x40a   : > { %v3827_v12 = vpop.f32.mrf.mxu1  ;;  %v15743_v15 = vld [vmem:[#allocation120_spill] sm:$0xff] }
 0x40b   : > { %v4685_v32 = vadd.f32 %v13357_v17, %v4614_v42  ;;  %v4617_v8 = vadd.f32 %v4553_v33, %v4489_v55  ;;  %v4488_v37 = vmul.f32 %v15741_v49, %v3827_v12  ;;  %10400 = vmatprep.mubr.msk.f32.mxu0 %vm2274_vm1, %v4747_v47  ;;  %v4555_v34 = vmul.f32 %v15743_v15, %v15742_v30  ;;  %v15745_v42 = vld [vmem:[#allocation87_spill] sm:$0xff]  ;;  %v15746_v33 = vld [vmem:[#allocation121_spill] sm:$0xff] }
 0x40c   : > { %v10211_v24 = vpop.f32.mrf.mxu1  ;;  %10401 = vmatmul.mubr.msk.f32.gmra.mxu0 %vm2274_vm1, %v4748_v23  ;;  %v4750_v6 = vmax.f32 %v4686_v58, 0.0  ;;  %v4554_v55 = vmul.f32 %v15746_v33, %v15745_v42  ;;  %v15763_v42 = vld [vmem:[#allocation15_spill] sm:$0xff] }
 0x40d   : > { %v4749_v53 = vmax.f32 %v4685_v32, 0.0  ;;  %v4616_v18 = vadd.f32 %v4552_v16, %v4488_v37  ;;  %v4491_v54 = vmul.f32 %v15744_v22, %v10211_v24  ;;  %v4688_v44 = vadd.f32 %v13357_v17, %v4617_v8  ;;  %v15748_v37 = vld [vmem:[#allocation90_spill] sm:$0xff] }
 0x40e   : > { %v3837_v45 = vpop.f32.mrf.mxu1  ;;  %v4557_v16 = vmul.f32 %v13009_v3, %v15748_v37  ;;  %v15750_v3 = vld [vmem:[#allocation92_spill] sm:$0xff] }
 0x40f   : > { %v4687_v12 = vadd.f32 %v13357_v17, %v4616_v18  ;;  %v4619_v47 = vadd.f32 %v4555_v34, %v4491_v54  ;;  %v4490_v61 = vmul.f32 %v15747_v46, %v3837_v45  ;;  %10403 = vmatprep.mubr.msk.f32.mxu0 %vm2274_vm1, %v4749_v53  ;;  %v4752_v24 = vmax.f32 %v4688_v44, 0.0  ;;  %v15749_v18 = vld [vmem:[#allocation89_spill] sm:$0xff] }
 0x410   : > { %v10230_v23 = vpop.f32.mrf.mxu0  ;;  %10404 = vmatmul.mubr.msk.f32.gmra.mxu0 %vm2274_vm1, %v4750_v6  ;;  %v4556_v34 = vmul.f32 %v13015_v11, %v15749_v18  ;;  %v15757_v18 = vld [vmem:[#allocation17_spill] sm:$0xff] }
 0x411   : > { %v4751_v58 = vmax.f32 %v4687_v12, 0.0  ;;  %v4618_v32 = vadd.f32 %v4554_v55, %v4490_v61  ;;  %v4493_v8 = vmul.f32 %v11898_v0, %v10230_v23  ;;  %v4690_v15 = vadd.f32 %v13357_v17, %v4619_v47 }
 0x412   : > { %v3912_v33 = vpop.f32.mrf.mxu0  ;;  %v4559_v61 = vmul.f32 %v13021_v41, %v15750_v3  ;;  %v15752_v41 = vld [vmem:[#allocation94_spill] sm:$0xff] }
 0x413   : > { %v4689_v45 = vadd.f32 %v13357_v17, %v4618_v32  ;;  %v4621_v53 = vadd.f32 %v4557_v16, %v4493_v8  ;;  %v4492_v54 = vmul.f32 %v11902_v31, %v3912_v33  ;;  %10406 = vmatprep.mubr.msk.f32.mxu0 %vm2274_vm1, %v4751_v58  ;;  %v4754_v47 = vmax.f32 %v4690_v15, 0.0  ;;  %v15751_v32 = vld [vmem:[#allocation91_spill] sm:$0xff] }
 0x414   : > { %v10233_v6 = vpop.f32.mrf.mxu0  ;;  %10407 = vmatmul.mubr.msk.f32.gmra.mxu0 %vm2274_vm1, %v4752_v24  ;;  %v4558_v16 = vmul.f32 %v13027_v63, %v15751_v32 }
 0x415   : > { %v4753_v44 = vmax.f32 %v4689_v45, 0.0  ;;  %v4620_v55 = vadd.f32 %v4556_v34, %v4492_v54  ;;  %v4495_v12 = vmul.f32 %v11882_v26, %v10233_v6  ;;  %v4692_v11 = vadd.f32 %v13357_v17, %v4621_v53  ;;  %v15753_v34 = vld [vmem:[#allocation122_spill] sm:$0xff]  ;;  %v15754_v53 = vld [vmem:[#allocation16_spill] sm:$0xff] }
 0x416   : > { %v3922_v23 = vpop.f32.mrf.mxu0  ;;  %v4561_v45 = vmul.f32 %v15753_v34, %v15752_v41 }
 0x417   : > { %v4691_v8 = vadd.f32 %v13357_v17, %v4620_v55  ;;  %v4623_v58 = vadd.f32 %v4559_v61, %v4495_v12  ;;  %v4494_v33 = vmul.f32 %v11886_v2, %v3922_v23  ;;  %10409 = vmatprep.mubr.msk.f32.mxu0 %vm2274_vm1, %v4753_v44  ;;  %v4756_v3 = vmax.f32 %v4692_v11, 0.0  ;;  %v15755_v55 = vld [vmem:[#allocation93_spill] sm:$0xff]  ;;  %v15756_v61 = vld [vmem:[#allocation123_spill] sm:$0xff] }
 0x418   : > { %v10236_v24 = vpop.f32.mrf.mxu0  ;;  %10410 = vmatmul.mubr.msk.f32.gmra.mxu0 %vm2274_vm1, %v4754_v47  ;;  %v4560_v12 = vmul.f32 %v15756_v61, %v15755_v55 }
 0x419   : > { %v4755_v15 = vmax.f32 %v4691_v8, 0.0  ;;  %v4622_v54 = vadd.f32 %v4558_v16, %v4494_v33  ;;  %v4497_v6 = vmul.f32 %v15754_v53, %v10236_v24  ;;  %v4694_v63 = vadd.f32 %v13357_v17, %v4623_v58  ;;  %v15758_v16 = vld [vmem:[#allocation96_spill] sm:$0xff]  ;;  %v15760_v58 = vld [vmem:[#allocation14_spill] sm:$0xff] }
 0x41a   : > { %v3932_v32 = vpop.f32.mrf.mxu0  ;;  %v15759_v8 = vld [vmem:[#allocation124_spill] sm:$0xff] }
 0x41b   : > { %v4693_v23 = vadd.f32 %v13357_v17, %v4622_v54  ;;  %v4625_v44 = vadd.f32 %v4561_v45, %v4497_v6  ;;  %v4496_v37 = vmul.f32 %v15757_v18, %v3932_v32  ;;  %10412 = vmatprep.mubr.msk.f32.mxu0 %vm2274_vm1, %v4755_v15  ;;  %v4563_v33 = vmul.f32 %v15759_v8, %v15758_v16  ;;  %v15761_v54 = vld [vmem:[#allocation95_spill] sm:$0xff]  ;;  %v15762_v45 = vld [vmem:[#allocation125_spill] sm:$0xff] }
 0x41c   : > { %v10239_v47 = vpop.f32.mrf.mxu0  ;;  %10413 = vmatmul.mubr.msk.f32.gmra.mxu0 %vm2274_vm1, %v4756_v3  ;;  %v4758_v41 = vmax.f32 %v4694_v63, 0.0  ;;  %v4562_v6 = vmul.f32 %v15762_v45, %v15761_v54  ;;  %v15779_v54 = vld [vmem:[#allocation19_spill] sm:$0xff] }
 0x41d   : > { %v4757_v11 = vmax.f32 %v4693_v23, 0.0  ;;  %v4624_v24 = vadd.f32 %v4560_v12, %v4496_v37  ;;  %v4499_v34 = vmul.f32 %v15760_v58, %v10239_v47  ;;  %v4696_v61 = vadd.f32 %v13357_v17, %v4625_v44  ;;  %v15764_v37 = vld [vmem:[#allocation98_spill] sm:$0xff] }
 0x41e   : > { %v3942_v55 = vpop.f32.mrf.mxu0  ;;  %v4565_v12 = vmul.f32 %v13057_v7, %v15764_v37  ;;  %v15766_v7 = vld [vmem:[#allocation100_spill] sm:$0xff] }
 0x41f   : > { %v4695_v32 = vadd.f32 %v13357_v17, %v4624_v24  ;;  %v4627_v15 = vadd.f32 %v4563_v33, %v4499_v34  ;;  %v4498_v30 = vmul.f32 %v15763_v42, %v3942_v55  ;;  %10415 = vmatprep.mubr.msk.f32.mxu0 %vm2274_vm1, %v4757_v11  ;;  %v4760_v47 = vmax.f32 %v4696_v61, 0.0  ;;  %v15765_v24 = vld [vmem:[#allocation97_spill] sm:$0xff] }
 0x420   : > { %v10258_v3 = vpop.f32.mrf.mxu1  ;;  %10416 = vmatmul.mubr.msk.f32.gmra.mxu0 %vm2274_vm1, %v4758_v41  ;;  %v4564_v33 = vmul.f32 %v13063_v57, %v15765_v24  ;;  %v15773_v24 = vld [vmem:[#allocation21_spill] sm:$0xff] }
 0x421   : > { %v4759_v63 = vmax.f32 %v4695_v32, 0.0  ;;  %v4626_v23 = vadd.f32 %v4562_v6, %v4498_v30  ;;  %v4501_v44 = vmul.f32 %v11958_v1, %v10258_v3  ;;  %v4698_v8 = vadd.f32 %v13357_v17, %v4627_v15 }
 0x422   : > { %v4017_v45 = vpop.f32.mrf.mxu1  ;;  %v4567_v30 = vmul.f32 %v13069_v62, %v15766_v7  ;;  %v15768_v62 = vld [vmem:[#allocation102_spill] sm:$0xff] }
 0x423   : > { %v4697_v55 = vadd.f32 %v13357_v17, %v4626_v23  ;;  %v4629_v11 = vadd.f32 %v4565_v12, %v4501_v44  ;;  %v4500_v34 = vmul.f32 %v11962_v50, %v4017_v45  ;;  %10418 = vmatprep.mubr.msk.f32.mxu0 %vm2274_vm1, %v4759_v63  ;;  %v4762_v15 = vmax.f32 %v4698_v8, 0.0  ;;  %v15767_v23 = vld [vmem:[#allocation99_spill] sm:$0xff] }
 0x424   : > { %v10261_v41 = vpop.f32.mrf.mxu1  ;;  %10419 = vmatmul.mubr.msk.f32.gmra.mxu0 %vm2274_vm1, %v4760_v47  ;;  %v4566_v12 = vmul.f32 %v13075_v21, %v15767_v23 }
 0x425   : > { %v4761_v61 = vmax.f32 %v4697_v55, 0.0  ;;  %v4628_v6 = vadd.f32 %v4564_v33, %v4500_v34  ;;  %v4503_v32 = vmul.f32 %v11940_v25, %v10261_v41  ;;  %v4700_v57 = vadd.f32 %v13357_v17, %v4629_v11  ;;  %v15769_v33 = vld [vmem:[#allocation126_spill] sm:$0xff]  ;;  %v15770_v11 = vld [vmem:[#allocation20_spill] sm:$0xff] }
 0x426   : > { %v4027_v3 = vpop.f32.mrf.mxu1  ;;  %v4569_v55 = vmul.f32 %v15769_v33, %v15768_v62 }
 0x427   : > { %v4699_v44 = vadd.f32 %v13357_v17, %v4628_v6  ;;  %v4631_v63 = vadd.f32 %v4567_v30, %v4503_v32  ;;  %v4502_v45 = vmul.f32 %v11944_v5, %v4027_v3  ;;  %10421 = vmatprep.mubr.msk.f32.mxu0 %vm2274_vm1, %v4761_v61  ;;  %v4764_v7 = vmax.f32 %v4700_v57, 0.0  ;;  %v15771_v6 = vld [vmem:[#allocation101_spill] sm:$0xff]  ;;  %v15772_v30 = vld [vmem:[#allocation127_spill] sm:$0xff] }
 0x428   : > { %v10264_v47 = vpop.f32.mrf.mxu1  ;;  %10422 = vmatmul.mubr.msk.f32.gmra.mxu0 %vm2274_vm1, %v4762_v15  ;;  %v4568_v32 = vmul.f32 %v15772_v30, %v15771_v6 }
 0x429   : > { %v4763_v8 = vmax.f32 %v4699_v44, 0.0  ;;  %v4630_v34 = vadd.f32 %v4566_v12, %v4502_v45  ;;  %v4505_v41 = vmul.f32 %v15770_v11, %v10264_v47  ;;  %v4702_v21 = vadd.f32 %v13357_v17, %v4631_v63  ;;  %v15774_v12 = vld [vmem:[#allocation104_spill] sm:$0xff]  ;;  %v15776_v63 = vld [vmem:[#allocation18_spill] sm:$0xff] }
 0x42a   : > { %v4037_v23 = vpop.f32.mrf.mxu1  ;;  %v15775_v44 = vld [vmem:[#allocation128_spill] sm:$0xff] }
 0x42b   : > { %v4701_v3 = vadd.f32 %v13357_v17, %v4630_v34  ;;  %v4633_v61 = vadd.f32 %v4569_v55, %v4505_v41  ;;  %v4504_v37 = vmul.f32 %v15773_v24, %v4037_v23  ;;  %10424 = vmatprep.mubr.msk.f32.mxu0 %vm2274_vm1, %v4763_v8  ;;  %v4571_v45 = vmul.f32 %v15775_v44, %v15774_v12  ;;  %v15777_v34 = vld [vmem:[#allocation103_spill] sm:$0xff]  ;;  %v15778_v55 = vld [vmem:[#allocation129_spill] sm:$0xff] }
 0x42c   : > { %v10267_v15 = vpop.f32.mrf.mxu1  ;;  %10425 = vmatmul.mubr.msk.f32.gmra.mxu0 %vm2274_vm1, %v4764_v7  ;;  %v4766_v62 = vmax.f32 %v4702_v21, 0.0  ;;  %v4570_v41 = vmul.f32 %v15778_v55, %v15777_v34  ;;  %v15795_v34 = vld [vmem:[#allocation23_spill] sm:$0xff] }
 0x42d   : > { %v4765_v57 = vmax.f32 %v4701_v3, 0.0  ;;  %v4632_v47 = vadd.f32 %v4568_v32, %v4504_v37  ;;  %v4507_v33 = vmul.f32 %v15776_v63, %v10267_v15  ;;  %v4704_v30 = vadd.f32 %v13357_v17, %v4633_v61  ;;  %v15780_v37 = vld [vmem:[#allocation106_spill] sm:$0xff] }
 0x42e   : > { %v4047_v6 = vpop.f32.mrf.mxu1  ;;  %v4573_v32 = vmul.f32 %v13105_v27, %v15780_v37  ;;  %v15782_v27 = vld [vmem:[#allocation108_spill] sm:$0xff] }
 0x42f   : > { %v4703_v23 = vadd.f32 %v13357_v17, %v4632_v47  ;;  %v4635_v8 = vadd.f32 %v4571_v45, %v4507_v33  ;;  %v4506_v16 = vmul.f32 %v15779_v54, %v4047_v6  ;;  %10427 = vmatprep.mubr.msk.f32.mxu0 %vm2274_vm1, %v4765_v57  ;;  %v4768_v15 = vmax.f32 %v4704_v30, 0.0  ;;  %v15781_v47 = vld [vmem:[#allocation105_spill] sm:$0xff] }
 0x430   : > { %v10286_v7 = vpop.f32.mrf.mxu0  ;;  %10428 = vmatmul.mubr.msk.f32.gmra.mxu0 %vm2274_vm1, %v4766_v62  ;;  %v4572_v45 = vmul.f32 %v13111_v38, %v15781_v47  ;;  %v15789_v47 = vld [vmem:[#allocation27_spill] sm:$0xff] }
 0x431   : > { %v4767_v21 = vmax.f32 %v4703_v23, 0.0  ;;  %v4634_v3 = vadd.f32 %v4570_v41, %v4506_v16  ;;  %v4509_v61 = vmul.f32 %v12024_v60, %v10286_v7  ;;  %v4706_v44 = vadd.f32 %v13357_v17, %v4635_v8 }
 0x432   : > { %v4122_v55 = vpop.f32.mrf.mxu0  ;;  %v4575_v16 = vmul.f32 %v13117_v19, %v15782_v27  ;;  %v15784_v19 = vld [vmem:[#allocation28_spill] sm:$0xff] }
 0x433   : > { %v4705_v6 = vadd.f32 %v13357_v17, %v4634_v3  ;;  %v4637_v57 = vadd.f32 %v4573_v32, %v4509_v61  ;;  %v4508_v33 = vmul.f32 %v12028_v59, %v4122_v55  ;;  %10430 = vmatprep.mubr.msk.f32.mxu0 %vm2274_vm1, %v4767_v21  ;;  %v4770_v8 = vmax.f32 %v4706_v44, 0.0  ;;  %v15783_v3 = vld [vmem:[#allocation107_spill] sm:$0xff] }
 0x434   : > { %v10289_v62 = vpop.f32.mrf.mxu0  ;;  %10431 = vmatmul.mubr.msk.f32.gmra.mxu0 %vm2274_vm1, %v4768_v15  ;;  %v4574_v32 = vmul.f32 %v13123_v28, %v15783_v3 }
 0x435   : > { %v4769_v30 = vmax.f32 %v4705_v6, 0.0  ;;  %v4636_v41 = vadd.f32 %v4572_v45, %v4508_v33  ;;  %v4511_v23 = vmul.f32 %v12006_v9, %v10289_v62  ;;  %v4708_v38 = vadd.f32 %v13357_v17, %v4637_v57  ;;  %v15785_v45 = vld [vmem:[#allocation130_spill] sm:$0xff] }
 0x436   : > { %v4132_v7 = vpop.f32.mrf.mxu0  ;;  %v4577_v6 = vmul.f32 %v15785_v45, %v15784_v19  ;;  %v15786_v57 = vld [vmem:[#allocation26_spill] sm:$0xff] }
 0x437   : > { %v4707_v61 = vadd.f32 %v13357_v17, %v4636_v41  ;;  %v4639_v21 = vadd.f32 %v4575_v16, %v4511_v23  ;;  %v4510_v55 = vmul.f32 %v12010_v36, %v4132_v7  ;;  %10433 = vmatprep.mubr.msk.f32.mxu0 %vm2274_vm1, %v4769_v30  ;;  %v4772_v27 = vmax.f32 %v4708_v38, 0.0  ;;  %v15787_v41 = vld [vmem:[#allocation109_spill] sm:$0xff]  ;;  %v15788_v16 = vld [vmem:[#allocation131_spill] sm:$0xff] }
 0x438   : > { %v10292_v15 = vpop.f32.mrf.mxu0  ;;  %10434 = vmatmul.mubr.msk.f32.gmra.mxu0 %vm2274_vm1, %v4770_v8  ;;  %v4576_v23 = vmul.f32 %v15788_v16, %v15787_v41 }
 0x439   : > { %v4771_v44 = vmax.f32 %v4707_v61, 0.0  ;;  %v4638_v33 = vadd.f32 %v4574_v32, %v4510_v55  ;;  %v4513_v62 = vmul.f32 %v15786_v57, %v10292_v15  ;;  %v4710_v28 = vadd.f32 %v13357_v17, %v4639_v21  ;;  %v15790_v32 = vld [vmem:[#allocation24_spill] sm:$0xff]  ;;  %v15792_v21 = vld [vmem:[#allocation22_spill] sm:$0xff] }
 0x43a   : > { %v4142_v3 = vpop.f32.mrf.mxu0  ;;  %v15791_v61 = vld [vmem:[#allocation132_spill] sm:$0xff] }
 0x43b   : > { %v4709_v7 = vadd.f32 %v13357_v17, %v4638_v33  ;;  %v4641_v30 = vadd.f32 %v4577_v6, %v4513_v62  ;;  %v4512_v37 = vmul.f32 %v15789_v47, %v4142_v3  ;;  %10436 = vmatprep.mubr.msk.f32.mxu0 %vm2274_vm1, %v4771_v44  ;;  %v4579_v55 = vmul.f32 %v15791_v61, %v15790_v32  ;;  %v15793_v33 = vld [vmem:[#allocation25_spill] sm:$0xff]  ;;  %v15808_v32 = vld [vmem:[#allocation34_spill] sm:$0xff] }
 0x43c   : > { %v10295_v8 = vpop.f32.mrf.mxu0  ;;  %10437 = vmatmul.mubr.msk.f32.gmra.mxu0 %vm2274_vm1, %v4772_v27  ;;  %v4774_v19 = vmax.f32 %v4710_v28, 0.0  ;;  %v15794_v6 = vld [vmem:[#allocation133_spill] sm:$0xff] }
 0x43d   : > { %v4773_v38 = vmax.f32 %v4709_v7, 0.0  ;;  %v4640_v15 = vadd.f32 %v4576_v23, %v4512_v37  ;;  %v4515_v45 = vmul.f32 %v15792_v21, %v10295_v8  ;;  %v4712_v16 = vadd.f32 %v13357_v17, %v4641_v30  ;;  %v15796_v37 = vld [vmem:[#allocation111_spill] sm:$0xff] }
 0x43e   : > { %v4152_v41 = vpop.f32.mrf.mxu0  ;;  %v4578_v62 = vmul.f32 %v15794_v6, %v15793_v33  ;;  %v4581_v23 = vmul.f32 %v13153_v14, %v15796_v37  ;;  %v15798_v14 = vld [vmem:[#allocation113_spill] sm:$0xff]  ;;  %v15802_v37 = vld [vmem:[#allocation38_spill] sm:$0xff] }
 0x43f   : > { %v4711_v3 = vadd.f32 %v13357_v17, %v4640_v15  ;;  %v4643_v44 = vadd.f32 %v4579_v55, %v4515_v45  ;;  %v4514_v12 = vmul.f32 %v15795_v34, %v4152_v41  ;;  %10439 = vmatprep.mubr.msk.f32.mxu0 %vm2274_vm1, %v4773_v38  ;;  %v4776_v8 = vmax.f32 %v4712_v16, 0.0  ;;  %v15797_v15 = vld [vmem:[#allocation110_spill] sm:$0xff] }
 0x440   : > { %v10314_v27 = vpop.f32.mrf.mxu1  ;;  %10440 = vmatmul.mubr.msk.f32.gmra.mxu0 %vm2274_vm1, %v4774_v19  ;;  %v4580_v55 = vmul.f32 %v13159_v10, %v15797_v15 }
 0x441   : > { %v4775_v28 = vmax.f32 %v4711_v3, 0.0  ;;  %v4642_v7 = vadd.f32 %v4578_v62, %v4514_v12  ;;  %v4517_v30 = vmul.f32 %v12090_v48, %v10314_v27  ;;  %v4714_v61 = vadd.f32 %v13357_v17, %v4643_v44  ;;  %v15799_v3 = vld [vmem:[#allocation37_spill] sm:$0xff]  ;;  %v15814_v48 = vld [vmem:[#allocation30_spill] sm:$0xff] }
 0x442   : > { %v4227_v6 = vpop.f32.mrf.mxu1  ;;  %v4583_v12 = vmul.f32 %v13165_v20, %v15798_v14  ;;  %v15803_v20 = vld [vmem:[#allocation35_spill] sm:$0xff] }
 0x443   : > { %v4713_v41 = vadd.f32 %v13357_v17, %v4642_v7  ;;  %v4645_v38 = vadd.f32 %v4581_v23, %v4517_v30  ;;  %v4516_v45 = vmul.f32 %v12094_v40, %v4227_v6  ;;  %10442 = vmatprep.mubr.msk.f32.mxu0 %vm2274_vm1, %v4775_v28  ;;  %v4778_v27 = vmax.f32 %v4714_v61, 0.0  ;;  %v15800_v7 = vld [vmem:[#allocation112_spill] sm:$0xff]  ;;  %v15801_v23 = vld [vmem:[#allocation134_spill] sm:$0xff] }
 0x444   : > { %v10317_v19 = vpop.f32.mrf.mxu1  ;;  %10443 = vmatmul.mubr.msk.f32.gmra.mxu0 %vm2274_vm1, %v4776_v8  ;;  %v4582_v30 = vmul.f32 %v15801_v23, %v15800_v7 }
 0x445   : > { %v4777_v16 = vmax.f32 %v4713_v41, 0.0  ;;  %v4644_v62 = vadd.f32 %v4580_v55, %v4516_v45  ;;  %v4519_v44 = vmul.f32 %v15799_v3, %v10317_v19  ;;  %v4716_v10 = vadd.f32 %v13357_v17, %v4645_v38  ;;  %v15804_v55 = vld [vmem:[#allocation135_spill] sm:$0xff]  ;;  %v15805_v38 = vld [vmem:[#allocation33_spill] sm:$0xff] }
 0x446   : > { %v4237_v15 = vpop.f32.mrf.mxu1  ;;  %v4585_v41 = vmul.f32 %v15804_v55, %v15803_v20 }
 0x447   : > { %v4715_v6 = vadd.f32 %v13357_v17, %v4644_v62  ;;  %v4647_v28 = vadd.f32 %v4583_v12, %v4519_v44  ;;  %v4518_v33 = vmul.f32 %v15802_v37, %v4237_v15  ;;  %10445 = vmatprep.mubr.msk.f32.mxu0 %vm2274_vm1, %v4777_v16  ;;  %v4780_v14 = vmax.f32 %v4716_v10, 0.0  ;;  %v15806_v62 = vld [vmem:[#allocation36_spill] sm:$0xff] }
 0x448   : > { %v10320_v8 = vpop.f32.mrf.mxu1  ;;  %10446 = vmatmul.mubr.msk.f32.gmra.mxu0 %vm2274_vm1, %v4778_v27  ;;  %v15807_v12 = vld [vmem:[#allocation136_spill] sm:$0xff] }
 0x449   : > { %v4779_v61 = vmax.f32 %v4715_v6, 0.0  ;;  %v4646_v45 = vadd.f32 %v4582_v30, %v4518_v33  ;;  %v4521_v19 = vmul.f32 %v15805_v38, %v10320_v8  ;;  %v4718_v23 = vadd.f32 %v13357_v17, %v4647_v28  ;;  %v15809_v33 = vld [vmem:[#allocation31_spill] sm:$0xff]  ;;  %v15810_v30 = vld [vmem:[#allocation137_spill] sm:$0xff] }
 0x44a   : > { %v4247_v7 = vpop.f32.mrf.mxu1  ;;  %v4584_v44 = vmul.f32 %v15807_v12, %v15806_v62  ;;  %v4587_v6 = vmul.f32 %v15810_v30, %v15809_v33  ;;  %v15811_v28 = vld [vmem:[#allocation29_spill] sm:$0xff]  ;;  %v15819_v33 = vld [vmem:[#allocation56_spill] sm:$0xff] }
 0x44b   : > { %v4717_v15 = vadd.f32 %v13357_v17, %v4646_v45  ;;  %v4649_v16 = vadd.f32 %v4585_v41, %v4521_v19  ;;  %v4520_v40 = vmul.f32 %v15808_v32, %v4247_v7  ;;  %10448 = vmatprep.mubr.msk.f32.mxu0 %vm2274_vm1, %v4779_v61  ;;  %v4782_v20 = vmax.f32 %v4718_v23, 0.0  ;;  %v15812_v45 = vld [vmem:[#allocation32_spill] sm:$0xff]  ;;  %v15813_v41 = vld [vmem:[#allocation138_spill] sm:$0xff] }
 0x44c   : > { %v10323_v27 = vpop.f32.mrf.mxu1  ;;  %10449 = vmatmul.mubr.msk.f32.gmra.mxu0 %vm2274_vm1, %v4780_v14  ;;  %v4586_v19 = vmul.f32 %v15813_v41, %v15812_v45 }
 0x44d   : > { %v4781_v10 = vmax.f32 %v4717_v15, 0.0  ;;  %v4648_v8 = vadd.f32 %v4584_v44, %v4520_v40  ;;  %v4523_v55 = vmul.f32 %v15811_v28, %v10323_v27  ;;  %v4720_v12 = vadd.f32 %v13357_v17, %v4649_v16  ;;  %v15815_v40 = vld [vmem:[#allocation115_spill] sm:$0xff] }
 0x44e   : > { %v4257_v62 = vpop.f32.mrf.mxu1  ;;  %v4589_v44 = vmul.f32 %v13201_v29, %v15815_v40  ;;  %v15816_v16 = vld [vmem:[#allocation55_spill] sm:$0xff]  ;;  %v15820_v29 = vld [vmem:[#allocation53_spill] sm:$0xff] }
 0x44f   : > { %v4719_v7 = vadd.f32 %v13357_v17, %v4648_v8  ;;  %v4651_v61 = vadd.f32 %v4587_v6, %v4523_v55  ;;  %v4522_v37 = vmul.f32 %v15814_v48, %v4257_v62  ;;  %10451 = vmatprep.mubr.msk.f32.mxu0 %vm2274_vm1, %v4781_v10  ;;  %v4784_v30 = vmax.f32 %v4720_v12, 0.0  ;;  %v15817_v8 = vld [vmem:[#allocation114_spill] sm:$0xff]  ;;  %v15818_v6 = vld [vmem:[#allocation139_spill] sm:$0xff] }
 0x450   : > { %v10342_v14 = vpop.f32.mrf.mxu0  ;;  %10452 = vmatmul.mubr.msk.f32.gmra.mxu0 %vm2274_vm1, %v4782_v20  ;;  %v4588_v55 = vmul.f32 %v15818_v6, %v15817_v8 }
 0x451   : > { %v4783_v23 = vmax.f32 %v4719_v7, 0.0  ;;  %v4650_v15 = vadd.f32 %v4586_v19, %v4522_v37  ;;  %v4525_v27 = vmul.f32 %v15816_v16, %v10342_v14  ;;  %v4722_v41 = vadd.f32 %v13357_v17, %v4651_v61  ;;  %v15821_v37 = vld [vmem:[#allocation140_spill] sm:$0xff]  ;;  %v15822_v61 = vld [vmem:[#allocation51_spill] sm:$0xff] }
 0x452   : > { %v4332_v45 = vpop.f32.mrf.mxu0  ;;  %v4591_v19 = vmul.f32 %v15821_v37, %v15820_v29 }
 0x453   : > { %v4721_v62 = vadd.f32 %v13357_v17, %v4650_v15  ;;  %v4653_v10 = vadd.f32 %v4589_v44, %v4525_v27  ;;  %v4524_v3 = vmul.f32 %v15819_v33, %v4332_v45  ;;  %10454 = vmatprep.mubr.msk.f32.mxu0 %vm2274_vm1, %v4783_v23  ;;  %v4786_v40 = vmax.f32 %v4722_v41, 0.0  ;;  %v15823_v15 = vld [vmem:[#allocation54_spill] sm:$0xff]  ;;  %v15824_v44 = vld [vmem:[#allocation141_spill] sm:$0xff]  ;;  %v15825_v33 = vld [vmem:[#allocation52_spill] sm:$0xff] }
 0x454   : > { %v10345_v20 = vpop.f32.mrf.mxu0  ;;  %10455 = vmatmul.mubr.msk.f32.gmra.mxu0 %vm2274_vm1, %v4784_v30  ;;  %v4590_v27 = vmul.f32 %v15824_v44, %v15823_v15 }
 0x455   : > { %v4785_v12 = vmax.f32 %v4721_v62, 0.0  ;;  %v4652_v7 = vadd.f32 %v4588_v55, %v4524_v3  ;;  %v4527_v14 = vmul.f32 %v15822_v61, %v10345_v20  ;;  %v4724_v6 = vadd.f32 %v13357_v17, %v4653_v10  ;;  %v15826_v3 = vld [vmem:[#allocation49_spill] sm:$0xff]  ;;  %v15827_v55 = vld [vmem:[#allocation142_spill] sm:$0xff]  ;;  %v15828_v10 = vld [vmem:[#allocation47_spill] sm:$0xff] }
 0x456   : > { %v4342_v8 = vpop.f32.mrf.mxu0  ;;  %v4593_v62 = vmul.f32 %v15827_v55, %v15826_v3 }
 0x457   : > { %v4723_v45 = vadd.f32 %v13357_v17, %v4652_v7  ;;  %v4655_v23 = vadd.f32 %v4591_v19, %v4527_v14  ;;  %v4526_v16 = vmul.f32 %v15825_v33, %v4342_v8  ;;  %10457 = vmatprep.mubr.msk.f32.mxu0 %vm2274_vm1, %v4785_v12  ;;  %v4788_v29 = vmax.f32 %v4724_v6, 0.0  ;;  %v15829_v7 = vld [vmem:[#allocation50_spill] sm:$0xff]  ;;  %v15830_v19 = vld [vmem:[#allocation143_spill] sm:$0xff]  ;;  %v15831_v33 = vld [vmem:[#allocation48_spill] sm:$0xff] }
 0x458   : > { %v10348_v30 = vpop.f32.mrf.mxu0  ;;  %10458 = vmatmul.mubr.msk.f32.gmra.mxu0 %vm2274_vm1, %v4786_v40  ;;  %v4592_v14 = vmul.f32 %v15830_v19, %v15829_v7 }
 0x459   : > { %v4787_v41 = vmax.f32 %v4723_v45, 0.0  ;;  %v4654_v20 = vadd.f32 %v4590_v27, %v4526_v16  ;;  %v4529_v37 = vmul.f32 %v15828_v10, %v10348_v30  ;;  %v4726_v44 = vadd.f32 %v13357_v17, %v4655_v23  ;;  %v15832_v16 = vld [vmem:[#allocation45_spill] sm:$0xff]  ;;  %v15833_v27 = vld [vmem:[#allocation144_spill] sm:$0xff]  ;;  %v15834_v23 = vld [vmem:[#allocation43_spill] sm:$0xff] }
 0x45a   : > { %v4352_v15 = vpop.f32.mrf.mxu0  ;;  %v4595_v45 = vmul.f32 %v15833_v27, %v15832_v16 }
 0x45b   : > { %v4725_v8 = vadd.f32 %v13357_v17, %v4654_v20  ;;  %v4657_v12 = vadd.f32 %v4593_v62, %v4529_v37  ;;  %v4528_v61 = vmul.f32 %v15831_v33, %v4352_v15  ;;  %10460 = vmatprep.mubr.msk.f32.mxu0 %vm2274_vm1, %v4787_v41  ;;  %v4790_v3 = vmax.f32 %v4726_v44, 0.0  ;;  %v15835_v20 = vld [vmem:[#allocation46_spill] sm:$0xff]  ;;  %v15836_v62 = vld [vmem:[#allocation145_spill] sm:$0xff]  ;;  %v15837_v33 = vld [vmem:[#allocation44_spill] sm:$0xff] }
 0x45c   : > { %v10351_v40 = vpop.f32.mrf.mxu0  ;;  %10461 = vmatmul.mubr.msk.f32.gmra.mxu0 %vm2274_vm1, %v4788_v29  ;;  %v4594_v37 = vmul.f32 %v15836_v62, %v15835_v20 }
 0x45d   : > { %v4789_v6 = vmax.f32 %v4725_v8, 0.0  ;;  %v4656_v30 = vadd.f32 %v4592_v14, %v4528_v61  ;;  %v4531_v55 = vmul.f32 %v15834_v23, %v10351_v40  ;;  %v4728_v19 = vadd.f32 %v13357_v17, %v4657_v12  ;;  %v15838_v61 = vld [vmem:[#allocation41_spill] sm:$0xff]  ;;  %v15839_v14 = vld [vmem:[#allocation146_spill] sm:$0xff]  ;;  %v15840_v12 = vld [vmem:[#allocation71_spill] sm:$0xff] }
 0x45e   : > { %v4362_v7 = vpop.f32.mrf.mxu0  ;;  %v4597_v8 = vmul.f32 %v15839_v14, %v15838_v61 }
 0x45f   : > { %v4727_v15 = vadd.f32 %v13357_v17, %v4656_v30  ;;  %v4659_v41 = vadd.f32 %v4595_v45, %v4531_v55  ;;  %v4530_v10 = vmul.f32 %v15837_v33, %v4362_v7  ;;  %10463 = vmatprep.mubr.msk.f32.mxu0 %vm2274_vm1, %v4789_v6  ;;  %v4792_v16 = vmax.f32 %v4728_v19, 0.0  ;;  %v15841_v30 = vld [vmem:[#allocation42_spill] sm:$0xff]  ;;  %v15842_v45 = vld [vmem:[#allocation147_spill] sm:$0xff]  ;;  %v15843_v33 = vld [vmem:[#allocation72_spill] sm:$0xff] }
 0x460   : > { %v10370_v29 = vpop.f32.mrf.mxu1  ;;  %10464 = vmatmul.mubr.msk.f32.gmra.mxu0 %vm2274_vm1, %v4790_v3  ;;  %v4596_v55 = vmul.f32 %v15842_v45, %v15841_v30 }
 0x461   : > { %v4791_v44 = vmax.f32 %v4727_v15, 0.0  ;;  %v4658_v40 = vadd.f32 %v4594_v37, %v4530_v10  ;;  %v4533_v27 = vmul.f32 %v15840_v12, %v10370_v29  ;;  %v4730_v62 = vadd.f32 %v13357_v17, %v4659_v41  ;;  %v15844_v10 = vld [vmem:[#allocation69_spill] sm:$0xff]  ;;  %v15845_v37 = vld [vmem:[#allocation148_spill] sm:$0xff]  ;;  %v15846_v41 = vld [vmem:[#allocation67_spill] sm:$0xff] }
 0x462   : > { %v4437_v20 = vpop.f32.mrf.mxu1  ;;  %v4599_v15 = vmul.f32 %v15845_v37, %v15844_v10 }
 0x463   : > { %v4729_v7 = vadd.f32 %v13357_v17, %v4658_v40  ;;  %v4661_v6 = vadd.f32 %v4597_v8, %v4533_v27  ;;  %v4532_v23 = vmul.f32 %v15843_v33, %v4437_v20  ;;  %10466 = vmatprep.mubr.msk.f32.mxu0 %vm2274_vm1, %v4791_v44  ;;  %v4794_v61 = vmax.f32 %v4730_v62, 0.0  ;;  %v15847_v40 = vld [vmem:[#allocation70_spill] sm:$0xff]  ;;  %v15848_v8 = vld [vmem:[#allocation149_spill] sm:$0xff]  ;;  %v15849_v33 = vld [vmem:[#allocation68_spill] sm:$0xff] }
 0x464   : > { %v10373_v3 = vpop.f32.mrf.mxu1  ;;  %10467 = vmatmul.mubr.msk.f32.gmra.mxu0 %vm2274_vm1, %v4792_v16  ;;  %v4598_v27 = vmul.f32 %v15848_v8, %v15847_v40 }
 0x465   : > { %v4793_v19 = vmax.f32 %v4729_v7, 0.0  ;;  %v4660_v29 = vadd.f32 %v4596_v55, %v4532_v23  ;;  %v4535_v14 = vmul.f32 %v15846_v41, %v10373_v3  ;;  %v4732_v45 = vadd.f32 %v13357_v17, %v4661_v6  ;;  %v15850_v23 = vld [vmem:[#allocation65_spill] sm:$0xff]  ;;  %v15851_v55 = vld [vmem:[#allocation150_spill] sm:$0xff]  ;;  %v15852_v6 = vld [vmem:[#allocation63_spill] sm:$0xff] }
 0x466   : > { %v4447_v30 = vpop.f32.mrf.mxu1  ;;  %v4601_v7 = vmul.f32 %v15851_v55, %v15850_v23 }
 0x467   : > { %v4731_v20 = vadd.f32 %v13357_v17, %v4660_v29  ;;  %v4663_v44 = vadd.f32 %v4599_v15, %v4535_v14  ;;  %v4534_v12 = vmul.f32 %v15849_v33, %v4447_v30  ;;  %10469 = vmatprep.mubr.msk.f32.mxu0 %vm2274_vm1, %v4793_v19  ;;  %v4796_v10 = vmax.f32 %v4732_v45, 0.0  ;;  %v15853_v29 = vld [vmem:[#allocation66_spill] sm:$0xff]  ;;  %v15854_v15 = vld [vmem:[#allocation151_spill] sm:$0xff]  ;;  %v15855_v33 = vld [vmem:[#allocation64_spill] sm:$0xff] }
 0x468   : > { %v10376_v16 = vpop.f32.mrf.mxu1  ;;  %10470 = vmatmul.mubr.msk.f32.gmra.mxu0 %vm2274_vm1, %v4794_v61  ;;  %v4600_v14 = vmul.f32 %v15854_v15, %v15853_v29 }
 0x469   : > { %v4795_v62 = vmax.f32 %v4731_v20, 0.0  ;;  %v4662_v3 = vadd.f32 %v4598_v27, %v4534_v12  ;;  %v4537_v37 = vmul.f32 %v15852_v6, %v10376_v16  ;;  %v4734_v8 = vadd.f32 %v13357_v17, %v4663_v44  ;;  %v15856_v12 = vld [vmem:[#allocation61_spill] sm:$0xff]  ;;  %v15857_v27 = vld [vmem:[#allocation152_spill] sm:$0xff]  ;;  %v15858_v44 = vld [vmem:[#allocation59_spill] sm:$0xff] }
 0x46a   : > { %v4457_v40 = vpop.f32.mrf.mxu1  ;;  %v4603_v20 = vmul.f32 %v15857_v27, %v15856_v12  ;;  %v15869_v12 = vld [vmem:[#allocation9_spill] sm:$0xff] }
 0x46b   : > { %v4733_v30 = vadd.f32 %v13357_v17, %v4662_v3  ;;  %v4665_v19 = vadd.f32 %v4601_v7, %v4537_v37  ;;  %v4536_v41 = vmul.f32 %v15855_v33, %v4457_v40  ;;  %10472 = vmatprep.mubr.msk.f32.mxu0 %vm2274_vm1, %v4795_v62  ;;  %v4798_v23 = vmax.f32 %v4734_v8, 0.0  ;;  %v15859_v3 = vld [vmem:[#allocation62_spill] sm:$0xff]  ;;  %v15860_v7 = vld [vmem:[#allocation153_spill] sm:$0xff]  ;;  %v15861_v33 = vld [vmem:[#allocation60_spill] sm:$0xff] }
 0x46c   : > { %v10379_v61 = vpop.f32.mrf.mxu1  ;;  %10473 = vmatmul.mubr.msk.f32.gmra.mxu0 %vm2274_vm1, %v4796_v10  ;;  %v4602_v37 = vmul.f32 %v15860_v7, %v15859_v3 }
 0x46d   : > { %v4797_v45 = vmax.f32 %v4733_v30, 0.0  ;;  %v4664_v16 = vadd.f32 %v4600_v14, %v4536_v41  ;;  %v4539_v55 = vmul.f32 %v15858_v44, %v10379_v61  ;;  %v4736_v15 = vadd.f32 %v13357_v17, %v4665_v19 }
 0x46e   : > { %v4467_v29 = vpop.f32.mrf.mxu1 }
 0x46f   : > { %v4735_v40 = vadd.f32 %v13357_v17, %v4664_v16  ;;  %v4667_v62 = vadd.f32 %v4603_v20, %v4539_v55  ;;  %v4538_v6 = vmul.f32 %v15861_v33, %v4467_v29  ;;  %10475 = vmatprep.mubr.msk.f32.mxu0 %vm2274_vm1, %v4797_v45  ;;  %v4800_v14 = vmax.f32 %v4736_v15, 0.0 }
 0x470   : > { %10476 = vmatmul.mubr.msk.f32.gmra.mxu0 %vm2274_vm1, %v4798_v23 }
 0x471   : > { %v4799_v10 = vmax.f32 %v4735_v40, 0.0  ;;  %v4666_v41 = vadd.f32 %v4602_v37, %v4538_v6  ;;  %v4738_v8 = vadd.f32 %v13357_v17, %v4667_v62  ;;  %v15864_v62 = vld [vmem:[#allocation5_spill] sm:$0xff] }
 0x473   : > { %v4737_v30 = vadd.f32 %v13357_v17, %v4666_v41  ;;  %10478 = vmatprep.mubr.msk.f32.mxu0 %vm2274_vm1, %v4799_v10  ;;  %v4802_v61 = vmax.f32 %v4738_v8, 0.0 }
 0x474   : > { %10479 = vmatmul.mubr.msk.f32.gmra.mxu0 %vm2274_vm1, %v4800_v14  ;;  %v15865_v14 = vld [vmem:[#allocation6_spill] sm:$0xff] }
 0x475   : > { %v4801_v19 = vmax.f32 %v4737_v30, 0.0 }
 0x477   : > { %10481 = vmatprep.mubr.msk.f32.mxu0 %vm2274_vm1, %v4801_v19  ;;  %v15866_v19 = vld [vmem:[#allocation7_spill] sm:$0xff] }
 0x478   : > { %10482 = vmatmul.mubr.msk.f32.gmra.mxu0 %vm2274_vm1, %v4802_v61 }
 0x4bc   : > { %v13674_v29 = vpop.f32.mrf.mxu0 }
 0x4be   : > { %v13676_v23 = vpop.f32.mrf.mxu0 }
 0x4c0   : > { %v13678_v6 = vpop.f32.mrf.mxu0 }
 0x4c1   : > { %v5387_v8 = vmul.f32 %v15865_v14, %v13678_v6 }
 0x4c2   : > { %v13680_v27 = vpop.f32.mrf.mxu0 }
 0x4c3   : > { %v5386_v61 = vmul.f32 %v15866_v19, %v13680_v27 }
 0x4c4   : > { %v13682_v20 = vpop.f32.mrf.mxu0 }
 0x4c5   : > { %v5389_v37 = vmul.f32 %v15722_v39, %v13682_v20 }
 0x4c6   : > { %v13684_v17 = vpop.f32.mrf.mxu0 }
 0x4c7   : > { %v5388_v10 = vmul.f32 %v15864_v62, %v13684_v17 }
 0x4c8   : > { %v13686_v45 = vpop.f32.mrf.mxu0 }
 0x4c9   : > { %15862 = vst [vmem:[#allocation58_spill] sm:$0xff] %v13686_v45  ;;  %v5391_v16 = vmul.f32 %v15728_v51, %v13686_v45  ;;  %v11363_v45 = vld [vmem:[%s11525_s14 + $0x8] sm:$0xff] }
 0x4ca   : > { %v13690_v55 = vpop.f32.mrf.mxu0 }
 0x4cb   : > { %15863 = vst [vmem:[#allocation3_spill] sm:$0xff] %v13690_v55  ;;  %v5390_v15 = vmul.f32 %v15731_v56, %v13690_v55  ;;  %10484 = vmatprep.subr.mxu1 %v5391_v16  ;;  %v5384_v56 = vmul.f32 %v15869_v12, %v13676_v23 }
 0x4cc   : > { %v13694_v7 = vpop.f32.mrf.mxu0  ;;  %10485 = vmatpush3.msra.mxu1 %v5391_v16 }
 0x4cd   : > { %10486 = vmatprep.subr.mxu1 %v5390_v15 }
 0x4ce   : > { %v13698_v40 = vpop.f32.mrf.mxu0  ;;  %10487 = vmatpush3.msra.mxu1 %v5390_v15  ;;  %v15867_v15 = vld [vmem:[#allocation8_spill] sm:$0xff] }
 0x4cf   : > { %10488 = vmatprep.subr.mxu1 %v5389_v37  ;;  %v5385_v3 = vmul.f32 %v15867_v15, %v13674_v29 }
 0x4d0   : > { %v13702_v41 = vpop.f32.mrf.mxu0  ;;  %10489 = vmatpush3.msra.mxu1 %v5389_v37 }
 0x4d1   : > { %10490 = vmatprep.subr.mxu1 %v5388_v10 }
 0x4d2   : > { %v13706_v30 = vpop.f32.mrf.mxu0  ;;  %10491 = vmatpush3.msra.mxu1 %v5388_v10  ;;  %v6616_v10 = vld [vmem:[%s15038_s8 + $0x8] sm:$0xff] }
 0x4d3   : > { %10492 = vmatprep.subr.mxu1 %v5387_v8  ;;  %10708 = vmatprep.subr.mxu0 %v6616_v10 }
 0x4d4   : > { %v13710_v16 = vpop.f32.mrf.mxu0  ;;  %10493 = vmatpush3.msra.mxu1 %v5387_v8  ;;  %10709 = vmatpush3.msra.mxu0 %v6616_v10 }
 0x4d5   : > { %10494 = vmatprep.subr.mxu1 %v5386_v61  ;;  %v5397_v10 = vmul.f32 %v15738_v52, %v13710_v16 }
 0x4d6   : > { %v13714_v37 = vpop.f32.mrf.mxu0  ;;  %10495 = vmatpush3.msra.mxu1 %v5386_v61 }
 0x4d7   : > { %15868 = vst [vmem:[#allocation57_spill] sm:$0xff] %v13714_v37  ;;  %10496 = vmatprep.subr.mxu1 %v5385_v3 }
 0x4d8   : > { %v13721_v55 = vpop.f32.mrf.mxu0  ;;  %10497 = vmatpush3.msra.mxu1 %v5385_v3  ;;  %v11364_v3 = vld [vmem:[%s11525_s14 + $0x10] sm:$0xff] }
 0x4d9   : > { %15870 = vst [vmem:[#allocation116_spill] sm:$0xff] %v13721_v55  ;;  %v5399_v8 = vmul.f32 %v15744_v22, %v13721_v55  ;;  %10498 = vmatprep.subr.mxu1 %v5384_v56  ;;  %v5394_v22 = vmul.f32 %v11831_v43, %v13706_v30  ;;  %v5393_v55 = vmul.f32 %v11843_v4, %v13694_v7 }
 0x4da   : > { %v13725_v61 = vpop.f32.mrf.mxu0  ;;  %10499 = vmatpush3.msra.mxu1 %v5384_v56 }
 0x4db   : > { %15871 = vst [vmem:[#allocation117_spill] sm:$0xff] %v13725_v61  ;;  %v5398_v51 = vmul.f32 %v15747_v46, %v13725_v61  ;;  %10501 = vmatmul.mubr.msk.f32.vlgmr.msra.gmra.mxu1 %vm597_vm0, %v11363_v45  ;;  %10512 = vmatprep.subr.mxu1 %v5399_v8  ;;  %v5396_v46 = vmul.f32 %v15741_v49, %v13714_v37  ;;  %v11365_v45 = vld [vmem:[%s11525_s14 + $0x18] sm:$0xff] }
 0x4dc   : > { %v13731_v62 = vpop.f32.mrf.mxu0  ;;  %10513 = vmatpush3.msra.mxu1 %v5399_v8  ;;  %10503 = vmatprep.mubr.msk.f32.mxu1 %vm597_vm0, %v11364_v3  ;;  %v11366_v3 = vld [vmem:[%s11525_s14 + $0x20] sm:$0xff]  ;;  %v5395_v61 = vmul.f32 %v11829_v35, %v13702_v41  ;;  %v5392_v49 = vmul.f32 %v11845_v13, %v13698_v40 }
 0x4dd   : > { %10514 = vmatprep.subr.mxu1 %v5398_v51 }
 0x4de   : > { %v13737_v56 = vpop.f32.mrf.mxu0  ;;  %10515 = vmatpush3.msra.mxu1 %v5398_v51 }
 0x4df   : > { %10504 = vmatmul.mubr.msk.f32.gmra.mxu1 %vm597_vm0, %v11365_v45  ;;  %10516 = vmatprep.subr.mxu1 %v5397_v10  ;;  %v11367_v45 = vld [vmem:[%s11525_s14 + $0x28] sm:$0xff] }
 0x4e0   : > { %v13743_v8 = vpop.f32.mrf.mxu0  ;;  %10517 = vmatpush3.msra.mxu1 %v5397_v10  ;;  %10506 = vmatprep.mubr.msk.f32.mxu1 %vm597_vm0, %v11366_v3  ;;  %v11368_v3 = vld [vmem:[%s11525_s14 + $0x30] sm:$0xff] }
 0x4e1   : > { %10518 = vmatprep.subr.mxu1 %v5396_v46 }
 0x4e2   : > { %v13749_v51 = vpop.f32.mrf.mxu0  ;;  %10519 = vmatpush3.msra.mxu1 %v5396_v46 }
 0x4e3   : > { %10507 = vmatmul.mubr.msk.f32.gmra.mxu1 %vm597_vm0, %v11367_v45  ;;  %10520 = vmatprep.subr.mxu1 %v5395_v61  ;;  %v11369_v45 = vld [vmem:[%s11525_s14 + $0x38] sm:$0xff] }
 0x4e4   : > { %v13755_v10 = vpop.f32.mrf.mxu0  ;;  %10521 = vmatpush3.msra.mxu1 %v5395_v61  ;;  %10509 = vmatprep.mubr.msk.f32.mxu1 %vm597_vm0, %v11368_v3  ;;  %v11370_v3 = vld [vmem:[%s11525_s14 + $0x40] sm:$0xff] }
 0x4e5   : > { %15872 = vst [vmem:[#allocation118_spill] sm:$0xff] %v13755_v10  ;;  %10522 = vmatprep.subr.mxu1 %v5394_v22 }
 0x4e6   : > { %v13761_v46 = vpop.f32.mrf.mxu0  ;;  %10523 = vmatpush3.msra.mxu1 %v5394_v22 }
 0x4e7   : > { %15873 = vst [vmem:[#allocation119_spill] sm:$0xff] %v13761_v46  ;;  %10510 = vmatmul.mubr.msk.f32.gmra.mxu1 %vm597_vm0, %v11369_v45  ;;  %10524 = vmatprep.subr.mxu1 %v5393_v55  ;;  %v11371_v45 = vld [vmem:[%s11525_s14 + $0x48] sm:$0xff] }
 0x4e8   : > { %v13767_v61 = vpop.f32.mrf.mxu0  ;;  %10525 = vmatpush3.msra.mxu1 %v5393_v55  ;;  %10528 = vmatprep.mubr.msk.f32.mxu1 %vm597_vm0, %v11370_v3  ;;  %v11372_v3 = vld [vmem:[%s11525_s14 + $0x50] sm:$0xff] }
 0x4e9   : > { %15874 = vst [vmem:[#allocation120_spill] sm:$0xff] %v13767_v61  ;;  %v5407_v37 = vmul.f32 %v15760_v58, %v13767_v61  ;;  %10526 = vmatprep.subr.mxu1 %v5392_v49  ;;  %v5405_v58 = vmul.f32 %v15754_v53, %v13755_v10  ;;  %v5402_v61 = vmul.f32 %v11886_v2, %v13749_v51 }
 0x4ea   : > { %v13773_v22 = vpop.f32.mrf.mxu0  ;;  %10527 = vmatpush3.msra.mxu1 %v5392_v49 }
 0x4eb   : > { %15875 = vst [vmem:[#allocation121_spill] sm:$0xff] %v13773_v22  ;;  %v5406_v52 = vmul.f32 %v15763_v42, %v13773_v22  ;;  %10529 = vmatmul.mubr.msk.f32.vlgmr.msra.gmra.mxu1 %vm597_vm0, %v11371_v45  ;;  %10540 = vmatprep.subr.mxu1 %v5407_v37  ;;  %v5404_v42 = vmul.f32 %v15757_v18, %v13761_v46  ;;  %v11373_v45 = vld [vmem:[%s11525_s14 + $0x58] sm:$0xff] }
 0x4ec   : > { %v13779_v55 = vpop.f32.mrf.mxu0  ;;  %10541 = vmatpush3.msra.mxu1 %v5407_v37  ;;  %10531 = vmatprep.mubr.msk.f32.mxu1 %vm597_vm0, %v11372_v3  ;;  %v11374_v3 = vld [vmem:[%s11525_s14 + $0x60] sm:$0xff]  ;;  %v5403_v22 = vmul.f32 %v11882_v26, %v13743_v8  ;;  %v5401_v18 = vmul.f32 %v11898_v0, %v13731_v62  ;;  %v5400_v46 = vmul.f32 %v11902_v31, %v13737_v56 }
 0x4ed   : > { %10542 = vmatprep.subr.mxu1 %v5406_v52 }
 0x4ee   : > { %v13785_v49 = vpop.f32.mrf.mxu0  ;;  %10543 = vmatpush3.msra.mxu1 %v5406_v52 }
 0x4ef   : > { %10532 = vmatmul.mubr.msk.f32.gmra.mxu1 %vm597_vm0, %v11373_v45  ;;  %10544 = vmatprep.subr.mxu1 %v5405_v58  ;;  %v11375_v45 = vld [vmem:[%s11525_s14 + $0x68] sm:$0xff] }
 0x4f0   : > { %v13791_v37 = vpop.f32.mrf.mxu0  ;;  %10545 = vmatpush3.msra.mxu1 %v5405_v58  ;;  %10534 = vmatprep.mubr.msk.f32.mxu1 %vm597_vm0, %v11374_v3  ;;  %v11376_v3 = vld [vmem:[%s11525_s14 + $0x70] sm:$0xff] }
 0x4f1   : > { %10546 = vmatprep.subr.mxu1 %v5404_v42 }
 0x4f2   : > { %v13797_v52 = vpop.f32.mrf.mxu0  ;;  %10547 = vmatpush3.msra.mxu1 %v5404_v42 }
 0x4f3   : > { %10535 = vmatmul.mubr.msk.f32.gmra.mxu1 %vm597_vm0, %v11375_v45  ;;  %10548 = vmatprep.subr.mxu1 %v5403_v22  ;;  %v11377_v45 = vld [vmem:[%s11525_s14 + $0x78] sm:$0xff] }
 0x4f4   : > { %v13803_v58 = vpop.f32.mrf.mxu0  ;;  %10549 = vmatpush3.msra.mxu1 %v5403_v22  ;;  %10537 = vmatprep.mubr.msk.f32.mxu1 %vm597_vm0, %v11376_v3  ;;  %v11378_v3 = vld [vmem:[%s11525_s14 + $0x80] sm:$0xff] }
 0x4f5   : > { %15876 = vst [vmem:[#allocation122_spill] sm:$0xff] %v13803_v58  ;;  %10550 = vmatprep.subr.mxu1 %v5402_v61 }
 0x4f6   : > { %v13809_v42 = vpop.f32.mrf.mxu0  ;;  %10551 = vmatpush3.msra.mxu1 %v5402_v61 }
 0x4f7   : > { %15877 = vst [vmem:[#allocation123_spill] sm:$0xff] %v13809_v42  ;;  %10538 = vmatmul.mubr.msk.f32.gmra.mxu1 %vm597_vm0, %v11377_v45  ;;  %10552 = vmatprep.subr.mxu1 %v5401_v18  ;;  %v11379_v45 = vld [vmem:[%s11525_s14 + $0x88] sm:$0xff] }
 0x4f8   : > { %v13815_v22 = vpop.f32.mrf.mxu0  ;;  %10553 = vmatpush3.msra.mxu1 %v5401_v18  ;;  %10556 = vmatprep.mubr.msk.f32.mxu1 %vm597_vm0, %v11378_v3  ;;  %v11380_v3 = vld [vmem:[%s11525_s14 + $0x90] sm:$0xff] }
 0x4f9   : > { %15878 = vst [vmem:[#allocation124_spill] sm:$0xff] %v13815_v22  ;;  %v5415_v53 = vmul.f32 %v15776_v63, %v13815_v22  ;;  %10554 = vmatprep.subr.mxu1 %v5400_v46  ;;  %v5413_v63 = vmul.f32 %v15770_v11, %v13803_v58  ;;  %v5410_v22 = vmul.f32 %v11944_v5, %v13797_v52 }
 0x4fa   : > { %v13821_v61 = vpop.f32.mrf.mxu0  ;;  %10555 = vmatpush3.msra.mxu1 %v5400_v46 }
 0x4fb   : > { %15879 = vst [vmem:[#allocation125_spill] sm:$0xff] %v13821_v61  ;;  %v5414_v10 = vmul.f32 %v15779_v54, %v13821_v61  ;;  %10557 = vmatmul.mubr.msk.f32.vlgmr.msra.gmra.mxu1 %vm597_vm0, %v11379_v45  ;;  %10568 = vmatprep.subr.mxu1 %v5415_v53  ;;  %v5412_v54 = vmul.f32 %v15773_v24, %v13809_v42  ;;  %v11381_v45 = vld [vmem:[%s11525_s14 + $0x98] sm:$0xff] }
 0x4fc   : > { %v13827_v18 = vpop.f32.mrf.mxu0  ;;  %10569 = vmatpush3.msra.mxu1 %v5415_v53  ;;  %10559 = vmatprep.mubr.msk.f32.mxu1 %vm597_vm0, %v11380_v3  ;;  %v11382_v3 = vld [vmem:[%s11525_s14 + $0xa0] sm:$0xff]  ;;  %v5411_v61 = vmul.f32 %v11940_v25, %v13791_v37  ;;  %v5409_v24 = vmul.f32 %v11958_v1, %v13779_v55  ;;  %v5408_v42 = vmul.f32 %v11962_v50, %v13785_v49 }
 0x4fd   : > { %10570 = vmatprep.subr.mxu1 %v5414_v10 }
 0x4fe   : > { %v13833_v46 = vpop.f32.mrf.mxu0  ;;  %10571 = vmatpush3.msra.mxu1 %v5414_v10 }
 0x4ff   : > { %10560 = vmatmul.mubr.msk.f32.gmra.mxu1 %vm597_vm0, %v11381_v45  ;;  %10572 = vmatprep.subr.mxu1 %v5413_v63  ;;  %v11383_v45 = vld [vmem:[%s11525_s14 + $0xa8] sm:$0xff] }
 0x500   : > { %v13839_v53 = vpop.f32.mrf.mxu0  ;;  %10573 = vmatpush3.msra.mxu1 %v5413_v63  ;;  %10562 = vmatprep.mubr.msk.f32.mxu1 %vm597_vm0, %v11382_v3  ;;  %v11384_v3 = vld [vmem:[%s11525_s14 + $0xb0] sm:$0xff] }
 0x501   : > { %10574 = vmatprep.subr.mxu1 %v5412_v54 }
 0x502   : > { %v13845_v10 = vpop.f32.mrf.mxu0  ;;  %10575 = vmatpush3.msra.mxu1 %v5412_v54 }
 0x503   : > { %10563 = vmatmul.mubr.msk.f32.gmra.mxu1 %vm597_vm0, %v11383_v45  ;;  %10576 = vmatprep.subr.mxu1 %v5411_v61  ;;  %v11385_v45 = vld [vmem:[%s11525_s14 + $0xb8] sm:$0xff] }
 0x504   : > { %v13851_v63 = vpop.f32.mrf.mxu0  ;;  %10577 = vmatpush3.msra.mxu1 %v5411_v61  ;;  %10565 = vmatprep.mubr.msk.f32.mxu1 %vm597_vm0, %v11384_v3  ;;  %v11386_v3 = vld [vmem:[%s11525_s14 + $0xc0] sm:$0xff] }
 0x505   : > { %15880 = vst [vmem:[#allocation126_spill] sm:$0xff] %v13851_v63  ;;  %10578 = vmatprep.subr.mxu1 %v5410_v22 }
 0x506   : > { %v13857_v54 = vpop.f32.mrf.mxu0  ;;  %10579 = vmatpush3.msra.mxu1 %v5410_v22 }
 0x507   : > { %15881 = vst [vmem:[#allocation127_spill] sm:$0xff] %v13857_v54  ;;  %10566 = vmatmul.mubr.msk.f32.gmra.mxu1 %vm597_vm0, %v11385_v45  ;;  %10580 = vmatprep.subr.mxu1 %v5409_v24  ;;  %v11387_v45 = vld [vmem:[%s11525_s14 + $0xc8] sm:$0xff] }
 0x508   : > { %v13863_v61 = vpop.f32.mrf.mxu0  ;;  %10581 = vmatpush3.msra.mxu1 %v5409_v24  ;;  %10584 = vmatprep.mubr.msk.f32.mxu1 %vm597_vm0, %v11386_v3  ;;  %v11388_v3 = vld [vmem:[%s11525_s14 + $0xd0] sm:$0xff] }
 0x509   : > { %15882 = vst [vmem:[#allocation128_spill] sm:$0xff] %v13863_v61  ;;  %v5423_v11 = vmul.f32 %v15792_v21, %v13863_v61  ;;  %10582 = vmatprep.subr.mxu1 %v5408_v42  ;;  %v5421_v21 = vmul.f32 %v15786_v57, %v13851_v63  ;;  %v5418_v61 = vmul.f32 %v12010_v36, %v13845_v10 }
 0x50a   : > { %v13869_v22 = vpop.f32.mrf.mxu0  ;;  %10583 = vmatpush3.msra.mxu1 %v5408_v42 }
 0x50b   : > { %15883 = vst [vmem:[#allocation129_spill] sm:$0xff] %v13869_v22  ;;  %v5422_v58 = vmul.f32 %v15795_v34, %v13869_v22  ;;  %10585 = vmatmul.mubr.msk.f32.vlgmr.msra.gmra.mxu1 %vm597_vm0, %v11387_v45  ;;  %10596 = vmatprep.subr.mxu1 %v5423_v11  ;;  %v5420_v34 = vmul.f32 %v15789_v47, %v13857_v54  ;;  %v11389_v45 = vld [vmem:[%s11525_s14 + $0xd8] sm:$0xff] }
 0x50c   : > { %v13875_v24 = vpop.f32.mrf.mxu0  ;;  %10597 = vmatpush3.msra.mxu1 %v5423_v11  ;;  %10587 = vmatprep.mubr.msk.f32.mxu1 %vm597_vm0, %v11388_v3  ;;  %v11390_v3 = vld [vmem:[%s11525_s14 + $0xe0] sm:$0xff]  ;;  %v5419_v22 = vmul.f32 %v12006_v9, %v13839_v53  ;;  %v5417_v47 = vmul.f32 %v12024_v60, %v13827_v18  ;;  %v5416_v54 = vmul.f32 %v12028_v59, %v13833_v46 }
 0x50d   : > { %10598 = vmatprep.subr.mxu1 %v5422_v58 }
 0x50e   : > { %v13881_v42 = vpop.f32.mrf.mxu0  ;;  %10599 = vmatpush3.msra.mxu1 %v5422_v58 }
 0x50f   : > { %10588 = vmatmul.mubr.msk.f32.gmra.mxu1 %vm597_vm0, %v11389_v45  ;;  %10600 = vmatprep.subr.mxu1 %v5421_v21  ;;  %v11391_v45 = vld [vmem:[%s11525_s14 + $0xe8] sm:$0xff] }
 0x510   : > { %v13887_v11 = vpop.f32.mrf.mxu0  ;;  %10601 = vmatpush3.msra.mxu1 %v5421_v21  ;;  %10590 = vmatprep.mubr.msk.f32.mxu1 %vm597_vm0, %v11390_v3  ;;  %v11392_v3 = vld [vmem:[%s11525_s14 + $0xf0] sm:$0xff] }
 0x511   : > { %15884 = vst [vmem:[#allocation130_spill] sm:$0xff] %v13887_v11  ;;  %10602 = vmatprep.subr.mxu1 %v5420_v34 }
 0x512   : > { %v13893_v58 = vpop.f32.mrf.mxu0  ;;  %10603 = vmatpush3.msra.mxu1 %v5420_v34 }
 0x513   : > { %15885 = vst [vmem:[#allocation131_spill] sm:$0xff] %v13893_v58  ;;  %10591 = vmatmul.mubr.msk.f32.gmra.mxu1 %vm597_vm0, %v11391_v45  ;;  %10604 = vmatprep.subr.mxu1 %v5419_v22  ;;  %v11393_v45 = vld [vmem:[%s11525_s14 + $0xf8] sm:$0xff] }
 0x514   : > { %v13899_v21 = vpop.f32.mrf.mxu0  ;;  %10605 = vmatpush3.msra.mxu1 %v5419_v22  ;;  %10593 = vmatprep.mubr.msk.f32.mxu1 %vm597_vm0, %v11392_v3  ;;  %v11394_v3 = vld [vmem:[%s11525_s14 + $0x100] sm:$0xff] }
 0x515   : > { %15886 = vst [vmem:[#allocation132_spill] sm:$0xff] %v13899_v21  ;;  %10606 = vmatprep.subr.mxu1 %v5418_v61 }
 0x516   : > { %v13905_v34 = vpop.f32.mrf.mxu0  ;;  %10607 = vmatpush3.msra.mxu1 %v5418_v61 }
 0x517   : > { %15887 = vst [vmem:[#allocation133_spill] sm:$0xff] %v13905_v34  ;;  %10594 = vmatmul.mubr.msk.f32.gmra.mxu1 %vm597_vm0, %v11393_v45  ;;  %10608 = vmatprep.subr.mxu1 %v5417_v47  ;;  %v11395_v45 = vld [vmem:[%s11525_s14 + $0x108] sm:$0xff] }
 0x518   : > { %v13911_v22 = vpop.f32.mrf.mxu0  ;;  %10609 = vmatpush3.msra.mxu1 %v5417_v47  ;;  %10612 = vmatprep.mubr.msk.f32.mxu1 %vm597_vm0, %v11394_v3  ;;  %v11396_v3 = vld [vmem:[%s11525_s14 + $0x110] sm:$0xff] }
 0x519   : > { %15888 = vst [vmem:[#allocation134_spill] sm:$0xff] %v13911_v22  ;;  %v5431_v57 = vmul.f32 %v15811_v28, %v13911_v22  ;;  %10610 = vmatprep.subr.mxu1 %v5416_v54  ;;  %v5429_v28 = vmul.f32 %v15805_v38, %v13899_v21 }
 0x51a   : > { %v13917_v61 = vpop.f32.mrf.mxu0  ;;  %10611 = vmatpush3.msra.mxu1 %v5416_v54 }
 0x51b   : > { %15889 = vst [vmem:[#allocation135_spill] sm:$0xff] %v13917_v61  ;;  %v5430_v63 = vmul.f32 %v15814_v48, %v13917_v61  ;;  %10613 = vmatmul.mubr.msk.f32.vlgmr.msra.gmra.mxu1 %vm597_vm0, %v11395_v45  ;;  %10624 = vmatprep.subr.mxu1 %v5431_v57  ;;  %v5428_v48 = vmul.f32 %v15808_v32, %v13905_v34  ;;  %v11397_v45 = vld [vmem:[%s11525_s14 + $0x118] sm:$0xff] }
 0x51c   : > { %v13923_v47 = vpop.f32.mrf.mxu0  ;;  %10625 = vmatpush3.msra.mxu1 %v5431_v57  ;;  %10615 = vmatprep.mubr.msk.f32.mxu1 %vm597_vm0, %v11396_v3  ;;  %v11398_v3 = vld [vmem:[%s11525_s14 + $0x120] sm:$0xff]  ;;  %v15892_v61 = vld [vmem:[#allocation37_spill] sm:$0xff] }
 0x51d   : > { %10626 = vmatprep.subr.mxu1 %v5430_v63  ;;  %v5427_v22 = vmul.f32 %v15892_v61, %v13887_v11  ;;  %v11402_v61 = vld [vmem:[%s11525_s14 + $0x140] sm:$0xff]  ;;  %v15900_v11 = vld [vmem:[#allocation43_spill] sm:$0xff] }
 0x51e   : > { %v13929_v54 = vpop.f32.mrf.mxu0  ;;  %10627 = vmatpush3.msra.mxu1 %v5430_v63  ;;  %v15894_v63 = vld [vmem:[#allocation38_spill] sm:$0xff] }
 0x51f   : > { %15890 = vst [vmem:[#allocation136_spill] sm:$0xff] %v13929_v54  ;;  %10616 = vmatmul.mubr.msk.f32.gmra.mxu1 %vm597_vm0, %v11397_v45  ;;  %10628 = vmatprep.subr.mxu1 %v5429_v28  ;;  %v5426_v32 = vmul.f32 %v15894_v63, %v13893_v58  ;;  %v11399_v45 = vld [vmem:[%s11525_s14 + $0x128] sm:$0xff]  ;;  %v11401_v58 = vld [vmem:[%s11525_s14 + $0x138] sm:$0xff] }
 0x520   : > { %v13935_v57 = vpop.f32.mrf.mxu0  ;;  %10629 = vmatpush3.msra.mxu1 %v5429_v28  ;;  %10618 = vmatprep.mubr.msk.f32.mxu1 %vm597_vm0, %v11398_v3  ;;  %v11400_v28 = vld [vmem:[%s11525_s14 + $0x130] sm:$0xff]  ;;  %v6615_v3 = vld [vmem:[%s15038_s8] sm:$0xff] }
 0x521   : > { %15891 = vst [vmem:[#allocation137_spill] sm:$0xff] %v13935_v57  ;;  %10630 = vmatprep.subr.mxu1 %v5428_v48  ;;  %10710 = vmatprep.subr.mxu0 %v6615_v3 }
 0x522   : > { %v13941_v38 = vpop.f32.mrf.mxu0  ;;  %10631 = vmatpush3.msra.mxu1 %v5428_v48  ;;  %v15896_v48 = vld [vmem:[#allocation39_spill] sm:$0xff]  ;;  %10711 = vmatpush3.msra.mxu0 %v6615_v3  ;;  %v15902_v3 = vld [vmem:[#allocation44_spill] sm:$0xff] }
 0x523   : > { %15893 = vst [vmem:[#allocation138_spill] sm:$0xff] %v13941_v38  ;;  %10619 = vmatmul.mubr.msk.f32.gmra.mxu1 %vm597_vm0, %v11399_v45  ;;  %10632 = vmatprep.subr.mxu1 %v5427_v22  ;;  %v5425_v21 = vmul.f32 %v15896_v48, %v13875_v24 }
 0x524   : > { %v13947_v34 = vpop.f32.mrf.mxu0  ;;  %10633 = vmatpush3.msra.mxu1 %v5427_v22  ;;  %10621 = vmatprep.mubr.msk.f32.mxu1 %vm597_vm0, %v11400_v28  ;;  %v15898_v22 = vld [vmem:[#allocation40_spill] sm:$0xff] }
 0x525   : > { %15895 = vst [vmem:[#allocation139_spill] sm:$0xff] %v13947_v34  ;;  %10634 = vmatprep.subr.mxu1 %v5426_v32  ;;  %v5424_v45 = vmul.f32 %v15898_v22, %v13881_v42 }
 0x526   : > { %v13956_v63 = vpop.f32.mrf.mxu0  ;;  %10635 = vmatpush3.msra.mxu1 %v5426_v32 }
 0x527   : > { %15897 = vst [vmem:[#allocation140_spill] sm:$0xff] %v13956_v63  ;;  %10622 = vmatmul.mubr.msk.f32.gmra.mxu1 %vm597_vm0, %v11401_v58  ;;  %10636 = vmatprep.subr.mxu1 %v5425_v21  ;;  %v11403_v58 = vld [vmem:[%s11525_s14 + $0x148] sm:$0xff] }
 0x528   : > { %v13962_v28 = vpop.f32.mrf.mxu0  ;;  %10637 = vmatpush3.msra.mxu1 %v5425_v21  ;;  %10640 = vmatprep.mubr.msk.f32.mxu1 %vm597_vm0, %v11402_v61  ;;  %v11404_v61 = vld [vmem:[%s11525_s14 + $0x150] sm:$0xff] }
 0x529   : > { %15899 = vst [vmem:[#allocation141_spill] sm:$0xff] %v13962_v28  ;;  %v5439_v48 = vmul.f32 %v15900_v11, %v13962_v28  ;;  %10638 = vmatprep.subr.mxu1 %v5424_v45  ;;  %v15903_v11 = vld [vmem:[#allocation47_spill] sm:$0xff] }
 0x52a   : > { %v13968_v32 = vpop.f32.mrf.mxu0  ;;  %10639 = vmatpush3.msra.mxu1 %v5424_v45  ;;  %v5437_v28 = vmul.f32 %v15903_v11, %v13947_v34  ;;  %v15907_v11 = vld [vmem:[#allocation51_spill] sm:$0xff] }
 0x52b   : > { %15901 = vst [vmem:[#allocation142_spill] sm:$0xff] %v13968_v32  ;;  %v5438_v22 = vmul.f32 %v15902_v3, %v13968_v32  ;;  %10641 = vmatmul.mubr.msk.f32.vlgmr.msra.gmra.mxu1 %vm597_vm0, %v11403_v58  ;;  %10652 = vmatprep.subr.mxu1 %v5439_v48  ;;  %v15905_v3 = vld [vmem:[#allocation48_spill] sm:$0xff]  ;;  %v11405_v58 = vld [vmem:[%s11525_s14 + $0x158] sm:$0xff]  ;;  %v5435_v34 = vmul.f32 %v15907_v11, %v13935_v57  ;;  %v15911_v11 = vld [vmem:[#allocation55_spill] sm:$0xff] }
 0x52c   : > { %v13974_v21 = vpop.f32.mrf.mxu0  ;;  %10653 = vmatpush3.msra.mxu1 %v5439_v48  ;;  %10643 = vmatprep.mubr.msk.f32.mxu1 %vm597_vm0, %v11404_v61  ;;  %v5436_v32 = vmul.f32 %v15905_v3, %v13956_v63  ;;  %v11406_v61 = vld [vmem:[%s11525_s14 + $0x160] sm:$0xff]  ;;  %v15909_v3 = vld [vmem:[#allocation52_spill] sm:$0xff]  ;;  %v5433_v57 = vmul.f32 %v15911_v11, %v13923_v47 }
 0x52d   : > { %10654 = vmatprep.subr.mxu1 %v5438_v22  ;;  %v5434_v63 = vmul.f32 %v15909_v3, %v13941_v38  ;;  %v15913_v3 = vld [vmem:[#allocation56_spill] sm:$0xff] }
 0x52e   : > { %v13980_v45 = vpop.f32.mrf.mxu0  ;;  %10655 = vmatpush3.msra.mxu1 %v5438_v22  ;;  %v5432_v38 = vmul.f32 %v15913_v3, %v13929_v54  ;;  %v11413_v54 = vld [vmem:[%s11525_s14 + $0x198] sm:$0xff] }
 0x52f   : > { %15904 = vst [vmem:[#allocation143_spill] sm:$0xff] %v13980_v45  ;;  %10644 = vmatmul.mubr.msk.f32.gmra.mxu1 %vm597_vm0, %v11405_v58  ;;  %10656 = vmatprep.subr.mxu1 %v5437_v28  ;;  %v11407_v58 = vld [vmem:[%s11525_s14 + $0x168] sm:$0xff] }
 0x530   : > { %v13986_v48 = vpop.f32.mrf.mxu0  ;;  %10657 = vmatpush3.msra.mxu1 %v5437_v28  ;;  %10646 = vmatprep.mubr.msk.f32.mxu1 %vm597_vm0, %v11406_v61  ;;  %v11408_v61 = vld [vmem:[%s11525_s14 + $0x170] sm:$0xff] }
 0x531   : > { %15906 = vst [vmem:[#allocation144_spill] sm:$0xff] %v13986_v48  ;;  %10658 = vmatprep.subr.mxu1 %v5436_v32 }
 0x532   : > { %v13992_v22 = vpop.f32.mrf.mxu0  ;;  %10659 = vmatpush3.msra.mxu1 %v5436_v32 }
 0x533   : > { %15908 = vst [vmem:[#allocation145_spill] sm:$0xff] %v13992_v22  ;;  %10647 = vmatmul.mubr.msk.f32.gmra.mxu1 %vm597_vm0, %v11407_v58  ;;  %10660 = vmatprep.subr.mxu1 %v5435_v34  ;;  %v11409_v58 = vld [vmem:[%s11525_s14 + $0x178] sm:$0xff] }
 0x534   : > { %v13998_v28 = vpop.f32.mrf.mxu0  ;;  %10661 = vmatpush3.msra.mxu1 %v5435_v34  ;;  %10649 = vmatprep.mubr.msk.f32.mxu1 %vm597_vm0, %v11408_v61  ;;  %v11410_v61 = vld [vmem:[%s11525_s14 + $0x180] sm:$0xff] }
 0x535   : > { %15910 = vst [vmem:[#allocation146_spill] sm:$0xff] %v13998_v28  ;;  %10662 = vmatprep.subr.mxu1 %v5434_v63 }
 0x536   : > { %v14004_v32 = vpop.f32.mrf.mxu0  ;;  %10663 = vmatpush3.msra.mxu1 %v5434_v63 }
 0x537   : > { %15912 = vst [vmem:[#allocation147_spill] sm:$0xff] %v14004_v32  ;;  %10650 = vmatmul.mubr.msk.f32.gmra.mxu1 %vm597_vm0, %v11409_v58  ;;  %10664 = vmatprep.subr.mxu1 %v5433_v57  ;;  %v11411_v58 = vld [vmem:[%s11525_s14 + $0x188] sm:$0xff] }
 0x538   : > { %v14010_v34 = vpop.f32.mrf.mxu0  ;;  %10665 = vmatpush3.msra.mxu1 %v5433_v57  ;;  %10668 = vmatprep.mubr.msk.f32.mxu1 %vm597_vm0, %v11410_v61  ;;  %v11412_v57 = vld [vmem:[%s11525_s14 + $0x190] sm:$0xff]  ;;  %v15916_v61 = vld [vmem:[#allocation63_spill] sm:$0xff] }
 0x539   : > { %15914 = vst [vmem:[#allocation148_spill] sm:$0xff] %v14010_v34  ;;  %v5447_v11 = vmul.f32 %v15858_v44, %v14010_v34  ;;  %10666 = vmatprep.subr.mxu1 %v5432_v38  ;;  %v5445_v44 = vmul.f32 %v15916_v61, %v13998_v28  ;;  %v11422_v61 = vld [vmem:[%s11525_s14 + $0x1e0] sm:$0xff] }
 0x53a   : > { %v14016_v63 = vpop.f32.mrf.mxu0  ;;  %10667 = vmatpush3.msra.mxu1 %v5432_v38  ;;  %v15917_v38 = vld [vmem:[#allocation64_spill] sm:$0xff] }
 0x53b   : > { %15915 = vst [vmem:[#allocation149_spill] sm:$0xff] %v14016_v63  ;;  %v5446_v3 = vmul.f32 %v15861_v33, %v14016_v63  ;;  %10669 = vmatmul.mubr.msk.f32.vlgmr.msra.gmra.mxu1 %vm597_vm0, %v11411_v58  ;;  %10680 = vmatprep.subr.mxu1 %v5447_v11  ;;  %v5444_v34 = vmul.f32 %v15917_v38, %v14004_v32  ;;  %v11414_v58 = vld [vmem:[%s11525_s14 + $0x1a0] sm:$0xff]  ;;  %v11415_v63 = vld [vmem:[%s11525_s14 + $0x1a8] sm:$0xff]  ;;  %v11417_v32 = vld [vmem:[%s11525_s14 + $0x1b8] sm:$0xff] }
 0x53c   : > { %10681 = vmatpush3.msra.mxu1 %v5447_v11  ;;  %10671 = vmatprep.mubr.msk.f32.mxu1 %vm597_vm0, %v11412_v57  ;;  %v15918_v11 = vld [vmem:[#allocation67_spill] sm:$0xff] }
 0x53d   : > { %10682 = vmatprep.subr.mxu1 %v5446_v3  ;;  %v5443_v57 = vmul.f32 %v15918_v11, %v13986_v48 }
 0x53e   : > { %10683 = vmatpush3.msra.mxu1 %v5446_v3  ;;  %v15919_v3 = vld [vmem:[#allocation68_spill] sm:$0xff] }
 0x53f   : > { %10672 = vmatmul.mubr.msk.f32.gmra.mxu1 %vm597_vm0, %v11413_v54  ;;  %10684 = vmatprep.subr.mxu1 %v5445_v44  ;;  %v5442_v33 = vmul.f32 %v15919_v3, %v13992_v22  ;;  %v15920_v54 = vld [vmem:[#allocation71_spill] sm:$0xff] }
 0x540   : > { %10685 = vmatpush3.msra.mxu1 %v5445_v44  ;;  %10674 = vmatprep.mubr.msk.f32.mxu1 %vm597_vm0, %v11414_v58  ;;  %v11416_v44 = vld [vmem:[%s11525_s14 + $0x1b0] sm:$0xff]  ;;  %v5441_v58 = vmul.f32 %v15920_v54, %v13974_v21 }
 0x541   : > { %10686 = vmatprep.subr.mxu1 %v5444_v34 }
 0x542   : > { %10687 = vmatpush3.msra.mxu1 %v5444_v34  ;;  %v15921_v34 = vld [vmem:[#allocation72_spill] sm:$0xff] }
 0x543   : > { %10675 = vmatmul.mubr.msk.f32.gmra.mxu1 %vm597_vm0, %v11415_v63  ;;  %10688 = vmatprep.subr.mxu1 %v5443_v57  ;;  %v5440_v38 = vmul.f32 %v15921_v34, %v13980_v45  ;;  %v11418_v63 = vld [vmem:[%s11525_s14 + $0x1c0] sm:$0xff] }
 0x544   : > { %10689 = vmatpush3.msra.mxu1 %v5443_v57  ;;  %10677 = vmatprep.mubr.msk.f32.mxu1 %vm597_vm0, %v11416_v44  ;;  %v11419_v57 = vld [vmem:[%s11525_s14 + $0x1c8] sm:$0xff]  ;;  %v11421_v44 = vld [vmem:[%s11525_s14 + $0x1d8] sm:$0xff] }
 0x545   : > { %10690 = vmatprep.subr.mxu1 %v5442_v33 }
 0x546   : > { %10691 = vmatpush3.msra.mxu1 %v5442_v33  ;;  %v11420_v33 = vld [vmem:[%s11525_s14 + $0x1d0] sm:$0xff] }
 0x547   : > { %10678 = vmatmul.mubr.msk.f32.gmra.mxu1 %vm597_vm0, %v11417_v32  ;;  %10692 = vmatprep.subr.mxu1 %v5441_v58  ;;  %v11423_v32 = vld [vmem:[%s11525_s14 + $0x1e8] sm:$0xff] }
 0x548   : > { %10693 = vmatpush3.msra.mxu1 %v5441_v58  ;;  %10696 = vmatprep.mubr.msk.f32.mxu1 %vm597_vm0, %v11418_v63  ;;  %v11424_v58 = vld [vmem:[%s11525_s14 + $0x1f0] sm:$0xff]  ;;  %v11425_v63 = vld [vmem:[%s11525_s14 + $0x1f8] sm:$0xff]  ;;  %s468_s14 = scalar_lea.vmem %s15043_s13, %s8528_s15 }
 0x549   : > { %10694 = vmatprep.subr.mxu1 %v5440_v38 }
 0x54a   : > { %10695 = vmatpush3.msra.mxu1 %v5440_v38 }
 0x54b   : > { %10697 = vmatmul.mubr.msk.f32.vlgmr.msra.gmra.mxu1 %vm597_vm0, %v11419_v57  ;;  %v15922_v57 = vld [vmem:[#allocation74_spill] sm:$0xff] }
 0x54c   : > { %10699 = vmatprep.mubr.msk.f32.mxu1 %vm597_vm0, %v11420_v33  ;;  %v6353_v28 = vmul.f32 %v13674_v29, %v15922_v57  ;;  %v15925_v57 = vld [vmem:[#allocation75_spill] sm:$0xff] }
 0x54f   : > { %10700 = vmatmul.mubr.msk.f32.gmra.mxu1 %vm597_vm0, %v11421_v44  ;;  %v15923_v44 = vld [vmem:[#allocation73_spill] sm:$0xff] }
 0x550   : > { %10702 = vmatprep.mubr.msk.f32.mxu1 %vm597_vm0, %v11422_v61  ;;  %v6352_v22 = vmul.f32 %v13676_v23, %v15923_v44  ;;  %v6354_v23 = vmul.f32 %v13680_v27, %v15925_v57 }
 0x553   : > { %10703 = vmatmul.mubr.msk.f32.gmra.mxu1 %vm597_vm0, %v11423_v32  ;;  %v14070_v32 = vld [vmem:[%s15037_s7] ss:$0 sm:$0xff] }
 0x554   : > { %10705 = vmatprep.mubr.msk.f32.mxu1 %vm597_vm0, %v11424_v58 }
 0x557   : > { %10706 = vmatmul.mubr.msk.f32.gmra.mxu1 %vm597_vm0, %v11425_v63  ;;  %v15924_v63 = vld [vmem:[#allocation76_spill] sm:$0xff] }
 0x558   : > { %v6355_v48 = vmul.f32 %v13678_v6, %v15924_v63  ;;  %v15928_v63 = vld [vmem:[#allocation5_spill] sm:$0xff] }
 0x59b   : > { %v10502_v38 = vpop.f32.mrf.mxu1 }
 0x59c   : > { %v6289_v33 = vmul.f32 %v15867_v15, %v10502_v38 }
 0x59d   : > { %v5514_v3 = vpop.f32.mrf.mxu1 }
 0x59e   : > { %v6417_v61 = vadd.f32 %v6353_v28, %v6289_v33  ;;  %v6288_v58 = vmul.f32 %v15869_v12, %v5514_v3  ;;  %v15926_v12 = vld [vmem:[#allocation78_spill] sm:$0xff] }
 0x59f   : > { %v10505_v11 = vpop.f32.mrf.mxu1  ;;  %v6357_v3 = vmul.f32 %v13682_v20, %v15926_v12  ;;  %v15932_v12 = vld [vmem:[#allocation79_spill] sm:$0xff] }
 0x5a0   : > { %v6416_v34 = vadd.f32 %v6352_v22, %v6288_v58  ;;  %v6291_v29 = vmul.f32 %v15865_v14, %v10505_v11  ;;  %v6488_v15 = vadd.f32 %v14070_v32, %v6417_v61  ;;  %v15927_v58 = vld [vmem:[#allocation77_spill] sm:$0xff] }
 0x5a1   : > { %v5524_v38 = vpop.f32.mrf.mxu1 }
 0x5a2   : > { %v6487_v28 = vadd.f32 %v14070_v32, %v6416_v34  ;;  %v6419_v33 = vadd.f32 %v6355_v48, %v6291_v29  ;;  %v6290_v44 = vmul.f32 %v15866_v19, %v5524_v38  ;;  %v14086_v11 = vmax.f32 %v6488_v15, 0.0 }
 0x5a3   : > { %v10508_v45 = vpop.f32.mrf.mxu1  ;;  %v6356_v48 = vmul.f32 %v13684_v17, %v15927_v58  ;;  %v15934_v58 = vld [vmem:[#allocation4_spill] sm:$0xff] }
 0x5a4   : > { %v14083_v6 = vmax.f32 %v6487_v28, 0.0  ;;  %v6418_v22 = vadd.f32 %v6354_v23, %v6290_v44  ;;  %v6293_v14 = vmul.f32 %v15722_v39, %v10508_v45  ;;  %v6490_v61 = vadd.f32 %v14070_v32, %v6419_v33  ;;  %v15929_v39 = vld [vmem:[#allocation80_spill] sm:$0xff]  ;;  %v15930_v45 = vld [vmem:[#allocation58_spill] sm:$0xff] }
 0x5a5   : > { %v5534_v27 = vpop.f32.mrf.mxu1  ;;  %v6359_v15 = vmul.f32 %v15930_v45, %v15929_v39  ;;  %v15931_v23 = vld [vmem:[#allocation2_spill] sm:$0xff] }
 0x5a6   : > { %v6489_v19 = vadd.f32 %v14070_v32, %v6418_v22  ;;  %v6421_v34 = vadd.f32 %v6357_v3, %v6293_v14  ;;  %v6292_v29 = vmul.f32 %v15928_v63, %v5534_v27  ;;  %10712 = vmatprep.mubr.msk.f32.mxu0 %vm6617_vm2, %v14083_v6  ;;  %v14102_v28 = vmax.f32 %v6490_v61, 0.0  ;;  %v15933_v3 = vld [vmem:[#allocation3_spill] sm:$0xff]  ;;  %v15935_v61 = vld [vmem:[#allocation82_spill] sm:$0xff] }
 0x5a7   : > { %v10511_v20 = vpop.f32.mrf.mxu1  ;;  %10713 = vmatmul.mubr.msk.f32.vlgmr.msra.gmra.mxu0 %vm6617_vm2, %v14086_v11  ;;  %v6358_v22 = vmul.f32 %v15933_v3, %v15932_v12 }
 0x5a8   : > { %v14099_v38 = vmax.f32 %v6489_v19, 0.0  ;;  %v6420_v57 = vadd.f32 %v6356_v48, %v6292_v29  ;;  %v6295_v17 = vmul.f32 %v15931_v23, %v10511_v20  ;;  %v6492_v33 = vadd.f32 %v14070_v32, %v6421_v34 }
 0x5a9   : > { %v5544_v44 = vpop.f32.mrf.mxu1  ;;  %v6361_v48 = vmul.f32 %v13694_v7, %v15935_v61 }
 0x5aa   : > { %v6491_v14 = vadd.f32 %v14070_v32, %v6420_v57  ;;  %v6423_v27 = vadd.f32 %v6359_v15, %v6295_v17  ;;  %v6294_v63 = vmul.f32 %v15934_v58, %v5544_v44  ;;  %10715 = vmatprep.mubr.msk.f32.mxu0 %vm6617_vm2, %v14099_v38  ;;  %v14118_v39 = vmax.f32 %v6492_v33, 0.0  ;;  %v15936_v57 = vld [vmem:[#allocation81_spill] sm:$0xff]  ;;  %v15938_v58 = vld [vmem:[#allocation83_spill] sm:$0xff] }
 0x5ab   : > { %v10530_v19 = vpop.f32.mrf.mxu1  ;;  %10716 = vmatmul.mubr.msk.f32.gmra.mxu0 %vm6617_vm2, %v14102_v28  ;;  %v6360_v23 = vmul.f32 %v13698_v40, %v15936_v57 }
 0x5ac   : > { %v14115_v34 = vmax.f32 %v6491_v14, 0.0  ;;  %v6422_v29 = vadd.f32 %v6358_v22, %v6294_v63  ;;  %v6297_v20 = vmul.f32 %v11843_v4, %v10530_v19  ;;  %v6494_v45 = vadd.f32 %v14070_v32, %v6423_v27  ;;  %v15937_v4 = vld [vmem:[#allocation84_spill] sm:$0xff] }
 0x5ad   : > { %v5619_v15 = vpop.f32.mrf.mxu1  ;;  %v6363_v33 = vmul.f32 %v13702_v41, %v15937_v4  ;;  %v6362_v63 = vmul.f32 %v13706_v30, %v15938_v58 }
 0x5ae   : > { %v6493_v17 = vadd.f32 %v14070_v32, %v6422_v29  ;;  %v6425_v44 = vadd.f32 %v6361_v48, %v6297_v20  ;;  %v6296_v12 = vmul.f32 %v11845_v13, %v5619_v15  ;;  %10718 = vmatprep.mubr.msk.f32.mxu0 %vm6617_vm2, %v14115_v34  ;;  %v14134_v14 = vmax.f32 %v6494_v45, 0.0  ;;  %v15940_v15 = vld [vmem:[#allocation12_spill] sm:$0xff] }
 0x5af   : > { %v10533_v7 = vpop.f32.mrf.mxu1  ;;  %10719 = vmatmul.mubr.msk.f32.gmra.mxu0 %vm6617_vm2, %v14118_v39 }
 0x5b0   : > { %v14131_v3 = vmax.f32 %v6493_v17, 0.0  ;;  %v6424_v22 = vadd.f32 %v6360_v23, %v6296_v12  ;;  %v6299_v40 = vmul.f32 %v11829_v35, %v10533_v7  ;;  %v6496_v27 = vadd.f32 %v14070_v32, %v6425_v44  ;;  %v15939_v35 = vld [vmem:[#allocation86_spill] sm:$0xff]  ;;  %v15941_v17 = vld [vmem:[#allocation85_spill] sm:$0xff] }
 0x5b1   : > { %v5629_v13 = vpop.f32.mrf.mxu1  ;;  %v6365_v29 = vmul.f32 %v13710_v16, %v15939_v35  ;;  %v15942_v44 = vld [vmem:[#allocation57_spill] sm:$0xff] }
 0x5b2   : > { %v6495_v19 = vadd.f32 %v14070_v32, %v6424_v22  ;;  %v6427_v61 = vadd.f32 %v6363_v33, %v6299_v40  ;;  %v6298_v48 = vmul.f32 %v11831_v43, %v5629_v13  ;;  %10721 = vmatprep.mubr.msk.f32.mxu0 %vm6617_vm2, %v14131_v3  ;;  %v14150_v57 = vmax.f32 %v6496_v27, 0.0  ;;  %v15943_v33 = vld [vmem:[#allocation13_spill] sm:$0xff]  ;;  %v15944_v40 = vld [vmem:[#allocation88_spill] sm:$0xff] }
 0x5b3   : > { %v10536_v41 = vpop.f32.mrf.mxu1  ;;  %10722 = vmatmul.mubr.msk.f32.gmra.mxu0 %vm6617_vm2, %v14134_v14  ;;  %v6364_v12 = vmul.f32 %v15942_v44, %v15941_v17  ;;  %v15945_v27 = vld [vmem:[#allocation116_spill] sm:$0xff]  ;;  %v15949_v17 = vld [vmem:[#allocation11_spill] sm:$0xff] }
 0x5b4   : > { %v14147_v20 = vmax.f32 %v6495_v19, 0.0  ;;  %v6426_v45 = vadd.f32 %v6362_v63, %v6298_v48  ;;  %v6301_v30 = vmul.f32 %v15940_v15, %v10536_v41  ;;  %v6498_v23 = vadd.f32 %v14070_v32, %v6427_v61  ;;  %v15946_v19 = vld [vmem:[#allocation10_spill] sm:$0xff] }
 0x5b5   : > { %v5639_v43 = vpop.f32.mrf.mxu1  ;;  %v6367_v13 = vmul.f32 %v15945_v27, %v15944_v40 }
 0x5b6   : > { %v6497_v7 = vadd.f32 %v14070_v32, %v6426_v45  ;;  %v6429_v4 = vadd.f32 %v6365_v29, %v6301_v30  ;;  %v6300_v22 = vmul.f32 %v15943_v33, %v5639_v43  ;;  %10724 = vmatprep.mubr.msk.f32.mxu0 %vm6617_vm2, %v14147_v20  ;;  %v14166_v48 = vmax.f32 %v6498_v23, 0.0  ;;  %v15947_v29 = vld [vmem:[#allocation87_spill] sm:$0xff]  ;;  %v15948_v45 = vld [vmem:[#allocation117_spill] sm:$0xff]  ;;  %v15950_v23 = vld [vmem:[#allocation90_spill] sm:$0xff] }
 0x5b7   : > { %v10539_v16 = vpop.f32.mrf.mxu1  ;;  %10725 = vmatmul.mubr.msk.f32.gmra.mxu0 %vm6617_vm2, %v14150_v57  ;;  %v6366_v15 = vmul.f32 %v15948_v45, %v15947_v29 }
 0x5b8   : > { %v14163_v58 = vmax.f32 %v6497_v7, 0.0  ;;  %v6428_v63 = vadd.f32 %v6364_v12, %v6300_v22  ;;  %v6303_v61 = vmul.f32 %v15946_v19, %v10539_v16  ;;  %v6500_v41 = vadd.f32 %v14070_v32, %v6429_v4 }
 0x5b9   : > { %v5649_v35 = vpop.f32.mrf.mxu1  ;;  %v6369_v12 = vmul.f32 %v13731_v62, %v15950_v23 }
 0x5ba   : > { %v6499_v30 = vadd.f32 %v14070_v32, %v6428_v63  ;;  %v6431_v43 = vadd.f32 %v6367_v13, %v6303_v61  ;;  %v6302_v44 = vmul.f32 %v15949_v17, %v5649_v35  ;;  %10727 = vmatprep.mubr.msk.f32.mxu0 %vm6617_vm2, %v14163_v58  ;;  %v14182_v16 = vmax.f32 %v6500_v41, 0.0  ;;  %v15951_v13 = vld [vmem:[#allocation89_spill] sm:$0xff] }
 0x5bb   : > { %v10558_v7 = vpop.f32.mrf.mxu1  ;;  %10728 = vmatmul.mubr.msk.f32.gmra.mxu0 %vm6617_vm2, %v14166_v48  ;;  %v6368_v63 = vmul.f32 %v13737_v56, %v15951_v13 }
 0x5bc   : > { %v14179_v4 = vmax.f32 %v6499_v30, 0.0  ;;  %v6430_v33 = vadd.f32 %v6366_v15, %v6302_v44  ;;  %v6305_v22 = vmul.f32 %v11898_v0, %v10558_v7  ;;  %v6502_v40 = vadd.f32 %v14070_v32, %v6431_v43  ;;  %v15952_v0 = vld [vmem:[#allocation92_spill] sm:$0xff]  ;;  %v15953_v43 = vld [vmem:[#allocation91_spill] sm:$0xff] }
 0x5bd   : > { %v5724_v27 = vpop.f32.mrf.mxu1  ;;  %v6371_v41 = vmul.f32 %v13743_v8, %v15952_v0  ;;  %v6370_v17 = vmul.f32 %v13749_v51, %v15953_v43 }
 0x5be   : > { %v6501_v19 = vadd.f32 %v14070_v32, %v6430_v33  ;;  %v6433_v61 = vadd.f32 %v6369_v12, %v6305_v22  ;;  %v6304_v35 = vmul.f32 %v11902_v31, %v5724_v27  ;;  %10730 = vmatprep.mubr.msk.f32.mxu0 %vm6617_vm2, %v14179_v4  ;;  %v14198_v15 = vmax.f32 %v6502_v40, 0.0  ;;  %v15955_v12 = vld [vmem:[#allocation118_spill] sm:$0xff]  ;;  %v15956_v27 = vld [vmem:[#allocation16_spill] sm:$0xff] }
 0x5bf   : > { %v10561_v62 = vpop.f32.mrf.mxu1  ;;  %10731 = vmatmul.mubr.msk.f32.gmra.mxu0 %vm6617_vm2, %v14182_v16 }
 0x5c0   : > { %v14195_v29 = vmax.f32 %v6501_v19, 0.0  ;;  %v6432_v45 = vadd.f32 %v6368_v63, %v6304_v35  ;;  %v6307_v56 = vmul.f32 %v11882_v26, %v10561_v62  ;;  %v6504_v30 = vadd.f32 %v14070_v32, %v6433_v61  ;;  %v15954_v26 = vld [vmem:[#allocation94_spill] sm:$0xff]  ;;  %v15957_v19 = vld [vmem:[#allocation93_spill] sm:$0xff]  ;;  %v15958_v61 = vld [vmem:[#allocation119_spill] sm:$0xff] }
 0x5c1   : > { %v5734_v31 = vpop.f32.mrf.mxu1  ;;  %v6373_v33 = vmul.f32 %v15955_v12, %v15954_v26  ;;  %v6372_v35 = vmul.f32 %v15958_v61, %v15957_v19  ;;  %v15965_v19 = vld [vmem:[#allocation15_spill] sm:$0xff] }
 0x5c2   : > { %v6503_v44 = vadd.f32 %v14070_v32, %v6432_v45  ;;  %v6435_v7 = vadd.f32 %v6371_v41, %v6307_v56  ;;  %v6306_v23 = vmul.f32 %v11886_v2, %v5734_v31  ;;  %10733 = vmatprep.mubr.msk.f32.mxu0 %vm6617_vm2, %v14195_v29  ;;  %v14214_v13 = vmax.f32 %v6504_v30, 0.0  ;;  %v15959_v41 = vld [vmem:[#allocation17_spill] sm:$0xff]  ;;  %v15960_v30 = vld [vmem:[#allocation96_spill] sm:$0xff] }
 0x5c3   : > { %v10564_v8 = vpop.f32.mrf.mxu1  ;;  %10734 = vmatmul.mubr.msk.f32.gmra.mxu0 %vm6617_vm2, %v14198_v15  ;;  %v15961_v31 = vld [vmem:[#allocation120_spill] sm:$0xff] }
 0x5c4   : > { %v14211_v22 = vmax.f32 %v6503_v44, 0.0  ;;  %v6434_v40 = vadd.f32 %v6370_v17, %v6306_v23  ;;  %v6309_v51 = vmul.f32 %v15956_v27, %v10564_v8  ;;  %v6506_v63 = vadd.f32 %v14070_v32, %v6435_v7  ;;  %v15962_v7 = vld [vmem:[#allocation14_spill] sm:$0xff] }
 0x5c5   : > { %v5744_v2 = vpop.f32.mrf.mxu1  ;;  %v6375_v43 = vmul.f32 %v15961_v31, %v15960_v30 }
 0x5c6   : > { %v6505_v62 = vadd.f32 %v14070_v32, %v6434_v40  ;;  %v6437_v0 = vadd.f32 %v6373_v33, %v6309_v51  ;;  %v6308_v45 = vmul.f32 %v15959_v41, %v5744_v2  ;;  %10736 = vmatprep.mubr.msk.f32.mxu0 %vm6617_vm2, %v14211_v22  ;;  %v14230_v8 = vmax.f32 %v6506_v63, 0.0  ;;  %v15963_v33 = vld [vmem:[#allocation95_spill] sm:$0xff]  ;;  %v15964_v40 = vld [vmem:[#allocation121_spill] sm:$0xff]  ;;  %v15966_v63 = vld [vmem:[#allocation98_spill] sm:$0xff] }
 0x5c7   : > { %v10567_v56 = vpop.f32.mrf.mxu1  ;;  %10737 = vmatmul.mubr.msk.f32.gmra.mxu0 %vm6617_vm2, %v14214_v13  ;;  %v6374_v27 = vmul.f32 %v15964_v40, %v15963_v33 }
 0x5c8   : > { %v14227_v17 = vmax.f32 %v6505_v62, 0.0  ;;  %v6436_v44 = vadd.f32 %v6372_v35, %v6308_v45  ;;  %v6311_v23 = vmul.f32 %v15962_v7, %v10567_v56  ;;  %v6508_v26 = vadd.f32 %v14070_v32, %v6437_v0 }
 0x5c9   : > { %v5754_v12 = vpop.f32.mrf.mxu1  ;;  %v6377_v35 = vmul.f32 %v13779_v55, %v15966_v63 }
 0x5ca   : > { %v6507_v51 = vadd.f32 %v14070_v32, %v6436_v44  ;;  %v6439_v2 = vadd.f32 %v6375_v43, %v6311_v23  ;;  %v6310_v61 = vmul.f32 %v15965_v19, %v5754_v12  ;;  %10739 = vmatprep.mubr.msk.f32.mxu0 %vm6617_vm2, %v14227_v17  ;;  %v14246_v56 = vmax.f32 %v6508_v26, 0.0  ;;  %v15967_v43 = vld [vmem:[#allocation97_spill] sm:$0xff] }
 0x5cb   : > { %v10586_v62 = vpop.f32.mrf.mxu1  ;;  %10740 = vmatmul.mubr.msk.f32.gmra.mxu0 %vm6617_vm2, %v14230_v8  ;;  %v6376_v44 = vmul.f32 %v13785_v49, %v15967_v43 }
 0x5cc   : > { %v14243_v0 = vmax.f32 %v6507_v51, 0.0  ;;  %v6438_v41 = vadd.f32 %v6374_v27, %v6310_v61  ;;  %v6313_v45 = vmul.f32 %v11958_v1, %v10586_v62  ;;  %v6510_v30 = vadd.f32 %v14070_v32, %v6439_v2  ;;  %v15968_v1 = vld [vmem:[#allocation100_spill] sm:$0xff]  ;;  %v15969_v2 = vld [vmem:[#allocation99_spill] sm:$0xff] }
 0x5cd   : > { %v5829_v31 = vpop.f32.mrf.mxu1  ;;  %v6379_v26 = vmul.f32 %v13791_v37, %v15968_v1  ;;  %v6378_v19 = vmul.f32 %v13797_v52, %v15969_v2 }
 0x5ce   : > { %v6509_v7 = vadd.f32 %v14070_v32, %v6438_v41  ;;  %v6441_v23 = vadd.f32 %v6377_v35, %v6313_v45  ;;  %v6312_v12 = vmul.f32 %v11962_v50, %v5829_v31  ;;  %10742 = vmatprep.mubr.msk.f32.mxu0 %vm6617_vm2, %v14243_v0  ;;  %v14262_v27 = vmax.f32 %v6510_v30, 0.0  ;;  %v15971_v35 = vld [vmem:[#allocation122_spill] sm:$0xff]  ;;  %v15972_v31 = vld [vmem:[#allocation20_spill] sm:$0xff] }
 0x5cf   : > { %v10589_v55 = vpop.f32.mrf.mxu1  ;;  %10743 = vmatmul.mubr.msk.f32.gmra.mxu0 %vm6617_vm2, %v14246_v56 }
 0x5d0   : > { %v14259_v33 = vmax.f32 %v6509_v7, 0.0  ;;  %v6440_v40 = vadd.f32 %v6376_v44, %v6312_v12  ;;  %v6315_v49 = vmul.f32 %v11940_v25, %v10589_v55  ;;  %v6512_v51 = vadd.f32 %v14070_v32, %v6441_v23  ;;  %v15970_v25 = vld [vmem:[#allocation102_spill] sm:$0xff]  ;;  %v15973_v7 = vld [vmem:[#allocation101_spill] sm:$0xff]  ;;  %v15974_v23 = vld [vmem:[#allocation123_spill] sm:$0xff] }
 0x5d1   : > { %v5839_v50 = vpop.f32.mrf.mxu1  ;;  %v6381_v41 = vmul.f32 %v15971_v35, %v15970_v25  ;;  %v6380_v12 = vmul.f32 %v15974_v23, %v15973_v7  ;;  %v15981_v7 = vld [vmem:[#allocation19_spill] sm:$0xff] }
 0x5d2   : > { %v6511_v61 = vadd.f32 %v14070_v32, %v6440_v40  ;;  %v6443_v62 = vadd.f32 %v6379_v26, %v6315_v49  ;;  %v6314_v63 = vmul.f32 %v11944_v5, %v5839_v50  ;;  %10745 = vmatprep.mubr.msk.f32.mxu0 %vm6617_vm2, %v14259_v33  ;;  %v14278_v43 = vmax.f32 %v6512_v51, 0.0  ;;  %v15975_v26 = vld [vmem:[#allocation21_spill] sm:$0xff]  ;;  %v15976_v51 = vld [vmem:[#allocation104_spill] sm:$0xff] }
 0x5d3   : > { %v10592_v37 = vpop.f32.mrf.mxu1  ;;  %10746 = vmatmul.mubr.msk.f32.gmra.mxu0 %vm6617_vm2, %v14262_v27  ;;  %v15977_v50 = vld [vmem:[#allocation124_spill] sm:$0xff] }
 0x5d4   : > { %v14275_v45 = vmax.f32 %v6511_v61, 0.0  ;;  %v6442_v30 = vadd.f32 %v6378_v19, %v6314_v63  ;;  %v6317_v52 = vmul.f32 %v15972_v31, %v10592_v37  ;;  %v6514_v44 = vadd.f32 %v14070_v32, %v6443_v62  ;;  %v15978_v62 = vld [vmem:[#allocation18_spill] sm:$0xff] }
 0x5d5   : > { %v5849_v5 = vpop.f32.mrf.mxu1  ;;  %v6383_v2 = vmul.f32 %v15977_v50, %v15976_v51 }
 0x5d6   : > { %v6513_v55 = vadd.f32 %v14070_v32, %v6442_v30  ;;  %v6445_v1 = vadd.f32 %v6381_v41, %v6317_v52  ;;  %v6316_v40 = vmul.f32 %v15975_v26, %v5849_v5  ;;  %10748 = vmatprep.mubr.msk.f32.mxu0 %vm6617_vm2, %v14275_v45  ;;  %v14294_v37 = vmax.f32 %v6514_v44, 0.0  ;;  %v15979_v41 = vld [vmem:[#allocation103_spill] sm:$0xff]  ;;  %v15980_v30 = vld [vmem:[#allocation125_spill] sm:$0xff]  ;;  %v15982_v44 = vld [vmem:[#allocation106_spill] sm:$0xff] }
 0x5d7   : > { %v10595_v49 = vpop.f32.mrf.mxu1  ;;  %10749 = vmatmul.mubr.msk.f32.gmra.mxu0 %vm6617_vm2, %v14278_v43  ;;  %v6382_v31 = vmul.f32 %v15980_v30, %v15979_v41 }
 0x5d8   : > { %v14291_v19 = vmax.f32 %v6513_v55, 0.0  ;;  %v6444_v61 = vadd.f32 %v6380_v12, %v6316_v40  ;;  %v6319_v63 = vmul.f32 %v15978_v62, %v10595_v49  ;;  %v6516_v25 = vadd.f32 %v14070_v32, %v6445_v1 }
 0x5d9   : > { %v5859_v35 = vpop.f32.mrf.mxu1  ;;  %v6385_v12 = vmul.f32 %v13827_v18, %v15982_v44 }
 0x5da   : > { %v6515_v52 = vadd.f32 %v14070_v32, %v6444_v61  ;;  %v6447_v5 = vadd.f32 %v6383_v2, %v6319_v63  ;;  %v6318_v23 = vmul.f32 %v15981_v7, %v5859_v35  ;;  %10751 = vmatprep.mubr.msk.f32.mxu0 %vm6617_vm2, %v14291_v19  ;;  %v14310_v49 = vmax.f32 %v6516_v25, 0.0  ;;  %v15984_v2 = vld [vmem:[#allocation105_spill] sm:$0xff] }
 0x5db   : > { %v10614_v55 = vpop.f32.mrf.mxu1  ;;  %10752 = vmatmul.mubr.msk.f32.gmra.mxu0 %vm6617_vm2, %v14294_v37  ;;  %v6384_v61 = vmul.f32 %v13833_v46, %v15984_v2 }
 0x5dc   : > { %v14307_v1 = vmax.f32 %v6515_v52, 0.0  ;;  %v6446_v26 = vadd.f32 %v6382_v31, %v6318_v23  ;;  %v6321_v40 = vmul.f32 %v12024_v60, %v10614_v55  ;;  %v6518_v51 = vadd.f32 %v14070_v32, %v6447_v5  ;;  %v15985_v60 = vld [vmem:[#allocation108_spill] sm:$0xff]  ;;  %v15986_v5 = vld [vmem:[#allocation107_spill] sm:$0xff] }
 0x5dd   : > { %v5934_v50 = vpop.f32.mrf.mxu1  ;;  %v6387_v25 = vmul.f32 %v13839_v53, %v15985_v60  ;;  %v6386_v7 = vmul.f32 %v13845_v10, %v15986_v5 }
 0x5de   : > { %15983 = vst [vmem:[#allocation150_spill] sm:$0xff] %v14307_v1  ;;  %v6517_v62 = vadd.f32 %v14070_v32, %v6446_v26  ;;  %v6449_v63 = vadd.f32 %v6385_v12, %v6321_v40  ;;  %v6320_v35 = vmul.f32 %v12028_v59, %v5934_v50  ;;  %10754 = vmatprep.mubr.msk.f32.mxu0 %vm6617_vm2, %v14307_v1  ;;  %v14326_v31 = vmax.f32 %v6518_v51, 0.0  ;;  %v15988_v12 = vld [vmem:[#allocation126_spill] sm:$0xff] }
 0x5df   : > { %v10617_v18 = vpop.f32.mrf.mxu1  ;;  %10755 = vmatmul.mubr.msk.f32.gmra.mxu0 %vm6617_vm2, %v14310_v49  ;;  %v15989_v50 = vld [vmem:[#allocation26_spill] sm:$0xff] }
 0x5e0   : > { %v14323_v41 = vmax.f32 %v6517_v62, 0.0  ;;  %v6448_v30 = vadd.f32 %v6384_v61, %v6320_v35  ;;  %v6323_v46 = vmul.f32 %v12006_v9, %v10617_v18  ;;  %v6520_v52 = vadd.f32 %v14070_v32, %v6449_v63  ;;  %v15987_v9 = vld [vmem:[#allocation28_spill] sm:$0xff]  ;;  %v15990_v62 = vld [vmem:[#allocation109_spill] sm:$0xff]  ;;  %v15991_v63 = vld [vmem:[#allocation127_spill] sm:$0xff] }
 0x5e1   : > { %v5944_v59 = vpop.f32.mrf.mxu1  ;;  %v6389_v26 = vmul.f32 %v15988_v12, %v15987_v9  ;;  %v6388_v35 = vmul.f32 %v15991_v63, %v15990_v62  ;;  %v15998_v62 = vld [vmem:[#allocation23_spill] sm:$0xff] }
 0x5e2   : > { %v6519_v23 = vadd.f32 %v14070_v32, %v6448_v30  ;;  %v6451_v55 = vadd.f32 %v6387_v25, %v6323_v46  ;;  %v6322_v44 = vmul.f32 %v12010_v36, %v5944_v59  ;;  %10757 = vmatprep.mubr.msk.f32.mxu0 %vm6617_vm2, %v14323_v41  ;;  %v14342_v2 = vmax.f32 %v6520_v52, 0.0  ;;  %v15992_v25 = vld [vmem:[#allocation27_spill] sm:$0xff]  ;;  %v15993_v52 = vld [vmem:[#allocation24_spill] sm:$0xff] }
 0x5e3   : > { %v10620_v53 = vpop.f32.mrf.mxu1  ;;  %10758 = vmatmul.mubr.msk.f32.gmra.mxu0 %vm6617_vm2, %v14326_v31  ;;  %v15994_v59 = vld [vmem:[#allocation128_spill] sm:$0xff] }
 0x5e4   : > { %v14339_v40 = vmax.f32 %v6519_v23, 0.0  ;;  %v6450_v51 = vadd.f32 %v6386_v7, %v6322_v44  ;;  %v6325_v10 = vmul.f32 %v15989_v50, %v10620_v53  ;;  %v6522_v61 = vadd.f32 %v14070_v32, %v6451_v55  ;;  %v15995_v55 = vld [vmem:[#allocation22_spill] sm:$0xff] }
 0x5e5   : > { %v5954_v36 = vpop.f32.mrf.mxu1  ;;  %v6391_v5 = vmul.f32 %v15994_v59, %v15993_v52 }
 0x5e6   : > { %v6521_v18 = vadd.f32 %v14070_v32, %v6450_v51  ;;  %v6453_v60 = vadd.f32 %v6389_v26, %v6325_v10  ;;  %v6324_v30 = vmul.f32 %v15992_v25, %v5954_v36  ;;  %10760 = vmatprep.mubr.msk.f32.mxu0 %vm6617_vm2, %v14339_v40  ;;  %v14358_v53 = vmax.f32 %v6522_v61, 0.0  ;;  %v15996_v26 = vld [vmem:[#allocation25_spill] sm:$0xff]  ;;  %v15999_v61 = vld [vmem:[#allocation111_spill] sm:$0xff] }
 0x5e7   : > { %v10623_v46 = vpop.f32.mrf.mxu1  ;;  %10761 = vmatmul.mubr.msk.f32.gmra.mxu0 %vm6617_vm2, %v14342_v2  ;;  %v15997_v51 = vld [vmem:[#allocation129_spill] sm:$0xff] }
 0x5e8   : > { %v14355_v7 = vmax.f32 %v6521_v18, 0.0  ;;  %v6452_v23 = vadd.f32 %v6388_v35, %v6324_v30  ;;  %v6327_v44 = vmul.f32 %v15995_v55, %v10623_v46  ;;  %v6524_v9 = vadd.f32 %v14070_v32, %v6453_v60  ;;  %v16001_v30 = vld [vmem:[#allocation39_spill] sm:$0xff] }
 0x5e9   : > { %v5964_v12 = vpop.f32.mrf.mxu1  ;;  %v6390_v50 = vmul.f32 %v15997_v51, %v15996_v26  ;;  %v6393_v35 = vmul.f32 %v13875_v24, %v15999_v61  ;;  %v16004_v26 = vld [vmem:[#allocation40_spill] sm:$0xff] }
 0x5ea   : > { %v6523_v10 = vadd.f32 %v14070_v32, %v6452_v23  ;;  %v6455_v36 = vadd.f32 %v6391_v5, %v6327_v44  ;;  %v6326_v63 = vmul.f32 %v15998_v62, %v5964_v12  ;;  %10763 = vmatprep.mubr.msk.f32.mxu0 %vm6617_vm2, %v14355_v7  ;;  %v14374_v52 = vmax.f32 %v6524_v9, 0.0  ;;  %v16003_v23 = vld [vmem:[#allocation110_spill] sm:$0xff]  ;;  %v16005_v9 = vld [vmem:[#allocation113_spill] sm:$0xff] }
 0x5eb   : > { %v10642_v18 = vpop.f32.mrf.mxu1  ;;  %10764 = vmatmul.mubr.msk.f32.gmra.mxu0 %vm6617_vm2, %v14358_v53  ;;  %v6392_v55 = vmul.f32 %v13881_v42, %v16003_v23 }
 0x5ec   : > { %v14371_v60 = vmax.f32 %v6523_v10, 0.0  ;;  %v6454_v25 = vadd.f32 %v6390_v50, %v6326_v63  ;;  %v6329_v46 = vmul.f32 %v16001_v30, %v10642_v18  ;;  %16002 = vst [vmem:[#allocation152_spill] sm:$0xff] %v14374_v52  ;;  %v6526_v59 = vadd.f32 %v14070_v32, %v6455_v36  ;;  %v16006_v50 = vld [vmem:[#allocation130_spill] sm:$0xff]  ;;  %v16008_v63 = vld [vmem:[#allocation37_spill] sm:$0xff]  ;;  %v16011_v30 = vld [vmem:[#allocation131_spill] sm:$0xff] }
 0x5ed   : > { %v6039_v5 = vpop.f32.mrf.mxu1  ;;  %v6395_v10 = vmul.f32 %v16006_v50, %v16005_v9  ;;  %v16015_v9 = vld [vmem:[#allocation33_spill] sm:$0xff] }
 0x5ee   : > { %16000 = vst [vmem:[#allocation151_spill] sm:$0xff] %v14371_v60  ;;  %v6525_v44 = vadd.f32 %v14070_v32, %v6454_v25  ;;  %v6457_v12 = vadd.f32 %v6393_v35, %v6329_v46  ;;  %v6328_v51 = vmul.f32 %v16004_v26, %v6039_v5  ;;  %10766 = vmatprep.mubr.msk.f32.mxu0 %vm6617_vm2, %v14371_v60  ;;  %v14390_v18 = vmax.f32 %v6526_v59, 0.0  ;;  %v16010_v25 = vld [vmem:[#allocation112_spill] sm:$0xff]  ;;  %v16012_v26 = vld [vmem:[#allocation38_spill] sm:$0xff]  ;;  %v16013_v59 = vld [vmem:[#allocation35_spill] sm:$0xff] }
 0x5ef   : > { %v10645_v24 = vpop.f32.mrf.mxu1  ;;  %10767 = vmatmul.mubr.msk.f32.gmra.mxu0 %vm6617_vm2, %v14374_v52  ;;  %v6394_v46 = vmul.f32 %v16011_v30, %v16010_v25 }
 0x5f0   : > { %v14387_v36 = vmax.f32 %v6525_v44, 0.0  ;;  %v6456_v62 = vadd.f32 %v6392_v55, %v6328_v51  ;;  %v6331_v42 = vmul.f32 %v16008_v63, %v10645_v24  ;;  %16009 = vst [vmem:[#allocation6_spill] sm:$0xff] %v14390_v18  ;;  %v6528_v61 = vadd.f32 %v14070_v32, %v6457_v12  ;;  %v16014_v55 = vld [vmem:[#allocation132_spill] sm:$0xff] }
 0x5f1   : > { %v6049_v35 = vpop.f32.mrf.mxu1  ;;  %v6397_v51 = vmul.f32 %v16014_v55, %v16013_v59  ;;  %v16023_v59 = vld [vmem:[#allocation29_spill] sm:$0xff] }
 0x5f2   : > { %16007 = vst [vmem:[#allocation153_spill] sm:$0xff] %v14387_v36  ;;  %v6527_v5 = vadd.f32 %v14070_v32, %v6456_v62  ;;  %v6459_v23 = vadd.f32 %v6395_v10, %v6331_v42  ;;  %v6330_v52 = vmul.f32 %v16012_v26, %v6049_v35  ;;  %10769 = vmatprep.mubr.msk.f32.mxu0 %vm6617_vm2, %v14387_v36  ;;  %v14406_v63 = vmax.f32 %v6528_v61, 0.0  ;;  %v16017_v42 = vld [vmem:[#allocation36_spill] sm:$0xff]  ;;  %v16018_v35 = vld [vmem:[#allocation133_spill] sm:$0xff]  ;;  %v16021_v61 = vld [vmem:[#allocation134_spill] sm:$0xff] }
 0x5f3   : > { %v10648_v44 = vpop.f32.mrf.mxu1  ;;  %10770 = vmatmul.mubr.msk.f32.gmra.mxu0 %vm6617_vm2, %v14390_v18  ;;  %v6396_v25 = vmul.f32 %v16018_v35, %v16017_v42  ;;  %v16019_v18 = vld [vmem:[#allocation34_spill] sm:$0xff] }
 0x5f4   : > { %v14403_v12 = vmax.f32 %v6527_v5, 0.0  ;;  %v6458_v24 = vadd.f32 %v6394_v46, %v6330_v52  ;;  %v6333_v50 = vmul.f32 %v16015_v9, %v10648_v44  ;;  %16016 = vst [vmem:[#allocation7_spill] sm:$0xff] %v14406_v63  ;;  %v6530_v10 = vadd.f32 %v14070_v32, %v6459_v23  ;;  %v16020_v52 = vld [vmem:[#allocation31_spill] sm:$0xff] }
 0x5f5   : > { %v6059_v62 = vpop.f32.mrf.mxu1  ;;  %v6399_v46 = vmul.f32 %v16021_v61, %v16020_v52 }
 0x5f6   : > { %v6529_v30 = vadd.f32 %v14070_v32, %v6458_v24  ;;  %v6461_v26 = vadd.f32 %v6397_v51, %v6333_v50  ;;  %v6332_v36 = vmul.f32 %v16019_v18, %v6059_v62  ;;  %10772 = vmatprep.mubr.msk.f32.mxu0 %vm6617_vm2, %v14403_v12  ;;  %v14422_v9 = vmax.f32 %v6530_v10, 0.0  ;;  %v16024_v24 = vld [vmem:[#allocation32_spill] sm:$0xff]  ;;  %v16025_v50 = vld [vmem:[#allocation135_spill] sm:$0xff] }
 0x5f7   : > { %v10651_v5 = vpop.f32.mrf.mxu1  ;;  %10773 = vmatmul.mubr.msk.f32.gmra.mxu0 %vm6617_vm2, %v14406_v63  ;;  %v6398_v62 = vmul.f32 %v16025_v50, %v16024_v24  ;;  %v16026_v63 = vld [vmem:[#allocation30_spill] sm:$0xff]  ;;  %v16033_v50 = vld [vmem:[#allocation56_spill] sm:$0xff] }
 0x5f8   : > { %v14419_v23 = vmax.f32 %v6529_v30, 0.0  ;;  %v6460_v44 = vadd.f32 %v6396_v25, %v6332_v36  ;;  %v6335_v55 = vmul.f32 %v16023_v59, %v10651_v5  ;;  %v6532_v51 = vadd.f32 %v14070_v32, %v6461_v26  ;;  %v16027_v36 = vld [vmem:[#allocation115_spill] sm:$0xff]  ;;  %v16032_v59 = vld [vmem:[#allocation136_spill] sm:$0xff] }
 0x5f9   : > { %v6069_v18 = vpop.f32.mrf.mxu1  ;;  %v6401_v10 = vmul.f32 %v13923_v47, %v16027_v36  ;;  %v16029_v5 = vld [vmem:[#allocation55_spill] sm:$0xff] }
 0x5fa   : > { %16022 = vst [vmem:[#allocation8_spill] sm:$0xff] %v14419_v23  ;;  %v6531_v42 = vadd.f32 %v14070_v32, %v6460_v44  ;;  %v6463_v35 = vadd.f32 %v6399_v46, %v6335_v55  ;;  %v6334_v60 = vmul.f32 %v16026_v63, %v6069_v18  ;;  %10775 = vmatprep.mubr.msk.f32.mxu0 %vm6617_vm2, %v14419_v23  ;;  %v14438_v61 = vmax.f32 %v6532_v51, 0.0  ;;  %v16031_v44 = vld [vmem:[#allocation114_spill] sm:$0xff]  ;;  %v16035_v51 = vld [vmem:[#allocation137_spill] sm:$0xff] }
 0x5fb   : > { %v10670_v30 = vpop.f32.mrf.mxu1  ;;  %10776 = vmatmul.mubr.msk.f32.gmra.mxu0 %vm6617_vm2, %v14422_v9  ;;  %v6400_v55 = vmul.f32 %v16032_v59, %v16031_v44 }
 0x5fc   : > { %v14435_v25 = vmax.f32 %v6531_v42, 0.0  ;;  %v6462_v26 = vadd.f32 %v6398_v62, %v6334_v60  ;;  %v6337_v52 = vmul.f32 %v16029_v5, %v10670_v30  ;;  %16030 = vst [vmem:[#allocation71_spill] sm:$0xff] %v14438_v61  ;;  %v6534_v46 = vadd.f32 %v14070_v32, %v6463_v35  ;;  %v16034_v60 = vld [vmem:[#allocation53_spill] sm:$0xff]  ;;  %v16037_v30 = vld [vmem:[#allocation51_spill] sm:$0xff] }
 0x5fd   : > { %v6144_v63 = vpop.f32.mrf.mxu1  ;;  %v6403_v62 = vmul.f32 %v16035_v51, %v16034_v60  ;;  %v16045_v60 = vld [vmem:[#allocation47_spill] sm:$0xff] }
 0x5fe   : > { %16028 = vst [vmem:[#allocation9_spill] sm:$0xff] %v14435_v25  ;;  %v6533_v18 = vadd.f32 %v14070_v32, %v6462_v26  ;;  %v6465_v24 = vadd.f32 %v6401_v10, %v6337_v52  ;;  %v6336_v23 = vmul.f32 %v16033_v50, %v6144_v63  ;;  %10778 = vmatprep.mubr.msk.f32.mxu0 %vm6617_vm2, %v14435_v25  ;;  %v14454_v5 = vmax.f32 %v6534_v46, 0.0  ;;  %v16039_v52 = vld [vmem:[#allocation54_spill] sm:$0xff]  ;;  %v16043_v46 = vld [vmem:[#allocation139_spill] sm:$0xff] }
 0x5ff   : > { %v10673_v47 = vpop.f32.mrf.mxu1  ;;  %10779 = vmatmul.mubr.msk.f32.gmra.mxu0 %vm6617_vm2, %v14438_v61  ;;  %v16040_v63 = vld [vmem:[#allocation138_spill] sm:$0xff]  ;;  %v16041_v61 = vld [vmem:[#allocation52_spill] sm:$0xff] }
 0x600   : > { %v14451_v42 = vmax.f32 %v6533_v18, 0.0  ;;  %v6464_v35 = vadd.f32 %v6400_v55, %v6336_v23  ;;  %v6339_v36 = vmul.f32 %v16037_v30, %v10673_v47  ;;  %16038 = vst [vmem:[#allocation73_spill] sm:$0xff] %v14454_v5  ;;  %v6536_v10 = vadd.f32 %v14070_v32, %v6465_v24  ;;  %v16042_v23 = vld [vmem:[#allocation49_spill] sm:$0xff] }
 0x601   : > { %v6154_v26 = vpop.f32.mrf.mxu1  ;;  %v6402_v44 = vmul.f32 %v16040_v63, %v16039_v52  ;;  %v6405_v55 = vmul.f32 %v16043_v46, %v16042_v23  ;;  %v16053_v23 = vld [vmem:[#allocation43_spill] sm:$0xff] }
 0x602   : > { %16036 = vst [vmem:[#allocation74_spill] sm:$0xff] %v14451_v42  ;;  %v6535_v59 = vadd.f32 %v14070_v32, %v6464_v35  ;;  %v6467_v50 = vadd.f32 %v6403_v62, %v6339_v36  ;;  %v6338_v25 = vmul.f32 %v16041_v61, %v6154_v26  ;;  %10781 = vmatprep.mubr.msk.f32.mxu0 %vm6617_vm2, %v14451_v42  ;;  %v14470_v30 = vmax.f32 %v6536_v10, 0.0  ;;  %v16047_v35 = vld [vmem:[#allocation50_spill] sm:$0xff]  ;;  %v16048_v36 = vld [vmem:[#allocation140_spill] sm:$0xff]  ;;  %v16051_v10 = vld [vmem:[#allocation141_spill] sm:$0xff] }
 0x603   : > { %v10676_v18 = vpop.f32.mrf.mxu1  ;;  %10782 = vmatmul.mubr.msk.f32.gmra.mxu0 %vm6617_vm2, %v14454_v5  ;;  %v6404_v26 = vmul.f32 %v16048_v36, %v16047_v35  ;;  %v16049_v5 = vld [vmem:[#allocation48_spill] sm:$0xff] }
 0x604   : > { %v14467_v24 = vmax.f32 %v6535_v59, 0.0  ;;  %v6466_v47 = vadd.f32 %v6402_v44, %v6338_v25  ;;  %v6341_v51 = vmul.f32 %v16045_v60, %v10676_v18  ;;  %16046 = vst [vmem:[#allocation75_spill] sm:$0xff] %v14470_v30  ;;  %v6538_v62 = vadd.f32 %v14070_v32, %v6467_v50  ;;  %v16050_v25 = vld [vmem:[#allocation45_spill] sm:$0xff] }
 0x605   : > { %v6164_v61 = vpop.f32.mrf.mxu1  ;;  %v6407_v44 = vmul.f32 %v16051_v10, %v16050_v25 }
 0x606   : > { %16044 = vst [vmem:[#allocation76_spill] sm:$0xff] %v14467_v24  ;;  %v6537_v52 = vadd.f32 %v14070_v32, %v6466_v47  ;;  %v6469_v63 = vadd.f32 %v6405_v55, %v6341_v51  ;;  %v6340_v42 = vmul.f32 %v16049_v5, %v6164_v61  ;;  %10784 = vmatprep.mubr.msk.f32.mxu0 %vm6617_vm2, %v14467_v24  ;;  %v14486_v60 = vmax.f32 %v6538_v62, 0.0  ;;  %v16055_v47 = vld [vmem:[#allocation46_spill] sm:$0xff] }
 0x607   : > { %v10679_v59 = vpop.f32.mrf.mxu1  ;;  %10785 = vmatmul.mubr.msk.f32.gmra.mxu0 %vm6617_vm2, %v14470_v30  ;;  %v16056_v51 = vld [vmem:[#allocation142_spill] sm:$0xff]  ;;  %v16057_v30 = vld [vmem:[#allocation44_spill] sm:$0xff] }
 0x608   : > { %v14483_v50 = vmax.f32 %v6537_v52, 0.0  ;;  %v6468_v18 = vadd.f32 %v6404_v26, %v6340_v42  ;;  %v6343_v46 = vmul.f32 %v16053_v23, %v10679_v59  ;;  %16054 = vst [vmem:[#allocation77_spill] sm:$0xff] %v14486_v60  ;;  %v6540_v55 = vadd.f32 %v14070_v32, %v6469_v63  ;;  %v16058_v42 = vld [vmem:[#allocation41_spill] sm:$0xff] }
 0x609   : > { %v6174_v5 = vpop.f32.mrf.mxu1  ;;  %v6406_v61 = vmul.f32 %v16056_v51, %v16055_v47  ;;  %v6409_v62 = vmul.f32 %v13974_v21, %v16058_v42  ;;  %v16063_v47 = vld [vmem:[#allocation72_spill] sm:$0xff] }
 0x60a   : > { %16052 = vst [vmem:[#allocation78_spill] sm:$0xff] %v14483_v50  ;;  %v6539_v35 = vadd.f32 %v14070_v32, %v6468_v18  ;;  %v6471_v36 = vadd.f32 %v6407_v44, %v6343_v46  ;;  %v6342_v24 = vmul.f32 %v16057_v30, %v6174_v5  ;;  %10787 = vmatprep.mubr.msk.f32.mxu0 %vm6617_vm2, %v14483_v50  ;;  %v14502_v25 = vmax.f32 %v6540_v55, 0.0  ;;  %v16061_v44 = vld [vmem:[#allocation42_spill] sm:$0xff]  ;;  %v16062_v18 = vld [vmem:[#allocation143_spill] sm:$0xff] }
 0x60b   : > { %v10698_v52 = vpop.f32.mrf.mxu1  ;;  %10788 = vmatmul.mubr.msk.f32.gmra.mxu0 %vm6617_vm2, %v14486_v60  ;;  %v6408_v23 = vmul.f32 %v16062_v18, %v16061_v44 }
 0x60c   : > { %v14499_v26 = vmax.f32 %v6539_v35, 0.0  ;;  %v6470_v63 = vadd.f32 %v6406_v61, %v6342_v24  ;;  %v6345_v59 = vmul.f32 %v15920_v54, %v10698_v52  ;;  %16060 = vst [vmem:[#allocation80_spill] sm:$0xff] %v14502_v25  ;;  %v6542_v10 = vadd.f32 %v14070_v32, %v6471_v36  ;;  %v16064_v54 = vld [vmem:[#allocation69_spill] sm:$0xff]  ;;  %v16065_v24 = vld [vmem:[#allocation144_spill] sm:$0xff]  ;;  %v16067_v36 = vld [vmem:[#allocation67_spill] sm:$0xff] }
 0x60d   : > { %v6249_v30 = vpop.f32.mrf.mxu1  ;;  %v6411_v55 = vmul.f32 %v16065_v24, %v16064_v54  ;;  %v16075_v54 = vld [vmem:[#allocation63_spill] sm:$0xff] }
 0x60e   : > { %16059 = vst [vmem:[#allocation5_spill] sm:$0xff] %v14499_v26  ;;  %v6541_v46 = vadd.f32 %v14070_v32, %v6470_v63  ;;  %v6473_v5 = vadd.f32 %v6409_v62, %v6345_v59  ;;  %v6344_v51 = vmul.f32 %v16063_v47, %v6249_v30  ;;  %10790 = vmatprep.mubr.msk.f32.mxu0 %vm6617_vm2, %v14499_v26  ;;  %v14518_v42 = vmax.f32 %v6542_v10, 0.0  ;;  %v16069_v59 = vld [vmem:[#allocation70_spill] sm:$0xff]  ;;  %v16070_v30 = vld [vmem:[#allocation145_spill] sm:$0xff] }
 0x60f   : > { %v10701_v21 = vpop.f32.mrf.mxu1  ;;  %10791 = vmatmul.mubr.msk.f32.gmra.mxu0 %vm6617_vm2, %v14502_v25  ;;  %v6410_v44 = vmul.f32 %v16070_v30, %v16069_v59  ;;  %v16071_v25 = vld [vmem:[#allocation68_spill] sm:$0xff]  ;;  %v16072_v10 = vld [vmem:[#allocation65_spill] sm:$0xff] }
 0x610   : > { %v14515_v61 = vmax.f32 %v6541_v46, 0.0  ;;  %v6472_v35 = vadd.f32 %v6408_v23, %v6344_v51  ;;  %v6347_v52 = vmul.f32 %v16067_v36, %v10701_v21  ;;  %16068 = vst [vmem:[#allocation2_spill] sm:$0xff] %v14518_v42  ;;  %v6544_v62 = vadd.f32 %v14070_v32, %v6473_v5  ;;  %v16073_v23 = vld [vmem:[#allocation146_spill] sm:$0xff] }
 0x611   : > { %v6259_v63 = vpop.f32.mrf.mxu1  ;;  %v6413_v51 = vmul.f32 %v16073_v23, %v16072_v10  ;;  %v16083_v10 = vld [vmem:[#allocation59_spill] sm:$0xff] }
 0x612   : > { %16066 = vst [vmem:[#allocation58_spill] sm:$0xff] %v14515_v61  ;;  %v6543_v18 = vadd.f32 %v14070_v32, %v6472_v35  ;;  %v6475_v47 = vadd.f32 %v6411_v55, %v6347_v52  ;;  %v6346_v26 = vmul.f32 %v16071_v25, %v6259_v63  ;;  %10793 = vmatprep.mubr.msk.f32.mxu0 %vm6617_vm2, %v14515_v61  ;;  %v14534_v36 = vmax.f32 %v6544_v62, 0.0  ;;  %v16077_v35 = vld [vmem:[#allocation66_spill] sm:$0xff]  ;;  %v16078_v52 = vld [vmem:[#allocation147_spill] sm:$0xff]  ;;  %v16081_v62 = vld [vmem:[#allocation148_spill] sm:$0xff] }
 0x613   : > { %v10704_v46 = vpop.f32.mrf.mxu1  ;;  %10794 = vmatmul.mubr.msk.f32.gmra.mxu0 %vm6617_vm2, %v14518_v42  ;;  %v6412_v63 = vmul.f32 %v16078_v52, %v16077_v35  ;;  %v16079_v42 = vld [vmem:[#allocation64_spill] sm:$0xff] }
 0x614   : > { %v14531_v5 = vmax.f32 %v6543_v18, 0.0  ;;  %v6474_v21 = vadd.f32 %v6410_v44, %v6346_v26  ;;  %v6349_v24 = vmul.f32 %v16075_v54, %v10704_v46  ;;  %16076 = vst [vmem:[#allocation3_spill] sm:$0xff] %v14534_v36  ;;  %v6546_v55 = vadd.f32 %v14070_v32, %v6475_v47  ;;  %v16080_v26 = vld [vmem:[#allocation61_spill] sm:$0xff] }
 0x615   : > { %v6269_v25 = vpop.f32.mrf.mxu1  ;;  %v6415_v44 = vmul.f32 %v16081_v62, %v16080_v26 }
 0x616   : > { %16074 = vst [vmem:[#allocation79_spill] sm:$0xff] %v14531_v5  ;;  %v6545_v59 = vadd.f32 %v14070_v32, %v6474_v21  ;;  %v6477_v30 = vadd.f32 %v6413_v51, %v6349_v24  ;;  %v6348_v60 = vmul.f32 %v16079_v42, %v6269_v25  ;;  %10796 = vmatprep.mubr.msk.f32.mxu0 %vm6617_vm2, %v14531_v5  ;;  %v14550_v54 = vmax.f32 %v6546_v55, 0.0  ;;  %v16085_v21 = vld [vmem:[#allocation62_spill] sm:$0xff]  ;;  %v16086_v24 = vld [vmem:[#allocation149_spill] sm:$0xff]  ;;  %v16087_v5 = vld [vmem:[#allocation60_spill] sm:$0xff] }
 0x617   : > { %v10707_v18 = vpop.f32.mrf.mxu1  ;;  %10797 = vmatmul.mubr.msk.f32.gmra.mxu0 %vm6617_vm2, %v14534_v36  ;;  %v6414_v25 = vmul.f32 %v16086_v24, %v16085_v21 }
 0x618   : > { %v14547_v47 = vmax.f32 %v6545_v59, 0.0  ;;  %v6476_v46 = vadd.f32 %v6412_v63, %v6348_v60  ;;  %v6351_v23 = vmul.f32 %v16083_v10, %v10707_v18  ;;  %16084 = vst [vmem:[#allocation82_spill] sm:$0xff] %v14550_v54  ;;  %v6548_v51 = vadd.f32 %v14070_v32, %v6477_v30 }
 0x619   : > { %v6279_v42 = vpop.f32.mrf.mxu1 }
 0x61a   : > { %16082 = vst [vmem:[#allocation4_spill] sm:$0xff] %v14547_v47  ;;  %v6547_v35 = vadd.f32 %v14070_v32, %v6476_v46  ;;  %v6479_v52 = vadd.f32 %v6415_v44, %v6351_v23  ;;  %v6350_v36 = vmul.f32 %v16087_v5, %v6279_v42  ;;  %10799 = vmatprep.mubr.msk.f32.mxu0 %vm6617_vm2, %v14547_v47  ;;  %v14563_v63 = vmax.f32 %v6548_v51, 0.0 }
 0x61b   : > { %10800 = vmatmul.mubr.msk.f32.gmra.mxu0 %vm6617_vm2, %v14550_v54 }
 0x61c   : > { %v14561_v60 = vmax.f32 %v6547_v35, 0.0  ;;  %v6478_v55 = vadd.f32 %v6414_v25, %v6350_v36  ;;  %16089 = vst [vmem:[#allocation84_spill] sm:$0xff] %v14563_v63  ;;  %v6550_v59 = vadd.f32 %v14070_v32, %v6479_v52 }
 0x61e   : > { %16088 = vst [vmem:[#allocation81_spill] sm:$0xff] %v14561_v60  ;;  %v6549_v30 = vadd.f32 %v14070_v32, %v6478_v55  ;;  %10802 = vmatprep.mubr.msk.f32.mxu0 %vm6617_vm2, %v14561_v60  ;;  %v14573_v18 = vmax.f32 %v6550_v59, 0.0 }
 0x61f   : > { %10803 = vmatmul.mubr.msk.f32.gmra.mxu0 %vm6617_vm2, %v14563_v63 }
 0x620   : > { %v14571_v5 = vmax.f32 %v6549_v30, 0.0  ;;  %16091 = vst [vmem:[#allocation86_spill] sm:$0xff] %v14573_v18 }
 0x622   : > { %16090 = vst [vmem:[#allocation83_spill] sm:$0xff] %v14571_v5  ;;  %10805 = vmatprep.mubr.msk.f32.mxu0 %vm6617_vm2, %v14571_v5 }
 0x623   : > { %10806 = vmatmul.mubr.msk.f32.gmra.mxu0 %vm6617_vm2, %v14573_v18 }
 0x667   : > { %v10714_v36 = vpop.f32.mrf.mxu0 }
 0x668   : > { %v7196_v44 = vsel %vm6617_vm2, %v10714_v36, 0.0 }
 0x669   : > { %v6876_v26 = vpop.f32.mrf.mxu0 }
 0x66a   : > { %v7195_v32 = vsel %vm6617_vm2, %v6876_v26, 0.0 }
 0x66b   : > { %v10717_v62 = vpop.f32.mrf.mxu0  ;;  %v7197_v46 = vadd.f32 %v7196_v44, %v7195_v32 }
 0x66c   : > { %v7200_v21 = vsel %vm6617_vm2, %v10717_v62, 0.0 }
 0x66d   : > { %v6886_v10 = vpop.f32.mrf.mxu0 }
 0x66e   : > { %v7198_v23 = vsel %vm6617_vm2, %v6886_v10, 0.0 }
 0x66f   : > { %v7199_v51 = vadd.f32 %v7198_v23, %v7197_v46  ;;  %v10720_v42 = vpop.f32.mrf.mxu0 }
 0x670   : > { %v7204_v59 = vsel %vm6617_vm2, %v10720_v42, 0.0 }
 0x671   : > { %v6896_v24 = vpop.f32.mrf.mxu0  ;;  %v7201_v25 = vadd.f32 %v7200_v21, %v7199_v51 }
 0x672   : > { %v7202_v35 = vsel %vm6617_vm2, %v6896_v24, 0.0 }
 0x673   : > { %v7203_v52 = vadd.f32 %v7202_v35, %v7201_v25  ;;  %v10723_v55 = vpop.f32.mrf.mxu0 }
 0x674   : > { %v7208_v10 = vsel %vm6617_vm2, %v10723_v55, 0.0 }
 0x675   : > { %v6906_v30 = vpop.f32.mrf.mxu0  ;;  %v7205_v26 = vadd.f32 %v7204_v59, %v7203_v52 }
 0x676   : > { %v7206_v36 = vsel %vm6617_vm2, %v6906_v30, 0.0 }
 0x677   : > { %v7207_v32 = vadd.f32 %v7206_v36, %v7205_v26  ;;  %v10726_v44 = vpop.f32.mrf.mxu0 }
 0x678   : > { %v7217_v21 = vsel %vm6617_vm2, %v10726_v44, 0.0 }
 0x679   : > { %v7209_v46 = vadd.f32 %v7208_v10, %v7207_v32  ;;  %v6916_v23 = vpop.f32.mrf.mxu0 }
 0x67a   : > { %v7216_v62 = vsel %vm6617_vm2, %v6916_v23, 0.0 }
 0x67b   : > { %v7210_v18 = vrot.slane %v7209_v46, 4  ;;  %v10729_v51 = vpop.f32.mrf.mxu0  ;;  %v7218_v25 = vadd.f32 %v7217_v21, %v7216_v62 }
 0x67c   : > { %v7221_v26 = vsel %vm6617_vm2, %v10729_v51, 0.0 }
 0x67d   : > { %v7211_v24 = vadd.f32 %v7210_v18, %v7209_v46  ;;  %v6926_v35 = vpop.f32.mrf.mxu0 }
 0x67e   : > { %v7219_v42 = vsel %vm6617_vm2, %v6926_v35, 0.0 }
 0x67f   : > { %v7212_v52 = vrot.slane %v7211_v24, 2  ;;  %v7220_v59 = vadd.f32 %v7219_v42, %v7218_v25  ;;  %v10732_v30 = vpop.f32.mrf.mxu0 }
 0x680   : > { %v7225_v44 = vsel %vm6617_vm2, %v10732_v30, 0.0 }
 0x681   : > { %v7213_v36 = vadd.f32 %v7212_v52, %v7211_v24  ;;  %v6936_v55 = vpop.f32.mrf.mxu0  ;;  %v7222_v32 = vadd.f32 %v7221_v26, %v7220_v59 }
 0x682   : > { %v7223_v10 = vsel %vm6617_vm2, %v6936_v55, 0.0 }
 0x683   : > { %v7214_v23 = vrot.slane %v7213_v36, 1  ;;  %v7224_v5 = vadd.f32 %v7223_v10, %v7222_v32  ;;  %v10735_v63 = vpop.f32.mrf.mxu0 }
 0x684   : > { %v7229_v51 = vsel %vm6617_vm2, %v10735_v63, 0.0 }
 0x685   : > { %v7215_v18 = vadd.f32 %v7214_v23, %v7213_v36  ;;  %v6946_v46 = vpop.f32.mrf.mxu0  ;;  %v7226_v62 = vadd.f32 %v7225_v44, %v7224_v5 }
 0x686   : > { %v7227_v21 = vsel %vm6617_vm2, %v6946_v46, 0.0 }
 0x687   : > { %v7364_v35 = vmul.f32 0.015625, %v7215_v18  ;;  %v7228_v25 = vadd.f32 %v7227_v21, %v7226_v62  ;;  %v10738_v42 = vpop.f32.mrf.mxu0 }
 0x688   : > { %v7238_v32 = vsel %vm6617_vm2, %v10738_v42, 0.0 }
 0x689   : > { %10968 = vtanh.f32 %v7364_v35  ;;  %v7230_v24 = vadd.f32 %v7229_v51, %v7228_v25  ;;  %v6956_v52 = vpop.f32.mrf.mxu0 }
 0x68a   : > { %v7237_v59 = vsel %vm6617_vm2, %v6956_v52, 0.0 }
 0x68b   : > { %v7231_v26 = vrot.slane %v7230_v24, 4  ;;  %v10741_v55 = vpop.f32.mrf.mxu0  ;;  %v7239_v36 = vadd.f32 %v7238_v32, %v7237_v59 }
 0x68c   : > { %v7242_v46 = vsel %vm6617_vm2, %v10741_v55, 0.0 }
 0x68d   : > { %v7232_v30 = vadd.f32 %v7231_v26, %v7230_v24  ;;  %v6966_v10 = vpop.f32.mrf.mxu0 }
 0x68e   : > { %v7240_v5 = vsel %vm6617_vm2, %v6966_v10, 0.0 }
 0x68f   : > { %v7233_v23 = vrot.slane %v7232_v30, 2  ;;  %v7241_v44 = vadd.f32 %v7240_v5, %v7239_v36  ;;  %v10744_v18 = vpop.f32.mrf.mxu0 }
 0x690   : > { %v7246_v42 = vsel %vm6617_vm2, %v10744_v18, 0.0 }
 0x691   : > { %v7234_v63 = vadd.f32 %v7233_v23, %v7232_v30  ;;  %v6976_v62 = vpop.f32.mrf.mxu0  ;;  %v7243_v21 = vadd.f32 %v7242_v46, %v7241_v44 }
 0x692   : > { %v7244_v35 = vsel %vm6617_vm2, %v6976_v62, 0.0 }
 0x693   : > { %v7235_v25 = vrot.slane %v7234_v63, 1  ;;  %v7245_v51 = vadd.f32 %v7244_v35, %v7243_v21  ;;  %v10747_v52 = vpop.f32.mrf.mxu0 }
 0x694   : > { %v7250_v23 = vsel %vm6617_vm2, %v10747_v52, 0.0 }
 0x695   : > { %v7236_v24 = vadd.f32 %v7235_v25, %v7234_v63  ;;  %v6986_v59 = vpop.f32.mrf.mxu0  ;;  %v7247_v26 = vadd.f32 %v7246_v42, %v7245_v51 }
 0x696   : > { %v10969_v32 = vpop.eup %10968  ;;  %v7248_v10 = vsel %vm6617_vm2, %v6986_v59, 0.0 }
 0x697   : > { %v7365_v36 = vmul.f32 0.015625, %v7236_v24  ;;  %v7249_v5 = vadd.f32 %v7248_v10, %v7247_v26  ;;  %v10750_v60 = vpop.f32.mrf.mxu0  ;;  %v7381_v55 = vmul.f32 %v10969_v32, %v14086_v11  ;;  %v7380_v30 = vmul.f32 %v10969_v32, %v14083_v6 }
 0x698   : > { %v7383_v44 = vmul.f32 %v10969_v32, %v14102_v28  ;;  %v7382_v46 = vmul.f32 %v10969_v32, %v14099_v38  ;;  %v7259_v42 = vsel %vm6617_vm2, %v10750_v60, 0.0  ;;  %v7385_v24 = vmul.f32 %v10969_v32, %v14118_v39 }
 0x699   : > { %10970 = vtanh.f32 %v7365_v36  ;;  %v7251_v18 = vadd.f32 %v7250_v23, %v7249_v5  ;;  %v6996_v63 = vpop.f32.mrf.mxu0  ;;  %v7447_v62 = vsel %vm6617_vm2, %v7381_v55, 0.0  ;;  %v7444_v21 = vsel %vm6617_vm2, %v7380_v30, 0.0 }
 0x69a   : > { %v7258_v35 = vsel %vm6617_vm2, %v6996_v63, 0.0  ;;  %7448 = vadd.xlane.f32.xlu1 %v7447_v62  ;;  %7445 = vadd.xlane.f32.xlu0 %v7444_v21  ;;  %v7453_v52 = vsel %vm6617_vm2, %v7383_v44, 0.0  ;;  %v7450_v36 = vsel %vm6617_vm2, %v7382_v46, 0.0  ;;  %v7384_v5 = vmul.f32 %v10969_v32, %v14115_v34 }
 0x69b   : > { %v7252_v25 = vrot.slane %v7251_v18, 4  ;;  %v10753_v51 = vpop.f32.mrf.mxu0  ;;  %v7260_v26 = vadd.f32 %v7259_v42, %v7258_v35  ;;  %v7459_v44 = vsel %vm6617_vm2, %v7385_v24, 0.0  ;;  %v7386_v46 = vmul.f32 %v10969_v32, %v14131_v3 }
 0x69c   : > { %v7263_v60 = vsel %vm6617_vm2, %v10753_v51, 0.0  ;;  %v7456_v35 = vsel %vm6617_vm2, %v7384_v5, 0.0  ;;  %v7387_v51 = vmul.f32 %v10969_v32, %v14134_v14 }
 0x69d   : > { %v7253_v59 = vadd.f32 %v7252_v25, %v7251_v18  ;;  %v7006_v10 = vpop.f32.mrf.mxu0 }
 0x69e   : > { %v7261_v55 = vsel %vm6617_vm2, %v7006_v10, 0.0  ;;  %7454 = vadd.xlane.f32.xlu1 %v7453_v52  ;;  %7451 = vadd.xlane.f32.xlu0 %v7450_v36 }
 0x69f   : > { %v7254_v30 = vrot.slane %v7253_v59, 2  ;;  %v7262_v23 = vadd.f32 %v7261_v55, %v7260_v26  ;;  %v10756_v63 = vpop.f32.mrf.mxu0  ;;  %v7462_v55 = vsel %vm6617_vm2, %v7386_v46, 0.0 }
 0x6a0   : > { %v7267_v26 = vsel %vm6617_vm2, %v10756_v63, 0.0  ;;  %v7465_v63 = vsel %vm6617_vm2, %v7387_v51, 0.0 }
 0x6a1   : > { %v7255_v62 = vadd.f32 %v7254_v30, %v7253_v59  ;;  %v7016_v21 = vpop.f32.mrf.mxu0  ;;  %v7264_v18 = vadd.f32 %v7263_v60, %v7262_v23 }
 0x6a2   : > { %v7265_v25 = vsel %vm6617_vm2, %v7016_v21, 0.0  ;;  %7460 = vadd.xlane.f32.xlu1 %v7459_v44  ;;  %7457 = vadd.xlane.f32.xlu0 %v7456_v35 }
 0x6a3   : > { %v7256_v42 = vrot.slane %v7255_v62, 1  ;;  %v7266_v52 = vadd.f32 %v7265_v25, %v7264_v18  ;;  %v10759_v10 = vpop.f32.mrf.mxu0 }
 0x6a4   : > { %v7271_v18 = vsel %vm6617_vm2, %v10759_v10, 0.0 }
 0x6a5   : > { %v7257_v36 = vadd.f32 %v7256_v42, %v7255_v62  ;;  %v7026_v24 = vpop.f32.mrf.mxu0  ;;  %v7268_v59 = vadd.f32 %v7267_v26, %v7266_v52 }
 0x6a6   : > { %v10971_v30 = vpop.eup %10970  ;;  %v7269_v5 = vsel %vm6617_vm2, %v7026_v24, 0.0  ;;  %7463 = vadd.xlane.f32.xlu1 %v7462_v55 }
 0x6a7   : > { %v7366_v23 = vmul.f32 0.015625, %v7257_v36  ;;  %v7270_v60 = vadd.f32 %v7269_v5, %v7268_v59  ;;  %v10762_v44 = vpop.f32.mrf.mxu0  ;;  %v7388_v21 = vmul.f32 %v10971_v30, %v14147_v20  ;;  %v7389_v32 = vmul.f32 %v10971_v30, %v14150_v57 }
 0x6a8   : > { %v7391_v25 = vmul.f32 %v10971_v30, %v14166_v48  ;;  %v7280_v36 = vsel %vm6617_vm2, %v10762_v44, 0.0  ;;  %v7390_v10 = vmul.f32 %v10971_v30, %v14163_v58  ;;  %v7393_v51 = vmul.f32 %v10971_v30, %v14182_v16 }
 0x6a9   : > { %10972 = vtanh.f32 %v7366_v23  ;;  %v7272_v62 = vadd.f32 %v7271_v18, %v7270_v60  ;;  %v7036_v35 = vpop.f32.mrf.mxu0  ;;  %v7468_v46 = vsel %vm6617_vm2, %v7388_v21, 0.0  ;;  %v7471_v5 = vsel %vm6617_vm2, %v7389_v32, 0.0 }
 0x6aa   : > { %v7279_v42 = vsel %vm6617_vm2, %v7036_v35, 0.0  ;;  %7466 = vadd.xlane.f32.xlu1 %v7465_v63  ;;  %7469 = vadd.xlane.f32.xlu0 %v7468_v46  ;;  %v7477_v23 = vsel %vm6617_vm2, %v7391_v25, 0.0  ;;  %v7474_v35 = vsel %vm6617_vm2, %v7390_v10, 0.0  ;;  %v7483_v46 = vsel %vm6617_vm2, %v7393_v51, 0.0 }
 0x6ab   : > { %v7273_v52 = vrot.slane %v7272_v62, 4  ;;  %v10765_v26 = vpop.f32.mrf.mxu0  ;;  %v7281_v59 = vadd.f32 %v7280_v36, %v7279_v42  ;;  %v7392_v32 = vmul.f32 %v10971_v30, %v14179_v4  ;;  %v7394_v25 = vmul.f32 %v10971_v30, %v14195_v29 }
 0x6ac   : > { %v7284_v44 = vsel %vm6617_vm2, %v10765_v26, 0.0  ;;  %v7395_v10 = vmul.f32 %v10971_v30, %v14198_v15 }
 0x6ad   : > { %v7274_v24 = vadd.f32 %v7273_v52, %v7272_v62  ;;  %v7046_v55 = vpop.f32.mrf.mxu0 }
 0x6ae   : > { %v7282_v60 = vsel %vm6617_vm2, %v7046_v55, 0.0  ;;  %7472 = vadd.xlane.f32.xlu1 %v7471_v5  ;;  %7478 = vadd.xlane.f32.xlu0 %v7477_v23 }
 0x6af   : > { %v7275_v21 = vrot.slane %v7274_v24, 2  ;;  %v7283_v18 = vadd.f32 %v7282_v60, %v7281_v59  ;;  %v10768_v63 = vpop.f32.mrf.mxu0  ;;  %v7480_v60 = vsel %vm6617_vm2, %v7392_v32, 0.0 }
 0x6b0   : > { %v7288_v26 = vsel %vm6617_vm2, %v10768_v63, 0.0 }
 0x6b1   : > { %v7276_v62 = vadd.f32 %v7275_v21, %v7274_v24  ;;  %v7056_v42 = vpop.f32.mrf.mxu0  ;;  %v7285_v52 = vadd.f32 %v7284_v44, %v7283_v18  ;;  %v7486_v21 = vsel %vm6617_vm2, %v7394_v25, 0.0 }
 0x6b2   : > { %v7286_v36 = vsel %vm6617_vm2, %v7056_v42, 0.0  ;;  %7475 = vadd.xlane.f32.xlu1 %v7474_v35  ;;  %7484 = vadd.xlane.f32.xlu0 %v7483_v46 }
 0x6b3   : > { %v7277_v55 = vrot.slane %v7276_v62, 1  ;;  %v7287_v59 = vadd.f32 %v7286_v36, %v7285_v52  ;;  %v10771_v5 = vpop.f32.mrf.mxu0 }
 0x6b4   : > { %v7292_v30 = vsel %vm6617_vm2, %v10771_v5, 0.0 }
 0x6b5   : > { %v7278_v23 = vadd.f32 %v7277_v55, %v7276_v62  ;;  %v7066_v51 = vpop.f32.mrf.mxu0  ;;  %v7289_v24 = vadd.f32 %v7288_v26, %v7287_v59  ;;  %v7489_v62 = vsel %vm6617_vm2, %v7395_v10, 0.0 }
 0x6b6   : > { %v14648_v18 = vpop.eup %10972  ;;  %v7290_v44 = vsel %vm6617_vm2, %v7066_v51, 0.0  ;;  %7481 = vadd.xlane.f32.xlu1 %v7480_v60  ;;  %7487 = vadd.xlane.f32.xlu0 %v7486_v21 }
 0x6b7   : > { %v7367_v35 = vmul.f32 0.015625, %v7278_v23  ;;  %v7291_v46 = vadd.f32 %v7290_v44, %v7289_v24  ;;  %v10774_v42 = vpop.f32.mrf.mxu0  ;;  %v7397_v63 = vmul.f32 %v14648_v18, %v14214_v13  ;;  %v7396_v36 = vmul.f32 %v14648_v18, %v14211_v22 }
 0x6b8   : > { %v7301_v23 = vsel %vm6617_vm2, %v10774_v42, 0.0  ;;  %v7398_v60 = vmul.f32 %v14648_v18, %v14227_v17 }
 0x6b9   : > { %10974 = vtanh.f32 %v7367_v35  ;;  %v7293_v52 = vadd.f32 %v7292_v30, %v7291_v46  ;;  %v7076_v32 = vpop.f32.mrf.mxu0  ;;  %v7495_v25 = vsel %vm6617_vm2, %v7397_v63, 0.0  ;;  %v7492_v10 = vsel %vm6617_vm2, %v7396_v36, 0.0 }
 0x6ba   : > { %v7300_v55 = vsel %vm6617_vm2, %v7076_v32, 0.0  ;;  %7490 = vadd.xlane.f32.xlu0 %v7489_v62  ;;  %7496 = vadd.xlane.f32.xlu1 %v7495_v25  ;;  %v7498_v42 = vsel %vm6617_vm2, %v7398_v60, 0.0 }
 0x6bb   : > { %v7294_v59 = vrot.slane %v7293_v52, 4  ;;  %v10777_v26 = vpop.f32.mrf.mxu0  ;;  %v7302_v5 = vadd.f32 %v7301_v23, %v7300_v55 }
 0x6bc   : > { %v7305_v63 = vsel %vm6617_vm2, %v10777_v26, 0.0 }
 0x6bd   : > { %v7295_v51 = vadd.f32 %v7294_v59, %v7293_v52  ;;  %v7086_v24 = vpop.f32.mrf.mxu0  ;;  %v7399_v52 = vmul.f32 %v14648_v18, %v14230_v8 }
 0x6be   : > { %v7303_v21 = vsel %vm6617_vm2, %v7086_v24, 0.0  ;;  %7493 = vadd.xlane.f32.xlu0 %v7492_v10 }
 0x6bf   : > { %v7296_v44 = vrot.slane %v7295_v51, 2  ;;  %v7304_v35 = vadd.f32 %v7303_v21, %v7302_v5  ;;  %v10780_v46 = vpop.f32.mrf.mxu0  ;;  %v7400_v5 = vmul.f32 %v14648_v18, %v14243_v0  ;;  %v7501_v10 = vsel %vm6617_vm2, %v7399_v52, 0.0 }
 0x6c0   : > { %v7309_v23 = vsel %vm6617_vm2, %v10780_v46, 0.0 }
 0x6c1   : > { %v7297_v30 = vadd.f32 %v7296_v44, %v7295_v51  ;;  %v7096_v62 = vpop.f32.mrf.mxu0  ;;  %v7306_v32 = vadd.f32 %v7305_v63, %v7304_v35 }
 0x6c2   : > { %v7307_v25 = vsel %vm6617_vm2, %v7096_v62, 0.0  ;;  %7499 = vadd.xlane.f32.xlu0 %v7498_v42  ;;  %v7504_v62 = vsel %vm6617_vm2, %v7400_v5, 0.0 }
 0x6c3   : > { %v7298_v36 = vrot.slane %v7297_v30, 1  ;;  %v7308_v55 = vadd.f32 %v7307_v25, %v7306_v32  ;;  %v10783_v59 = vpop.f32.mrf.mxu0 }
 0x6c4   : > { %v7313_v46 = vsel %vm6617_vm2, %v10783_v59, 0.0 }
 0x6c5   : > { %v7299_v26 = vadd.f32 %v7298_v36, %v7297_v30  ;;  %v7106_v51 = vpop.f32.mrf.mxu0  ;;  %v7310_v24 = vadd.f32 %v7309_v23, %v7308_v55  ;;  %v7401_v30 = vmul.f32 %v14648_v18, %v14246_v56 }
 0x6c6   : > { %v14673_v60 = vpop.eup %10974  ;;  %v7311_v21 = vsel %vm6617_vm2, %v7106_v51, 0.0  ;;  %7502 = vadd.xlane.f32.xlu0 %v7501_v10 }
 0x6c7   : > { %v7312_v44 = vadd.f32 %v7311_v21, %v7310_v24  ;;  %v10786_v35 = vpop.f32.mrf.mxu0  ;;  %v7405_v63 = vmul.f32 %v14673_v60, %v14278_v43  ;;  %v7368_v32 = vmul.f32 0.015625, %v7299_v26  ;;  %v7406_v36 = vmul.f32 %v14673_v60, %v14291_v19 }
 0x6c8   : > { %v7322_v59 = vsel %vm6617_vm2, %v10786_v35, 0.0  ;;  %v7507_v5 = vsel %vm6617_vm2, %v7401_v30, 0.0  ;;  %v7402_v26 = vmul.f32 %v14648_v18, %v14259_v33  ;;  %v7408_v24 = vmul.f32 %v14673_v60, %v14307_v1 }
 0x6c9   : > { %v7314_v42 = vadd.f32 %v7313_v46, %v7312_v44  ;;  %v7116_v52 = vpop.f32.mrf.mxu0  ;;  %v7519_v25 = vsel %vm6617_vm2, %v7405_v63, 0.0  ;;  %10976 = vtanh.f32 %v7368_v32  ;;  %v7522_v63 = vsel %vm6617_vm2, %v7406_v36, 0.0 }
 0x6ca   : > { %v7321_v55 = vsel %vm6617_vm2, %v7116_v52, 0.0  ;;  %7505 = vadd.xlane.f32.xlu0 %v7504_v62  ;;  %7520 = vadd.xlane.f32.xlu1 %v7519_v25  ;;  %v7510_v25 = vsel %vm6617_vm2, %v7402_v26, 0.0  ;;  %v7403_v1 = vmul.f32 %v14648_v18, %v14262_v27  ;;  %v7409_v36 = vmul.f32 %v14673_v60, %v14310_v49 }
 0x6cb   : > { %v7315_v23 = vrot.slane %v7314_v42, 4  ;;  %v10789_v51 = vpop.f32.mrf.mxu0  ;;  %v7323_v21 = vadd.f32 %v7322_v59, %v7321_v55  ;;  %v7410_v18 = vmul.f32 %v14673_v60, %v14323_v41 }
 0x6cc   : > { %v7326_v30 = vsel %vm6617_vm2, %v10789_v51, 0.0 }
 0x6cd   : > { %v7316_v10 = vadd.f32 %v7315_v23, %v7314_v42  ;;  %v7126_v44 = vpop.f32.mrf.mxu0  ;;  %v7528_v23 = vsel %vm6617_vm2, %v7408_v24, 0.0 }
 0x6ce   : > { %v7324_v46 = vsel %vm6617_vm2, %v7126_v44, 0.0  ;;  %7508 = vadd.xlane.f32.xlu0 %v7507_v5  ;;  %7523 = vadd.xlane.f32.xlu1 %v7522_v63  ;;  %v7513_v44 = vsel %vm6617_vm2, %v7403_v1, 0.0 }
 0x6cf   : > { %v7317_v62 = vrot.slane %v7316_v10, 2  ;;  %v7325_v35 = vadd.f32 %v7324_v46, %v7323_v21  ;;  %v10792_v52 = vpop.f32.mrf.mxu0  ;;  %v7531_v46 = vsel %vm6617_vm2, %v7409_v36, 0.0  ;;  %v7534_v36 = vsel %vm6617_vm2, %v7410_v18, 0.0 }
 0x6d0   : > { %v7330_v26 = vsel %vm6617_vm2, %v10792_v52, 0.0 }
 0x6d1   : > { %v7318_v32 = vadd.f32 %v7317_v62, %v7316_v10  ;;  %v7136_v42 = vpop.f32.mrf.mxu0  ;;  %v7327_v55 = vadd.f32 %v7326_v30, %v7325_v35  ;;  %v7404_v62 = vmul.f32 %v14673_v60, %v14275_v45 }
 0x6d2   : > { %v7328_v59 = vsel %vm6617_vm2, %v7136_v42, 0.0  ;;  %7511 = vadd.xlane.f32.xlu0 %v7510_v25  ;;  %7529 = vadd.xlane.f32.xlu1 %v7528_v23  ;;  %v7411_v42 = vmul.f32 %v14673_v60, %v14326_v31 }
 0x6d3   : > { %v7319_v5 = vrot.slane %v7318_v32, 1  ;;  %v7329_v21 = vadd.f32 %v7328_v59, %v7327_v55  ;;  %v10795_v51 = vpop.f32.mrf.mxu0  ;;  %v7516_v59 = vsel %vm6617_vm2, %v7404_v62, 0.0 }
 0x6d4   : > { %v7334_v1 = vsel %vm6617_vm2, %v10795_v51, 0.0 }
 0x6d5   : > { %v7320_v10 = vadd.f32 %v7319_v5, %v7318_v32  ;;  %v7146_v63 = vpop.f32.mrf.mxu0  ;;  %v7331_v24 = vadd.f32 %v7330_v26, %v7329_v21  ;;  %v7407_v32 = vmul.f32 %v14673_v60, %v14294_v37 }
 0x6d6   : > { %v7332_v35 = vsel %vm6617_vm2, %v7146_v63, 0.0  ;;  %7514 = vadd.xlane.f32.xlu0 %v7513_v44  ;;  %7532 = vadd.xlane.f32.xlu1 %v7531_v46  ;;  %v14717_v5 = vpop.eup %10976 }
 0x6d7   : > { %v7369_v30 = vmul.f32 0.015625, %v7320_v10  ;;  %v7333_v25 = vadd.f32 %v7332_v35, %v7331_v24  ;;  %v10798_v52 = vpop.f32.mrf.mxu0  ;;  %v7537_v10 = vsel %vm6617_vm2, %v7411_v42, 0.0  ;;  %v7525_v60 = vsel %vm6617_vm2, %v7407_v32, 0.0 }
 0x6d8   : > { %v7343_v44 = vsel %vm6617_vm2, %v10798_v52, 0.0  ;;  %v7413_v18 = vmul.f32 %v14717_v5, %v14342_v2  ;;  %v7412_v62 = vmul.f32 %v14717_v5, %v14339_v40  ;;  %v7414_v42 = vmul.f32 %v14717_v5, %v14355_v7 }
 0x6d9   : > { %10978 = vtanh.f32 %v7369_v30  ;;  %v7335_v55 = vadd.f32 %v7334_v1, %v7333_v25  ;;  %v7156_v23 = vpop.f32.mrf.mxu0 }
 0x6da   : > { %v7342_v21 = vsel %vm6617_vm2, %v7156_v23, 0.0  ;;  %7535 = vadd.xlane.f32.xlu1 %v7534_v36  ;;  %7517 = vadd.xlane.f32.xlu0 %v7516_v59  ;;  %v7543_v36 = vsel %vm6617_vm2, %v7413_v18, 0.0  ;;  %v7540_v59 = vsel %vm6617_vm2, %v7412_v62, 0.0 }
 0x6db   : > { %v7336_v51 = vrot.slane %v7335_v55, 4  ;;  %v10801_v26 = vpop.f32.mrf.mxu0  ;;  %v7344_v24 = vadd.f32 %v7343_v44, %v7342_v21 }
 0x6dc   : > { %v7347_v1 = vsel %vm6617_vm2, %v10801_v26, 0.0  ;;  %v7415_v26 = vmul.f32 %v14717_v5, %v14358_v53 }
 0x6dd   : > { %v7337_v63 = vadd.f32 %v7336_v51, %v7335_v55  ;;  %v7166_v46 = vpop.f32.mrf.mxu0 }
 0x6de   : > { %v7345_v35 = vsel %vm6617_vm2, %v7166_v46, 0.0  ;;  %7538 = vadd.xlane.f32.xlu1 %v7537_v10  ;;  %7526 = vadd.xlane.f32.xlu0 %v7525_v60 }
 0x6df   : > { %v7338_v30 = vrot.slane %v7337_v63, 2  ;;  %v7346_v25 = vadd.f32 %v7345_v35, %v7344_v24  ;;  %v10804_v52 = vpop.f32.mrf.mxu0  ;;  %v7546_v35 = vsel %vm6617_vm2, %v7414_v42, 0.0 }
 0x6e0   : > { %v7351_v60 = vsel %vm6617_vm2, %v10804_v52, 0.0 }
 0x6e1   : > { %v7339_v32 = vadd.f32 %v7338_v30, %v7337_v63  ;;  %v7176_v55 = vpop.f32.mrf.mxu0  ;;  %v7348_v23 = vadd.f32 %v7347_v1, %v7346_v25 }
 0x6e2   : > { %v7349_v21 = vsel %vm6617_vm2, %v7176_v55, 0.0  ;;  %7544 = vadd.xlane.f32.xlu0 %v7543_v36  ;;  %7541 = vadd.xlane.f32.xlu1 %v7540_v59  ;;  %v7549_v55 = vsel %vm6617_vm2, %v7415_v26, 0.0 }
 0x6e3   : > { %v7340_v51 = vrot.slane %v7339_v32, 1  ;;  %v7350_v44 = vadd.f32 %v7349_v21, %v7348_v23  ;;  %v10807_v10 = vpop.f32.mrf.mxu0  ;;  %v16092_v23 = vld [vmem:[#allocation151_spill] sm:$0xff] }
 0x6e4   : > { %v7355_v52 = vsel %vm6617_vm2, %v10807_v10, 0.0 }
 0x6e5   : > { %v7341_v24 = vadd.f32 %v7340_v51, %v7339_v32  ;;  %v7186_v63 = vpop.f32.mrf.mxu0  ;;  %v7352_v46 = vadd.f32 %v7351_v60, %v7350_v44  ;;  %v7416_v32 = vmul.f32 %v14717_v5, %v16092_v23  ;;  %v16093_v60 = vld [vmem:[#allocation152_spill] sm:$0xff] }
 0x6e6   : > { %v14738_v18 = vpop.eup %10978  ;;  %v7353_v62 = vsel %vm6617_vm2, %v7186_v63, 0.0  ;;  %7547 = vadd.xlane.f32.xlu1 %v7546_v35  ;;  %v7417_v26 = vmul.f32 %v14717_v5, %v16093_v60  ;;  %v16095_v35 = vld [vmem:[#allocation153_spill] sm:$0xff] }
 0x6e7   : > { %v7370_v30 = vmul.f32 0.015625, %v7341_v24  ;;  %v7354_v25 = vadd.f32 %v7353_v62, %v7352_v46  ;;  %v7420_v1 = vmul.f32 %v14738_v18, %v14403_v12  ;;  %v7423_v59 = vmul.f32 %v14738_v18, %v14422_v9  ;;  %v16094_v24 = vld [vmem:[#allocation9_spill] sm:$0xff] }
 0x6e8   : > { %v7552_v51 = vsel %vm6617_vm2, %v7416_v32, 0.0  ;;  %v7424_v63 = vmul.f32 %v14738_v18, %v16094_v24  ;;  %v7418_v62 = vmul.f32 %v14717_v5, %v16095_v35 }
 0x6e9   : > { %10980 = vtanh.f32 %v7370_v30  ;;  %v7356_v36 = vadd.f32 %v7355_v52, %v7354_v25  ;;  %v7564_v42 = vsel %vm6617_vm2, %v7420_v1, 0.0  ;;  %v7573_v10 = vsel %vm6617_vm2, %v7423_v59, 0.0  ;;  %v16096_v52 = vld [vmem:[#allocation71_spill] sm:$0xff] }
 0x6ea   : > { %7550 = vadd.xlane.f32.xlu1 %v7549_v55  ;;  %7565 = vadd.xlane.f32.xlu0 %v7564_v42  ;;  %v7555_v25 = vsel %vm6617_vm2, %v7417_v26, 0.0  ;;  %v7576_v1 = vsel %vm6617_vm2, %v7424_v63, 0.0  ;;  %v7425_v55 = vmul.f32 %v14738_v18, %v16096_v52 }
 0x6eb   : > { %v7357_v21 = vrot.slane %v7356_v36, 4 }
 0x6ed   : > { %v7358_v44 = vadd.f32 %v7357_v21, %v7356_v36  ;;  %v16097_v36 = vld [vmem:[#allocation7_spill] sm:$0xff]  ;;  %v7558_v21 = vsel %vm6617_vm2, %v7418_v62, 0.0 }
 0x6ee   : > { %7553 = vadd.xlane.f32.xlu1 %v7552_v51  ;;  %7574 = vadd.xlane.f32.xlu0 %v7573_v10  ;;  %v7421_v42 = vmul.f32 %v14738_v18, %v16097_v36  ;;  %v7579_v51 = vsel %vm6617_vm2, %v7425_v55, 0.0  ;;  %v16098_v10 = vld [vmem:[#allocation74_spill] sm:$0xff] }
 0x6ef   : > { %v7359_v46 = vrot.slane %v7358_v44, 2 }
 0x6f1   : > { %v7360_v30 = vadd.f32 %v7359_v46, %v7358_v44  ;;  %v7426_v44 = vmul.f32 %v14738_v18, %v16098_v10  ;;  %v7567_v46 = vsel %vm6617_vm2, %v7421_v42, 0.0  ;;  %v16101_v10 = vld [vmem:[#allocation75_spill] sm:$0xff] }
 0x6f2   : > { %7556 = vadd.xlane.f32.xlu1 %v7555_v25  ;;  %7577 = vadd.xlane.f32.xlu0 %v7576_v1  ;;  %v16099_v1 = vld [vmem:[#allocation8_spill] sm:$0xff] }
 0x6f3   : > { %v7361_v32 = vrot.slane %v7360_v30, 1  ;;  %v7582_v25 = vsel %vm6617_vm2, %v7426_v44, 0.0  ;;  %v7422_v52 = vmul.f32 %v14738_v18, %v16099_v1 }
 0x6f5   : > { %v7362_v59 = vadd.f32 %v7361_v32, %v7360_v30  ;;  %v16100_v30 = vld [vmem:[#allocation76_spill] sm:$0xff]  ;;  %v7570_v62 = vsel %vm6617_vm2, %v7422_v52, 0.0 }
 0x6f6   : > { %v10981_v26 = vpop.eup %10980  ;;  %7559 = vadd.xlane.f32.xlu1 %v7558_v21  ;;  %7580 = vadd.xlane.f32.xlu0 %v7579_v51 }
 0x6f7   : > { %v7371_v63 = vmul.f32 0.015625, %v7362_v59  ;;  %v7428_v32 = vmul.f32 %v10981_v26, %v16100_v30  ;;  %v7429_v21 = vmul.f32 %v10981_v26, %v16101_v10  ;;  %v7430_v59 = vmul.f32 %v10981_v26, %v14483_v50 }
 0x6f8   : > { %v7434_v44 = vmul.f32 %v10981_v26, %v14515_v61  ;;  %v16105_v61 = vld [vmem:[#allocation80_spill] sm:$0xff] }
 0x6f9   : > { %10982 = vtanh.f32 %v7371_v63  ;;  %v7588_v55 = vsel %vm6617_vm2, %v7428_v32, 0.0  ;;  %v7591_v42 = vsel %vm6617_vm2, %v7429_v21, 0.0  ;;  %v7594_v51 = vsel %vm6617_vm2, %v7430_v59, 0.0  ;;  %v16102_v63 = vld [vmem:[#allocation77_spill] sm:$0xff] }
 0x6fa   : > { %7568 = vadd.xlane.f32.xlu1 %v7567_v46  ;;  %7583 = vadd.xlane.f32.xlu0 %v7582_v25  ;;  %v7431_v30 = vmul.f32 %v10981_v26, %v16102_v63  ;;  %v7606_v52 = vsel %vm6617_vm2, %v7434_v44, 0.0  ;;  %v16103_v25 = vld [vmem:[#allocation5_spill] sm:$0xff]  ;;  %v7433_v50 = vmul.f32 %v10981_v26, %v16105_v61  ;;  %v16108_v63 = vld [vmem:[#allocation6_spill] sm:$0xff] }
 0x6fb   : > { %v7432_v32 = vmul.f32 %v10981_v26, %v16103_v25  ;;  %v16107_v25 = vld [vmem:[#allocation81_spill] sm:$0xff] }
 0x6fc   : > { %v7597_v46 = vsel %vm6617_vm2, %v7431_v30, 0.0 }
 0x6fd   : > { %v7600_v21 = vsel %vm6617_vm2, %v7432_v32, 0.0 }
 0x6fe   : > { %7571 = vadd.xlane.f32.xlu1 %v7570_v62  ;;  %7589 = vadd.xlane.f32.xlu0 %v7588_v55  ;;  %v16104_v62 = vld [vmem:[#allocation3_spill] sm:$0xff] }
 0x702   : > { %7592 = vadd.xlane.f32.xlu1 %v7591_v42  ;;  %7595 = vadd.xlane.f32.xlu0 %v7594_v51  ;;  %v7603_v51 = vsel %vm6617_vm2, %v7433_v50, 0.0 }
 0x706   : > { %v10983_v10 = vpop.eup %10982  ;;  %7607 = vadd.xlane.f32.xlu1 %v7606_v52  ;;  %7598 = vadd.xlane.f32.xlu0 %v7597_v46  ;;  %v16106_v52 = vld [vmem:[#allocation79_spill] sm:$0xff] }
 0x707   : > { %v7437_v55 = vmul.f32 %v10983_v10, %v16104_v62  ;;  %v7438_v42 = vmul.f32 %v10983_v10, %v14547_v47  ;;  %v7439_v44 = vmul.f32 %v10983_v10, %v14550_v54  ;;  %v7436_v46 = vmul.f32 %v10983_v10, %v16106_v52  ;;  %v16110_v47 = vld [vmem:[#allocation73_spill] sm:$0xff] }
 0x708   : > { %v7440_v61 = vmul.f32 %v10983_v10, %v16107_v25 }
 0x709   : > { %v7615_v59 = vsel %vm6617_vm2, %v7437_v55, 0.0  ;;  %v7618_v30 = vsel %vm6617_vm2, %v7438_v42, 0.0  ;;  %v7621_v32 = vsel %vm6617_vm2, %v7439_v44, 0.0  ;;  %v7612_v55 = vsel %vm6617_vm2, %v7436_v46, 0.0  ;;  %v16109_v42 = vld [vmem:[#allocation84_spill] sm:$0xff]  ;;  %v16111_v46 = vld [vmem:[#allocation83_spill] sm:$0xff] }
 0x70a   : > { %7601 = vadd.xlane.f32.xlu0 %v7600_v21  ;;  %7616 = vadd.xlane.f32.xlu1 %v7615_v59  ;;  %v7419_v21 = vmul.f32 %v14717_v5, %v16108_v63  ;;  %v7624_v50 = vsel %vm6617_vm2, %v7440_v61, 0.0  ;;  %v7441_v54 = vmul.f32 %v10983_v10, %v16109_v42  ;;  %v7442_v25 = vmul.f32 %v10983_v10, %v16111_v46  ;;  %v16112_v5 = vld [vmem:[#allocation2_spill] sm:$0xff] }
 0x70c   : > { %v7561_v59 = vsel %vm6617_vm2, %v7419_v21, 0.0  ;;  %v7630_v61 = vsel %vm6617_vm2, %v7442_v25, 0.0  ;;  %v16113_v21 = vld [vmem:[#allocation86_spill] sm:$0xff] }
 0x70d   : > { %v7443_v42 = vmul.f32 %v10983_v10, %v16113_v21 }
 0x70e   : > { %7604 = vadd.xlane.f32.xlu0 %v7603_v51  ;;  %7619 = vadd.xlane.f32.xlu1 %v7618_v30  ;;  %v7427_v51 = vmul.f32 %v14738_v18, %v16110_v47  ;;  %v7627_v30 = vsel %vm6617_vm2, %v7441_v54, 0.0 }
 0x70f   : > { %v7633_v18 = vsel %vm6617_vm2, %v7443_v42, 0.0 }
 0x710   : > { %v7585_v44 = vsel %vm6617_vm2, %v7427_v51, 0.0 }
 0x712   : > { %7622 = vadd.xlane.f32.xlu1 %v7621_v32  ;;  %7613 = vadd.xlane.f32.xlu0 %v7612_v55  ;;  %v7435_v32 = vmul.f32 %v10981_v26, %v16112_v5 }
 0x714   : > { %v7609_v55 = vsel %vm6617_vm2, %v7435_v32, 0.0 }
 0x716   : > { %7625 = vadd.xlane.f32.xlu1 %v7624_v50  ;;  %7562 = vadd.xlane.f32.xlu0 %v7561_v59 }
 0x71a   : > { %7628 = vadd.xlane.f32.xlu1 %v7627_v30  ;;  %7586 = vadd.xlane.f32.xlu0 %v7585_v44 }
 0x71e   : > { %7631 = vadd.xlane.f32.xlu1 %v7630_v61  ;;  %7610 = vadd.xlane.f32.xlu0 %v7609_v55 }
 0x722   : > { %7634 = vadd.xlane.f32.xlu1 %v7633_v18 }
 0x723   : > { %v7449_v54 = vpop.xlane.xlu1 %7448  ;;  %v7446_v50 = vpop.xlane.xlu0 %7445 }
 0x724   : > { %v8981_v59 = vmul.f32 -1.442695, %v7449_v54  ;;  %v8980_v51 = vmul.f32 -1.442695, %v7446_v50 }
 0x726   : > { %10984 = vpow2.f32 %v8981_v59 }
 0x727   : > { %10986 = vpow2.f32 %v8980_v51  ;;  %v7455_v26 = vpop.xlane.xlu1 %7454  ;;  %v7452_v30 = vpop.xlane.xlu0 %7451 }
 0x728   : > { %v8983_v44 = vmul.f32 -1.442695, %v7455_v26  ;;  %v8982_v5 = vmul.f32 -1.442695, %v7452_v30 }
 0x72a   : > { %10988 = vpow2.f32 %v8983_v44 }
 0x72b   : > { %10990 = vpow2.f32 %v8982_v5  ;;  %v7461_v25 = vpop.xlane.xlu1 %7460  ;;  %v7458_v32 = vpop.xlane.xlu0 %7457 }
 0x72c   : > { %v8985_v10 = vmul.f32 -1.442695, %v7461_v25  ;;  %v8984_v61 = vmul.f32 -1.442695, %v7458_v32 }
 0x72e   : > { %10992 = vpow2.f32 %v8985_v10 }
 0x72f   : > { %10994 = vpow2.f32 %v8984_v61  ;;  %v7464_v42 = vpop.xlane.xlu1 %7463 }
 0x730   : > { %v8986_v55 = vmul.f32 -1.442695, %v7464_v42 }
 0x732   : > { %10996 = vpow2.f32 %v8986_v55 }
 0x733   : > { %v10985_v18 = vpop.eup %10984  ;;  %v7467_v54 = vpop.xlane.xlu1 %7466 }
 0x734   : > { %v7470_v50 = vpop.xlane.xlu0 %7469  ;;  %v10987_v59 = vpop.eup %10986  ;;  %v7829_v51 = vadd.f32 1.0, %v10985_v18  ;;  %v8987_v21 = vmul.f32 -1.442695, %v7467_v54 }
 0x735   : > { %v7828_v46 = vadd.f32 1.0, %v10987_v59  ;;  %v8988_v26 = vmul.f32 -1.442695, %v7470_v50 }
 0x736   : > { %10998 = vrcp.f32 %v7829_v51 }
 0x737   : > { %v10989_v30 = vpop.eup %10988  ;;  %11000 = vrcp.f32 %v7828_v46  ;;  %v7473_v5 = vpop.xlane.xlu1 %7472 }
 0x738   : > { %v7479_v44 = vpop.xlane.xlu0 %7478  ;;  %v10991_v25 = vpop.eup %10990  ;;  %v7831_v32 = vadd.f32 1.0, %v10989_v30  ;;  %11002 = vpow2.f32 %v8987_v21  ;;  %v8989_v10 = vmul.f32 -1.442695, %v7473_v5 }
 0x739   : > { %v7830_v61 = vadd.f32 1.0, %v10991_v25  ;;  %11004 = vpow2.f32 %v8988_v26  ;;  %v8991_v42 = vmul.f32 -1.442695, %v7479_v44 }
 0x73a   : > { %11006 = vrcp.f32 %v7831_v32 }
 0x73b   : > { %v10993_v55 = vpop.eup %10992  ;;  %11008 = vrcp.f32 %v7830_v61  ;;  %v7476_v47 = vpop.xlane.xlu1 %7475 }
 0x73c   : > { %v7485_v18 = vpop.xlane.xlu0 %7484  ;;  %v10995_v54 = vpop.eup %10994  ;;  %v7833_v59 = vadd.f32 1.0, %v10993_v55  ;;  %11010 = vpow2.f32 %v8989_v10  ;;  %v8990_v50 = vmul.f32 -1.442695, %v7476_v47 }
 0x73d   : > { %v7832_v51 = vadd.f32 1.0, %v10995_v54  ;;  %11012 = vpow2.f32 %v8991_v42  ;;  %v8993_v46 = vmul.f32 -1.442695, %v7485_v18 }
 0x73e   : > { %11014 = vrcp.f32 %v7833_v59 }
 0x73f   : > { %v10997_v63 = vpop.eup %10996  ;;  %11016 = vrcp.f32 %v7832_v51  ;;  %v7482_v21 = vpop.xlane.xlu1 %7481 }
 0x740   : > { %v7488_v30 = vpop.xlane.xlu0 %7487  ;;  %v7834_v5 = vadd.f32 1.0, %v10997_v63  ;;  %11018 = vpow2.f32 %v8990_v50  ;;  %v8992_v26 = vmul.f32 -1.442695, %v7482_v21 }
 0x741   : > { %v8994_v44 = vmul.f32 -1.442695, %v7488_v30  ;;  %11020 = vpow2.f32 %v8993_v46 }
 0x742   : > { %11022 = vrcp.f32 %v7834_v5 }
 0x743   : > { %v10999_v25 = vpop.eup %10998  ;;  %11024 = vpow2.f32 %v8992_v26  ;;  %v7497_v61 = vpop.xlane.xlu1 %7496 }
 0x744   : > { %v7491_v32 = vpop.xlane.xlu0 %7490  ;;  %v11001_v10 = vpop.eup %11000  ;;  %v8021_v47 = vmul.f32 %v10999_v25, %v14086_v11  ;;  %11026 = vpow2.f32 %v8994_v44  ;;  %v8997_v55 = vmul.f32 -1.442695, %v7497_v61 }
 0x745   : > { %v8995_v42 = vmul.f32 -1.442695, %v7491_v32  ;;  %v11003_v18 = vpop.eup %11002  ;;  %v8020_v54 = vmul.f32 %v11001_v10, %v14083_v6 }
 0x746   : > { %v11005_v59 = vpop.eup %11004  ;;  %v8085_v63 = vsel %vm6617_vm2, %v8021_v47, 0.0  ;;  %v7835_v50 = vadd.f32 1.0, %v11003_v18 }
 0x747   : > { %11028 = vpow2.f32 %v8995_v42  ;;  %v11007_v51 = vpop.eup %11006  ;;  %v8084_v46 = vsel %vm6617_vm2, %v8020_v54, 0.0  ;;  %v7836_v21 = vadd.f32 1.0, %v11005_v59 }
 0x748   : > { %11030 = vpow2.f32 %v8997_v55  ;;  %v7494_v30 = vpop.xlane.xlu0 %7493  ;;  %v11009_v5 = vpop.eup %11008  ;;  %v8086_v26 = vadd.f32 %v8085_v63, %v8084_v46  ;;  %v8023_v25 = vmul.f32 %v11007_v51, %v14102_v28 }
 0x749   : > { %11032 = vrcp.f32 %v7835_v50  ;;  %v8996_v11 = vmul.f32 -1.442695, %v7494_v30  ;;  %v11011_v44 = vpop.eup %11010  ;;  %v8022_v6 = vmul.f32 %v11009_v5, %v14099_v38 }
 0x74a   : > { %11034 = vrcp.f32 %v7836_v21  ;;  %v11013_v32 = vpop.eup %11012  ;;  %v7837_v61 = vadd.f32 1.0, %v11011_v44  ;;  %v8089_v50 = vsel %vm6617_vm2, %v8023_v25, 0.0 }
 0x74b   : > { %11036 = vpow2.f32 %v8996_v11  ;;  %v11015_v10 = vpop.eup %11014  ;;  %v8087_v47 = vsel %vm6617_vm2, %v8022_v6, 0.0  ;;  %v7839_v42 = vadd.f32 1.0, %v11013_v32 }
 0x74c   : > { %v7500_v18 = vpop.xlane.xlu0 %7499  ;;  %v11017_v55 = vpop.eup %11016  ;;  %v8088_v54 = vadd.f32 %v8087_v47, %v8086_v26  ;;  %11038 = vrcp.f32 %v7837_v61  ;;  %v8025_v28 = vmul.f32 %v11015_v10, %v14118_v39 }
 0x74d   : > { %v8998_v59 = vmul.f32 -1.442695, %v7500_v18  ;;  %v11019_v63 = vpop.eup %11018  ;;  %v8024_v38 = vmul.f32 %v11017_v55, %v14115_v34  ;;  %11040 = vrcp.f32 %v7839_v42 }
 0x74e   : > { %v11021_v51 = vpop.eup %11020  ;;  %v8090_v46 = vadd.f32 %v8089_v50, %v8088_v54  ;;  %v7838_v21 = vadd.f32 1.0, %v11019_v63  ;;  %v8093_v39 = vsel %vm6617_vm2, %v8025_v28, 0.0 }
 0x74f   : > { %11042 = vpow2.f32 %v8998_v59  ;;  %v11023_v30 = vpop.eup %11022  ;;  %v8091_v5 = vsel %vm6617_vm2, %v8024_v38, 0.0  ;;  %v7841_v11 = vadd.f32 1.0, %v11021_v51 }
 0x750   : > { %v7503_v44 = vpop.xlane.xlu0 %7502  ;;  %v11025_v26 = vpop.eup %11024  ;;  %v8092_v6 = vadd.f32 %v8091_v5, %v8090_v46  ;;  %v8026_v32 = vmul.f32 %v11023_v30, %v14131_v3  ;;  %11044 = vrcp.f32 %v7838_v21 }
 0x751   : > { %v8999_v25 = vmul.f32 -1.442695, %v7503_v44  ;;  %v11027_v61 = vpop.eup %11026  ;;  %11046 = vrcp.f32 %v7841_v11  ;;  %v7840_v34 = vadd.f32 1.0, %v11025_v26 }
 0x752   : > { %v8094_v10 = vadd.f32 %v8093_v39, %v8092_v6  ;;  %v8095_v47 = vsel %vm6617_vm2, %v8026_v32, 0.0  ;;  %v7842_v42 = vadd.f32 1.0, %v11027_v61 }
 0x753   : > { %11048 = vpow2.f32 %v8999_v25  ;;  %v7521_v54 = vpop.xlane.xlu1 %7520 }
 0x754   : > { %v11029_v18 = vpop.eup %11028  ;;  %11050 = vrcp.f32 %v7840_v34  ;;  %v7506_v55 = vpop.xlane.xlu0 %7505  ;;  %v8096_v63 = vadd.f32 %v8095_v47, %v8094_v10  ;;  %v9005_v5 = vmul.f32 -1.442695, %v7521_v54  ;;  %v8252_v54 = vld [vmem:[%s15039_s9] sm:$0xff] }
 0x755   : > { %v11031_v59 = vpop.eup %11030  ;;  %11052 = vrcp.f32 %v7842_v42  ;;  %v7843_v3 = vadd.f32 1.0, %v11029_v18  ;;  %v9000_v50 = vmul.f32 -1.442695, %v7506_v55  ;;  %v11434_v55 = vmov 0.0  }
 0x756   : > { %v11033_v38 = vpop.eup %11032  ;;  %v7845_v51 = vadd.f32 1.0, %v11031_v59  ;;  %10808 = vmatprep.subr.mxu1 %v11434_v55  ;;  %10812 = vmatprep.mubr.msk.f32.mxu1 %vm11435_vm3, %v11434_v55 }
 0x757   : > { %v11035_v46 = vpop.eup %11034  ;;  %v8027_v28 = vmul.f32 %v11033_v38, %v14134_v14  ;;  %11054 = vrcp.f32 %v7843_v3  ;;  %v7524_v44 = vpop.xlane.xlu1 %7523  ;;  %v8253_v14 = vld [vmem:[%s15039_s9 + $0x8] sm:$0xff] }
 0x758   : > { %v11037_v21 = vpop.eup %11036  ;;  %v8028_v30 = vmul.f32 %v11035_v46, %v14147_v20  ;;  %11056 = vrcp.f32 %v7845_v51  ;;  %v7509_v11 = vpop.xlane.xlu0 %7508  ;;  %v9006_v39 = vmul.f32 -1.442695, %v7524_v44  ;;  %10809 = vmatpush3.msra.mxu1 %v8253_v14 }
 0x759   : > { %v8097_v26 = vsel %vm6617_vm2, %v8027_v28, 0.0  ;;  %v7844_v6 = vadd.f32 1.0, %v11037_v21  ;;  %11058 = vpow2.f32 %v9000_v50  ;;  %v9001_v32 = vmul.f32 -1.442695, %v7509_v11  ;;  %v11039_v25 = vpop.eup %11038  ;;  %10810 = vmatprep.subr.mxu1 %v11434_v55 }
 0x75a   : > { %v14828_v61 = vadd.f32 %v8097_v26, %v8096_v63  ;;  %v11041_v34 = vpop.eup %11040  ;;  %v8029_v20 = vmul.f32 %v11039_v25, %v14150_v57  ;;  %v8105_v47 = vsel %vm6617_vm2, %v8028_v30, 0.0  ;;  %10811 = vmatpush3.msra.mxu1 %v8252_v54 }
 0x75b   : > { %11060 = vrcp.f32 %v7844_v6  ;;  %v7530_v18 = vpop.xlane.xlu1 %7529  ;;  %v8031_v46 = vmul.f32 %v11041_v34, %v14166_v48  ;;  %10815 = vmatprep.subr.mxu1 %v11434_v55 }
 0x75c   : > { %v11043_v10 = vpop.eup %11042  ;;  %11062 = vpow2.f32 %v9001_v32  ;;  %v7512_v42 = vpop.xlane.xlu0 %7511  ;;  %v8106_v57 = vsel %vm6617_vm2, %v8029_v20, 0.0  ;;  %v9008_v38 = vmul.f32 -1.442695, %v7530_v18  ;;  %v8099_v20 = vrot.slane %v14828_v61, 4 }
 0x75d   : > { %v7846_v59 = vadd.f32 1.0, %v11043_v10  ;;  %11064 = vpow2.f32 %v9005_v5  ;;  %v9002_v63 = vmul.f32 -1.442695, %v7512_v42  ;;  %v11045_v3 = vpop.eup %11044  ;;  %v8107_v50 = vadd.f32 %v8106_v57, %v8105_v47 }
 0x75e   : > { %11066 = vpow2.f32 %v9006_v39  ;;  %v11047_v51 = vpop.eup %11046  ;;  %v8030_v28 = vmul.f32 %v11045_v3, %v14163_v58  ;;  %v8110_v58 = vsel %vm6617_vm2, %v8031_v46, 0.0 }
 0x75f   : > { %11068 = vrcp.f32 %v7846_v59  ;;  %v7533_v11 = vpop.xlane.xlu1 %7532  ;;  %v8033_v39 = vmul.f32 %v11047_v51, %v14182_v16 }
 0x760   : > { %v11049_v21 = vpop.eup %11048  ;;  %11070 = vpow2.f32 %v9002_v63  ;;  %v7515_v30 = vpop.xlane.xlu0 %7514  ;;  %v8108_v44 = vsel %vm6617_vm2, %v8030_v28, 0.0  ;;  %v9009_v14 = vmul.f32 -1.442695, %v7533_v11  ;;  %v8100_v28 = vadd.f32 %v8099_v20, %v14828_v61 }
 0x761   : > { %v11051_v5 = vpop.eup %11050  ;;  %v7847_v26 = vadd.f32 1.0, %v11049_v21  ;;  %v9003_v6 = vmul.f32 -1.442695, %v7515_v30  ;;  %v8109_v25 = vadd.f32 %v8108_v44, %v8107_v50  ;;  %11072 = vpow2.f32 %v9008_v38 }
 0x762   : > { %v11053_v32 = vpop.eup %11052  ;;  %v8032_v48 = vmul.f32 %v11051_v5, %v14179_v4  ;;  %v8114_v4 = vsel %vm6617_vm2, %v8033_v39, 0.0 }
 0x763   : > { %11074 = vrcp.f32 %v7847_v26  ;;  %v8111_v10 = vadd.f32 %v8110_v58, %v8109_v25  ;;  %v7536_v42 = vpop.xlane.xlu1 %7535  ;;  %v8034_v57 = vmul.f32 %v11053_v32, %v14195_v29 }
 0x764   : > { %v11055_v34 = vpop.eup %11054  ;;  %v8112_v47 = vsel %vm6617_vm2, %v8032_v48, 0.0  ;;  %11076 = vpow2.f32 %v9003_v6  ;;  %v7518_v18 = vpop.xlane.xlu0 %7517  ;;  %v9010_v16 = vmul.f32 -1.442695, %v7536_v42 }
 0x765   : > { %v11057_v54 = vpop.eup %11056  ;;  %v8113_v63 = vadd.f32 %v8112_v47, %v8111_v10  ;;  %11078 = vpow2.f32 %v9009_v14  ;;  %v9004_v3 = vmul.f32 -1.442695, %v7518_v18  ;;  %v8035_v50 = vmul.f32 %v11055_v34, %v14198_v15 }
 0x766   : > { %v11059_v59 = vpop.eup %11058  ;;  %v8037_v38 = vmul.f32 %v11057_v54, %v14214_v13  ;;  %11080 = vpow2.f32 %v9010_v16  ;;  %v8116_v5 = vsel %vm6617_vm2, %v8034_v57, 0.0 }
 0x767   : > { %v7848_v51 = vadd.f32 1.0, %v11059_v59  ;;  %v8115_v21 = vadd.f32 %v8114_v4, %v8113_v63  ;;  %11082 = vpow2.f32 %v9004_v3  ;;  %v7539_v30 = vpop.xlane.xlu1 %7538  ;;  %v8118_v39 = vsel %vm6617_vm2, %v8035_v50, 0.0 }
 0x768   : > { %v11061_v46 = vpop.eup %11060  ;;  %v7527_v29 = vpop.xlane.xlu0 %7526  ;;  %v9011_v26 = vmul.f32 -1.442695, %v7539_v30  ;;  %v8127_v61 = vsel %vm6617_vm2, %v8037_v38, 0.0 }
 0x769   : > { %v11063_v11 = vpop.eup %11062  ;;  %v8036_v44 = vmul.f32 %v11061_v46, %v14211_v22  ;;  %11084 = vrcp.f32 %v7848_v51  ;;  %v8117_v15 = vadd.f32 %v8116_v5, %v8115_v21  ;;  %v9007_v13 = vmul.f32 -1.442695, %v7527_v29 }
 0x76a   : > { %v11065_v6 = vpop.eup %11064  ;;  %v7849_v32 = vadd.f32 1.0, %v11063_v11  ;;  %v8101_v22 = vrot.slane %v8100_v28, 2 }
 0x76b   : > { %v11067_v25 = vpop.eup %11066  ;;  %v8126_v48 = vsel %vm6617_vm2, %v8036_v44, 0.0  ;;  %v8119_v14 = vadd.f32 %v8118_v39, %v8117_v15  ;;  %v7542_v20 = vpop.xlane.xlu1 %7541  ;;  %v7853_v18 = vadd.f32 1.0, %v11065_v6 }
 0x76c   : > { %v11069_v58 = vpop.eup %11068  ;;  %v8128_v34 = vadd.f32 %v8127_v61, %v8126_v48  ;;  %11086 = vrcp.f32 %v7849_v32  ;;  %v7545_v57 = vpop.xlane.xlu0 %7544  ;;  %v7854_v4 = vadd.f32 1.0, %v11067_v25  ;;  %v8102_v46 = vadd.f32 %v8101_v22, %v8100_v28 }
 0x76d   : > { %v11071_v10 = vpop.eup %11070  ;;  %v8038_v47 = vmul.f32 %v11069_v58, %v14227_v17  ;;  %11088 = vpow2.f32 %v9011_v26  ;;  %v8120_v42 = vrot.slane %v8119_v14, 4  ;;  %v9013_v17 = vmul.f32 -1.442695, %v7545_v57 }
 0x76e   : > { %v7850_v54 = vadd.f32 1.0, %v11071_v10  ;;  %11090 = vpow2.f32 %v9007_v13  ;;  %v11073_v16 = vpop.eup %11072  ;;  %v9012_v26 = vmul.f32 -1.442695, %v7542_v20  ;;  %v8103_v28 = vrot.slane %v8102_v46, 1 }
 0x76f   : > { %v8129_v59 = vsel %vm6617_vm2, %v8038_v47, 0.0  ;;  %v8121_v3 = vadd.f32 %v8120_v42, %v8119_v14  ;;  %v7548_v38 = vpop.xlane.xlu1 %7547  ;;  %v7856_v29 = vadd.f32 1.0, %v11073_v16 }
 0x770   : > { %v11075_v63 = vpop.eup %11074  ;;  %v8130_v50 = vadd.f32 %v8129_v59, %v8128_v34  ;;  %11092 = vrcp.f32 %v7850_v54  ;;  %v8104_v54 = vadd.f32 %v8103_v28, %v8102_v46 }
 0x771   : > { %v11077_v51 = vpop.eup %11076  ;;  %v8039_v21 = vmul.f32 %v11075_v63, %v14230_v8  ;;  %v8122_v30 = vrot.slane %v8121_v3, 2  ;;  %11094 = vrcp.f32 %v7853_v18  ;;  %v9014_v8 = vmul.f32 -1.442695, %v7548_v38 }
 0x772   : > { %v7851_v11 = vadd.f32 1.0, %v11077_v51  ;;  %v11079_v5 = vpop.eup %11078  ;;  %11096 = vrcp.f32 %v7854_v4 }
 0x773   : > { %v8131_v44 = vsel %vm6617_vm2, %v8039_v21, 0.0  ;;  %v11081_v6 = vpop.eup %11080  ;;  %v8123_v15 = vadd.f32 %v8122_v30, %v8121_v3  ;;  %v7551_v13 = vpop.xlane.xlu1 %7550  ;;  %v7857_v58 = vadd.f32 1.0, %v11079_v5 }
 0x774   : > { %v8132_v32 = vadd.f32 %v8131_v44, %v8130_v50  ;;  %11098 = vrcp.f32 %v7851_v11  ;;  %v7566_v25 = vpop.xlane.xlu0 %7565  ;;  %v11083_v39 = vpop.eup %11082  ;;  %v7858_v10 = vadd.f32 1.0, %v11081_v6  ;;  %v9015_v22 = vmul.f32 -1.442695, %v7551_v13 }
 0x775   : > { %11100 = vpow2.f32 %v9013_v17  ;;  %v8124_v48 = vrot.slane %v8123_v15, 1  ;;  %v7852_v14 = vadd.f32 1.0, %v11083_v39  ;;  %v9020_v16 = vmul.f32 -1.442695, %v7566_v25 }
 0x776   : > { %v11085_v61 = vpop.eup %11084  ;;  %11102 = vrcp.f32 %v7856_v29 }
 0x777   : > { %v8040_v34 = vmul.f32 %v11085_v61, %v14243_v0  ;;  %11104 = vpow2.f32 %v9012_v26  ;;  %v8125_v20 = vadd.f32 %v8124_v48, %v8123_v15  ;;  %v7554_v47 = vpop.xlane.xlu1 %7553 }
 0x778   : > { %11106 = vrcp.f32 %v7852_v14  ;;  %v7575_v42 = vpop.xlane.xlu0 %7574  ;;  %v9016_v3 = vmul.f32 -1.442695, %v7554_v47 }
 0x779   : > { %v11087_v18 = vpop.eup %11086  ;;  %v8133_v57 = vsel %vm6617_vm2, %v8040_v34, 0.0  ;;  %11108 = vpow2.f32 %v9014_v8  ;;  %v14869_v50 = vsel %vm8269_vm4, %v8125_v20, %v8104_v54  ;;  %v9023_v21 = vmul.f32 -1.442695, %v7575_v42 }
 0x77a   : > { %v11089_v59 = vpop.eup %11088  ;;  %v8134_v4 = vadd.f32 %v8133_v57, %v8132_v32  ;;  %v8041_v63 = vmul.f32 %v11087_v18, %v14246_v56  ;;  %11110 = vrcp.f32 %v7857_v58 }
 0x77b   : > { %v11091_v0 = vpop.eup %11090  ;;  %11112 = vrcp.f32 %v7858_v10  ;;  %v7557_v46 = vpop.xlane.xlu1 %7556  ;;  %v7859_v11 = vadd.f32 1.0, %v11089_v59 }
 0x77c   : > { %v8135_v38 = vsel %vm6617_vm2, %v8041_v63, 0.0  ;;  %v7855_v51 = vadd.f32 1.0, %v11091_v0  ;;  %11114 = vpow2.f32 %v9015_v22  ;;  %v7578_v17 = vpop.xlane.xlu0 %7577  ;;  %v9017_v56 = vmul.f32 -1.442695, %v7557_v46  ;;  %v16114_v46 = vld [vmem:[#allocation150_spill] sm:$0xff] }
 0x77d   : > { %v11093_v30 = vpop.eup %11092  ;;  %v8136_v29 = vadd.f32 %v8135_v38, %v8134_v4  ;;  %11116 = vpow2.f32 %v9020_v16  ;;  %v9024_v8 = vmul.f32 -1.442695, %v7578_v17 }
 0x77e   : > { %v8042_v5 = vmul.f32 %v11093_v30, %v14259_v33  ;;  %11118 = vrcp.f32 %v7855_v51  ;;  %v11095_v44 = vpop.eup %11094 }
 0x77f   : > { %11120 = vpow2.f32 %v9016_v3  ;;  %v11097_v26 = vpop.eup %11096  ;;  %v7560_v15 = vpop.xlane.xlu1 %7559  ;;  %v8045_v58 = vmul.f32 %v11095_v44, %v14278_v43 }
 0x780   : > { %v8137_v6 = vsel %vm6617_vm2, %v8042_v5, 0.0  ;;  %11122 = vpow2.f32 %v9023_v21  ;;  %v7581_v32 = vpop.xlane.xlu0 %7580  ;;  %v9018_v33 = vmul.f32 -1.442695, %v7560_v15  ;;  %v8046_v42 = vmul.f32 %v11097_v26, %v14291_v19 }
 0x781   : > { %v11099_v13 = vpop.eup %11098  ;;  %v8138_v25 = vadd.f32 %v8137_v6, %v8136_v29  ;;  %11124 = vrcp.f32 %v7859_v11  ;;  %v8148_v43 = vsel %vm6617_vm2, %v8045_v58, 0.0 }
 0x782   : > { %v11101_v39 = vpop.eup %11100  ;;  %v8043_v28 = vmul.f32 %v11099_v13, %v14262_v27  ;;  %11126 = vpow2.f32 %v9017_v56  ;;  %v9025_v27 = vmul.f32 -1.442695, %v7581_v32 }
 0x783   : > { %v11103_v61 = vpop.eup %11102  ;;  %v7569_v34 = vpop.xlane.xlu1 %7568  ;;  %11128 = vpow2.f32 %v9024_v8  ;;  %v7861_v21 = vadd.f32 1.0, %v11101_v39 }
 0x784   : > { %v11105_v48 = vpop.eup %11104  ;;  %v8139_v14 = vsel %vm6617_vm2, %v8043_v28, 0.0  ;;  %v7584_v10 = vpop.xlane.xlu0 %7583  ;;  %11130 = vpow2.f32 %v9018_v33  ;;  %v9021_v16 = vmul.f32 -1.442695, %v7569_v34  ;;  %v8048_v17 = vmul.f32 %v11103_v61, %v16114_v46 }
 0x785   : > { %v11107_v20 = vpop.eup %11106  ;;  %v8140_v22 = vadd.f32 %v8139_v14, %v8138_v25  ;;  %v7860_v30 = vadd.f32 1.0, %v11105_v48  ;;  %11132 = vpow2.f32 %v9025_v27 }
 0x786   : > { %v11109_v47 = vpop.eup %11108  ;;  %v8044_v18 = vmul.f32 %v11107_v20, %v14275_v45  ;;  %v8150_v45 = vsel %vm6617_vm2, %v8046_v42, 0.0  ;;  %11134 = vpow2.f32 %v9021_v16  ;;  %v8154_v58 = vsel %vm6617_vm2, %v8048_v17, 0.0 }
 0x787   : > { %v11111_v54 = vpop.eup %11110  ;;  %v8141_v57 = vrot.slane %v8140_v22, 4  ;;  %v7572_v63 = vpop.xlane.xlu1 %7571  ;;  %v7862_v56 = vadd.f32 1.0, %v11109_v47  ;;  %11136 = vrcp.f32 %v7861_v21 }
 0x788   : > { %v11113_v59 = vpop.eup %11112  ;;  %v8147_v4 = vsel %vm6617_vm2, %v8044_v18, 0.0  ;;  %v7590_v0 = vpop.xlane.xlu0 %7589  ;;  %v8049_v8 = vmul.f32 %v11111_v54, %v14310_v49  ;;  %11138 = vrcp.f32 %v7860_v30  ;;  %v9022_v33 = vmul.f32 -1.442695, %v7572_v63 }
 0x789   : > { %v11115_v3 = vpop.eup %11114  ;;  %v8142_v38 = vadd.f32 %v8141_v57, %v8140_v22  ;;  %v8149_v51 = vadd.f32 %v8148_v43, %v8147_v4  ;;  %11140 = vrcp.f32 %v7862_v56  ;;  %v8050_v20 = vmul.f32 %v11113_v59, %v14323_v41 }
 0x78a   : > { %v11117_v19 = vpop.eup %11116  ;;  %v7863_v6 = vadd.f32 1.0, %v11115_v3  ;;  %v9026_v49 = vmul.f32 -1.442695, %v7584_v10  ;;  %v8156_v27 = vsel %vm6617_vm2, %v8049_v8, 0.0  ;;  %v9028_v4 = vmul.f32 -1.442695, %v7590_v0 }
 0x78b   : > { %v11119_v29 = vpop.eup %11118  ;;  %v8143_v11 = vrot.slane %v8142_v38, 2  ;;  %v8151_v5 = vadd.f32 %v8150_v45, %v8149_v51  ;;  %v7593_v15 = vpop.xlane.xlu1 %7592  ;;  %v7868_v39 = vadd.f32 1.0, %v11117_v19  ;;  %v8158_v59 = vsel %vm6617_vm2, %v8050_v20, 0.0 }
 0x78c   : > { %v11121_v44 = vpop.eup %11120  ;;  %v8047_v26 = vmul.f32 %v11119_v29, %v14294_v37  ;;  %v7596_v32 = vpop.xlane.xlu0 %7595  ;;  %11142 = vrcp.f32 %v7863_v6  ;;  %v9029_v63 = vmul.f32 -1.442695, %v7593_v15 }
 0x78d   : > { %v11123_v13 = vpop.eup %11122  ;;  %v8144_v25 = vadd.f32 %v8143_v11, %v8142_v38  ;;  %v7864_v37 = vadd.f32 1.0, %v11121_v44  ;;  %11144 = vrcp.f32 %v7868_v39  ;;  %v9030_v21 = vmul.f32 -1.442695, %v7596_v32 }
 0x78e   : > { %v11125_v28 = vpop.eup %11124  ;;  %v8152_v61 = vsel %vm6617_vm2, %v8047_v26, 0.0  ;;  %v7871_v22 = vadd.f32 1.0, %v11123_v13  ;;  %11146 = vpow2.f32 %v9022_v33 }
 0x78f   : > { %v11127_v48 = vpop.eup %11126  ;;  %v8153_v14 = vadd.f32 %v8152_v61, %v8151_v5  ;;  %v8145_v34 = vrot.slane %v8144_v25, 1  ;;  %v14888_v47 = vpop.xlane.xlu1 %7607  ;;  %v8051_v54 = vmul.f32 %v11125_v28, %v14326_v31  ;;  %11148 = vrcp.f32 %v7864_v37 }
 0x790   : > { %v7599_v42 = vpop.xlane.xlu0 %7598  ;;  %v7865_v57 = vadd.f32 1.0, %v11127_v48  ;;  %v11129_v16 = vpop.eup %11128  ;;  %11150 = vrcp.f32 %v7871_v22 }
 0x791   : > { %v8155_v18 = vadd.f32 %v8154_v58, %v8153_v14  ;;  %v11131_v41 = vpop.eup %11130  ;;  %v8146_v51 = vadd.f32 %v8145_v34, %v8144_v25  ;;  %11152 = vpow2.f32 %v9026_v49  ;;  %v8160_v31 = vsel %vm6617_vm2, %v8051_v54, 0.0 }
 0x792   : > { %11154 = vrcp.f32 %v7865_v57  ;;  %v7872_v19 = vadd.f32 1.0, %v11129_v16  ;;  %v11133_v0 = vpop.eup %11132  ;;  %v7866_v17 = vadd.f32 1.0, %v11131_v41  ;;  %v9031_v29 = vmul.f32 -1.442695, %v7599_v42 }
 0x793   : > { %v8157_v43 = vadd.f32 %v8156_v27, %v8155_v18  ;;  %v7617_v38 = vpop.xlane.xlu1 %7616  ;;  %v14895_v45 = vsel %vm8271_vm5, %v8146_v51, %v14869_v50  ;;  %11156 = vpow2.f32 %v9028_v4  ;;  %v11135_v30 = vpop.eup %11134  ;;  %v7873_v26 = vadd.f32 1.0, %v11133_v0 }
 0x794   : > { %v7602_v3 = vpop.xlane.xlu0 %7601  ;;  %11158 = vpow2.f32 %v9029_v63  ;;  %v9037_v56 = vmul.f32 -1.442695, %v7617_v38  ;;  %v14897_v44 = vpop.eup %11136  ;;  %v7869_v50 = vadd.f32 1.0, %v11135_v30  ;;  %v9034_v41 = vmul.f32 -1.442695, %v14888_v47 }
 0x795   : > { %v8159_v10 = vadd.f32 %v8158_v59, %v8157_v43  ;;  %11160 = vpow2.f32 %v9030_v21  ;;  %v14899_v6 = vpop.eup %11138  ;;  %v9032_v33 = vmul.f32 -1.442695, %v7602_v3 }
 0x796   : > { %11162 = vrcp.f32 %v7872_v19  ;;  %v14901_v32 = vpop.eup %11140 }
 0x797   : > { %v8161_v46 = vadd.f32 %v8160_v31, %v8159_v10  ;;  %v7620_v5 = vpop.xlane.xlu1 %7619  ;;  %11164 = vrcp.f32 %v7866_v17 }
 0x798   : > { %v7605_v11 = vpop.xlane.xlu0 %7604  ;;  %11166 = vpow2.f32 %v9031_v29  ;;  %v9038_v13 = vmul.f32 -1.442695, %v7620_v5 }
 0x799   : > { %v8162_v15 = vrot.slane %v8161_v46, 4  ;;  %v14903_v28 = vpop.eup %11142  ;;  %11168 = vpow2.f32 %v9037_v56  ;;  %v9033_v34 = vmul.f32 -1.442695, %v7605_v11 }
 0x79a   : > { %v14905_v61 = vpop.eup %11144  ;;  %11170 = vrcp.f32 %v7873_v26 }
 0x79b   : > { %v7623_v25 = vpop.xlane.xlu1 %7622  ;;  %v8163_v48 = vadd.f32 %v8162_v15, %v8161_v46  ;;  %v11147_v58 = vpop.eup %11146  ;;  %11172 = vrcp.f32 %v7869_v50 }
 0x79c   : > { %v7614_v39 = vpop.xlane.xlu0 %7613  ;;  %v9039_v8 = vmul.f32 -1.442695, %v7623_v25  ;;  %v14907_v37 = vpop.eup %11148  ;;  %11174 = vpow2.f32 %v9038_v13  ;;  %v7870_v27 = vadd.f32 1.0, %v11147_v58  ;;  %v8053_v58 = vmul.f32 %v14897_v44, %v14342_v2 }
 0x79d   : > { %v9036_v14 = vmul.f32 -1.442695, %v7614_v39  ;;  %v8164_v42 = vrot.slane %v8163_v48, 2  ;;  %v14909_v18 = vpop.eup %11150 }
 0x79e   : > { %11176 = vpow2.f32 %v9039_v8  ;;  %v11153_v49 = vpop.eup %11152  ;;  %v8169_v2 = vsel %vm6617_vm2, %v8053_v58, 0.0  ;;  %v16115_v58 = vld [vmem:[#allocation75_spill] sm:$0xff] }
 0x79f   : > { %v7626_v20 = vpop.xlane.xlu1 %7625  ;;  %11178 = vpow2.f32 %v9032_v33  ;;  %v8165_v57 = vadd.f32 %v8164_v42, %v8163_v48  ;;  %v14911_v16 = vpop.eup %11154  ;;  %v7874_v51 = vadd.f32 1.0, %v11153_v49  ;;  %v8054_v49 = vmul.f32 %v14901_v32, %v14355_v7 }
 0x7a0   : > { %v7563_v22 = vpop.xlane.xlu0 %7562  ;;  %11180 = vpow2.f32 %v9036_v14  ;;  %v9040_v43 = vmul.f32 -1.442695, %v7626_v20  ;;  %v11157_v4 = vpop.eup %11156  ;;  %v8055_v32 = vmul.f32 %v14903_v28, %v14358_v53 }
 0x7a1   : > { %v9019_v54 = vmul.f32 -1.442695, %v7563_v22  ;;  %11182 = vpow2.f32 %v9033_v34  ;;  %v8166_v63 = vrot.slane %v8165_v57, 1  ;;  %v11159_v3 = vpop.eup %11158  ;;  %v7876_v31 = vadd.f32 1.0, %v11157_v4 }
 0x7a2   : > { %v11161_v38 = vpop.eup %11160  ;;  %v7877_v17 = vadd.f32 1.0, %v11159_v3  ;;  %v8052_v34 = vmul.f32 %v14899_v6, %v14339_v40  ;;  %v8171_v7 = vsel %vm6617_vm2, %v8054_v49, 0.0 }
 0x7a3   : > { %v7629_v59 = vpop.xlane.xlu1 %7628  ;;  %11184 = vpow2.f32 %v9019_v54  ;;  %v14914_v21 = vpop.eup %11162  ;;  %v8167_v0 = vadd.f32 %v8166_v63, %v8165_v57  ;;  %v7878_v30 = vadd.f32 1.0, %v11161_v38  ;;  %v8060_v38 = vmul.f32 %v14905_v61, %v14403_v12 }
 0x7a4   : > { %11186 = vrcp.f32 %v7870_v27  ;;  %v9041_v10 = vmul.f32 -1.442695, %v7629_v59  ;;  %v7587_v19 = vpop.xlane.xlu0 %7586  ;;  %v14916_v46 = vpop.eup %11164  ;;  %v8168_v40 = vsel %vm6617_vm2, %v8052_v34, 0.0  ;;  %v8173_v12 = vsel %vm6617_vm2, %v8055_v32, 0.0 }
 0x7a5   : > { %11188 = vpow2.f32 %v9040_v43  ;;  %v11167_v47 = vpop.eup %11166  ;;  %v9027_v11 = vmul.f32 -1.442695, %v7587_v19  ;;  %v14919_v56 = vsel %vm8273_vm6, %v8167_v0, %v14895_v45  ;;  %v8056_v19 = vmul.f32 %v14907_v37, %v16092_v23 }
 0x7a6   : > { %11190 = vpow2.f32 %v9034_v41  ;;  %v11169_v29 = vpop.eup %11168  ;;  %v7879_v13 = vadd.f32 1.0, %v11167_v47  ;;  %v8063_v23 = vmul.f32 %v14909_v18, %v14422_v9  ;;  %v8064_v9 = vmul.f32 %v14914_v21, %v16094_v24 }
 0x7a7   : > { %11192 = vpow2.f32 %v9041_v10  ;;  %v7632_v5 = vpop.xlane.xlu1 %7631  ;;  %v14921_v26 = vpop.eup %11170  ;;  %v7885_v50 = vadd.f32 1.0, %v11169_v29  ;;  %v8189_v29 = vsel %vm6617_vm2, %v8060_v38, 0.0  ;;  %v16120_v38 = vld [vmem:[#allocation78_spill] sm:$0xff] }
 0x7a8   : > { %11194 = vrcp.f32 %v7874_v51  ;;  %v11173_v15 = vpop.eup %11172  ;;  %v9042_v33 = vmul.f32 -1.442695, %v7632_v5  ;;  %v7611_v45 = vpop.xlane.xlu0 %7610  ;;  %v8175_v5 = vsel %vm6617_vm2, %v8056_v19, 0.0 }
 0x7a9   : > { %11196 = vrcp.f32 %v7876_v31  ;;  %v11175_v25 = vpop.eup %11174  ;;  %v9035_v57 = vmul.f32 -1.442695, %v7611_v45  ;;  %v8061_v6 = vmul.f32 %v11173_v15, %v16097_v36  ;;  %v8170_v36 = vadd.f32 %v8169_v2, %v8168_v40 }
 0x7aa   : > { %11198 = vrcp.f32 %v7877_v17  ;;  %v7886_v8 = vadd.f32 1.0, %v11175_v25 }
 0x7ab   : > { %11200 = vrcp.f32 %v7878_v30  ;;  %v11177_v39 = vpop.eup %11176  ;;  %v7635_v22 = vpop.xlane.xlu1 %7634  ;;  %v8190_v53 = vsel %vm6617_vm2, %v8061_v6, 0.0  ;;  %v8172_v47 = vadd.f32 %v8171_v7, %v8170_v36  ;;  %v16118_v6 = vld [vmem:[#allocation4_spill] sm:$0xff]  ;;  %v16119_v7 = vld [vmem:[#allocation6_spill] sm:$0xff] }
 0x7ac   : > { %11202 = vpow2.f32 %v9027_v11  ;;  %v11179_v48 = vpop.eup %11178  ;;  %v7887_v20 = vadd.f32 1.0, %v11177_v39  ;;  %v9043_v4 = vmul.f32 -1.442695, %v7635_v22  ;;  %v8191_v15 = vadd.f32 %v8190_v53, %v8189_v29  ;;  %v16122_v29 = vld [vmem:[#allocation82_spill] sm:$0xff] }
 0x7ad   : > { %11204 = vrcp.f32 %v7885_v50  ;;  %v11181_v14 = vpop.eup %11180  ;;  %v7880_v59 = vadd.f32 1.0, %v11179_v48  ;;  %v8058_v50 = vmul.f32 %v14916_v46, %v16095_v35  ;;  %v8194_v46 = vsel %vm6617_vm2, %v8063_v23, 0.0 }
 0x7ae   : > { %11206 = vrcp.f32 %v7879_v13  ;;  %v11183_v42 = vpop.eup %11182  ;;  %v7884_v27 = vadd.f32 1.0, %v11181_v14 }
 0x7af   : > { %11208 = vrcp.f32 %v7886_v8  ;;  %v7881_v10 = vadd.f32 1.0, %v11183_v42  ;;  %v8179_v14 = vsel %vm6617_vm2, %v8058_v50, 0.0  ;;  %v16116_v42 = vld [vmem:[#allocation76_spill] sm:$0xff] }
 0x7b0   : > { %v11185_v54 = vpop.eup %11184  ;;  %11210 = vpow2.f32 %v9042_v33 }
 0x7b1   : > { %v11187_v43 = vpop.eup %11186  ;;  %11212 = vrcp.f32 %v7884_v27  ;;  %v7867_v44 = vadd.f32 1.0, %v11185_v54  ;;  %v8196_v27 = vsel %vm6617_vm2, %v8064_v9, 0.0  ;;  %v16125_v9 = vld [vmem:[#allocation80_spill] sm:$0xff] }
 0x7b2   : > { %v11189_v41 = vpop.eup %11188  ;;  %11214 = vrcp.f32 %v7887_v20  ;;  %v8062_v51 = vmul.f32 %v11187_v43, %v16099_v1  ;;  %v8057_v1 = vmul.f32 %v14911_v16, %v16093_v60  ;;  %v8174_v60 = vadd.f32 %v8173_v12, %v8172_v47  ;;  %v16121_v47 = vld [vmem:[#allocation77_spill] sm:$0xff] }
 0x7b3   : > { %v11191_v63 = vpop.eup %11190  ;;  %11216 = vrcp.f32 %v7867_v44  ;;  %v7888_v0 = vadd.f32 1.0, %v11189_v41  ;;  %v16117_v44 = vld [vmem:[#allocation71_spill] sm:$0xff] }
 0x7b4   : > { %v11193_v3 = vpop.eup %11192  ;;  %11218 = vpow2.f32 %v9035_v57  ;;  %v8192_v37 = vsel %vm6617_vm2, %v8062_v51, 0.0  ;;  %v7882_v16 = vadd.f32 1.0, %v11191_v63  ;;  %v8177_v8 = vsel %vm6617_vm2, %v8057_v1, 0.0 }
 0x7b5   : > { %v14938_v31 = vpop.eup %11194  ;;  %11220 = vpow2.f32 %v9043_v4  ;;  %v7889_v61 = vadd.f32 1.0, %v11193_v3  ;;  %v8193_v18 = vadd.f32 %v8192_v37, %v8191_v15  ;;  %v8176_v48 = vadd.f32 %v8175_v5, %v8174_v60  ;;  %v16124_v15 = vld [vmem:[#allocation5_spill] sm:$0xff] }
 0x7b6   : > { %v11197_v17 = vpop.eup %11196  ;;  %11222 = vrcp.f32 %v7880_v59  ;;  %v8065_v4 = vmul.f32 %v14921_v26, %v16117_v44 }
 0x7b7   : > { %v11199_v28 = vpop.eup %11198  ;;  %11224 = vrcp.f32 %v7881_v10  ;;  %v8178_v22 = vadd.f32 %v8177_v8, %v8176_v48  ;;  %v8068_v49 = vmul.f32 %v11197_v17, %v16116_v42  ;;  %v8195_v54 = vadd.f32 %v8194_v46, %v8193_v18 }
 0x7b8   : > { %v11201_v30 = vpop.eup %11200  ;;  %11226 = vrcp.f32 %v7888_v0  ;;  %v8069_v45 = vmul.f32 %v11199_v28, %v16115_v58  ;;  %v8198_v28 = vsel %vm6617_vm2, %v8065_v4, 0.0  ;;  %v16126_v58 = vld [vmem:[#allocation81_spill] sm:$0xff] }
 0x7b9   : > { %v11203_v11 = vpop.eup %11202  ;;  %11228 = vrcp.f32 %v7889_v61  ;;  %v8180_v2 = vadd.f32 %v8179_v14, %v8178_v22  ;;  %v8070_v51 = vmul.f32 %v11201_v30, %v16120_v38  ;;  %v8197_v19 = vadd.f32 %v8196_v27, %v8195_v54 }
 0x7ba   : > { %v11205_v13 = vpop.eup %11204  ;;  %v7875_v25 = vadd.f32 1.0, %v11203_v11  ;;  %v8211_v41 = vsel %vm6617_vm2, %v8069_v45, 0.0  ;;  %v16123_v11 = vld [vmem:[#allocation74_spill] sm:$0xff] }
 0x7bb   : > { %v11207_v39 = vpop.eup %11206  ;;  %v8077_v34 = vmul.f32 %v11205_v13, %v16104_v62  ;;  %v8066_v5 = vmul.f32 %v14938_v31, %v16123_v11  ;;  %v8213_v50 = vsel %vm6617_vm2, %v8070_v51, 0.0 }
 0x7bc   : > { %v11209_v33 = vpop.eup %11208  ;;  %11230 = vrcp.f32 %v7875_v25  ;;  %v8071_v12 = vmul.f32 %v11207_v39, %v16121_v47  ;;  %v8199_v25 = vadd.f32 %v8198_v28, %v8197_v19  ;;  %v16131_v19 = vld [vmem:[#allocation2_spill] sm:$0xff] }
 0x7bd   : > { %v11211_v35 = vpop.eup %11210  ;;  %11232 = vrcp.f32 %v7882_v16  ;;  %v8232_v40 = vsel %vm6617_vm2, %v8077_v34, 0.0  ;;  %v8078_v59 = vmul.f32 %v11209_v33, %v16118_v6  ;;  %v8200_v31 = vsel %vm6617_vm2, %v8066_v5, 0.0  ;;  %v16127_v34 = vld [vmem:[#allocation73_spill] sm:$0xff]  ;;  %v16130_v6 = vld [vmem:[#allocation83_spill] sm:$0xff] }
 0x7be   : > { %v11213_v20 = vpop.eup %11212  ;;  %v7890_v24 = vadd.f32 1.0, %v11211_v35  ;;  %v8215_v8 = vsel %vm6617_vm2, %v8071_v12, 0.0 }
 0x7bf   : > { %v11215_v21 = vpop.eup %11214  ;;  %v8076_v57 = vmul.f32 %v11213_v20, %v16106_v52  ;;  %v8210_v52 = vsel %vm6617_vm2, %v8068_v49, 0.0  ;;  %v8234_v61 = vsel %vm6617_vm2, %v8078_v59, 0.0  ;;  %v16128_v49 = vld [vmem:[#allocation84_spill] sm:$0xff] }
 0x7c0   : > { %v11217_v43 = vpop.eup %11216  ;;  %11234 = vrcp.f32 %v7890_v24  ;;  %v8212_v0 = vadd.f32 %v8211_v41, %v8210_v52  ;;  %v8079_v23 = vmul.f32 %v11215_v21, %v16122_v29  ;;  %v8201_v21 = vadd.f32 %v8200_v31, %v8199_v25  ;;  %v16129_v41 = vld [vmem:[#allocation58_spill] sm:$0xff] }
 0x7c1   : > { %v11219_v62 = vpop.eup %11218  ;;  %v8231_v63 = vsel %vm6617_vm2, %v8076_v57, 0.0  ;;  %v8059_v32 = vmul.f32 %v11217_v43, %v16119_v7 }
 0x7c2   : > { %v11221_v3 = vpop.eup %11220  ;;  %v8233_v10 = vadd.f32 %v8232_v40, %v8231_v63  ;;  %v7883_v36 = vadd.f32 1.0, %v11219_v62  ;;  %v8214_v16 = vadd.f32 %v8213_v50, %v8212_v0  ;;  %v8236_v48 = vsel %vm6617_vm2, %v8079_v23, 0.0 }
 0x7c3   : > { %v11223_v26 = vpop.eup %11222  ;;  %v8181_v17 = vsel %vm6617_vm2, %v8059_v32, 0.0  ;;  %v7891_v53 = vadd.f32 1.0, %v11221_v3 }
 0x7c4   : > { %11236 = vrcp.f32 %v7883_v36  ;;  %v11225_v1 = vpop.eup %11224  ;;  %v8182_v37 = vadd.f32 %v8181_v17, %v8180_v2  ;;  %v8072_v13 = vmul.f32 %v11223_v26, %v16124_v15  ;;  %v8235_v60 = vadd.f32 %v8234_v61, %v8233_v10 }
 0x7c5   : > { %11238 = vrcp.f32 %v7891_v53  ;;  %v11227_v30 = vpop.eup %11226  ;;  %v8073_v18 = vmul.f32 %v11225_v1, %v16125_v9  ;;  %v8216_v42 = vadd.f32 %v8215_v8, %v8214_v16  ;;  %v16132_v53 = vld [vmem:[#allocation86_spill] sm:$0xff] }
 0x7c6   : > { %v11229_v39 = vpop.eup %11228  ;;  %v8080_v45 = vmul.f32 %v11227_v30, %v16126_v58  ;;  %v8183_v35 = vrot.slane %v8182_v37, 4  ;;  %v8217_v46 = vsel %vm6617_vm2, %v8072_v13, 0.0  ;;  %v8237_v14 = vadd.f32 %v8236_v48, %v8235_v60 }
 0x7c7   : > { %v8081_v24 = vmul.f32 %v11229_v39, %v16128_v49  ;;  %v8219_v27 = vsel %vm6617_vm2, %v8073_v18, 0.0  ;;  %v8218_v43 = vadd.f32 %v8217_v46, %v8216_v42 }
 0x7c8   : > { %v8238_v2 = vsel %vm6617_vm2, %v8080_v45, 0.0  ;;  %v8184_v44 = vadd.f32 %v8183_v35, %v8182_v37 }
 0x7c9   : > { %v11231_v33 = vpop.eup %11230  ;;  %v8239_v40 = vadd.f32 %v8238_v2, %v8237_v14  ;;  %v8220_v63 = vadd.f32 %v8219_v27, %v8218_v43  ;;  %v8240_v7 = vsel %vm6617_vm2, %v8081_v24, 0.0 }
 0x7ca   : > { %v8067_v20 = vmul.f32 %v11231_v33, %v16127_v34  ;;  %v11233_v22 = vpop.eup %11232  ;;  %v8185_v52 = vrot.slane %v8184_v44, 2  ;;  %v8357_v34 = vld [vmem:[%s15041_s11 + $0x8] sm:$0xff] }
 0x7cb   : > { %v8074_v62 = vmul.f32 %v11233_v22, %v16129_v41  ;;  %v8241_v26 = vadd.f32 %v8240_v7, %v8239_v40 }
 0x7cc   : > { %v8202_v54 = vsel %vm6617_vm2, %v8067_v20, 0.0  ;;  %v8186_v23 = vadd.f32 %v8185_v52, %v8184_v44  ;;  %v8356_v20 = vld [vmem:[%s15041_s11] sm:$0xff] }
 0x7cd   : > { %v11235_v57 = vpop.eup %11234  ;;  %v8203_v4 = vadd.f32 %v8202_v54, %v8201_v21  ;;  %v8221_v36 = vsel %vm6617_vm2, %v8074_v62, 0.0  ;;  %v9046_v21 = vld [vmem:[%s15042_s12] ss:$0 sm:$0xff] }
 0x7ce   : > { %v8082_v59 = vmul.f32 %v11235_v57, %v16130_v6  ;;  %v8222_v17 = vadd.f32 %v8221_v36, %v8220_v63  ;;  %v8187_v50 = vrot.slane %v8186_v23, 1 }
 0x7cf   : > { %v8204_v32 = vrot.slane %v8203_v4, 4 }
 0x7d0   : > { %v8242_v51 = vsel %vm6617_vm2, %v8082_v59, 0.0  ;;  %v8188_v39 = vadd.f32 %v8187_v50, %v8186_v23 }
 0x7d1   : > { %v11237_v3 = vpop.eup %11236  ;;  %v8205_v38 = vadd.f32 %v8204_v32, %v8203_v4  ;;  %v8243_v12 = vadd.f32 %v8242_v51, %v8241_v26 }
 0x7d2   : > { %v11239_v10 = vpop.eup %11238  ;;  %v8075_v0 = vmul.f32 %v11237_v3, %v16131_v19  ;;  %v8276_v45 = vsel %vm8275_vm7, %v8188_v39, %v14919_v56  ;;  %v9044_v56 = vld [vmem:[%s15040_s10] ss:$0 sm:$0xff] }
 0x7d3   : > { %v8083_v28 = vmul.f32 %v11239_v10, %v16132_v53  ;;  %v8206_v47 = vrot.slane %v8205_v38, 2 }
 0x7d4   : > { %v8223_v1 = vsel %vm6617_vm2, %v8075_v0, 0.0 }
 0x7d5   : > { %v8224_v61 = vadd.f32 %v8223_v1, %v8222_v17  ;;  %v8244_v29 = vsel %vm6617_vm2, %v8083_v28, 0.0  ;;  %v8207_v30 = vadd.f32 %v8206_v47, %v8205_v38 }
 0x7d6   : > { %v8245_v37 = vadd.f32 %v8244_v29, %v8243_v12 }
 0x7d7   : > { %v8225_v11 = vrot.slane %v8224_v61, 4  ;;  %v8208_v13 = vrot.slane %v8207_v30, 1 }
 0x7d8   : > { %v8246_v5 = vrot.slane %v8245_v37, 4 }
 0x7d9   : > { %v8226_v15 = vadd.f32 %v8225_v11, %v8224_v61  ;;  %v8209_v9 = vadd.f32 %v8208_v13, %v8207_v30 }
 0x7da   : > { %v8247_v60 = vadd.f32 %v8246_v5, %v8245_v37 }
 0x7db   : > { %v8227_v16 = vrot.slane %v8226_v15, 2  ;;  %v8278_v31 = vsel %vm8277_vm8, %v8209_v9, %v8276_v45 }
 0x7dc   : > { %v8248_v25 = vrot.slane %v8247_v60, 2 }
 0x7dd   : > { %v8228_v8 = vadd.f32 %v8227_v16, %v8226_v15 }
 0x7de   : > { %v8249_v18 = vadd.f32 %v8248_v25, %v8247_v60 }
 0x7df   : > { %v8229_v33 = vrot.slane %v8228_v8, 1 }
 0x7e0   : > { %v8250_v48 = vrot.slane %v8249_v18, 1 }
 0x7e1   : > { %v8230_v58 = vadd.f32 %v8229_v33, %v8228_v8 }
 0x7e2   : > { %v8251_v35 = vadd.f32 %v8250_v48, %v8249_v18 }
 0x7e3   : > { %v8280_v46 = vsel %vm8279_vm9, %v8230_v58, %v8278_v31 }
 0x7e4   : > { %v8282_v14 = vsel %vm8281_vm10, %v8251_v35, %v8280_v46 }
 0x7e5   : > { %10813 = vmatmul.mubr.msk.f32.vlgmr.msra.gmra.mxu1 %vm6617_vm2, %v8282_v14 }
 0x7e6   : > { %10819 = vmatprep.mubr.msk.f32.mxu1 %vm11435_vm3, %v11434_v55  ;;  %10816 = vmatpush3.msra.mxu1 %v8357_v34 }
 0x7e7   : > { %10817 = vmatprep.subr.mxu1 %v11434_v55 }
 0x7e8   : > { %10818 = vmatpush3.msra.mxu1 %v8356_v20 }
 0x8a5   : > { %v8351_v22 = vpop.f32.mrf.mxu1 }
 0x8a6   : > { %v8352_v42 = vadd.f32 %v9044_v56, %v8351_v22 }
 0x8a7   : > { %v10814_v49 = vpop.f32.mrf.mxu1 }
 0x8a8   : > { %v8355_v24 = vmax.f32 %v8352_v42, 0.0 }
 0x8aa   : > { %10820 = vmatmul.mubr.msk.f32.vlgmr.msra.gmra.mxu1 %vm6617_vm2, %v8355_v24 }
 0x96a   : > { %v8434_v27 = vpop.f32.mrf.mxu1 }
 0x96b   : > { %v8435_v55 = vadd.f32 %v9046_v21, %v8434_v27 }
 0x96c   : > { %v10821_v54 = vpop.f32.mrf.mxu1 }
 0x96d   : > { %v8439_v57 = vsel %vm8438_vm11, %v8435_v55, -inf }
 0x96e   : > { %8440 = vmax.xlane.f32.xlu0 %v8439_v57 }
 0x9f7   : > { %v8441_v43 = vpop.xlane.xlu0 %8440 }
 0x9f8   : > { %v8442_v2 = vsub.f32 %v8435_v55, %v8441_v43 }
 0x9fa   : > { %v8443_v44 = vmul.f32 1.442695, %v8442_v2 }
 0x9fc   : > { %11240 = vpow2.f32 %v8443_v44 }
 0xa09   : > { %v11241_v4 = vpop.eup %11240 }
 0xa0a   : > { %v8445_v41 = vsel %vm8438_vm11, %v11241_v4, 0.0 }
 0xa0b   : > { %8446 = vadd.xlane.f32.xlu1 %v8445_v41 }
 0xa94   : > { %v8447_v62 = vpop.xlane.xlu1 %8446 }
 0xa95   : > { %11242 = vlog2.f32 %v8447_v62 }
 0xaa2   : > { %v11243_v40 = vpop.eup %11242 }
 0xaa3   : > { %v8449_v6 = vmul.f32 0.6931472, %v11243_v40 }
 0xaa5   : > { %v8450_v59 = vsub.f32 %v8442_v2, %v8449_v6 }
 0xaa7   : > { %8451 = vst.msk [vmem:[%s468_s14] sm:$0xff] %vm8438_vm11, %v8450_v59 }
 0xaa8 PF: > { %s23_s25 = sadd.s32 1, %s11432_s25  }
 0xaa9   : > { %p20_p5 = scmp.ge.s32.totalorder %s23_s25, 4  }
 0xaab   :  { %22 = sbr.rel (!%p20_p5) target bundleno = 1 (0x1), region = 105 }

</bundles_post_ra>
